<compile_context>
chip_gen: v6e
topology: v6e:2x2x1
jax: 0.10.0
libtpu: 0.0.40
codegen_flags: <defaults>
</compile_context>

<pallas_src>
import functools
import math

import jax
import jax.numpy as jnp
from jax.experimental import pallas as pl
from jax.experimental.pallas import tpu as pltpu

_NEG_INF = -1e30
_COMPUTE_DTYPE = jnp.bfloat16


def _round_up(x, m):
    return (x + m - 1) // m * m


def _pad2(x, mp, np_):
    m, n = x.shape
    if m == mp and n == np_:
        return x
    return jnp.pad(x, ((0, mp - m), (0, np_ - n)))


@functools.lru_cache(maxsize=None)
def _vmem_limit_bytes():
    # v5e/v6e: 128 MiB physical -> 96 MiB budget; v7x: 64 MiB/TC -> 48 MiB budget.
    try:
        cap = getattr(pltpu.get_tpu_info(), "vmem_capacity_bytes", None)
    except Exception:  # not on TPU / older runtime
        cap = None
    if cap is None:
        return 48 * 1024 * 1024
    return int(min(cap * 3 // 4, 96 * 1024 * 1024))


def _cparams(semantics):
    return pltpu.CompilerParams(dimension_semantics=semantics,
                                vmem_limit_bytes=_vmem_limit_bytes())


# ----------------------------------------------------------------------------
# Tiled matmul with fused LayerNorm prologue and bias/activation/residual epilogue
# ----------------------------------------------------------------------------

def _linear_kernel(*refs, activation, has_residual, has_ln, ln_eps):
    x_ref, w_ref, b_ref = refs[0], refs[1], refs[2]
    idx = 3
    if has_ln:
        g_ref, beta_ref = refs[3], refs[4]
        idx = 5
    if has_residual:
        r_ref = refs[idx]
        idx += 1
    o_ref, acc_ref = refs[idx], refs[idx + 1]

    k = pl.program_id(2)

    @pl.when(k == 0)
    def _init():
        acc_ref[...] = jnp.zeros_like(acc_ref)

    x = x_ref[...]
    if has_ln:
        # Fused LayerNorm prologue (the wrapper guarantees the full feature dim
        # lives in this single K tile, unpadded).  LN math in f32, matmul in bf16.
        xf = x.astype(jnp.float32)
        mu = jnp.mean(xf, axis=-1, keepdims=True)
        var = jnp.mean(jnp.square(xf - mu), axis=-1, keepdims=True)
        xf = (xf - mu) * jax.lax.rsqrt(var + ln_eps)
        xf = xf * g_ref[...].astype(jnp.float32) + beta_ref[...].astype(jnp.float32)
        x = xf.astype(x_ref.dtype)

    acc_ref[...] += jnp.dot(x, w_ref[...], preferred_element_type=jnp.float32)

    @pl.when(k == pl.num_programs(2) - 1)
    def _finalize():
        y = acc_ref[...] + b_ref[...].astype(jnp.float32)
        if activation == "relu":
            y = jnp.maximum(y, 0.0)
        elif activation == "gelu":  # tanh-approx GELU (SigLIP MLP), f32 epilogue
            y = 0.5 * y * (1.0 + jnp.tanh(0.7978845608028654 *
                                          (y + 0.044715 * y * y * y)))
        if has_residual:
            y = y + r_ref[...].astype(jnp.float32)
        o_ref[...] = y.astype(o_ref.dtype)


def linear(x, w, b, activation="none", residual=None, ln=None, ln_eps=1e-6,
           out_dtype=_COMPUTE_DTYPE, tm=256, tk=1024, tn=512):
    """y = act(LN?(x) @ w + b) (+ residual).  x:(M,K) w:(K,N) b:(1,N) residual:(M,N)."""
    M, K = x.shape
    N = w.shape[1]
    x = x.astype(_COMPUTE_DTYPE)                  # no-op when already bf16
    if residual is not None:
        residual = residual.astype(_COMPUTE_DTYPE)

    tm_ = M if M <= tm else tm                    # full dim or 8-aligned tile
    tn_ = N if N <= tn else tn
    # Fused LN normalizes over the whole feature dim -> it must be a single K tile.
    tk_ = K if (ln is not None or K <= tk) else tk
    Mp, Kp, Np = _round_up(M, tm_), _round_up(K, tk_), _round_up(N, tn_)

    xp = _pad2(x, Mp, Kp)                         # activations only; weights are
    wp = _pad2(w, Kp, Np)                         # pre-cast/aligned so these are no-ops
    bp = _pad2(b, 1, Np)

    in_specs = [
        pl.BlockSpec((tm_, tk_), lambda i, j, k: (i, k)),
        pl.BlockSpec((tk_, tn_), lambda i, j, k: (k, j)),
        pl.BlockSpec((1, tn_), lambda i, j, k: (0, j)),
    ]
    args = [xp, wp, bp]
    if ln is not None:
        g, beta = ln
        args += [g, beta]
        in_specs += [pl.BlockSpec((1, tk_), lambda i, j, k: (0, k)),
                     pl.BlockSpec((1, tk_), lambda i, j, k: (0, k))]
    if residual is not None:
        args.append(_pad2(residual, Mp, Np))
        in_specs.append(pl.BlockSpec((tm_, tn_), lambda i, j, k: (i, j)))

    bytes_acc = sum(int(a.size) * a.dtype.itemsize for a in args) \
        + Mp * Np * jnp.dtype(out_dtype).itemsize
    cost = pl.CostEstimate(flops=2 * Mp * Np * Kp,
                           transcendentals=Mp * Np if activation == "gelu" else 0,
                           bytes_accessed=int(bytes_acc))

    out = pl.pallas_call(
        functools.partial(_linear_kernel, activation=activation,
                          has_residual=residual is not None,
                          has_ln=ln is not None, ln_eps=ln_eps),
        grid=(Mp // tm_, Np // tn_, Kp // tk_),
        in_specs=in_specs,
        out_specs=pl.BlockSpec((tm_, tn_), lambda i, j, k: (i, j)),
        out_shape=jax.ShapeDtypeStruct((Mp, Np), out_dtype),
        scratch_shapes=[pltpu.VMEM((tm_, tn_), jnp.float32)],
        compiler_params=_cparams(("parallel", "parallel", "arbitrary")),
        cost_estimate=cost,
    )(*args)
    if Mp != M or Np != N:
        out = out[:M, :N]
    return out


# ----------------------------------------------------------------------------
# Flash-style attention: heads stay packed along E, lane-dense (tq, E) output
# ----------------------------------------------------------------------------

def _flash_kernel(q_ref, k_ref, v_ref, o_ref, m_sc, l_sc, acc_sc, *,
                  kv_len, tk, num_heads, head_dim):
    ki = pl.program_id(2)

    @pl.when(ki == 0)
    def _init():
        m_sc[...] = jnp.full_like(m_sc, _NEG_INF)
        l_sc[...] = jnp.zeros_like(l_sc)
        acc_sc[...] = jnp.zeros_like(acc_sc)

    q = q_ref[0]                         # (tq, E) bf16; 1/sqrt(Dh) folded into Wq
    k = k_ref[0]                         # (tk, E) bf16
    v = v_ref[0]                         # (tk, E) bf16
    tq = q.shape[0]
    col = ki * tk + jax.lax.broadcasted_iota(jnp.int32, (tq, tk), 1)
    valid = col < kv_len                 # mask padded keys

    # All heads of one batch element per grid step; static lane slices replace the
    # old plain-JAX (B,H,T,Dh) transposes.
    for h in range(num_heads):
        sl = slice(h * head_dim, (h + 1) * head_dim)
        s = jax.lax.dot_general(q[:, sl], k[:, sl], (((1,), (1,)), ((), ())),
                                preferred_element_type=jnp.float32)
        s = jnp.where(valid, s, _NEG_INF)
        m_prev = m_sc[h]
        m_new = jnp.maximum(m_prev, jnp.max(s, axis=-1, keepdims=True))
        alpha = jnp.exp(m_prev - m_new)
        p = jnp.exp(s - m_new)
        l_sc[h] = alpha * l_sc[h] + jnp.sum(p, axis=-1, keepdims=True)
        acc_sc[h] = alpha * acc_sc[h] + jnp.dot(
            p.astype(v.dtype), v[:, sl], preferred_element_type=jnp.float32)
        m_sc[h] = m_new

    @pl.when(ki == pl.num_programs(2) - 1)
    def _finalize():
        # NOTE: a fully masked K tile would corrupt the accumulator; padding via
        # round_up guarantees the last tile always keeps >= 1 valid key.
        outs = [acc_sc[h] * pl.reciprocal(l_sc[h], approx=True)
                for h in range(num_heads)]
        o_ref[0] = jnp.concatenate(outs, axis=-1).astype(o_ref.dtype)


def attention(q, k, v, num_heads, tq=256, tk=256, out_dtype=_COMPUTE_DTYPE):
    """q: (B, Tq, E), k/v: (B, Tk, E) -> (B, Tq, E); heads packed along E."""
    B, Tq, E = q.shape
    Tk = k.shape[1]
    Dh = E // num_heads
    tq_ = Tq if Tq <= tq else tq
    tk_ = Tk if Tk <= tk else tk
    Tqp, Tkp = _round_up(Tq, tq_), _round_up(Tk, tk_)

    q = q.astype(_COMPUTE_DTYPE)
    k = k.astype(_COMPUTE_DTYPE)
    v = v.astype(_COMPUTE_DTYPE)
    if Tqp != Tq:
        q = jnp.pad(q, ((0, 0), (0, Tqp - Tq), (0, 0)))
    if Tkp != Tk:
        k = jnp.pad(k, ((0, 0), (0, Tkp - Tk), (0, 0)))
        v = jnp.pad(v, ((0, 0), (0, Tkp - Tk), (0, 0)))

    out = pl.pallas_call(
        functools.partial(_flash_kernel, kv_len=Tk, tk=tk_,
                          num_heads=num_heads, head_dim=Dh),
        grid=(B, Tqp // tq_, Tkp // tk_),
        in_specs=[pl.BlockSpec((1, tq_, E), lambda b, qi, ki: (b, qi, 0)),
                  pl.BlockSpec((1, tk_, E), lambda b, qi, ki: (b, ki, 0)),
                  pl.BlockSpec((1, tk_, E), lambda b, qi, ki: (b, ki, 0))],
        out_specs=pl.BlockSpec((1, tq_, E), lambda b, qi, ki: (b, qi, 0)),
        out_shape=jax.ShapeDtypeStruct((B, Tqp, E), out_dtype),
        scratch_shapes=[pltpu.VMEM((num_heads, tq_, 1), jnp.float32),
                        pltpu.VMEM((num_heads, tq_, 1), jnp.float32),
                        pltpu.VMEM((num_heads, tq_, Dh), jnp.float32)],
        compiler_params=_cparams(("parallel", "parallel", "arbitrary")),
    )(q, k, v)
    if Tqp != Tq:
        out = out[:, :Tq, :]
    return out


# ----------------------------------------------------------------------------
# Standalone tiled LayerNorm (decoder post-LN, vision final norm)
# ----------------------------------------------------------------------------

def _ln_kernel(x_ref, g_ref, b_ref, o_ref, *, eps):
    x = x_ref[...].astype(jnp.float32)
    mu = jnp.mean(x, axis=-1, keepdims=True)
    var = jnp.mean(jnp.square(x - mu), axis=-1, keepdims=True)
    y = (x - mu) * jax.lax.rsqrt(var + eps)
    o_ref[...] = (y * g_ref[...] + b_ref[...]).astype(o_ref.dtype)


def layer_norm(x, g, b, eps=1e-5, tm=256, out_dtype=_COMPUTE_DTYPE):
    M, D = x.shape
    tm_ = M if M <= tm else tm
    Mp = _round_up(M, tm_)
    xp = _pad2(x, Mp, D)
    out = pl.pallas_call(
        functools.partial(_ln_kernel, eps=eps),
        grid=(Mp // tm_,),
        in_specs=[pl.BlockSpec((tm_, D), lambda i: (i, 0)),
                  pl.BlockSpec((1, D), lambda i: (0, 0)),
                  pl.BlockSpec((1, D), lambda i: (0, 0))],
        out_specs=pl.BlockSpec((tm_, D), lambda i: (i, 0)),
        out_shape=jax.ShapeDtypeStruct((Mp, D), out_dtype),
        compiler_params=_cparams(("parallel",)),
    )(xp, g, b)
    if Mp != M:
        out = out[:M]
    return out


# ----------------------------------------------------------------------------
# Model pieces built from the kernels
# ----------------------------------------------------------------------------

def mha(q_in, kv_in, p, num_heads, residual, ln=None, ln_eps=1e-5):
    """Multi-head attention (batch-first). QKV fused; heads stay packed along E
    (no transposes); residual fused into the output-projection epilogue; `ln`
    (pre-LN blocks only) fused into the Q/QKV projection prologue."""
    B, Tq, E = q_in.shape
    Tk = kv_in.shape[1]

    if "wqkv" in p:                          # self-attention: fused (E, 3E) projection
        qkv = linear(q_in.reshape(B * Tq, E), p["wqkv"], p["bqkv"],
                     ln=ln, ln_eps=ln_eps).reshape(B, Tq, 3 * E)
        # TODO(synk): the q/k/v column splits stay as plain-JAX slices; splitting
        # via BlockSpec column indexing needs E to be 128-aligned.
        q, k, v = qkv[..., :E], qkv[..., E:2 * E], qkv[..., 2 * E:]
    else:                                    # cross-attention: q proj + fused (E,2E) kv
        q = linear(q_in.reshape(B * Tq, E), p["wq"], p["bq"],
                   ln=ln, ln_eps=ln_eps).reshape(B, Tq, E)
        kv = linear(kv_in.reshape(B * Tk, E), p["wkv"], p["bkv"]).reshape(B, Tk, 2 * E)
        k, v = kv[..., :E], kv[..., E:]

    o = attention(q, k, v, num_heads=num_heads)
    out = linear(o.reshape(B * Tq, E), p["wo"], p["bo"],
                 residual=residual.reshape(B * Tq, E))
    return out.reshape(B, Tq, E)


def siglip_vision_encoder(pixel_values, params, cfg):
    """ViT/SigLIP-style encoder: patch conv (as matmul) + pos emb + pre-LN blocks + post-LN."""
    B, C, H, W = pixel_values.shape
    ph = cfg["patch_size"]
    nh, nw = H // ph, W // ph
    P = nh * nw
    E = cfg["hidden_size"]

    patches = pixel_values.reshape(B, C, nh, ph, nw, ph)
    patches = patches.transpose(0, 2, 4, 1, 3, 5).reshape(B * P, C * ph * ph)
    pos = jnp.broadcast_to(params["pos_emb"][None], (B, P, E)).reshape(B * P, E)
    x = linear(patches, params["patch_w"], params["patch_b"],
               residual=pos).reshape(B, P, E)

    for lp in params["layers"]:
        r = x
        # pre-LN: LN1 fused into the QKV projection prologue
        x = mha(x, x, lp["attn"], cfg["num_heads"], residual=r,
                ln=(lp["ln1_g"], lp["ln1_b"]), ln_eps=1e-6)
        r2d = x.reshape(B * P, E)
        # pre-LN: LN2 fused into the fc1 prologue
        h = linear(r2d, lp["fc1_w"], lp["fc1_b"], activation="gelu",
                   ln=(lp["ln2_g"], lp["ln2_b"]), ln_eps=1e-6)
        x = linear(h, lp["fc2_w"], lp["fc2_b"], residual=r2d).reshape(B, P, E)

    x = layer_norm(x.reshape(B * P, E), params["post_ln_g"], params["post_ln_b"],
                   eps=1e-6)
    return x.reshape(B, P, E)


def transformer_decoder(tgt, memory, params, cfg):
    """nn.TransformerDecoder (post-LN layers, ReLU FFN, no masks, no final norm).
    Post-LN outputs feed residuals too, so decoder LNs stay standalone kernels."""
    B, T, E = tgt.shape
    x = tgt
    for lp in params["layers"]:
        sa = mha(x, x, lp["self_attn"], cfg["num_heads"], residual=x)       # x + SA(x)
        x = layer_norm(sa.reshape(B * T, E), lp["ln1_g"], lp["ln1_b"]).reshape(B, T, E)
        ca = mha(x, memory, lp["cross_attn"], cfg["num_heads"], residual=x)
        x = layer_norm(ca.reshape(B * T, E), lp["ln2_g"], lp["ln2_b"]).reshape(B, T, E)
        x2d = x.reshape(B * T, E)
        h = linear(x2d, lp["fc1_w"], lp["fc1_b"], activation="relu")
        h = linear(h, lp["fc2_w"], lp["fc2_b"], residual=x2d)
        x = layer_norm(h, lp["ln3_g"], lp["ln3_b"]).reshape(B, T, E)
    return x


def vlm_forward(params, pixel_values, input_ids, vcfg, tcfg):
    vision_features = siglip_vision_encoder(pixel_values, params["vision"], vcfg)
    # TODO(synk): embedding gather stays as plain-JAX jnp.take (glue, not a kernel).
    emb = jnp.take(params["token_embedding"], input_ids, axis=0)  # (B, T, E) bf16
    dec = transformer_decoder(emb, vision_features, params["decoder"], tcfg)
    B, T, E = dec.shape
    logits = linear(dec.reshape(B * T, E), params["fc_out_w"], params["fc_out_b"],
                    out_dtype=jnp.float32, tn=1024)   # stream vocab axis; f32 logits
    return logits.reshape(B, T, tcfg["vocab_size"])


# ----------------------------------------------------------------------------
# Parameter init (f32, PyTorch-like) + one-time prepare (bf16 cast, scale folding)
# ----------------------------------------------------------------------------

def init_params(key, vcfg, tcfg):
    keys = iter(jax.random.split(key, 1024))

    def lin(fan_in, fan_out):
        w = jax.random.normal(next(keys), (fan_in, fan_out), jnp.float32) * 0.02
        b = jax.random.normal(next(keys), (1, fan_out), jnp.float32) * 0.02
        return w, b

    def mha_self_p(E):   # packed in_proj, like nn.MultiheadAttention
        wqkv, bqkv = lin(E, 3 * E)
        wo, bo = lin(E, E)
        return dict(wqkv=wqkv, bqkv=bqkv, wo=wo, bo=bo)

    def mha_cross_p(E):
        wq, bq = lin(E, E)
        wkv, bkv = lin(E, 2 * E)
        wo, bo = lin(E, E)
        return dict(wq=wq, bq=bq, wkv=wkv, bkv=bkv, wo=wo, bo=bo)

    def ln_p(E):
        return jnp.ones((1, E), jnp.float32), jnp.zeros((1, E), jnp.float32)

    Ev = vcfg["hidden_size"]
    C, ph = vcfg["num_channels"], vcfg["patch_size"]
    P = (vcfg["image_size"] // ph) ** 2

    vision_layers = []
    for _ in range(vcfg["num_layers"]):
        ln1_g, ln1_b = ln_p(Ev)
        ln2_g, ln2_b = ln_p(Ev)
        fc1_w, fc1_b = lin(Ev, vcfg["intermediate_size"])
        fc2_w, fc2_b = lin(vcfg["intermediate_size"], Ev)
        vision_layers.append(dict(ln1_g=ln1_g, ln1_b=ln1_b, ln2_g=ln2_g, ln2_b=ln2_b,
                                  attn=mha_self_p(Ev), fc1_w=fc1_w, fc1_b=fc1_b,
                                  fc2_w=fc2_w, fc2_b=fc2_b))
    patch_w, patch_b = lin(C * ph * ph, Ev)
    post_g, post_b = ln_p(Ev)
    vision = dict(patch_w=patch_w, patch_b=patch_b,
                  pos_emb=jax.random.normal(next(keys), (P, Ev), jnp.float32) * 0.02,
                  layers=vision_layers, post_ln_g=post_g, post_ln_b=post_b)

    Et = tcfg["hidden_size"]
    dec_layers = []
    for _ in range(tcfg["num_layers"]):
        ln1_g, ln1_b = ln_p(Et)
        ln2_g, ln2_b = ln_p(Et)
        ln3_g, ln3_b = ln_p(Et)
        fc1_w, fc1_b = lin(Et, tcfg["dim_feedforward"])
        fc2_w, fc2_b = lin(tcfg["dim_feedforward"], Et)
        dec_layers.append(dict(self_attn=mha_self_p(Et), cross_attn=mha_cross_p(Et),
                               ln1_g=ln1_g, ln1_b=ln1_b, ln2_g=ln2_g, ln2_b=ln2_b,
                               ln3_g=ln3_g, ln3_b=ln3_b,
                               fc1_w=fc1_w, fc1_b=fc1_b, fc2_w=fc2_w, fc2_b=fc2_b))
    decoder = dict(layers=dec_layers)

    fc_out_w, fc_out_b = lin(Et, tcfg["vocab_size"])
    token_embedding = jax.random.normal(next(keys), (tcfg["vocab_size"], Et),
                                        jnp.float32) * 0.02

    return dict(vision=vision, decoder=decoder, token_embedding=token_embedding,
                fc_out_w=fc_out_w, fc_out_b=fc_out_b)


def prepare_params(params, vcfg, tcfg):
    """One-time: fold 1/sqrt(Dh) into the Q projections and cast all matmul
    weights/biases/embeddings to bf16.  LayerNorm params stay f32 (f32 epilogues)."""
    cast = lambda t: t.astype(_COMPUTE_DTYPE)

    def prep_self(p, E, num_heads):
        scale = 1.0 / math.sqrt(E // num_heads)
        wqkv = p["wqkv"].at[:, :E].multiply(scale)
        bqkv = p["bqkv"].at[:, :E].multiply(scale)
        return dict(wqkv=cast(wqkv), bqkv=cast(bqkv),
                    wo=cast(p["wo"]), bo=cast(p["bo"]))

    def prep_cross(p, E, num_heads):
        scale = 1.0 / math.sqrt(E // num_heads)
        return dict(wq=cast(p["wq"] * scale), bq=cast(p["bq"] * scale),
                    wkv=cast(p["wkv"]), bkv=cast(p["bkv"]),
                    wo=cast(p["wo"]), bo=cast(p["bo"]))

    Ev, Hv = vcfg["hidden_size"], vcfg["num_heads"]
    vis = params["vision"]
    vision = dict(
        patch_w=cast(vis["patch_w"]), patch_b=cast(vis["patch_b"]),
        pos_emb=cast(vis["pos_emb"]),
        post_ln_g=vis["post_ln_g"], post_ln_b=vis["post_ln_b"],
        layers=[dict(ln1_g=lp["ln1_g"], ln1_b=lp["ln1_b"],
                     ln2_g=lp["ln2_g"], ln2_b=lp["ln2_b"],
                     attn=prep_self(lp["attn"], Ev, Hv),
                     fc1_w=cast(lp["fc1_w"]), fc1_b=cast(lp["fc1_b"]),
                     fc2_w=cast(lp["fc2_w"]), fc2_b=cast(lp["fc2_b"]))
                for lp in vis["layers"]])

    Et, Ht = tcfg["hidden_size"], tcfg["num_heads"]
    decoder = dict(layers=[dict(
        self_attn=prep_self(lp["self_attn"], Et, Ht),
        cross_attn=prep_cross(lp["cross_attn"], Et, Ht),
        ln1_g=lp["ln1_g"], ln1_b=lp["ln1_b"],
        ln2_g=lp["ln2_g"], ln2_b=lp["ln2_b"],
        ln3_g=lp["ln3_g"], ln3_b=lp["ln3_b"],
        fc1_w=cast(lp["fc1_w"]), fc1_b=cast(lp["fc1_b"]),
        fc2_w=cast(lp["fc2_w"]), fc2_b=cast(lp["fc2_b"]))
        for lp in params["decoder"]["layers"]])

    return dict(vision=vision, decoder=decoder,
                token_embedding=cast(params["token_embedding"]),
                fc_out_w=cast(params["fc_out_w"]), fc_out_b=cast(params["fc_out_b"]))


# ----------------------------------------------------------------------------

if __name__ == "__main__":
    vcfg = dict(image_size=16, patch_size=8, num_channels=3, hidden_size=32,
                num_heads=4, num_layers=2, intermediate_size=64)
    # dim_feedforward=2048 matches the nn.TransformerDecoderLayer default
    tcfg = dict(hidden_size=32, num_heads=4, num_layers=2, dim_feedforward=2048,
                vocab_size=128)

    key = jax.random.PRNGKey(0)
    kp, kx, ki = jax.random.split(key, 3)
    params = prepare_params(init_params(kp, vcfg, tcfg), vcfg, tcfg)

    pixel_values = jax.random.normal(kx, (2, 3, 16, 16), jnp.float32)   # NCHW
    input_ids = jax.random.randint(ki, (2, 8), 0, tcfg["vocab_size"])

    fwd = jax.jit(functools.partial(vlm_forward, vcfg=vcfg, tcfg=tcfg))
    logits = fwd(params, pixel_values, input_ids)
    jax.block_until_ready(logits)
    assert logits.shape == (2, 8, tcfg["vocab_size"]) and logits.dtype == jnp.float32
    assert bool(jnp.all(jnp.isfinite(logits)))
    print("KERNEL_OK")
</pallas_src>

<mosaic_0001>
module attributes {stable_mosaic.version = 11 : i64} {
  func.func @_linear_kernel(%arg0: i32, %arg1: i32, %arg2: i32, %arg3: memref<8x192xbf16, #tpu.memory_space<vmem>>, %arg4: memref<192x32xbf16, #tpu.memory_space<vmem>>, %arg5: memref<1x32xbf16, #tpu.memory_space<vmem>>, %arg6: memref<8x32xbf16, #tpu.memory_space<vmem>>, %arg7: memref<8x32xbf16, #tpu.memory_space<vmem>>, %arg8: memref<8x32xf32, #tpu.memory_space<vmem>>) attributes {dimension_semantics = [#tpu.dimension_semantics<parallel>, #tpu.dimension_semantics<parallel>, #tpu.dimension_semantics<arbitrary>], iteration_bounds = array<i64: 1, 1, 1>, scalar_prefetch = 0 : i64, scratch_operands = 1 : i64, tpu.core_type = #tpu.core_type<tc>, window_params = [{transform_indices = @transform_0, window_bounds = array<i64: 8, 192>}, {transform_indices = @transform_1, window_bounds = array<i64: 192, 32>}, {transform_indices = @transform_2, window_bounds = array<i64: 1, 32>}, {transform_indices = @transform_3, window_bounds = array<i64: 8, 32>}, {transform_indices = @transform_4, window_bounds = array<i64: 8, 32>}]} {
    %c0_i32 = arith.constant 0 : i32
    %0 = arith.cmpi eq, %arg2, %c0_i32 : i32
    %1 = arith.extui %0 : i1 to i32
    %c0_i32_0 = arith.constant 0 : i32
    %2 = arith.cmpi ne, %1, %c0_i32_0 : i32
    scf.if %2 {
      %cst_10 = arith.constant 0.000000e+00 : f32
      %12 = vector.broadcast %cst_10 : f32 to vector<8x32xf32>
      %c0_11 = arith.constant 0 : index
      %c0_12 = arith.constant 0 : index
      %13 = vector.load %arg8[%c0_11, %c0_12] : memref<8x32xf32, #tpu.memory_space<vmem>>, vector<8x32xf32>
      tpu.vector_store %arg8[%c0_11, %c0_12], %12 {strides = array<i32>} : memref<8x32xf32, #tpu.memory_space<vmem>>, vector<8x32xf32>,
    } else {
    }
    %c0 = arith.constant 0 : index
    %c0_1 = arith.constant 0 : index
    %3 = vector.load %arg3[%c0, %c0_1] : memref<8x192xbf16, #tpu.memory_space<vmem>>, vector<8x192xbf16>
    %c0_2 = arith.constant 0 : index
    %c0_3 = arith.constant 0 : index
    %4 = vector.load %arg8[%c0_2, %c0_3] : memref<8x32xf32, #tpu.memory_space<vmem>>, vector<8x32xf32>
    %c0_4 = arith.constant 0 : index
    %c0_5 = arith.constant 0 : index
    %5 = vector.load %arg4[%c0_4, %c0_5] : memref<192x32xbf16, #tpu.memory_space<vmem>>, vector<192x32xbf16>
    %cst = arith.constant dense<0.000000e+00> : vector<8x32xf32>
    %6 = tpu.matmul %3, %5, %cst {dimension_numbers = #tpu.dot_dimension_numbers<[1], [0], [0], [1], [0, 0, 1, 1], [], []>} : vector<8x192xbf16>, vector<192x32xbf16>, vector<8x32xf32> -> vector<8x32xf32>
    %7 = arith.addf %4, %6 : vector<8x32xf32>
    %c0_6 = arith.constant 0 : index
    %c0_7 = arith.constant 0 : index
    %8 = vector.load %arg8[%c0_6, %c0_7] : memref<8x32xf32, #tpu.memory_space<vmem>>, vector<8x32xf32>
    tpu.vector_store %arg8[%c0_6, %c0_7], %7 {strides = array<i32>} : memref<8x32xf32, #tpu.memory_space<vmem>>, vector<8x32xf32>,
    %c0_i32_8 = arith.constant 0 : i32
    %9 = arith.cmpi eq, %arg2, %c0_i32_8 : i32
    %10 = arith.extui %9 : i1 to i32
    %c0_i32_9 = arith.constant 0 : i32
    %11 = arith.cmpi ne, %10, %c0_i32_9 : i32
    scf.if %11 {
      %c0_10 = arith.constant 0 : index
      %c0_11 = arith.constant 0 : index
      %12 = vector.load %arg8[%c0_10, %c0_11] : memref<8x32xf32, #tpu.memory_space<vmem>>, vector<8x32xf32>
      %c0_12 = arith.constant 0 : index
      %c0_13 = arith.constant 0 : index
      %13 = vector.load %arg5[%c0_12, %c0_13] : memref<1x32xbf16, #tpu.memory_space<vmem>>, vector<1x32xbf16>
      %14 = arith.extf %13 : vector<1x32xbf16> to vector<1x32xf32>
      %15 = vector.broadcast %14 : vector<1x32xf32> to vector<8x32xf32>
      %16 = arith.addf %12, %15 : vector<8x32xf32>
      %c0_14 = arith.constant 0 : index
      %c0_15 = arith.constant 0 : index
      %17 = vector.load %arg6[%c0_14, %c0_15] : memref<8x32xbf16, #tpu.memory_space<vmem>>, vector<8x32xbf16>
      %18 = arith.extf %17 : vector<8x32xbf16> to vector<8x32xf32>
      %19 = arith.addf %16, %18 : vector<8x32xf32>
      %20 = arith.truncf %19 : vector<8x32xf32> to vector<8x32xbf16>
      %c0_16 = arith.constant 0 : index
      %c0_17 = arith.constant 0 : index
      %21 = vector.load %arg7[%c0_16, %c0_17] : memref<8x32xbf16, #tpu.memory_space<vmem>>, vector<8x32xbf16>
      tpu.vector_store %arg7[%c0_16, %c0_17], %20 {strides = array<i32>} : memref<8x32xbf16, #tpu.memory_space<vmem>>, vector<8x32xbf16>,
    } else {
    }
    return
  }
  func.func @transform_0(%arg0: i32, %arg1: i32, %arg2: i32) -> (i32, i32) {
    %c0_i32 = arith.constant 0 : i32
    return %arg0, %arg2 : i32, i32
  }
  func.func @transform_1(%arg0: i32, %arg1: i32, %arg2: i32) -> (i32, i32) {
    %c0_i32 = arith.constant 0 : i32
    return %arg2, %arg1 : i32, i32
  }
  func.func @transform_2(%arg0: i32, %arg1: i32, %arg2: i32) -> (i32, i32) {
    %c0_i32 = arith.constant 0 : i32
    %c0_i32_0 = arith.constant 0 : i32
    return %c0_i32, %arg1 : i32, i32
  }
  func.func @transform_3(%arg0: i32, %arg1: i32, %arg2: i32) -> (i32, i32) {
    %c0_i32 = arith.constant 0 : i32
    return %arg0, %arg1 : i32, i32
  }
  func.func @transform_4(%arg0: i32, %arg1: i32, %arg2: i32) -> (i32, i32) {
    %c0_i32 = arith.constant 0 : i32
    return %arg0, %arg1 : i32, i32
  }
}

module attributes {stable_mosaic.version = 11 : i64} {
  func.func @_linear_kernel(%arg0: i32, %arg1: i32, %arg2: i32, %arg3: memref<8x32xbf16, #tpu.memory_space<vmem>>, %arg4: memref<32x96xbf16, #tpu.memory_space<vmem>>, %arg5: memref<1x96xbf16, #tpu.memory_space<vmem>>, %arg6: memref<1x32xf32, #tpu.memory_space<vmem>>, %arg7: memref<1x32xf32, #tpu.memory_space<vmem>>, %arg8: memref<8x96xbf16, #tpu.memory_space<vmem>>, %arg9: memref<8x96xf32, #tpu.memory_space<vmem>>) attributes {dimension_semantics = [#tpu.dimension_semantics<parallel>, #tpu.dimension_semantics<parallel>, #tpu.dimension_semantics<arbitrary>], iteration_bounds = array<i64: 1, 1, 1>, scalar_prefetch = 0 : i64, scratch_operands = 1 : i64, tpu.core_type = #tpu.core_type<tc>, window_params = [{transform_indices = @transform_0, window_bounds = array<i64: 8, 32>}, {transform_indices = @transform_1, window_bounds = array<i64: 32, 96>}, {transform_indices = @transform_2, window_bounds = array<i64: 1, 96>}, {transform_indices = @transform_3, window_bounds = array<i64: 1, 32>}, {transform_indices = @transform_4, window_bounds = array<i64: 1, 32>}, {transform_indices = @transform_5, window_bounds = array<i64: 8, 96>}]} {
    %c0_i32 = arith.constant 0 : i32
    %0 = arith.cmpi eq, %arg2, %c0_i32 : i32
    %1 = arith.extui %0 : i1 to i32
    %c0_i32_0 = arith.constant 0 : i32
    %2 = arith.cmpi ne, %1, %c0_i32_0 : i32
    scf.if %2 {
      %cst_19 = arith.constant 0.000000e+00 : f32
      %38 = vector.broadcast %cst_19 : f32 to vector<8x96xf32>
      %c0_20 = arith.constant 0 : index
      %c0_21 = arith.constant 0 : index
      %39 = vector.load %arg9[%c0_20, %c0_21] : memref<8x96xf32, #tpu.memory_space<vmem>>, vector<8x96xf32>
      tpu.vector_store %arg9[%c0_20, %c0_21], %38 {strides = array<i32>} : memref<8x96xf32, #tpu.memory_space<vmem>>, vector<8x96xf32>,
    } else {
    }
    %c0 = arith.constant 0 : index
    %c0_1 = arith.constant 0 : index
    %3 = vector.load %arg3[%c0, %c0_1] : memref<8x32xbf16, #tpu.memory_space<vmem>>, vector<8x32xbf16>
    %4 = arith.extf %3 : vector<8x32xbf16> to vector<8x32xf32>
    %cst = arith.constant dense<0.000000e+00> : vector<8xf32>
    %5 = vector.multi_reduction <add>, %4, %cst [1] : vector<8x32xf32> to vector<8xf32>
    %6 = vector.shape_cast %5 : vector<8xf32> to vector<8x1xf32>
    %cst_2 = arith.constant 3.200000e+01 : f32
    %7 = vector.broadcast %cst_2 : f32 to vector<8x1xf32>
    %8 = arith.divf %6, %7 : vector<8x1xf32>
    %9 = vector.broadcast %8 : vector<8x1xf32> to vector<8x32xf32>
    %10 = arith.subf %4, %9 : vector<8x32xf32>
    %11 = arith.mulf %10, %10 : vector<8x32xf32>
    %cst_3 = arith.constant dense<0.000000e+00> : vector<8xf32>
    %12 = vector.multi_reduction <add>, %11, %cst_3 [1] : vector<8x32xf32> to vector<8xf32>
    %13 = vector.shape_cast %12 : vector<8xf32> to vector<8x1xf32>
    %cst_4 = arith.constant 3.200000e+01 : f32
    %14 = vector.broadcast %cst_4 : f32 to vector<8x1xf32>
    %15 = arith.divf %13, %14 : vector<8x1xf32>
    %16 = vector.broadcast %8 : vector<8x1xf32> to vector<8x32xf32>
    %17 = arith.subf %4, %16 : vector<8x32xf32>
    %cst_5 = arith.constant 9.99999997E-7 : f32
    %18 = vector.broadcast %cst_5 : f32 to vector<8x1xf32>
    %19 = arith.addf %15, %18 : vector<8x1xf32>
    %20 = math.rsqrt %19 : vector<8x1xf32>
    %21 = vector.broadcast %20 : vector<8x1xf32> to vector<8x32xf32>
    %22 = arith.mulf %17, %21 : vector<8x32xf32>
    %c0_6 = arith.constant 0 : index
    %c0_7 = arith.constant 0 : index
    %23 = vector.load %arg6[%c0_6, %c0_7] : memref<1x32xf32, #tpu.memory_space<vmem>>, vector<1x32xf32>
    %24 = vector.broadcast %23 : vector<1x32xf32> to vector<8x32xf32>
    %25 = arith.mulf %22, %24 : vector<8x32xf32>
    %c0_8 = arith.constant 0 : index
    %c0_9 = arith.constant 0 : index
    %26 = vector.load %arg7[%c0_8, %c0_9] : memref<1x32xf32, #tpu.memory_space<vmem>>, vector<1x32xf32>
    %27 = vector.broadcast %26 : vector<1x32xf32> to vector<8x32xf32>
    %28 = arith.addf %25, %27 : vector<8x32xf32>
    %29 = arith.truncf %28 : vector<8x32xf32> to vector<8x32xbf16>
    %c0_10 = arith.constant 0 : index
    %c0_11 = arith.constant 0 : index
    %30 = vector.load %arg9[%c0_10, %c0_11] : memref<8x96xf32, #tpu.memory_space<vmem>>, vector<8x96xf32>
    %c0_12 = arith.constant 0 : index
    %c0_13 = arith.constant 0 : index
    %31 = vector.load %arg4[%c0_12, %c0_13] : memref<32x96xbf16, #tpu.memory_space<vmem>>, vector<32x96xbf16>
    %cst_14 = arith.constant dense<0.000000e+00> : vector<8x96xf32>
    %32 = tpu.matmul %29, %31, %cst_14 {dimension_numbers = #tpu.dot_dimension_numbers<[1], [0], [0], [1], [0, 0, 1, 1], [], []>} : vector<8x32xbf16>, vector<32x96xbf16>, vector<8x96xf32> -> vector<8x96xf32>
    %33 = arith.addf %30, %32 : vector<8x96xf32>
    %c0_15 = arith.constant 0 : index
    %c0_16 = arith.constant 0 : index
    %34 = vector.load %arg9[%c0_15, %c0_16] : memref<8x96xf32, #tpu.memory_space<vmem>>, vector<8x96xf32>
    tpu.vector_store %arg9[%c0_15, %c0_16], %33 {strides = array<i32>} : memref<8x96xf32, #tpu.memory_space<vmem>>, vector<8x96xf32>,
    %c0_i32_17 = arith.constant 0 : i32
    %35 = arith.cmpi eq, %arg2, %c0_i32_17 : i32
    %36 = arith.extui %35 : i1 to i32
    %c0_i32_18 = arith.constant 0 : i32
    %37 = arith.cmpi ne, %36, %c0_i32_18 : i32
    scf.if %37 {
      %c0_19 = arith.constant 0 : index
      %c0_20 = arith.constant 0 : index
      %38 = vector.load %arg9[%c0_19, %c0_20] : memref<8x96xf32, #tpu.memory_space<vmem>>, vector<8x96xf32>
      %c0_21 = arith.constant 0 : index
      %c0_22 = arith.constant 0 : index
      %39 = vector.load %arg5[%c0_21, %c0_22] : memref<1x96xbf16, #tpu.memory_space<vmem>>, vector<1x96xbf16>
      %40 = arith.extf %39 : vector<1x96xbf16> to vector<1x96xf32>
      %41 = vector.broadcast %40 : vector<1x96xf32> to vector<8x96xf32>
      %42 = arith.addf %38, %41 : vector<8x96xf32>
      %43 = arith.truncf %42 : vector<8x96xf32> to vector<8x96xbf16>
      %c0_23 = arith.constant 0 : index
      %c0_24 = arith.constant 0 : index
      %44 = vector.load %arg8[%c0_23, %c0_24] : memref<8x96xbf16, #tpu.memory_space<vmem>>, vector<8x96xbf16>
      tpu.vector_store %arg8[%c0_23, %c0_24], %43 {strides = array<i32>} : memref<8x96xbf16, #tpu.memory_space<vmem>>, vector<8x96xbf16>,
    } else {
    }
    return
  }
  func.func @transform_0(%arg0: i32, %arg1: i32, %arg2: i32) -> (i32, i32) {
    %c0_i32 = arith.constant 0 : i32
    return %arg0, %arg2 : i32, i32
  }
  func.func @transform_1(%arg0: i32, %arg1: i32, %arg2: i32) -> (i32, i32) {
    %c0_i32 = arith.constant 0 : i32
    return %arg2, %arg1 : i32, i32
  }
  func.func @transform_2(%arg0: i32, %arg1: i32, %arg2: i32) -> (i32, i32) {
    %c0_i32 = arith.constant 0 : i32
    %c0_i32_0 = arith.constant 0 : i32
    return %c0_i32, %arg1 : i32, i32
  }
  func.func @transform_3(%arg0: i32, %arg1: i32, %arg2: i32) -> (i32, i32) {
    %c0_i32 = arith.constant 0 : i32
    %c0_i32_0 = arith.constant 0 : i32
    return %c0_i32, %arg2 : i32, i32
  }
  func.func @transform_4(%arg0: i32, %arg1: i32, %arg2: i32) -> (i32, i32) {
    %c0_i32 = arith.constant 0 : i32
    %c0_i32_0 = arith.constant 0 : i32
    return %c0_i32, %arg2 : i32, i32
  }
  func.func @transform_5(%arg0: i32, %arg1: i32, %arg2: i32) -> (i32, i32) {
    %c0_i32 = arith.constant 0 : i32
    return %arg0, %arg1 : i32, i32
  }
}

module attributes {stable_mosaic.version = 11 : i64} {
  func.func @_linear_kernel(%arg0: i32, %arg1: i32, %arg2: i32, %arg3: memref<8x32xbf16, #tpu.memory_space<vmem>>, %arg4: memref<32x32xbf16, #tpu.memory_space<vmem>>, %arg5: memref<1x32xbf16, #tpu.memory_space<vmem>>, %arg6: memref<8x32xbf16, #tpu.memory_space<vmem>>, %arg7: memref<8x32xbf16, #tpu.memory_space<vmem>>, %arg8: memref<8x32xf32, #tpu.memory_space<vmem>>) attributes {dimension_semantics = [#tpu.dimension_semantics<parallel>, #tpu.dimension_semantics<parallel>, #tpu.dimension_semantics<arbitrary>], iteration_bounds = array<i64: 1, 1, 1>, scalar_prefetch = 0 : i64, scratch_operands = 1 : i64, tpu.core_type = #tpu.core_type<tc>, window_params = [{transform_indices = @transform_0, window_bounds = array<i64: 8, 32>}, {transform_indices = @transform_1, window_bounds = array<i64: 32, 32>}, {transform_indices = @transform_2, window_bounds = array<i64: 1, 32>}, {transform_indices = @transform_3, window_bounds = array<i64: 8, 32>}, {transform_indices = @transform_4, window_bounds = array<i64: 8, 32>}]} {
    %c0_i32 = arith.constant 0 : i32
    %0 = arith.cmpi eq, %arg2, %c0_i32 : i32
    %1 = arith.extui %0 : i1 to i32
    %c0_i32_0 = arith.constant 0 : i32
    %2 = arith.cmpi ne, %1, %c0_i32_0 : i32
    scf.if %2 {
      %cst_10 = arith.constant 0.000000e+00 : f32
      %12 = vector.broadcast %cst_10 : f32 to vector<8x32xf32>
      %c0_11 = arith.constant 0 : index
      %c0_12 = arith.constant 0 : index
      %13 = vector.load %arg8[%c0_11, %c0_12] : memref<8x32xf32, #tpu.memory_space<vmem>>, vector<8x32xf32>
      tpu.vector_store %arg8[%c0_11, %c0_12], %12 {strides = array<i32>} : memref<8x32xf32, #tpu.memory_space<vmem>>, vector<8x32xf32>,
    } else {
    }
    %c0 = arith.constant 0 : index
    %c0_1 = arith.constant 0 : index
    %3 = vector.load %arg3[%c0, %c0_1] : memref<8x32xbf16, #tpu.memory_space<vmem>>, vector<8x32xbf16>
    %c0_2 = arith.constant 0 : index
    %c0_3 = arith.constant 0 : index
    %4 = vector.load %arg8[%c0_2, %c0_3] : memref<8x32xf32, #tpu.memory_space<vmem>>, vector<8x32xf32>
    %c0_4 = arith.constant 0 : index
    %c0_5 = arith.constant 0 : index
    %5 = vector.load %arg4[%c0_4, %c0_5] : memref<32x32xbf16, #tpu.memory_space<vmem>>, vector<32x32xbf16>
    %cst = arith.constant dense<0.000000e+00> : vector<8x32xf32>
    %6 = tpu.matmul %3, %5, %cst {dimension_numbers = #tpu.dot_dimension_numbers<[1], [0], [0], [1], [0, 0, 1, 1], [], []>} : vector<8x32xbf16>, vector<32x32xbf16>, vector<8x32xf32> -> vector<8x32xf32>
    %7 = arith.addf %4, %6 : vector<8x32xf32>
    %c0_6 = arith.constant 0 : index
    %c0_7 = arith.constant 0 : index
    %8 = vector.load %arg8[%c0_6, %c0_7] : memref<8x32xf32, #tpu.memory_space<vmem>>, vector<8x32xf32>
    tpu.vector_store %arg8[%c0_6, %c0_7], %7 {strides = array<i32>} : memref<8x32xf32, #tpu.memory_space<vmem>>, vector<8x32xf32>,
    %c0_i32_8 = arith.constant 0 : i32
    %9 = arith.cmpi eq, %arg2, %c0_i32_8 : i32
    %10 = arith.extui %9 : i1 to i32
    %c0_i32_9 = arith.constant 0 : i32
    %11 = arith.cmpi ne, %10, %c0_i32_9 : i32
    scf.if %11 {
      %c0_10 = arith.constant 0 : index
      %c0_11 = arith.constant 0 : index
      %12 = vector.load %arg8[%c0_10, %c0_11] : memref<8x32xf32, #tpu.memory_space<vmem>>, vector<8x32xf32>
      %c0_12 = arith.constant 0 : index
      %c0_13 = arith.constant 0 : index
      %13 = vector.load %arg5[%c0_12, %c0_13] : memref<1x32xbf16, #tpu.memory_space<vmem>>, vector<1x32xbf16>
      %14 = arith.extf %13 : vector<1x32xbf16> to vector<1x32xf32>
      %15 = vector.broadcast %14 : vector<1x32xf32> to vector<8x32xf32>
      %16 = arith.addf %12, %15 : vector<8x32xf32>
      %c0_14 = arith.constant 0 : index
      %c0_15 = arith.constant 0 : index
      %17 = vector.load %arg6[%c0_14, %c0_15] : memref<8x32xbf16, #tpu.memory_space<vmem>>, vector<8x32xbf16>
      %18 = arith.extf %17 : vector<8x32xbf16> to vector<8x32xf32>
      %19 = arith.addf %16, %18 : vector<8x32xf32>
      %20 = arith.truncf %19 : vector<8x32xf32> to vector<8x32xbf16>
      %c0_16 = arith.constant 0 : index
      %c0_17 = arith.constant 0 : index
      %21 = vector.load %arg7[%c0_16, %c0_17] : memref<8x32xbf16, #tpu.memory_space<vmem>>, vector<8x32xbf16>
      tpu.vector_store %arg7[%c0_16, %c0_17], %20 {strides = array<i32>} : memref<8x32xbf16, #tpu.memory_space<vmem>>, vector<8x32xbf16>,
    } else {
    }
    return
  }
  func.func @transform_0(%arg0: i32, %arg1: i32, %arg2: i32) -> (i32, i32) {
    %c0_i32 = arith.constant 0 : i32
    return %arg0, %arg2 : i32, i32
  }
  func.func @transform_1(%arg0: i32, %arg1: i32, %arg2: i32) -> (i32, i32) {
    %c0_i32 = arith.constant 0 : i32
    return %arg2, %arg1 : i32, i32
  }
  func.func @transform_2(%arg0: i32, %arg1: i32, %arg2: i32) -> (i32, i32) {
    %c0_i32 = arith.constant 0 : i32
    %c0_i32_0 = arith.constant 0 : i32
    return %c0_i32, %arg1 : i32, i32
  }
  func.func @transform_3(%arg0: i32, %arg1: i32, %arg2: i32) -> (i32, i32) {
    %c0_i32 = arith.constant 0 : i32
    return %arg0, %arg1 : i32, i32
  }
  func.func @transform_4(%arg0: i32, %arg1: i32, %arg2: i32) -> (i32, i32) {
    %c0_i32 = arith.constant 0 : i32
    return %arg0, %arg1 : i32, i32
  }
}

module attributes {stable_mosaic.version = 11 : i64} {
  func.func @_flash_kernel(%arg0: i32, %arg1: i32, %arg2: i32, %arg3: memref<1x4x32xbf16, #tpu.memory_space<vmem>>, %arg4: memref<1x4x32xbf16, #tpu.memory_space<vmem>>, %arg5: memref<1x4x32xbf16, #tpu.memory_space<vmem>>, %arg6: memref<1x4x32xbf16, #tpu.memory_space<vmem>>, %arg7: memref<4x4x1xf32, #tpu.memory_space<vmem>>, %arg8: memref<4x4x1xf32, #tpu.memory_space<vmem>>, %arg9: memref<4x4x8xf32, #tpu.memory_space<vmem>>) attributes {dimension_semantics = [#tpu.dimension_semantics<parallel>, #tpu.dimension_semantics<parallel>, #tpu.dimension_semantics<arbitrary>], iteration_bounds = array<i64: 2, 1, 1>, scalar_prefetch = 0 : i64, scratch_operands = 3 : i64, tpu.core_type = #tpu.core_type<tc>, window_params = [{transform_indices = @transform_0, window_bounds = array<i64: 1, 4, 32>}, {transform_indices = @transform_1, window_bounds = array<i64: 1, 4, 32>}, {transform_indices = @transform_2, window_bounds = array<i64: 1, 4, 32>}, {transform_indices = @transform_3, window_bounds = array<i64: 1, 4, 32>}]} {
    %c0_i32 = arith.constant 0 : i32
    %0 = arith.cmpi eq, %arg2, %c0_i32 : i32
    %1 = arith.extui %0 : i1 to i32
    %c0_i32_0 = arith.constant 0 : i32
    %2 = arith.cmpi ne, %1, %c0_i32_0 : i32
    scf.if %2 {
      %cst_100 = arith.constant -1.000000e+30 : f32
      %170 = vector.broadcast %cst_100 : f32 to vector<4x4x1xf32>
      %c0_101 = arith.constant 0 : index
      %c0_102 = arith.constant 0 : index
      %c0_103 = arith.constant 0 : index
      %171 = vector.load %arg7[%c0_101, %c0_102, %c0_103] : memref<4x4x1xf32, #tpu.memory_space<vmem>>, vector<4x4x1xf32>
      tpu.vector_store %arg7[%c0_101, %c0_102, %c0_103], %170 {strides = array<i32>} : memref<4x4x1xf32, #tpu.memory_space<vmem>>, vector<4x4x1xf32>,
      %cst_104 = arith.constant 0.000000e+00 : f32
      %172 = vector.broadcast %cst_104 : f32 to vector<4x4x1xf32>
      %c0_105 = arith.constant 0 : index
      %c0_106 = arith.constant 0 : index
      %c0_107 = arith.constant 0 : index
      %173 = vector.load %arg8[%c0_105, %c0_106, %c0_107] : memref<4x4x1xf32, #tpu.memory_space<vmem>>, vector<4x4x1xf32>
      tpu.vector_store %arg8[%c0_105, %c0_106, %c0_107], %172 {strides = array<i32>} : memref<4x4x1xf32, #tpu.memory_space<vmem>>, vector<4x4x1xf32>,
      %cst_108 = arith.constant 0.000000e+00 : f32
      %174 = vector.broadcast %cst_108 : f32 to vector<4x4x8xf32>
      %c0_109 = arith.constant 0 : index
      %c0_110 = arith.constant 0 : index
      %c0_111 = arith.constant 0 : index
      %175 = vector.load %arg9[%c0_109, %c0_110, %c0_111] : memref<4x4x8xf32, #tpu.memory_space<vmem>>, vector<4x4x8xf32>
      tpu.vector_store %arg9[%c0_109, %c0_110, %c0_111], %174 {strides = array<i32>} : memref<4x4x8xf32, #tpu.memory_space<vmem>>, vector<4x4x8xf32>,
    } else {
    }
    %c0 = arith.constant 0 : index
    %c0_1 = arith.constant 0 : index
    %c0_2 = arith.constant 0 : index
    %3 = vector.load %arg3[%c0, %c0_1, %c0_2] : memref<1x4x32xbf16, #tpu.memory_space<vmem>>, vector<1x4x32xbf16>
    %4 = vector.shape_cast %3 : vector<1x4x32xbf16> to vector<4x32xbf16>
    %c0_3 = arith.constant 0 : index
    %c0_4 = arith.constant 0 : index
    %c0_5 = arith.constant 0 : index
    %5 = vector.load %arg4[%c0_3, %c0_4, %c0_5] : memref<1x4x32xbf16, #tpu.memory_space<vmem>>, vector<1x4x32xbf16>
    %6 = vector.shape_cast %5 : vector<1x4x32xbf16> to vector<4x32xbf16>
    %c0_6 = arith.constant 0 : index
    %c0_7 = arith.constant 0 : index
    %c0_8 = arith.constant 0 : index
    %7 = vector.load %arg5[%c0_6, %c0_7, %c0_8] : memref<1x4x32xbf16, #tpu.memory_space<vmem>>, vector<1x4x32xbf16>
    %8 = vector.shape_cast %7 : vector<1x4x32xbf16> to vector<4x32xbf16>
    %c4_i32 = arith.constant 4 : i32
    %9 = arith.muli %arg2, %c4_i32 : i32
    %10 = tpu.iota {dimensions = array<i32: 1>} : vector<4x4xi32>
    %11 = vector.broadcast %9 : i32 to vector<4x4xi32>
    %12 = arith.addi %11, %10 : vector<4x4xi32>
    %c4_i32_9 = arith.constant 4 : i32
    %13 = vector.broadcast %c4_i32_9 : i32 to vector<4x4xi32>
    %14 = arith.cmpi slt, %12, %13 : vector<4x4xi32>
    %15 = vector.extract_strided_slice %4 {offsets = [0, 0], sizes = [4, 8], strides = [1, 1]} : vector<4x32xbf16> to vector<4x8xbf16>
    %16 = vector.extract_strided_slice %6 {offsets = [0, 0], sizes = [4, 8], strides = [1, 1]} : vector<4x32xbf16> to vector<4x8xbf16>
    %cst = arith.constant dense<0.000000e+00> : vector<4x4xf32>
    %17 = tpu.matmul %15, %16, %cst {dimension_numbers = #tpu.dot_dimension_numbers<[1], [1], [0], [0], [0, 0, 1, 0], [], []>} : vector<4x8xbf16>, vector<4x8xbf16>, vector<4x4xf32> -> vector<4x4xf32>
    %cst_10 = arith.constant -1.000000e+30 : f32
    %18 = vector.broadcast %cst_10 : f32 to vector<4x4xf32>
    %19 = arith.select %14, %17, %18 : vector<4x4xi1>, vector<4x4xf32>
    %c0_11 = arith.constant 0 : index
    %c0_12 = arith.constant 0 : index
    %c0_13 = arith.constant 0 : index
    %20 = vector.load %arg7[%c0_11, %c0_12, %c0_13] : memref<4x4x1xf32, #tpu.memory_space<vmem>>, vector<1x4x1xf32>
    %21 = vector.shape_cast %20 : vector<1x4x1xf32> to vector<4x1xf32>
    %cst_14 = arith.constant dense<0xFF800000> : vector<4xf32>
    %22 = vector.multi_reduction <maximumf>, %19, %cst_14 [1] : vector<4x4xf32> to vector<4xf32>
    %23 = vector.shape_cast %22 : vector<4xf32> to vector<4x1xf32>
    %24 = arith.maximumf %21, %23 : vector<4x1xf32>
    %25 = arith.subf %21, %24 : vector<4x1xf32>
    %26 = math.exp %25 : vector<4x1xf32>
    %27 = vector.broadcast %24 : vector<4x1xf32> to vector<4x4xf32>
    %28 = arith.subf %19, %27 : vector<4x4xf32>
    %29 = math.exp %28 : vector<4x4xf32>
    %c0_15 = arith.constant 0 : index
    %c0_16 = arith.constant 0 : index
    %c0_17 = arith.constant 0 : index
    %30 = vector.load %arg8[%c0_15, %c0_16, %c0_17] : memref<4x4x1xf32, #tpu.memory_space<vmem>>, vector<1x4x1xf32>
    %31 = vector.shape_cast %30 : vector<1x4x1xf32> to vector<4x1xf32>
    %32 = arith.mulf %26, %31 : vector<4x1xf32>
    %cst_18 = arith.constant dense<0.000000e+00> : vector<4xf32>
    %33 = vector.multi_reduction <add>, %29, %cst_18 [1] : vector<4x4xf32> to vector<4xf32>
    %34 = vector.shape_cast %33 : vector<4xf32> to vector<4x1xf32>
    %35 = arith.addf %32, %34 : vector<4x1xf32>
    %c0_19 = arith.constant 0 : index
    %c0_20 = arith.constant 0 : index
    %c0_21 = arith.constant 0 : index
    %36 = vector.load %arg8[%c0_19, %c0_20, %c0_21] : memref<4x4x1xf32, #tpu.memory_space<vmem>>, vector<1x4x1xf32>
    %37 = vector.shape_cast %36 : vector<1x4x1xf32> to vector<4x1xf32>
    %38 = vector.shape_cast %35 : vector<4x1xf32> to vector<1x4x1xf32>
    tpu.vector_store %arg8[%c0_19, %c0_20, %c0_21], %38 {strides = array<i32>} : memref<4x4x1xf32, #tpu.memory_space<vmem>>, vector<1x4x1xf32>,
    %c0_22 = arith.constant 0 : index
    %c0_23 = arith.constant 0 : index
    %c0_24 = arith.constant 0 : index
    %39 = vector.load %arg9[%c0_22, %c0_23, %c0_24] : memref<4x4x8xf32, #tpu.memory_space<vmem>>, vector<1x4x8xf32>
    %40 = vector.shape_cast %39 : vector<1x4x8xf32> to vector<4x8xf32>
    %41 = vector.broadcast %26 : vector<4x1xf32> to vector<4x8xf32>
    %42 = arith.mulf %41, %40 : vector<4x8xf32>
    %43 = arith.truncf %29 : vector<4x4xf32> to vector<4x4xbf16>
    %44 = vector.extract_strided_slice %8 {offsets = [0, 0], sizes = [4, 8], strides = [1, 1]} : vector<4x32xbf16> to vector<4x8xbf16>
    %cst_25 = arith.constant dense<0.000000e+00> : vector<4x8xf32>
    %45 = tpu.matmul %43, %44, %cst_25 {dimension_numbers = #tpu.dot_dimension_numbers<[1], [0], [0], [1], [0, 0, 1, 1], [], []>} : vector<4x4xbf16>, vector<4x8xbf16>, vector<4x8xf32> -> vector<4x8xf32>
    %46 = arith.addf %42, %45 : vector<4x8xf32>
    %c0_26 = arith.constant 0 : index
    %c0_27 = arith.constant 0 : index
    %c0_28 = arith.constant 0 : index
    %47 = vector.load %arg9[%c0_26, %c0_27, %c0_28] : memref<4x4x8xf32, #tpu.memory_space<vmem>>, vector<1x4x8xf32>
    %48 = vector.shape_cast %47 : vector<1x4x8xf32> to vector<4x8xf32>
    %49 = vector.shape_cast %46 : vector<4x8xf32> to vector<1x4x8xf32>
    tpu.vector_store %arg9[%c0_26, %c0_27, %c0_28], %49 {strides = array<i32>} : memref<4x4x8xf32, #tpu.memory_space<vmem>>, vector<1x4x8xf32>,
    %c0_29 = arith.constant 0 : index
    %c0_30 = arith.constant 0 : index
    %c0_31 = arith.constant 0 : index
    %50 = vector.load %arg7[%c0_29, %c0_30, %c0_31] : memref<4x4x1xf32, #tpu.memory_space<vmem>>, vector<1x4x1xf32>
    %51 = vector.shape_cast %50 : vector<1x4x1xf32> to vector<4x1xf32>
    %52 = vector.shape_cast %24 : vector<4x1xf32> to vector<1x4x1xf32>
    tpu.vector_store %arg7[%c0_29, %c0_30, %c0_31], %52 {strides = array<i32>} : memref<4x4x1xf32, #tpu.memory_space<vmem>>, vector<1x4x1xf32>,
    %53 = vector.extract_strided_slice %4 {offsets = [0, 8], sizes = [4, 8], strides = [1, 1]} : vector<4x32xbf16> to vector<4x8xbf16>
    %54 = vector.extract_strided_slice %6 {offsets = [0, 8], sizes = [4, 8], strides = [1, 1]} : vector<4x32xbf16> to vector<4x8xbf16>
    %cst_32 = arith.constant dense<0.000000e+00> : vector<4x4xf32>
    %55 = tpu.matmul %53, %54, %cst_32 {dimension_numbers = #tpu.dot_dimension_numbers<[1], [1], [0], [0], [0, 0, 1, 0], [], []>} : vector<4x8xbf16>, vector<4x8xbf16>, vector<4x4xf32> -> vector<4x4xf32>
    %cst_33 = arith.constant -1.000000e+30 : f32
    %56 = vector.broadcast %cst_33 : f32 to vector<4x4xf32>
    %57 = arith.select %14, %55, %56 : vector<4x4xi1>, vector<4x4xf32>
    %c1 = arith.constant 1 : index
    %c0_34 = arith.constant 0 : index
    %c0_35 = arith.constant 0 : index
    %58 = vector.load %arg7[%c1, %c0_34, %c0_35] : memref<4x4x1xf32, #tpu.memory_space<vmem>>, vector<1x4x1xf32>
    %59 = vector.shape_cast %58 : vector<1x4x1xf32> to vector<4x1xf32>
    %cst_36 = arith.constant dense<0xFF800000> : vector<4xf32>
    %60 = vector.multi_reduction <maximumf>, %57, %cst_36 [1] : vector<4x4xf32> to vector<4xf32>
    %61 = vector.shape_cast %60 : vector<4xf32> to vector<4x1xf32>
    %62 = arith.maximumf %59, %61 : vector<4x1xf32>
    %63 = arith.subf %59, %62 : vector<4x1xf32>
    %64 = math.exp %63 : vector<4x1xf32>
    %65 = vector.broadcast %62 : vector<4x1xf32> to vector<4x4xf32>
    %66 = arith.subf %57, %65 : vector<4x4xf32>
    %67 = math.exp %66 : vector<4x4xf32>
    %c1_37 = arith.constant 1 : index
    %c0_38 = arith.constant 0 : index
    %c0_39 = arith.constant 0 : index
    %68 = vector.load %arg8[%c1_37, %c0_38, %c0_39] : memref<4x4x1xf32, #tpu.memory_space<vmem>>, vector<1x4x1xf32>
    %69 = vector.shape_cast %68 : vector<1x4x1xf32> to vector<4x1xf32>
    %70 = arith.mulf %64, %69 : vector<4x1xf32>
    %cst_40 = arith.constant dense<0.000000e+00> : vector<4xf32>
    %71 = vector.multi_reduction <add>, %67, %cst_40 [1] : vector<4x4xf32> to vector<4xf32>
    %72 = vector.shape_cast %71 : vector<4xf32> to vector<4x1xf32>
    %73 = arith.addf %70, %72 : vector<4x1xf32>
    %c1_41 = arith.constant 1 : index
    %c0_42 = arith.constant 0 : index
    %c0_43 = arith.constant 0 : index
    %74 = vector.load %arg8[%c1_41, %c0_42, %c0_43] : memref<4x4x1xf32, #tpu.memory_space<vmem>>, vector<1x4x1xf32>
    %75 = vector.shape_cast %74 : vector<1x4x1xf32> to vector<4x1xf32>
    %76 = vector.shape_cast %73 : vector<4x1xf32> to vector<1x4x1xf32>
    tpu.vector_store %arg8[%c1_41, %c0_42, %c0_43], %76 {strides = array<i32>} : memref<4x4x1xf32, #tpu.memory_space<vmem>>, vector<1x4x1xf32>,
    %c1_44 = arith.constant 1 : index
    %c0_45 = arith.constant 0 : index
    %c0_46 = arith.constant 0 : index
    %77 = vector.load %arg9[%c1_44, %c0_45, %c0_46] : memref<4x4x8xf32, #tpu.memory_space<vmem>>, vector<1x4x8xf32>
    %78 = vector.shape_cast %77 : vector<1x4x8xf32> to vector<4x8xf32>
    %79 = vector.broadcast %64 : vector<4x1xf32> to vector<4x8xf32>
    %80 = arith.mulf %79, %78 : vector<4x8xf32>
    %81 = arith.truncf %67 : vector<4x4xf32> to vector<4x4xbf16>
    %82 = vector.extract_strided_slice %8 {offsets = [0, 8], sizes = [4, 8], strides = [1, 1]} : vector<4x32xbf16> to vector<4x8xbf16>
    %cst_47 = arith.constant dense<0.000000e+00> : vector<4x8xf32>
    %83 = tpu.matmul %81, %82, %cst_47 {dimension_numbers = #tpu.dot_dimension_numbers<[1], [0], [0], [1], [0, 0, 1, 1], [], []>} : vector<4x4xbf16>, vector<4x8xbf16>, vector<4x8xf32> -> vector<4x8xf32>
    %84 = arith.addf %80, %83 : vector<4x8xf32>
    %c1_48 = arith.constant 1 : index
    %c0_49 = arith.constant 0 : index
    %c0_50 = arith.constant 0 : index
    %85 = vector.load %arg9[%c1_48, %c0_49, %c0_50] : memref<4x4x8xf32, #tpu.memory_space<vmem>>, vector<1x4x8xf32>
    %86 = vector.shape_cast %85 : vector<1x4x8xf32> to vector<4x8xf32>
    %87 = vector.shape_cast %84 : vector<4x8xf32> to vector<1x4x8xf32>
    tpu.vector_store %arg9[%c1_48, %c0_49, %c0_50], %87 {strides = array<i32>} : memref<4x4x8xf32, #tpu.memory_space<vmem>>, vector<1x4x8xf32>,
    %c1_51 = arith.constant 1 : index
    %c0_52 = arith.constant 0 : index
    %c0_53 = arith.constant 0 : index
    %88 = vector.load %arg7[%c1_51, %c0_52, %c0_53] : memref<4x4x1xf32, #tpu.memory_space<vmem>>, vector<1x4x1xf32>
    %89 = vector.shape_cast %88 : vector<1x4x1xf32> to vector<4x1xf32>
    %90 = vector.shape_cast %62 : vector<4x1xf32> to vector<1x4x1xf32>
    tpu.vector_store %arg7[%c1_51, %c0_52, %c0_53], %90 {strides = array<i32>} : memref<4x4x1xf32, #tpu.memory_space<vmem>>, vector<1x4x1xf32>,
    %91 = vector.extract_strided_slice %4 {offsets = [0, 16], sizes = [4, 8], strides = [1, 1]} : vector<4x32xbf16> to vector<4x8xbf16>
    %92 = vector.extract_strided_slice %6 {offsets = [0, 16], sizes = [4, 8], strides = [1, 1]} : vector<4x32xbf16> to vector<4x8xbf16>
    %cst_54 = arith.constant dense<0.000000e+00> : vector<4x4xf32>
    %93 = tpu.matmul %91, %92, %cst_54 {dimension_numbers = #tpu.dot_dimension_numbers<[1], [1], [0], [0], [0, 0, 1, 0], [], []>} : vector<4x8xbf16>, vector<4x8xbf16>, vector<4x4xf32> -> vector<4x4xf32>
    %cst_55 = arith.constant -1.000000e+30 : f32
    %94 = vector.broadcast %cst_55 : f32 to vector<4x4xf32>
    %95 = arith.select %14, %93, %94 : vector<4x4xi1>, vector<4x4xf32>
    %c2 = arith.constant 2 : index
    %c0_56 = arith.constant 0 : index
    %c0_57 = arith.constant 0 : index
    %96 = vector.load %arg7[%c2, %c0_56, %c0_57] : memref<4x4x1xf32, #tpu.memory_space<vmem>>, vector<1x4x1xf32>
    %97 = vector.shape_cast %96 : vector<1x4x1xf32> to vector<4x1xf32>
    %cst_58 = arith.constant dense<0xFF800000> : vector<4xf32>
    %98 = vector.multi_reduction <maximumf>, %95, %cst_58 [1] : vector<4x4xf32> to vector<4xf32>
    %99 = vector.shape_cast %98 : vector<4xf32> to vector<4x1xf32>
    %100 = arith.maximumf %97, %99 : vector<4x1xf32>
    %101 = arith.subf %97, %100 : vector<4x1xf32>
    %102 = math.exp %101 : vector<4x1xf32>
    %103 = vector.broadcast %100 : vector<4x1xf32> to vector<4x4xf32>
    %104 = arith.subf %95, %103 : vector<4x4xf32>
    %105 = math.exp %104 : vector<4x4xf32>
    %c2_59 = arith.constant 2 : index
    %c0_60 = arith.constant 0 : index
    %c0_61 = arith.constant 0 : index
    %106 = vector.load %arg8[%c2_59, %c0_60, %c0_61] : memref<4x4x1xf32, #tpu.memory_space<vmem>>, vector<1x4x1xf32>
    %107 = vector.shape_cast %106 : vector<1x4x1xf32> to vector<4x1xf32>
    %108 = arith.mulf %102, %107 : vector<4x1xf32>
    %cst_62 = arith.constant dense<0.000000e+00> : vector<4xf32>
    %109 = vector.multi_reduction <add>, %105, %cst_62 [1] : vector<4x4xf32> to vector<4xf32>
    %110 = vector.shape_cast %109 : vector<4xf32> to vector<4x1xf32>
    %111 = arith.addf %108, %110 : vector<4x1xf32>
    %c2_63 = arith.constant 2 : index
    %c0_64 = arith.constant 0 : index
    %c0_65 = arith.constant 0 : index
    %112 = vector.load %arg8[%c2_63, %c0_64, %c0_65] : memref<4x4x1xf32, #tpu.memory_space<vmem>>, vector<1x4x1xf32>
    %113 = vector.shape_cast %112 : vector<1x4x1xf32> to vector<4x1xf32>
    %114 = vector.shape_cast %111 : vector<4x1xf32> to vector<1x4x1xf32>
    tpu.vector_store %arg8[%c2_63, %c0_64, %c0_65], %114 {strides = array<i32>} : memref<4x4x1xf32, #tpu.memory_space<vmem>>, vector<1x4x1xf32>,
    %c2_66 = arith.constant 2 : index
    %c0_67 = arith.constant 0 : index
    %c0_68 = arith.constant 0 : index
    %115 = vector.load %arg9[%c2_66, %c0_67, %c0_68] : memref<4x4x8xf32, #tpu.memory_space<vmem>>, vector<1x4x8xf32>
    %116 = vector.shape_cast %115 : vector<1x4x8xf32> to vector<4x8xf32>
    %117 = vector.broadcast %102 : vector<4x1xf32> to vector<4x8xf32>
    %118 = arith.mulf %117, %116 : vector<4x8xf32>
    %119 = arith.truncf %105 : vector<4x4xf32> to vector<4x4xbf16>
    %120 = vector.extract_strided_slice %8 {offsets = [0, 16], sizes = [4, 8], strides = [1, 1]} : vector<4x32xbf16> to vector<4x8xbf16>
    %cst_69 = arith.constant dense<0.000000e+00> : vector<4x8xf32>
    %121 = tpu.matmul %119, %120, %cst_69 {dimension_numbers = #tpu.dot_dimension_numbers<[1], [0], [0], [1], [0, 0, 1, 1], [], []>} : vector<4x4xbf16>, vector<4x8xbf16>, vector<4x8xf32> -> vector<4x8xf32>
    %122 = arith.addf %118, %121 : vector<4x8xf32>
    %c2_70 = arith.constant 2 : index
    %c0_71 = arith.constant 0 : index
    %c0_72 = arith.constant 0 : index
    %123 = vector.load %arg9[%c2_70, %c0_71, %c0_72] : memref<4x4x8xf32, #tpu.memory_space<vmem>>, vector<1x4x8xf32>
    %124 = vector.shape_cast %123 : vector<1x4x8xf32> to vector<4x8xf32>
    %125 = vector.shape_cast %122 : vector<4x8xf32> to vector<1x4x8xf32>
    tpu.vector_store %arg9[%c2_70, %c0_71, %c0_72], %125 {strides = array<i32>} : memref<4x4x8xf32, #tpu.memory_space<vmem>>, vector<1x4x8xf32>,
    %c2_73 = arith.constant 2 : index
    %c0_74 = arith.constant 0 : index
    %c0_75 = arith.constant 0 : index
    %126 = vector.load %arg7[%c2_73, %c0_74, %c0_75] : memref<4x4x1xf32, #tpu.memory_space<vmem>>, vector<1x4x1xf32>
    %127 = vector.shape_cast %126 : vector<1x4x1xf32> to vector<4x1xf32>
    %128 = vector.shape_cast %100 : vector<4x1xf32> to vector<1x4x1xf32>
    tpu.vector_store %arg7[%c2_73, %c0_74, %c0_75], %128 {strides = array<i32>} : memref<4x4x1xf32, #tpu.memory_space<vmem>>, vector<1x4x1xf32>,
    %129 = vector.extract_strided_slice %4 {offsets = [0, 24], sizes = [4, 8], strides = [1, 1]} : vector<4x32xbf16> to vector<4x8xbf16>
    %130 = vector.extract_strided_slice %6 {offsets = [0, 24], sizes = [4, 8], strides = [1, 1]} : vector<4x32xbf16> to vector<4x8xbf16>
    %cst_76 = arith.constant dense<0.000000e+00> : vector<4x4xf32>
    %131 = tpu.matmul %129, %130, %cst_76 {dimension_numbers = #tpu.dot_dimension_numbers<[1], [1], [0], [0], [0, 0, 1, 0], [], []>} : vector<4x8xbf16>, vector<4x8xbf16>, vector<4x4xf32> -> vector<4x4xf32>
    %cst_77 = arith.constant -1.000000e+30 : f32
    %132 = vector.broadcast %cst_77 : f32 to vector<4x4xf32>
    %133 = arith.select %14, %131, %132 : vector<4x4xi1>, vector<4x4xf32>
    %c3 = arith.constant 3 : index
    %c0_78 = arith.constant 0 : index
    %c0_79 = arith.constant 0 : index
    %134 = vector.load %arg7[%c3, %c0_78, %c0_79] : memref<4x4x1xf32, #tpu.memory_space<vmem>>, vector<1x4x1xf32>
    %135 = vector.shape_cast %134 : vector<1x4x1xf32> to vector<4x1xf32>
    %cst_80 = arith.constant dense<0xFF800000> : vector<4xf32>
    %136 = vector.multi_reduction <maximumf>, %133, %cst_80 [1] : vector<4x4xf32> to vector<4xf32>
    %137 = vector.shape_cast %136 : vector<4xf32> to vector<4x1xf32>
    %138 = arith.maximumf %135, %137 : vector<4x1xf32>
    %139 = arith.subf %135, %138 : vector<4x1xf32>
    %140 = math.exp %139 : vector<4x1xf32>
    %141 = vector.broadcast %138 : vector<4x1xf32> to vector<4x4xf32>
    %142 = arith.subf %133, %141 : vector<4x4xf32>
    %143 = math.exp %142 : vector<4x4xf32>
    %c3_81 = arith.constant 3 : index
    %c0_82 = arith.constant 0 : index
    %c0_83 = arith.constant 0 : index
    %144 = vector.load %arg8[%c3_81, %c0_82, %c0_83] : memref<4x4x1xf32, #tpu.memory_space<vmem>>, vector<1x4x1xf32>
    %145 = vector.shape_cast %144 : vector<1x4x1xf32> to vector<4x1xf32>
    %146 = arith.mulf %140, %145 : vector<4x1xf32>
    %cst_84 = arith.constant dense<0.000000e+00> : vector<4xf32>
    %147 = vector.multi_reduction <add>, %143, %cst_84 [1] : vector<4x4xf32> to vector<4xf32>
    %148 = vector.shape_cast %147 : vector<4xf32> to vector<4x1xf32>
    %149 = arith.addf %146, %148 : vector<4x1xf32>
    %c3_85 = arith.constant 3 : index
    %c0_86 = arith.constant 0 : index
    %c0_87 = arith.constant 0 : index
    %150 = vector.load %arg8[%c3_85, %c0_86, %c0_87] : memref<4x4x1xf32, #tpu.memory_space<vmem>>, vector<1x4x1xf32>
    %151 = vector.shape_cast %150 : vector<1x4x1xf32> to vector<4x1xf32>
    %152 = vector.shape_cast %149 : vector<4x1xf32> to vector<1x4x1xf32>
    tpu.vector_store %arg8[%c3_85, %c0_86, %c0_87], %152 {strides = array<i32>} : memref<4x4x1xf32, #tpu.memory_space<vmem>>, vector<1x4x1xf32>,
    %c3_88 = arith.constant 3 : index
    %c0_89 = arith.constant 0 : index
    %c0_90 = arith.constant 0 : index
    %153 = vector.load %arg9[%c3_88, %c0_89, %c0_90] : memref<4x4x8xf32, #tpu.memory_space<vmem>>, vector<1x4x8xf32>
    %154 = vector.shape_cast %153 : vector<1x4x8xf32> to vector<4x8xf32>
    %155 = vector.broadcast %140 : vector<4x1xf32> to vector<4x8xf32>
    %156 = arith.mulf %155, %154 : vector<4x8xf32>
    %157 = arith.truncf %143 : vector<4x4xf32> to vector<4x4xbf16>
    %158 = vector.extract_strided_slice %8 {offsets = [0, 24], sizes = [4, 8], strides = [1, 1]} : vector<4x32xbf16> to vector<4x8xbf16>
    %cst_91 = arith.constant dense<0.000000e+00> : vector<4x8xf32>
    %159 = tpu.matmul %157, %158, %cst_91 {dimension_numbers = #tpu.dot_dimension_numbers<[1], [0], [0], [1], [0, 0, 1, 1], [], []>} : vector<4x4xbf16>, vector<4x8xbf16>, vector<4x8xf32> -> vector<4x8xf32>
    %160 = arith.addf %156, %159 : vector<4x8xf32>
    %c3_92 = arith.constant 3 : index
    %c0_93 = arith.constant 0 : index
    %c0_94 = arith.constant 0 : index
    %161 = vector.load %arg9[%c3_92, %c0_93, %c0_94] : memref<4x4x8xf32, #tpu.memory_space<vmem>>, vector<1x4x8xf32>
    %162 = vector.shape_cast %161 : vector<1x4x8xf32> to vector<4x8xf32>
    %163 = vector.shape_cast %160 : vector<4x8xf32> to vector<1x4x8xf32>
    tpu.vector_store %arg9[%c3_92, %c0_93, %c0_94], %163 {strides = array<i32>} : memref<4x4x8xf32, #tpu.memory_space<vmem>>, vector<1x4x8xf32>,
    %c3_95 = arith.constant 3 : index
    %c0_96 = arith.constant 0 : index
    %c0_97 = arith.constant 0 : index
    %164 = vector.load %arg7[%c3_95, %c0_96, %c0_97] : memref<4x4x1xf32, #tpu.memory_space<vmem>>, vector<1x4x1xf32>
    %165 = vector.shape_cast %164 : vector<1x4x1xf32> to vector<4x1xf32>
    %166 = vector.shape_cast %138 : vector<4x1xf32> to vector<1x4x1xf32>
    tpu.vector_store %arg7[%c3_95, %c0_96, %c0_97], %166 {strides = array<i32>} : memref<4x4x1xf32, #tpu.memory_space<vmem>>, vector<1x4x1xf32>,
    %c0_i32_98 = arith.constant 0 : i32
    %167 = arith.cmpi eq, %arg2, %c0_i32_98 : i32
    %168 = arith.extui %167 : i1 to i32
    %c0_i32_99 = arith.constant 0 : i32
    %169 = arith.cmpi ne, %168, %c0_i32_99 : i32
    scf.if %169 {
      %c0_100 = arith.constant 0 : index
      %c0_101 = arith.constant 0 : index
      %c0_102 = arith.constant 0 : index
      %170 = vector.load %arg9[%c0_100, %c0_101, %c0_102] : memref<4x4x8xf32, #tpu.memory_space<vmem>>, vector<1x4x8xf32>
      %171 = vector.shape_cast %170 : vector<1x4x8xf32> to vector<4x8xf32>
      %c0_103 = arith.constant 0 : index
      %c0_104 = arith.constant 0 : index
      %c0_105 = arith.constant 0 : index
      %172 = vector.load %arg8[%c0_103, %c0_104, %c0_105] : memref<4x4x1xf32, #tpu.memory_space<vmem>>, vector<1x4x1xf32>
      %173 = vector.shape_cast %172 : vector<1x4x1xf32> to vector<4x1xf32>
      %174 = tpu.reciprocal %173 {approx = true} : vector<4x1xf32> -> vector<4x1xf32>
      %175 = vector.broadcast %174 : vector<4x1xf32> to vector<4x8xf32>
      %176 = arith.mulf %171, %175 : vector<4x8xf32>
      %c1_106 = arith.constant 1 : index
      %c0_107 = arith.constant 0 : index
      %c0_108 = arith.constant 0 : index
      %177 = vector.load %arg9[%c1_106, %c0_107, %c0_108] : memref<4x4x8xf32, #tpu.memory_space<vmem>>, vector<1x4x8xf32>
      %178 = vector.shape_cast %177 : vector<1x4x8xf32> to vector<4x8xf32>
      %c1_109 = arith.constant 1 : index
      %c0_110 = arith.constant 0 : index
      %c0_111 = arith.constant 0 : index
      %179 = vector.load %arg8[%c1_109, %c0_110, %c0_111] : memref<4x4x1xf32, #tpu.memory_space<vmem>>, vector<1x4x1xf32>
      %180 = vector.shape_cast %179 : vector<1x4x1xf32> to vector<4x1xf32>
      %181 = tpu.reciprocal %180 {approx = true} : vector<4x1xf32> -> vector<4x1xf32>
      %182 = vector.broadcast %181 : vector<4x1xf32> to vector<4x8xf32>
      %183 = arith.mulf %178, %182 : vector<4x8xf32>
      %c2_112 = arith.constant 2 : index
      %c0_113 = arith.constant 0 : index
      %c0_114 = arith.constant 0 : index
      %184 = vector.load %arg9[%c2_112, %c0_113, %c0_114] : memref<4x4x8xf32, #tpu.memory_space<vmem>>, vector<1x4x8xf32>
      %185 = vector.shape_cast %184 : vector<1x4x8xf32> to vector<4x8xf32>
      %c2_115 = arith.constant 2 : index
      %c0_116 = arith.constant 0 : index
      %c0_117 = arith.constant 0 : index
      %186 = vector.load %arg8[%c2_115, %c0_116, %c0_117] : memref<4x4x1xf32, #tpu.memory_space<vmem>>, vector<1x4x1xf32>
      %187 = vector.shape_cast %186 : vector<1x4x1xf32> to vector<4x1xf32>
      %188 = tpu.reciprocal %187 {approx = true} : vector<4x1xf32> -> vector<4x1xf32>
      %189 = vector.broadcast %188 : vector<4x1xf32> to vector<4x8xf32>
      %190 = arith.mulf %185, %189 : vector<4x8xf32>
      %c3_118 = arith.constant 3 : index
      %c0_119 = arith.constant 0 : index
      %c0_120 = arith.constant 0 : index
      %191 = vector.load %arg9[%c3_118, %c0_119, %c0_120] : memref<4x4x8xf32, #tpu.memory_space<vmem>>, vector<1x4x8xf32>
      %192 = vector.shape_cast %191 : vector<1x4x8xf32> to vector<4x8xf32>
      %c3_121 = arith.constant 3 : index
      %c0_122 = arith.constant 0 : index
      %c0_123 = arith.constant 0 : index
      %193 = vector.load %arg8[%c3_121, %c0_122, %c0_123] : memref<4x4x1xf32, #tpu.memory_space<vmem>>, vector<1x4x1xf32>
      %194 = vector.shape_cast %193 : vector<1x4x1xf32> to vector<4x1xf32>
      %195 = tpu.reciprocal %194 {approx = true} : vector<4x1xf32> -> vector<4x1xf32>
      %196 = vector.broadcast %195 : vector<4x1xf32> to vector<4x8xf32>
      %197 = arith.mulf %192, %196 : vector<4x8xf32>
      %198 = tpu.concatenate %176, %183, %190, %197 in 1 : vector<4x8xf32>, vector<4x8xf32>, vector<4x8xf32>, vector<4x8xf32> -> vector<4x32xf32>
      %199 = arith.truncf %198 : vector<4x32xf32> to vector<4x32xbf16>
      %c0_124 = arith.constant 0 : index
      %c0_125 = arith.constant 0 : index
      %c0_126 = arith.constant 0 : index
      %200 = vector.load %arg6[%c0_124, %c0_125, %c0_126] : memref<1x4x32xbf16, #tpu.memory_space<vmem>>, vector<1x4x32xbf16>
      %201 = vector.shape_cast %200 : vector<1x4x32xbf16> to vector<4x32xbf16>
      %202 = vector.shape_cast %199 : vector<4x32xbf16> to vector<1x4x32xbf16>
      tpu.vector_store %arg6[%c0_124, %c0_125, %c0_126], %202 {strides = array<i32>} : memref<1x4x32xbf16, #tpu.memory_space<vmem>>, vector<1x4x32xbf16>,
    } else {
    }
    return
  }
  func.func @transform_0(%arg0: i32, %arg1: i32, %arg2: i32) -> (i32, i32, i32) {
    %c0_i32 = arith.constant 0 : i32
    %c0_i32_0 = arith.constant 0 : i32
    return %arg0, %arg1, %c0_i32 : i32, i32, i32
  }
  func.func @transform_1(%arg0: i32, %arg1: i32, %arg2: i32) -> (i32, i32, i32) {
    %c0_i32 = arith.constant 0 : i32
    %c0_i32_0 = arith.constant 0 : i32
    return %arg0, %arg2, %c0_i32 : i32, i32, i32
  }
  func.func @transform_2(%arg0: i32, %arg1: i32, %arg2: i32) -> (i32, i32, i32) {
    %c0_i32 = arith.constant 0 : i32
    %c0_i32_0 = arith.constant 0 : i32
    return %arg0, %arg2, %c0_i32 : i32, i32, i32
  }
  func.func @transform_3(%arg0: i32, %arg1: i32, %arg2: i32) -> (i32, i32, i32) {
    %c0_i32 = arith.constant 0 : i32
    %c0_i32_0 = arith.constant 0 : i32
    return %arg0, %arg1, %c0_i32 : i32, i32, i32
  }
}

module attributes {stable_mosaic.version = 11 : i64} {
  func.func @_linear_kernel(%arg0: i32, %arg1: i32, %arg2: i32, %arg3: memref<8x64xbf16, #tpu.memory_space<vmem>>, %arg4: memref<64x32xbf16, #tpu.memory_space<vmem>>, %arg5: memref<1x32xbf16, #tpu.memory_space<vmem>>, %arg6: memref<8x32xbf16, #tpu.memory_space<vmem>>, %arg7: memref<8x32xbf16, #tpu.memory_space<vmem>>, %arg8: memref<8x32xf32, #tpu.memory_space<vmem>>) attributes {dimension_semantics = [#tpu.dimension_semantics<parallel>, #tpu.dimension_semantics<parallel>, #tpu.dimension_semantics<arbitrary>], iteration_bounds = array<i64: 1, 1, 1>, scalar_prefetch = 0 : i64, scratch_operands = 1 : i64, tpu.core_type = #tpu.core_type<tc>, window_params = [{transform_indices = @transform_0, window_bounds = array<i64: 8, 64>}, {transform_indices = @transform_1, window_bounds = array<i64: 64, 32>}, {transform_indices = @transform_2, window_bounds = array<i64: 1, 32>}, {transform_indices = @transform_3, window_bounds = array<i64: 8, 32>}, {transform_indices = @transform_4, window_bounds = array<i64: 8, 32>}]} {
    %c0_i32 = arith.constant 0 : i32
    %0 = arith.cmpi eq, %arg2, %c0_i32 : i32
    %1 = arith.extui %0 : i1 to i32
    %c0_i32_0 = arith.constant 0 : i32
    %2 = arith.cmpi ne, %1, %c0_i32_0 : i32
    scf.if %2 {
      %cst_10 = arith.constant 0.000000e+00 : f32
      %12 = vector.broadcast %cst_10 : f32 to vector<8x32xf32>
      %c0_11 = arith.constant 0 : index
      %c0_12 = arith.constant 0 : index
      %13 = vector.load %arg8[%c0_11, %c0_12] : memref<8x32xf32, #tpu.memory_space<vmem>>, vector<8x32xf32>
      tpu.vector_store %arg8[%c0_11, %c0_12], %12 {strides = array<i32>} : memref<8x32xf32, #tpu.memory_space<vmem>>, vector<8x32xf32>,
    } else {
    }
    %c0 = arith.constant 0 : index
    %c0_1 = arith.constant 0 : index
    %3 = vector.load %arg3[%c0, %c0_1] : memref<8x64xbf16, #tpu.memory_space<vmem>>, vector<8x64xbf16>
    %c0_2 = arith.constant 0 : index
    %c0_3 = arith.constant 0 : index
    %4 = vector.load %arg8[%c0_2, %c0_3] : memref<8x32xf32, #tpu.memory_space<vmem>>, vector<8x32xf32>
    %c0_4 = arith.constant 0 : index
    %c0_5 = arith.constant 0 : index
    %5 = vector.load %arg4[%c0_4, %c0_5] : memref<64x32xbf16, #tpu.memory_space<vmem>>, vector<64x32xbf16>
    %cst = arith.constant dense<0.000000e+00> : vector<8x32xf32>
    %6 = tpu.matmul %3, %5, %cst {dimension_numbers = #tpu.dot_dimension_numbers<[1], [0], [0], [1], [0, 0, 1, 1], [], []>} : vector<8x64xbf16>, vector<64x32xbf16>, vector<8x32xf32> -> vector<8x32xf32>
    %7 = arith.addf %4, %6 : vector<8x32xf32>
    %c0_6 = arith.constant 0 : index
    %c0_7 = arith.constant 0 : index
    %8 = vector.load %arg8[%c0_6, %c0_7] : memref<8x32xf32, #tpu.memory_space<vmem>>, vector<8x32xf32>
    tpu.vector_store %arg8[%c0_6, %c0_7], %7 {strides = array<i32>} : memref<8x32xf32, #tpu.memory_space<vmem>>, vector<8x32xf32>,
    %c0_i32_8 = arith.constant 0 : i32
    %9 = arith.cmpi eq, %arg2, %c0_i32_8 : i32
    %10 = arith.extui %9 : i1 to i32
    %c0_i32_9 = arith.constant 0 : i32
    %11 = arith.cmpi ne, %10, %c0_i32_9 : i32
    scf.if %11 {
      %c0_10 = arith.constant 0 : index
      %c0_11 = arith.constant 0 : index
      %12 = vector.load %arg8[%c0_10, %c0_11] : memref<8x32xf32, #tpu.memory_space<vmem>>, vector<8x32xf32>
      %c0_12 = arith.constant 0 : index
      %c0_13 = arith.constant 0 : index
      %13 = vector.load %arg5[%c0_12, %c0_13] : memref<1x32xbf16, #tpu.memory_space<vmem>>, vector<1x32xbf16>
      %14 = arith.extf %13 : vector<1x32xbf16> to vector<1x32xf32>
      %15 = vector.broadcast %14 : vector<1x32xf32> to vector<8x32xf32>
      %16 = arith.addf %12, %15 : vector<8x32xf32>
      %c0_14 = arith.constant 0 : index
      %c0_15 = arith.constant 0 : index
      %17 = vector.load %arg6[%c0_14, %c0_15] : memref<8x32xbf16, #tpu.memory_space<vmem>>, vector<8x32xbf16>
      %18 = arith.extf %17 : vector<8x32xbf16> to vector<8x32xf32>
      %19 = arith.addf %16, %18 : vector<8x32xf32>
      %20 = arith.truncf %19 : vector<8x32xf32> to vector<8x32xbf16>
      %c0_16 = arith.constant 0 : index
      %c0_17 = arith.constant 0 : index
      %21 = vector.load %arg7[%c0_16, %c0_17] : memref<8x32xbf16, #tpu.memory_space<vmem>>, vector<8x32xbf16>
      tpu.vector_store %arg7[%c0_16, %c0_17], %20 {strides = array<i32>} : memref<8x32xbf16, #tpu.memory_space<vmem>>, vector<8x32xbf16>,
    } else {
    }
    return
  }
  func.func @transform_0(%arg0: i32, %arg1: i32, %arg2: i32) -> (i32, i32) {
    %c0_i32 = arith.constant 0 : i32
    return %arg0, %arg2 : i32, i32
  }
  func.func @transform_1(%arg0: i32, %arg1: i32, %arg2: i32) -> (i32, i32) {
    %c0_i32 = arith.constant 0 : i32
    return %arg2, %arg1 : i32, i32
  }
  func.func @transform_2(%arg0: i32, %arg1: i32, %arg2: i32) -> (i32, i32) {
    %c0_i32 = arith.constant 0 : i32
    %c0_i32_0 = arith.constant 0 : i32
    return %c0_i32, %arg1 : i32, i32
  }
  func.func @transform_3(%arg0: i32, %arg1: i32, %arg2: i32) -> (i32, i32) {
    %c0_i32 = arith.constant 0 : i32
    return %arg0, %arg1 : i32, i32
  }
  func.func @transform_4(%arg0: i32, %arg1: i32, %arg2: i32) -> (i32, i32) {
    %c0_i32 = arith.constant 0 : i32
    return %arg0, %arg1 : i32, i32
  }
}

module attributes {stable_mosaic.version = 11 : i64} {
  func.func @_linear_kernel(%arg0: i32, %arg1: i32, %arg2: i32, %arg3: memref<8x32xbf16, #tpu.memory_space<vmem>>, %arg4: memref<32x64xbf16, #tpu.memory_space<vmem>>, %arg5: memref<1x64xbf16, #tpu.memory_space<vmem>>, %arg6: memref<1x32xf32, #tpu.memory_space<vmem>>, %arg7: memref<1x32xf32, #tpu.memory_space<vmem>>, %arg8: memref<8x64xbf16, #tpu.memory_space<vmem>>, %arg9: memref<8x64xf32, #tpu.memory_space<vmem>>) attributes {dimension_semantics = [#tpu.dimension_semantics<parallel>, #tpu.dimension_semantics<parallel>, #tpu.dimension_semantics<arbitrary>], iteration_bounds = array<i64: 1, 1, 1>, scalar_prefetch = 0 : i64, scratch_operands = 1 : i64, tpu.core_type = #tpu.core_type<tc>, window_params = [{transform_indices = @transform_0, window_bounds = array<i64: 8, 32>}, {transform_indices = @transform_1, window_bounds = array<i64: 32, 64>}, {transform_indices = @transform_2, window_bounds = array<i64: 1, 64>}, {transform_indices = @transform_3, window_bounds = array<i64: 1, 32>}, {transform_indices = @transform_4, window_bounds = array<i64: 1, 32>}, {transform_indices = @transform_5, window_bounds = array<i64: 8, 64>}]} {
    %c0_i32 = arith.constant 0 : i32
    %0 = arith.cmpi eq, %arg2, %c0_i32 : i32
    %1 = arith.extui %0 : i1 to i32
    %c0_i32_0 = arith.constant 0 : i32
    %2 = arith.cmpi ne, %1, %c0_i32_0 : i32
    scf.if %2 {
      %cst_19 = arith.constant 0.000000e+00 : f32
      %38 = vector.broadcast %cst_19 : f32 to vector<8x64xf32>
      %c0_20 = arith.constant 0 : index
      %c0_21 = arith.constant 0 : index
      %39 = vector.load %arg9[%c0_20, %c0_21] : memref<8x64xf32, #tpu.memory_space<vmem>>, vector<8x64xf32>
      tpu.vector_store %arg9[%c0_20, %c0_21], %38 {strides = array<i32>} : memref<8x64xf32, #tpu.memory_space<vmem>>, vector<8x64xf32>,
    } else {
    }
    %c0 = arith.constant 0 : index
    %c0_1 = arith.constant 0 : index
    %3 = vector.load %arg3[%c0, %c0_1] : memref<8x32xbf16, #tpu.memory_space<vmem>>, vector<8x32xbf16>
    %4 = arith.extf %3 : vector<8x32xbf16> to vector<8x32xf32>
    %cst = arith.constant dense<0.000000e+00> : vector<8xf32>
    %5 = vector.multi_reduction <add>, %4, %cst [1] : vector<8x32xf32> to vector<8xf32>
    %6 = vector.shape_cast %5 : vector<8xf32> to vector<8x1xf32>
    %cst_2 = arith.constant 3.200000e+01 : f32
    %7 = vector.broadcast %cst_2 : f32 to vector<8x1xf32>
    %8 = arith.divf %6, %7 : vector<8x1xf32>
    %9 = vector.broadcast %8 : vector<8x1xf32> to vector<8x32xf32>
    %10 = arith.subf %4, %9 : vector<8x32xf32>
    %11 = arith.mulf %10, %10 : vector<8x32xf32>
    %cst_3 = arith.constant dense<0.000000e+00> : vector<8xf32>
    %12 = vector.multi_reduction <add>, %11, %cst_3 [1] : vector<8x32xf32> to vector<8xf32>
    %13 = vector.shape_cast %12 : vector<8xf32> to vector<8x1xf32>
    %cst_4 = arith.constant 3.200000e+01 : f32
    %14 = vector.broadcast %cst_4 : f32 to vector<8x1xf32>
    %15 = arith.divf %13, %14 : vector<8x1xf32>
    %16 = vector.broadcast %8 : vector<8x1xf32> to vector<8x32xf32>
    %17 = arith.subf %4, %16 : vector<8x32xf32>
    %cst_5 = arith.constant 9.99999997E-7 : f32
    %18 = vector.broadcast %cst_5 : f32 to vector<8x1xf32>
    %19 = arith.addf %15, %18 : vector<8x1xf32>
    %20 = math.rsqrt %19 : vector<8x1xf32>
    %21 = vector.broadcast %20 : vector<8x1xf32> to vector<8x32xf32>
    %22 = arith.mulf %17, %21 : vector<8x32xf32>
    %c0_6 = arith.constant 0 : index
    %c0_7 = arith.constant 0 : index
    %23 = vector.load %arg6[%c0_6, %c0_7] : memref<1x32xf32, #tpu.memory_space<vmem>>, vector<1x32xf32>
    %24 = vector.broadcast %23 : vector<1x32xf32> to vector<8x32xf32>
    %25 = arith.mulf %22, %24 : vector<8x32xf32>
    %c0_8 = arith.constant 0 : index
    %c0_9 = arith.constant 0 : index
    %26 = vector.load %arg7[%c0_8, %c0_9] : memref<1x32xf32, #tpu.memory_space<vmem>>, vector<1x32xf32>
    %27 = vector.broadcast %26 : vector<1x32xf32> to vector<8x32xf32>
    %28 = arith.addf %25, %27 : vector<8x32xf32>
    %29 = arith.truncf %28 : vector<8x32xf32> to vector<8x32xbf16>
    %c0_10 = arith.constant 0 : index
    %c0_11 = arith.constant 0 : index
    %30 = vector.load %arg9[%c0_10, %c0_11] : memref<8x64xf32, #tpu.memory_space<vmem>>, vector<8x64xf32>
    %c0_12 = arith.constant 0 : index
    %c0_13 = arith.constant 0 : index
    %31 = vector.load %arg4[%c0_12, %c0_13] : memref<32x64xbf16, #tpu.memory_space<vmem>>, vector<32x64xbf16>
    %cst_14 = arith.constant dense<0.000000e+00> : vector<8x64xf32>
    %32 = tpu.matmul %29, %31, %cst_14 {dimension_numbers = #tpu.dot_dimension_numbers<[1], [0], [0], [1], [0, 0, 1, 1], [], []>} : vector<8x32xbf16>, vector<32x64xbf16>, vector<8x64xf32> -> vector<8x64xf32>
    %33 = arith.addf %30, %32 : vector<8x64xf32>
    %c0_15 = arith.constant 0 : index
    %c0_16 = arith.constant 0 : index
    %34 = vector.load %arg9[%c0_15, %c0_16] : memref<8x64xf32, #tpu.memory_space<vmem>>, vector<8x64xf32>
    tpu.vector_store %arg9[%c0_15, %c0_16], %33 {strides = array<i32>} : memref<8x64xf32, #tpu.memory_space<vmem>>, vector<8x64xf32>,
    %c0_i32_17 = arith.constant 0 : i32
    %35 = arith.cmpi eq, %arg2, %c0_i32_17 : i32
    %36 = arith.extui %35 : i1 to i32
    %c0_i32_18 = arith.constant 0 : i32
    %37 = arith.cmpi ne, %36, %c0_i32_18 : i32
    scf.if %37 {
      %c0_19 = arith.constant 0 : index
      %c0_20 = arith.constant 0 : index
      %38 = vector.load %arg9[%c0_19, %c0_20] : memref<8x64xf32, #tpu.memory_space<vmem>>, vector<8x64xf32>
      %c0_21 = arith.constant 0 : index
      %c0_22 = arith.constant 0 : index
      %39 = vector.load %arg5[%c0_21, %c0_22] : memref<1x64xbf16, #tpu.memory_space<vmem>>, vector<1x64xbf16>
      %40 = arith.extf %39 : vector<1x64xbf16> to vector<1x64xf32>
      %41 = vector.broadcast %40 : vector<1x64xf32> to vector<8x64xf32>
      %42 = arith.addf %38, %41 : vector<8x64xf32>
      %cst_23 = arith.constant 5.000000e-01 : f32
      %43 = vector.broadcast %cst_23 : f32 to vector<8x64xf32>
      %44 = arith.mulf %43, %42 : vector<8x64xf32>
      %cst_24 = arith.constant 4.471500e-02 : f32
      %45 = vector.broadcast %cst_24 : f32 to vector<8x64xf32>
      %46 = arith.mulf %45, %42 : vector<8x64xf32>
      %47 = arith.mulf %46, %42 : vector<8x64xf32>
      %48 = arith.mulf %47, %42 : vector<8x64xf32>
      %49 = arith.addf %42, %48 : vector<8x64xf32>
      %cst_25 = arith.constant 0.797884583 : f32
      %50 = vector.broadcast %cst_25 : f32 to vector<8x64xf32>
      %51 = arith.mulf %50, %49 : vector<8x64xf32>
      %52 = math.tanh %51 : vector<8x64xf32>
      %cst_26 = arith.constant 1.000000e+00 : f32
      %53 = vector.broadcast %cst_26 : f32 to vector<8x64xf32>
      %54 = arith.addf %53, %52 : vector<8x64xf32>
      %55 = arith.mulf %44, %54 : vector<8x64xf32>
      %56 = arith.truncf %55 : vector<8x64xf32> to vector<8x64xbf16>
      %c0_27 = arith.constant 0 : index
      %c0_28 = arith.constant 0 : index
      %57 = vector.load %arg8[%c0_27, %c0_28] : memref<8x64xbf16, #tpu.memory_space<vmem>>, vector<8x64xbf16>
      tpu.vector_store %arg8[%c0_27, %c0_28], %56 {strides = array<i32>} : memref<8x64xbf16, #tpu.memory_space<vmem>>, vector<8x64xbf16>,
    } else {
    }
    return
  }
  func.func @transform_0(%arg0: i32, %arg1: i32, %arg2: i32) -> (i32, i32) {
    %c0_i32 = arith.constant 0 : i32
    return %arg0, %arg2 : i32, i32
  }
  func.func @transform_1(%arg0: i32, %arg1: i32, %arg2: i32) -> (i32, i32) {
    %c0_i32 = arith.constant 0 : i32
    return %arg2, %arg1 : i32, i32
  }
  func.func @transform_2(%arg0: i32, %arg1: i32, %arg2: i32) -> (i32, i32) {
    %c0_i32 = arith.constant 0 : i32
    %c0_i32_0 = arith.constant 0 : i32
    return %c0_i32, %arg1 : i32, i32
  }
  func.func @transform_3(%arg0: i32, %arg1: i32, %arg2: i32) -> (i32, i32) {
    %c0_i32 = arith.constant 0 : i32
    %c0_i32_0 = arith.constant 0 : i32
    return %c0_i32, %arg2 : i32, i32
  }
  func.func @transform_4(%arg0: i32, %arg1: i32, %arg2: i32) -> (i32, i32) {
    %c0_i32 = arith.constant 0 : i32
    %c0_i32_0 = arith.constant 0 : i32
    return %c0_i32, %arg2 : i32, i32
  }
  func.func @transform_5(%arg0: i32, %arg1: i32, %arg2: i32) -> (i32, i32) {
    %c0_i32 = arith.constant 0 : i32
    return %arg0, %arg1 : i32, i32
  }
}

module attributes {stable_mosaic.version = 11 : i64} {
  func.func @_ln_kernel(%arg0: i32, %arg1: memref<8x32xbf16, #tpu.memory_space<vmem>>, %arg2: memref<1x32xf32, #tpu.memory_space<vmem>>, %arg3: memref<1x32xf32, #tpu.memory_space<vmem>>, %arg4: memref<8x32xbf16, #tpu.memory_space<vmem>>) attributes {dimension_semantics = [#tpu.dimension_semantics<parallel>], iteration_bounds = array<i64: 1>, scalar_prefetch = 0 : i64, scratch_operands = 0 : i64, tpu.core_type = #tpu.core_type<tc>, window_params = [{transform_indices = @transform_0, window_bounds = array<i64: 8, 32>}, {pipeline_mode = #tpu.pipeline_mode<synchronous>, transform_indices = @transform_1, window_bounds = array<i64: 1, 32>}, {pipeline_mode = #tpu.pipeline_mode<synchronous>, transform_indices = @transform_2, window_bounds = array<i64: 1, 32>}, {transform_indices = @transform_3, window_bounds = array<i64: 8, 32>}]} {
    %c0 = arith.constant 0 : index
    %c0_0 = arith.constant 0 : index
    %0 = vector.load %arg1[%c0, %c0_0] : memref<8x32xbf16, #tpu.memory_space<vmem>>, vector<8x32xbf16>
    %1 = arith.extf %0 : vector<8x32xbf16> to vector<8x32xf32>
    %cst = arith.constant dense<0.000000e+00> : vector<8xf32>
    %2 = vector.multi_reduction <add>, %1, %cst [1] : vector<8x32xf32> to vector<8xf32>
    %3 = vector.shape_cast %2 : vector<8xf32> to vector<8x1xf32>
    %cst_1 = arith.constant 3.200000e+01 : f32
    %4 = vector.broadcast %cst_1 : f32 to vector<8x1xf32>
    %5 = arith.divf %3, %4 : vector<8x1xf32>
    %6 = vector.broadcast %5 : vector<8x1xf32> to vector<8x32xf32>
    %7 = arith.subf %1, %6 : vector<8x32xf32>
    %8 = arith.mulf %7, %7 : vector<8x32xf32>
    %cst_2 = arith.constant dense<0.000000e+00> : vector<8xf32>
    %9 = vector.multi_reduction <add>, %8, %cst_2 [1] : vector<8x32xf32> to vector<8xf32>
    %10 = vector.shape_cast %9 : vector<8xf32> to vector<8x1xf32>
    %cst_3 = arith.constant 3.200000e+01 : f32
    %11 = vector.broadcast %cst_3 : f32 to vector<8x1xf32>
    %12 = arith.divf %10, %11 : vector<8x1xf32>
    %13 = vector.broadcast %5 : vector<8x1xf32> to vector<8x32xf32>
    %14 = arith.subf %1, %13 : vector<8x32xf32>
    %cst_4 = arith.constant 9.99999997E-7 : f32
    %15 = vector.broadcast %cst_4 : f32 to vector<8x1xf32>
    %16 = arith.addf %12, %15 : vector<8x1xf32>
    %17 = math.rsqrt %16 : vector<8x1xf32>
    %18 = vector.broadcast %17 : vector<8x1xf32> to vector<8x32xf32>
    %19 = arith.mulf %14, %18 : vector<8x32xf32>
    %c0_5 = arith.constant 0 : index
    %c0_6 = arith.constant 0 : index
    %20 = vector.load %arg2[%c0_5, %c0_6] : memref<1x32xf32, #tpu.memory_space<vmem>>, vector<1x32xf32>
    %21 = vector.broadcast %20 : vector<1x32xf32> to vector<8x32xf32>
    %22 = arith.mulf %19, %21 : vector<8x32xf32>
    %c0_7 = arith.constant 0 : index
    %c0_8 = arith.constant 0 : index
    %23 = vector.load %arg3[%c0_7, %c0_8] : memref<1x32xf32, #tpu.memory_space<vmem>>, vector<1x32xf32>
    %24 = vector.broadcast %23 : vector<1x32xf32> to vector<8x32xf32>
    %25 = arith.addf %22, %24 : vector<8x32xf32>
    %26 = arith.truncf %25 : vector<8x32xf32> to vector<8x32xbf16>
    %c0_9 = arith.constant 0 : index
    %c0_10 = arith.constant 0 : index
    %27 = vector.load %arg4[%c0_9, %c0_10] : memref<8x32xbf16, #tpu.memory_space<vmem>>, vector<8x32xbf16>
    tpu.vector_store %arg4[%c0_9, %c0_10], %26 {strides = array<i32>} : memref<8x32xbf16, #tpu.memory_space<vmem>>, vector<8x32xbf16>,
    return
  }
  func.func @transform_0(%arg0: i32) -> (i32, i32) {
    %c0_i32 = arith.constant 0 : i32
    %c0_i32_0 = arith.constant 0 : i32
    return %arg0, %c0_i32 : i32, i32
  }
  func.func @transform_1(%arg0: i32) -> (i32, i32) {
    %c0_i32 = arith.constant 0 : i32
    %c0_i32_0 = arith.constant 0 : i32
    %c0_i32_1 = arith.constant 0 : i32
    return %c0_i32, %c0_i32_0 : i32, i32
  }
  func.func @transform_2(%arg0: i32) -> (i32, i32) {
    %c0_i32 = arith.constant 0 : i32
    %c0_i32_0 = arith.constant 0 : i32
    %c0_i32_1 = arith.constant 0 : i32
    return %c0_i32, %c0_i32_0 : i32, i32
  }
  func.func @transform_3(%arg0: i32) -> (i32, i32) {
    %c0_i32 = arith.constant 0 : i32
    %c0_i32_0 = arith.constant 0 : i32
    return %arg0, %c0_i32 : i32, i32
  }
}

module attributes {stable_mosaic.version = 11 : i64} {
  func.func @_linear_kernel(%arg0: i32, %arg1: i32, %arg2: i32, %arg3: memref<8x32xbf16, #tpu.memory_space<vmem>>, %arg4: memref<32x64xbf16, #tpu.memory_space<vmem>>, %arg5: memref<1x64xbf16, #tpu.memory_space<vmem>>, %arg6: memref<8x64xbf16, #tpu.memory_space<vmem>>, %arg7: memref<8x64xf32, #tpu.memory_space<vmem>>) attributes {dimension_semantics = [#tpu.dimension_semantics<parallel>, #tpu.dimension_semantics<parallel>, #tpu.dimension_semantics<arbitrary>], iteration_bounds = array<i64: 1, 1, 1>, scalar_prefetch = 0 : i64, scratch_operands = 1 : i64, tpu.core_type = #tpu.core_type<tc>, window_params = [{transform_indices = @transform_0, window_bounds = array<i64: 8, 32>}, {transform_indices = @transform_1, window_bounds = array<i64: 32, 64>}, {transform_indices = @transform_2, window_bounds = array<i64: 1, 64>}, {transform_indices = @transform_3, window_bounds = array<i64: 8, 64>}]} {
    %c0_i32 = arith.constant 0 : i32
    %0 = arith.cmpi eq, %arg2, %c0_i32 : i32
    %1 = arith.extui %0 : i1 to i32
    %c0_i32_0 = arith.constant 0 : i32
    %2 = arith.cmpi ne, %1, %c0_i32_0 : i32
    scf.if %2 {
      %cst_10 = arith.constant 0.000000e+00 : f32
      %12 = vector.broadcast %cst_10 : f32 to vector<8x64xf32>
      %c0_11 = arith.constant 0 : index
      %c0_12 = arith.constant 0 : index
      %13 = vector.load %arg7[%c0_11, %c0_12] : memref<8x64xf32, #tpu.memory_space<vmem>>, vector<8x64xf32>
      tpu.vector_store %arg7[%c0_11, %c0_12], %12 {strides = array<i32>} : memref<8x64xf32, #tpu.memory_space<vmem>>, vector<8x64xf32>,
    } else {
    }
    %c0 = arith.constant 0 : index
    %c0_1 = arith.constant 0 : index
    %3 = vector.load %arg3[%c0, %c0_1] : memref<8x32xbf16, #tpu.memory_space<vmem>>, vector<8x32xbf16>
    %c0_2 = arith.constant 0 : index
    %c0_3 = arith.constant 0 : index
    %4 = vector.load %arg7[%c0_2, %c0_3] : memref<8x64xf32, #tpu.memory_space<vmem>>, vector<8x64xf32>
    %c0_4 = arith.constant 0 : index
    %c0_5 = arith.constant 0 : index
    %5 = vector.load %arg4[%c0_4, %c0_5] : memref<32x64xbf16, #tpu.memory_space<vmem>>, vector<32x64xbf16>
    %cst = arith.constant dense<0.000000e+00> : vector<8x64xf32>
    %6 = tpu.matmul %3, %5, %cst {dimension_numbers = #tpu.dot_dimension_numbers<[1], [0], [0], [1], [0, 0, 1, 1], [], []>} : vector<8x32xbf16>, vector<32x64xbf16>, vector<8x64xf32> -> vector<8x64xf32>
    %7 = arith.addf %4, %6 : vector<8x64xf32>
    %c0_6 = arith.constant 0 : index
    %c0_7 = arith.constant 0 : index
    %8 = vector.load %arg7[%c0_6, %c0_7] : memref<8x64xf32, #tpu.memory_space<vmem>>, vector<8x64xf32>
    tpu.vector_store %arg7[%c0_6, %c0_7], %7 {strides = array<i32>} : memref<8x64xf32, #tpu.memory_space<vmem>>, vector<8x64xf32>,
    %c0_i32_8 = arith.constant 0 : i32
    %9 = arith.cmpi eq, %arg2, %c0_i32_8 : i32
    %10 = arith.extui %9 : i1 to i32
    %c0_i32_9 = arith.constant 0 : i32
    %11 = arith.cmpi ne, %10, %c0_i32_9 : i32
    scf.if %11 {
      %c0_10 = arith.constant 0 : index
      %c0_11 = arith.constant 0 : index
      %12 = vector.load %arg7[%c0_10, %c0_11] : memref<8x64xf32, #tpu.memory_space<vmem>>, vector<8x64xf32>
      %c0_12 = arith.constant 0 : index
      %c0_13 = arith.constant 0 : index
      %13 = vector.load %arg5[%c0_12, %c0_13] : memref<1x64xbf16, #tpu.memory_space<vmem>>, vector<1x64xbf16>
      %14 = arith.extf %13 : vector<1x64xbf16> to vector<1x64xf32>
      %15 = vector.broadcast %14 : vector<1x64xf32> to vector<8x64xf32>
      %16 = arith.addf %12, %15 : vector<8x64xf32>
      %17 = arith.truncf %16 : vector<8x64xf32> to vector<8x64xbf16>
      %c0_14 = arith.constant 0 : index
      %c0_15 = arith.constant 0 : index
      %18 = vector.load %arg6[%c0_14, %c0_15] : memref<8x64xbf16, #tpu.memory_space<vmem>>, vector<8x64xbf16>
      tpu.vector_store %arg6[%c0_14, %c0_15], %17 {strides = array<i32>} : memref<8x64xbf16, #tpu.memory_space<vmem>>, vector<8x64xbf16>,
    } else {
    }
    return
  }
  func.func @transform_0(%arg0: i32, %arg1: i32, %arg2: i32) -> (i32, i32) {
    %c0_i32 = arith.constant 0 : i32
    return %arg0, %arg2 : i32, i32
  }
  func.func @transform_1(%arg0: i32, %arg1: i32, %arg2: i32) -> (i32, i32) {
    %c0_i32 = arith.constant 0 : i32
    return %arg2, %arg1 : i32, i32
  }
  func.func @transform_2(%arg0: i32, %arg1: i32, %arg2: i32) -> (i32, i32) {
    %c0_i32 = arith.constant 0 : i32
    %c0_i32_0 = arith.constant 0 : i32
    return %c0_i32, %arg1 : i32, i32
  }
  func.func @transform_3(%arg0: i32, %arg1: i32, %arg2: i32) -> (i32, i32) {
    %c0_i32 = arith.constant 0 : i32
    return %arg0, %arg1 : i32, i32
  }
}

module attributes {stable_mosaic.version = 11 : i64} {
  func.func @_linear_kernel(%arg0: i32, %arg1: i32, %arg2: i32, %arg3: memref<16x32xbf16, #tpu.memory_space<vmem>>, %arg4: memref<32x96xbf16, #tpu.memory_space<vmem>>, %arg5: memref<1x96xbf16, #tpu.memory_space<vmem>>, %arg6: memref<16x96xbf16, #tpu.memory_space<vmem>>, %arg7: memref<16x96xf32, #tpu.memory_space<vmem>>) attributes {dimension_semantics = [#tpu.dimension_semantics<parallel>, #tpu.dimension_semantics<parallel>, #tpu.dimension_semantics<arbitrary>], iteration_bounds = array<i64: 1, 1, 1>, scalar_prefetch = 0 : i64, scratch_operands = 1 : i64, tpu.core_type = #tpu.core_type<tc>, window_params = [{transform_indices = @transform_0, window_bounds = array<i64: 16, 32>}, {transform_indices = @transform_1, window_bounds = array<i64: 32, 96>}, {transform_indices = @transform_2, window_bounds = array<i64: 1, 96>}, {transform_indices = @transform_3, window_bounds = array<i64: 16, 96>}]} {
    %c0_i32 = arith.constant 0 : i32
    %0 = arith.cmpi eq, %arg2, %c0_i32 : i32
    %1 = arith.extui %0 : i1 to i32
    %c0_i32_0 = arith.constant 0 : i32
    %2 = arith.cmpi ne, %1, %c0_i32_0 : i32
    scf.if %2 {
      %cst_10 = arith.constant 0.000000e+00 : f32
      %12 = vector.broadcast %cst_10 : f32 to vector<16x96xf32>
      %c0_11 = arith.constant 0 : index
      %c0_12 = arith.constant 0 : index
      %13 = vector.load %arg7[%c0_11, %c0_12] : memref<16x96xf32, #tpu.memory_space<vmem>>, vector<16x96xf32>
      tpu.vector_store %arg7[%c0_11, %c0_12], %12 {strides = array<i32>} : memref<16x96xf32, #tpu.memory_space<vmem>>, vector<16x96xf32>,
    } else {
    }
    %c0 = arith.constant 0 : index
    %c0_1 = arith.constant 0 : index
    %3 = vector.load %arg3[%c0, %c0_1] : memref<16x32xbf16, #tpu.memory_space<vmem>>, vector<16x32xbf16>
    %c0_2 = arith.constant 0 : index
    %c0_3 = arith.constant 0 : index
    %4 = vector.load %arg7[%c0_2, %c0_3] : memref<16x96xf32, #tpu.memory_space<vmem>>, vector<16x96xf32>
    %c0_4 = arith.constant 0 : index
    %c0_5 = arith.constant 0 : index
    %5 = vector.load %arg4[%c0_4, %c0_5] : memref<32x96xbf16, #tpu.memory_space<vmem>>, vector<32x96xbf16>
    %cst = arith.constant dense<0.000000e+00> : vector<16x96xf32>
    %6 = tpu.matmul %3, %5, %cst {dimension_numbers = #tpu.dot_dimension_numbers<[1], [0], [0], [1], [0, 0, 1, 1], [], []>} : vector<16x32xbf16>, vector<32x96xbf16>, vector<16x96xf32> -> vector<16x96xf32>
    %7 = arith.addf %4, %6 : vector<16x96xf32>
    %c0_6 = arith.constant 0 : index
    %c0_7 = arith.constant 0 : index
    %8 = vector.load %arg7[%c0_6, %c0_7] : memref<16x96xf32, #tpu.memory_space<vmem>>, vector<16x96xf32>
    tpu.vector_store %arg7[%c0_6, %c0_7], %7 {strides = array<i32>} : memref<16x96xf32, #tpu.memory_space<vmem>>, vector<16x96xf32>,
    %c0_i32_8 = arith.constant 0 : i32
    %9 = arith.cmpi eq, %arg2, %c0_i32_8 : i32
    %10 = arith.extui %9 : i1 to i32
    %c0_i32_9 = arith.constant 0 : i32
    %11 = arith.cmpi ne, %10, %c0_i32_9 : i32
    scf.if %11 {
      %c0_10 = arith.constant 0 : index
      %c0_11 = arith.constant 0 : index
      %12 = vector.load %arg7[%c0_10, %c0_11] : memref<16x96xf32, #tpu.memory_space<vmem>>, vector<16x96xf32>
      %c0_12 = arith.constant 0 : index
      %c0_13 = arith.constant 0 : index
      %13 = vector.load %arg5[%c0_12, %c0_13] : memref<1x96xbf16, #tpu.memory_space<vmem>>, vector<1x96xbf16>
      %14 = arith.extf %13 : vector<1x96xbf16> to vector<1x96xf32>
      %15 = vector.broadcast %14 : vector<1x96xf32> to vector<16x96xf32>
      %16 = arith.addf %12, %15 : vector<16x96xf32>
      %17 = arith.truncf %16 : vector<16x96xf32> to vector<16x96xbf16>
      %c0_14 = arith.constant 0 : index
      %c0_15 = arith.constant 0 : index
      %18 = vector.load %arg6[%c0_14, %c0_15] : memref<16x96xbf16, #tpu.memory_space<vmem>>, vector<16x96xbf16>
      tpu.vector_store %arg6[%c0_14, %c0_15], %17 {strides = array<i32>} : memref<16x96xbf16, #tpu.memory_space<vmem>>, vector<16x96xbf16>,
    } else {
    }
    return
  }
  func.func @transform_0(%arg0: i32, %arg1: i32, %arg2: i32) -> (i32, i32) {
    %c0_i32 = arith.constant 0 : i32
    return %arg0, %arg2 : i32, i32
  }
  func.func @transform_1(%arg0: i32, %arg1: i32, %arg2: i32) -> (i32, i32) {
    %c0_i32 = arith.constant 0 : i32
    return %arg2, %arg1 : i32, i32
  }
  func.func @transform_2(%arg0: i32, %arg1: i32, %arg2: i32) -> (i32, i32) {
    %c0_i32 = arith.constant 0 : i32
    %c0_i32_0 = arith.constant 0 : i32
    return %c0_i32, %arg1 : i32, i32
  }
  func.func @transform_3(%arg0: i32, %arg1: i32, %arg2: i32) -> (i32, i32) {
    %c0_i32 = arith.constant 0 : i32
    return %arg0, %arg1 : i32, i32
  }
}

module attributes {stable_mosaic.version = 11 : i64} {
  func.func @_linear_kernel(%arg0: i32, %arg1: i32, %arg2: i32, %arg3: memref<16x32xbf16, #tpu.memory_space<vmem>>, %arg4: memref<32x32xbf16, #tpu.memory_space<vmem>>, %arg5: memref<1x32xbf16, #tpu.memory_space<vmem>>, %arg6: memref<16x32xbf16, #tpu.memory_space<vmem>>, %arg7: memref<16x32xbf16, #tpu.memory_space<vmem>>, %arg8: memref<16x32xf32, #tpu.memory_space<vmem>>) attributes {dimension_semantics = [#tpu.dimension_semantics<parallel>, #tpu.dimension_semantics<parallel>, #tpu.dimension_semantics<arbitrary>], iteration_bounds = array<i64: 1, 1, 1>, scalar_prefetch = 0 : i64, scratch_operands = 1 : i64, tpu.core_type = #tpu.core_type<tc>, window_params = [{transform_indices = @transform_0, window_bounds = array<i64: 16, 32>}, {transform_indices = @transform_1, window_bounds = array<i64: 32, 32>}, {transform_indices = @transform_2, window_bounds = array<i64: 1, 32>}, {transform_indices = @transform_3, window_bounds = array<i64: 16, 32>}, {transform_indices = @transform_4, window_bounds = array<i64: 16, 32>}]} {
    %c0_i32 = arith.constant 0 : i32
    %0 = arith.cmpi eq, %arg2, %c0_i32 : i32
    %1 = arith.extui %0 : i1 to i32
    %c0_i32_0 = arith.constant 0 : i32
    %2 = arith.cmpi ne, %1, %c0_i32_0 : i32
    scf.if %2 {
      %cst_10 = arith.constant 0.000000e+00 : f32
      %12 = vector.broadcast %cst_10 : f32 to vector<16x32xf32>
      %c0_11 = arith.constant 0 : index
      %c0_12 = arith.constant 0 : index
      %13 = vector.load %arg8[%c0_11, %c0_12] : memref<16x32xf32, #tpu.memory_space<vmem>>, vector<16x32xf32>
      tpu.vector_store %arg8[%c0_11, %c0_12], %12 {strides = array<i32>} : memref<16x32xf32, #tpu.memory_space<vmem>>, vector<16x32xf32>,
    } else {
    }
    %c0 = arith.constant 0 : index
    %c0_1 = arith.constant 0 : index
    %3 = vector.load %arg3[%c0, %c0_1] : memref<16x32xbf16, #tpu.memory_space<vmem>>, vector<16x32xbf16>
    %c0_2 = arith.constant 0 : index
    %c0_3 = arith.constant 0 : index
    %4 = vector.load %arg8[%c0_2, %c0_3] : memref<16x32xf32, #tpu.memory_space<vmem>>, vector<16x32xf32>
    %c0_4 = arith.constant 0 : index
    %c0_5 = arith.constant 0 : index
    %5 = vector.load %arg4[%c0_4, %c0_5] : memref<32x32xbf16, #tpu.memory_space<vmem>>, vector<32x32xbf16>
    %cst = arith.constant dense<0.000000e+00> : vector<16x32xf32>
    %6 = tpu.matmul %3, %5, %cst {dimension_numbers = #tpu.dot_dimension_numbers<[1], [0], [0], [1], [0, 0, 1, 1], [], []>} : vector<16x32xbf16>, vector<32x32xbf16>, vector<16x32xf32> -> vector<16x32xf32>
    %7 = arith.addf %4, %6 : vector<16x32xf32>
    %c0_6 = arith.constant 0 : index
    %c0_7 = arith.constant 0 : index
    %8 = vector.load %arg8[%c0_6, %c0_7] : memref<16x32xf32, #tpu.memory_space<vmem>>, vector<16x32xf32>
    tpu.vector_store %arg8[%c0_6, %c0_7], %7 {strides = array<i32>} : memref<16x32xf32, #tpu.memory_space<vmem>>, vector<16x32xf32>,
    %c0_i32_8 = arith.constant 0 : i32
    %9 = arith.cmpi eq, %arg2, %c0_i32_8 : i32
    %10 = arith.extui %9 : i1 to i32
    %c0_i32_9 = arith.constant 0 : i32
    %11 = arith.cmpi ne, %10, %c0_i32_9 : i32
    scf.if %11 {
      %c0_10 = arith.constant 0 : index
      %c0_11 = arith.constant 0 : index
      %12 = vector.load %arg8[%c0_10, %c0_11] : memref<16x32xf32, #tpu.memory_space<vmem>>, vector<16x32xf32>
      %c0_12 = arith.constant 0 : index
      %c0_13 = arith.constant 0 : index
      %13 = vector.load %arg5[%c0_12, %c0_13] : memref<1x32xbf16, #tpu.memory_space<vmem>>, vector<1x32xbf16>
      %14 = arith.extf %13 : vector<1x32xbf16> to vector<1x32xf32>
      %15 = vector.broadcast %14 : vector<1x32xf32> to vector<16x32xf32>
      %16 = arith.addf %12, %15 : vector<16x32xf32>
      %c0_14 = arith.constant 0 : index
      %c0_15 = arith.constant 0 : index
      %17 = vector.load %arg6[%c0_14, %c0_15] : memref<16x32xbf16, #tpu.memory_space<vmem>>, vector<16x32xbf16>
      %18 = arith.extf %17 : vector<16x32xbf16> to vector<16x32xf32>
      %19 = arith.addf %16, %18 : vector<16x32xf32>
      %20 = arith.truncf %19 : vector<16x32xf32> to vector<16x32xbf16>
      %c0_16 = arith.constant 0 : index
      %c0_17 = arith.constant 0 : index
      %21 = vector.load %arg7[%c0_16, %c0_17] : memref<16x32xbf16, #tpu.memory_space<vmem>>, vector<16x32xbf16>
      tpu.vector_store %arg7[%c0_16, %c0_17], %20 {strides = array<i32>} : memref<16x32xbf16, #tpu.memory_space<vmem>>, vector<16x32xbf16>,
    } else {
    }
    return
  }
  func.func @transform_0(%arg0: i32, %arg1: i32, %arg2: i32) -> (i32, i32) {
    %c0_i32 = arith.constant 0 : i32
    return %arg0, %arg2 : i32, i32
  }
  func.func @transform_1(%arg0: i32, %arg1: i32, %arg2: i32) -> (i32, i32) {
    %c0_i32 = arith.constant 0 : i32
    return %arg2, %arg1 : i32, i32
  }
  func.func @transform_2(%arg0: i32, %arg1: i32, %arg2: i32) -> (i32, i32) {
    %c0_i32 = arith.constant 0 : i32
    %c0_i32_0 = arith.constant 0 : i32
    return %c0_i32, %arg1 : i32, i32
  }
  func.func @transform_3(%arg0: i32, %arg1: i32, %arg2: i32) -> (i32, i32) {
    %c0_i32 = arith.constant 0 : i32
    return %arg0, %arg1 : i32, i32
  }
  func.func @transform_4(%arg0: i32, %arg1: i32, %arg2: i32) -> (i32, i32) {
    %c0_i32 = arith.constant 0 : i32
    return %arg0, %arg1 : i32, i32
  }
}

module attributes {stable_mosaic.version = 11 : i64} {
  func.func @_ln_kernel(%arg0: i32, %arg1: memref<16x32xbf16, #tpu.memory_space<vmem>>, %arg2: memref<1x32xf32, #tpu.memory_space<vmem>>, %arg3: memref<1x32xf32, #tpu.memory_space<vmem>>, %arg4: memref<16x32xbf16, #tpu.memory_space<vmem>>) attributes {dimension_semantics = [#tpu.dimension_semantics<parallel>], iteration_bounds = array<i64: 1>, scalar_prefetch = 0 : i64, scratch_operands = 0 : i64, tpu.core_type = #tpu.core_type<tc>, window_params = [{transform_indices = @transform_0, window_bounds = array<i64: 16, 32>}, {pipeline_mode = #tpu.pipeline_mode<synchronous>, transform_indices = @transform_1, window_bounds = array<i64: 1, 32>}, {pipeline_mode = #tpu.pipeline_mode<synchronous>, transform_indices = @transform_2, window_bounds = array<i64: 1, 32>}, {transform_indices = @transform_3, window_bounds = array<i64: 16, 32>}]} {
    %c0 = arith.constant 0 : index
    %c0_0 = arith.constant 0 : index
    %0 = vector.load %arg1[%c0, %c0_0] : memref<16x32xbf16, #tpu.memory_space<vmem>>, vector<16x32xbf16>
    %1 = arith.extf %0 : vector<16x32xbf16> to vector<16x32xf32>
    %cst = arith.constant dense<0.000000e+00> : vector<16xf32>
    %2 = vector.multi_reduction <add>, %1, %cst [1] : vector<16x32xf32> to vector<16xf32>
    %3 = vector.shape_cast %2 : vector<16xf32> to vector<16x1xf32>
    %cst_1 = arith.constant 3.200000e+01 : f32
    %4 = vector.broadcast %cst_1 : f32 to vector<16x1xf32>
    %5 = arith.divf %3, %4 : vector<16x1xf32>
    %6 = vector.broadcast %5 : vector<16x1xf32> to vector<16x32xf32>
    %7 = arith.subf %1, %6 : vector<16x32xf32>
    %8 = arith.mulf %7, %7 : vector<16x32xf32>
    %cst_2 = arith.constant dense<0.000000e+00> : vector<16xf32>
    %9 = vector.multi_reduction <add>, %8, %cst_2 [1] : vector<16x32xf32> to vector<16xf32>
    %10 = vector.shape_cast %9 : vector<16xf32> to vector<16x1xf32>
    %cst_3 = arith.constant 3.200000e+01 : f32
    %11 = vector.broadcast %cst_3 : f32 to vector<16x1xf32>
    %12 = arith.divf %10, %11 : vector<16x1xf32>
    %13 = vector.broadcast %5 : vector<16x1xf32> to vector<16x32xf32>
    %14 = arith.subf %1, %13 : vector<16x32xf32>
    %cst_4 = arith.constant 9.99999974E-6 : f32
    %15 = vector.broadcast %cst_4 : f32 to vector<16x1xf32>
    %16 = arith.addf %12, %15 : vector<16x1xf32>
    %17 = math.rsqrt %16 : vector<16x1xf32>
    %18 = vector.broadcast %17 : vector<16x1xf32> to vector<16x32xf32>
    %19 = arith.mulf %14, %18 : vector<16x32xf32>
    %c0_5 = arith.constant 0 : index
    %c0_6 = arith.constant 0 : index
    %20 = vector.load %arg2[%c0_5, %c0_6] : memref<1x32xf32, #tpu.memory_space<vmem>>, vector<1x32xf32>
    %21 = vector.broadcast %20 : vector<1x32xf32> to vector<16x32xf32>
    %22 = arith.mulf %19, %21 : vector<16x32xf32>
    %c0_7 = arith.constant 0 : index
    %c0_8 = arith.constant 0 : index
    %23 = vector.load %arg3[%c0_7, %c0_8] : memref<1x32xf32, #tpu.memory_space<vmem>>, vector<1x32xf32>
    %24 = vector.broadcast %23 : vector<1x32xf32> to vector<16x32xf32>
    %25 = arith.addf %22, %24 : vector<16x32xf32>
    %26 = arith.truncf %25 : vector<16x32xf32> to vector<16x32xbf16>
    %c0_9 = arith.constant 0 : index
    %c0_10 = arith.constant 0 : index
    %27 = vector.load %arg4[%c0_9, %c0_10] : memref<16x32xbf16, #tpu.memory_space<vmem>>, vector<16x32xbf16>
    tpu.vector_store %arg4[%c0_9, %c0_10], %26 {strides = array<i32>} : memref<16x32xbf16, #tpu.memory_space<vmem>>, vector<16x32xbf16>,
    return
  }
  func.func @transform_0(%arg0: i32) -> (i32, i32) {
    %c0_i32 = arith.constant 0 : i32
    %c0_i32_0 = arith.constant 0 : i32
    return %arg0, %c0_i32 : i32, i32
  }
  func.func @transform_1(%arg0: i32) -> (i32, i32) {
    %c0_i32 = arith.constant 0 : i32
    %c0_i32_0 = arith.constant 0 : i32
    %c0_i32_1 = arith.constant 0 : i32
    return %c0_i32, %c0_i32_0 : i32, i32
  }
  func.func @transform_2(%arg0: i32) -> (i32, i32) {
    %c0_i32 = arith.constant 0 : i32
    %c0_i32_0 = arith.constant 0 : i32
    %c0_i32_1 = arith.constant 0 : i32
    return %c0_i32, %c0_i32_0 : i32, i32
  }
  func.func @transform_3(%arg0: i32) -> (i32, i32) {
    %c0_i32 = arith.constant 0 : i32
    %c0_i32_0 = arith.constant 0 : i32
    return %arg0, %c0_i32 : i32, i32
  }
}

module attributes {stable_mosaic.version = 11 : i64} {
  func.func @_flash_kernel(%arg0: i32, %arg1: i32, %arg2: i32, %arg3: memref<1x8x32xbf16, #tpu.memory_space<vmem>>, %arg4: memref<1x8x32xbf16, #tpu.memory_space<vmem>>, %arg5: memref<1x8x32xbf16, #tpu.memory_space<vmem>>, %arg6: memref<1x8x32xbf16, #tpu.memory_space<vmem>>, %arg7: memref<4x8x1xf32, #tpu.memory_space<vmem>>, %arg8: memref<4x8x1xf32, #tpu.memory_space<vmem>>, %arg9: memref<4x8x8xf32, #tpu.memory_space<vmem>>) attributes {dimension_semantics = [#tpu.dimension_semantics<parallel>, #tpu.dimension_semantics<parallel>, #tpu.dimension_semantics<arbitrary>], iteration_bounds = array<i64: 2, 1, 1>, scalar_prefetch = 0 : i64, scratch_operands = 3 : i64, tpu.core_type = #tpu.core_type<tc>, window_params = [{transform_indices = @transform_0, window_bounds = array<i64: 1, 8, 32>}, {transform_indices = @transform_1, window_bounds = array<i64: 1, 8, 32>}, {transform_indices = @transform_2, window_bounds = array<i64: 1, 8, 32>}, {transform_indices = @transform_3, window_bounds = array<i64: 1, 8, 32>}]} {
    %c0_i32 = arith.constant 0 : i32
    %0 = arith.cmpi eq, %arg2, %c0_i32 : i32
    %1 = arith.extui %0 : i1 to i32
    %c0_i32_0 = arith.constant 0 : i32
    %2 = arith.cmpi ne, %1, %c0_i32_0 : i32
    scf.if %2 {
      %cst_100 = arith.constant -1.000000e+30 : f32
      %170 = vector.broadcast %cst_100 : f32 to vector<4x8x1xf32>
      %c0_101 = arith.constant 0 : index
      %c0_102 = arith.constant 0 : index
      %c0_103 = arith.constant 0 : index
      %171 = vector.load %arg7[%c0_101, %c0_102, %c0_103] : memref<4x8x1xf32, #tpu.memory_space<vmem>>, vector<4x8x1xf32>
      tpu.vector_store %arg7[%c0_101, %c0_102, %c0_103], %170 {strides = array<i32>} : memref<4x8x1xf32, #tpu.memory_space<vmem>>, vector<4x8x1xf32>,
      %cst_104 = arith.constant 0.000000e+00 : f32
      %172 = vector.broadcast %cst_104 : f32 to vector<4x8x1xf32>
      %c0_105 = arith.constant 0 : index
      %c0_106 = arith.constant 0 : index
      %c0_107 = arith.constant 0 : index
      %173 = vector.load %arg8[%c0_105, %c0_106, %c0_107] : memref<4x8x1xf32, #tpu.memory_space<vmem>>, vector<4x8x1xf32>
      tpu.vector_store %arg8[%c0_105, %c0_106, %c0_107], %172 {strides = array<i32>} : memref<4x8x1xf32, #tpu.memory_space<vmem>>, vector<4x8x1xf32>,
      %cst_108 = arith.constant 0.000000e+00 : f32
      %174 = vector.broadcast %cst_108 : f32 to vector<4x8x8xf32>
      %c0_109 = arith.constant 0 : index
      %c0_110 = arith.constant 0 : index
      %c0_111 = arith.constant 0 : index
      %175 = vector.load %arg9[%c0_109, %c0_110, %c0_111] : memref<4x8x8xf32, #tpu.memory_space<vmem>>, vector<4x8x8xf32>
      tpu.vector_store %arg9[%c0_109, %c0_110, %c0_111], %174 {strides = array<i32>} : memref<4x8x8xf32, #tpu.memory_space<vmem>>, vector<4x8x8xf32>,
    } else {
    }
    %c0 = arith.constant 0 : index
    %c0_1 = arith.constant 0 : index
    %c0_2 = arith.constant 0 : index
    %3 = vector.load %arg3[%c0, %c0_1, %c0_2] : memref<1x8x32xbf16, #tpu.memory_space<vmem>>, vector<1x8x32xbf16>
    %4 = vector.shape_cast %3 : vector<1x8x32xbf16> to vector<8x32xbf16>
    %c0_3 = arith.constant 0 : index
    %c0_4 = arith.constant 0 : index
    %c0_5 = arith.constant 0 : index
    %5 = vector.load %arg4[%c0_3, %c0_4, %c0_5] : memref<1x8x32xbf16, #tpu.memory_space<vmem>>, vector<1x8x32xbf16>
    %6 = vector.shape_cast %5 : vector<1x8x32xbf16> to vector<8x32xbf16>
    %c0_6 = arith.constant 0 : index
    %c0_7 = arith.constant 0 : index
    %c0_8 = arith.constant 0 : index
    %7 = vector.load %arg5[%c0_6, %c0_7, %c0_8] : memref<1x8x32xbf16, #tpu.memory_space<vmem>>, vector<1x8x32xbf16>
    %8 = vector.shape_cast %7 : vector<1x8x32xbf16> to vector<8x32xbf16>
    %c8_i32 = arith.constant 8 : i32
    %9 = arith.muli %arg2, %c8_i32 : i32
    %10 = tpu.iota {dimensions = array<i32: 1>} : vector<8x8xi32>
    %11 = vector.broadcast %9 : i32 to vector<8x8xi32>
    %12 = arith.addi %11, %10 : vector<8x8xi32>
    %c8_i32_9 = arith.constant 8 : i32
    %13 = vector.broadcast %c8_i32_9 : i32 to vector<8x8xi32>
    %14 = arith.cmpi slt, %12, %13 : vector<8x8xi32>
    %15 = vector.extract_strided_slice %4 {offsets = [0, 0], sizes = [8, 8], strides = [1, 1]} : vector<8x32xbf16> to vector<8x8xbf16>
    %16 = vector.extract_strided_slice %6 {offsets = [0, 0], sizes = [8, 8], strides = [1, 1]} : vector<8x32xbf16> to vector<8x8xbf16>
    %cst = arith.constant dense<0.000000e+00> : vector<8x8xf32>
    %17 = tpu.matmul %15, %16, %cst {dimension_numbers = #tpu.dot_dimension_numbers<[1], [1], [0], [0], [0, 0, 1, 0], [], []>} : vector<8x8xbf16>, vector<8x8xbf16>, vector<8x8xf32> -> vector<8x8xf32>
    %cst_10 = arith.constant -1.000000e+30 : f32
    %18 = vector.broadcast %cst_10 : f32 to vector<8x8xf32>
    %19 = arith.select %14, %17, %18 : vector<8x8xi1>, vector<8x8xf32>
    %c0_11 = arith.constant 0 : index
    %c0_12 = arith.constant 0 : index
    %c0_13 = arith.constant 0 : index
    %20 = vector.load %arg7[%c0_11, %c0_12, %c0_13] : memref<4x8x1xf32, #tpu.memory_space<vmem>>, vector<1x8x1xf32>
    %21 = vector.shape_cast %20 : vector<1x8x1xf32> to vector<8x1xf32>
    %cst_14 = arith.constant dense<0xFF800000> : vector<8xf32>
    %22 = vector.multi_reduction <maximumf>, %19, %cst_14 [1] : vector<8x8xf32> to vector<8xf32>
    %23 = vector.shape_cast %22 : vector<8xf32> to vector<8x1xf32>
    %24 = arith.maximumf %21, %23 : vector<8x1xf32>
    %25 = arith.subf %21, %24 : vector<8x1xf32>
    %26 = math.exp %25 : vector<8x1xf32>
    %27 = vector.broadcast %24 : vector<8x1xf32> to vector<8x8xf32>
    %28 = arith.subf %19, %27 : vector<8x8xf32>
    %29 = math.exp %28 : vector<8x8xf32>
    %c0_15 = arith.constant 0 : index
    %c0_16 = arith.constant 0 : index
    %c0_17 = arith.constant 0 : index
    %30 = vector.load %arg8[%c0_15, %c0_16, %c0_17] : memref<4x8x1xf32, #tpu.memory_space<vmem>>, vector<1x8x1xf32>
    %31 = vector.shape_cast %30 : vector<1x8x1xf32> to vector<8x1xf32>
    %32 = arith.mulf %26, %31 : vector<8x1xf32>
    %cst_18 = arith.constant dense<0.000000e+00> : vector<8xf32>
    %33 = vector.multi_reduction <add>, %29, %cst_18 [1] : vector<8x8xf32> to vector<8xf32>
    %34 = vector.shape_cast %33 : vector<8xf32> to vector<8x1xf32>
    %35 = arith.addf %32, %34 : vector<8x1xf32>
    %c0_19 = arith.constant 0 : index
    %c0_20 = arith.constant 0 : index
    %c0_21 = arith.constant 0 : index
    %36 = vector.load %arg8[%c0_19, %c0_20, %c0_21] : memref<4x8x1xf32, #tpu.memory_space<vmem>>, vector<1x8x1xf32>
    %37 = vector.shape_cast %36 : vector<1x8x1xf32> to vector<8x1xf32>
    %38 = vector.shape_cast %35 : vector<8x1xf32> to vector<1x8x1xf32>
    tpu.vector_store %arg8[%c0_19, %c0_20, %c0_21], %38 {strides = array<i32>} : memref<4x8x1xf32, #tpu.memory_space<vmem>>, vector<1x8x1xf32>,
    %c0_22 = arith.constant 0 : index
    %c0_23 = arith.constant 0 : index
    %c0_24 = arith.constant 0 : index
    %39 = vector.load %arg9[%c0_22, %c0_23, %c0_24] : memref<4x8x8xf32, #tpu.memory_space<vmem>>, vector<1x8x8xf32>
    %40 = vector.shape_cast %39 : vector<1x8x8xf32> to vector<8x8xf32>
    %41 = vector.broadcast %26 : vector<8x1xf32> to vector<8x8xf32>
    %42 = arith.mulf %41, %40 : vector<8x8xf32>
    %43 = arith.truncf %29 : vector<8x8xf32> to vector<8x8xbf16>
    %44 = vector.extract_strided_slice %8 {offsets = [0, 0], sizes = [8, 8], strides = [1, 1]} : vector<8x32xbf16> to vector<8x8xbf16>
    %cst_25 = arith.constant dense<0.000000e+00> : vector<8x8xf32>
    %45 = tpu.matmul %43, %44, %cst_25 {dimension_numbers = #tpu.dot_dimension_numbers<[1], [0], [0], [1], [0, 0, 1, 1], [], []>} : vector<8x8xbf16>, vector<8x8xbf16>, vector<8x8xf32> -> vector<8x8xf32>
    %46 = arith.addf %42, %45 : vector<8x8xf32>
    %c0_26 = arith.constant 0 : index
    %c0_27 = arith.constant 0 : index
    %c0_28 = arith.constant 0 : index
    %47 = vector.load %arg9[%c0_26, %c0_27, %c0_28] : memref<4x8x8xf32, #tpu.memory_space<vmem>>, vector<1x8x8xf32>
    %48 = vector.shape_cast %47 : vector<1x8x8xf32> to vector<8x8xf32>
    %49 = vector.shape_cast %46 : vector<8x8xf32> to vector<1x8x8xf32>
    tpu.vector_store %arg9[%c0_26, %c0_27, %c0_28], %49 {strides = array<i32>} : memref<4x8x8xf32, #tpu.memory_space<vmem>>, vector<1x8x8xf32>,
    %c0_29 = arith.constant 0 : index
    %c0_30 = arith.constant 0 : index
    %c0_31 = arith.constant 0 : index
    %50 = vector.load %arg7[%c0_29, %c0_30, %c0_31] : memref<4x8x1xf32, #tpu.memory_space<vmem>>, vector<1x8x1xf32>
    %51 = vector.shape_cast %50 : vector<1x8x1xf32> to vector<8x1xf32>
    %52 = vector.shape_cast %24 : vector<8x1xf32> to vector<1x8x1xf32>
    tpu.vector_store %arg7[%c0_29, %c0_30, %c0_31], %52 {strides = array<i32>} : memref<4x8x1xf32, #tpu.memory_space<vmem>>, vector<1x8x1xf32>,
    %53 = vector.extract_strided_slice %4 {offsets = [0, 8], sizes = [8, 8], strides = [1, 1]} : vector<8x32xbf16> to vector<8x8xbf16>
    %54 = vector.extract_strided_slice %6 {offsets = [0, 8], sizes = [8, 8], strides = [1, 1]} : vector<8x32xbf16> to vector<8x8xbf16>
    %cst_32 = arith.constant dense<0.000000e+00> : vector<8x8xf32>
    %55 = tpu.matmul %53, %54, %cst_32 {dimension_numbers = #tpu.dot_dimension_numbers<[1], [1], [0], [0], [0, 0, 1, 0], [], []>} : vector<8x8xbf16>, vector<8x8xbf16>, vector<8x8xf32> -> vector<8x8xf32>
    %cst_33 = arith.constant -1.000000e+30 : f32
    %56 = vector.broadcast %cst_33 : f32 to vector<8x8xf32>
    %57 = arith.select %14, %55, %56 : vector<8x8xi1>, vector<8x8xf32>
    %c1 = arith.constant 1 : index
    %c0_34 = arith.constant 0 : index
    %c0_35 = arith.constant 0 : index
    %58 = vector.load %arg7[%c1, %c0_34, %c0_35] : memref<4x8x1xf32, #tpu.memory_space<vmem>>, vector<1x8x1xf32>
    %59 = vector.shape_cast %58 : vector<1x8x1xf32> to vector<8x1xf32>
    %cst_36 = arith.constant dense<0xFF800000> : vector<8xf32>
    %60 = vector.multi_reduction <maximumf>, %57, %cst_36 [1] : vector<8x8xf32> to vector<8xf32>
    %61 = vector.shape_cast %60 : vector<8xf32> to vector<8x1xf32>
    %62 = arith.maximumf %59, %61 : vector<8x1xf32>
    %63 = arith.subf %59, %62 : vector<8x1xf32>
    %64 = math.exp %63 : vector<8x1xf32>
    %65 = vector.broadcast %62 : vector<8x1xf32> to vector<8x8xf32>
    %66 = arith.subf %57, %65 : vector<8x8xf32>
    %67 = math.exp %66 : vector<8x8xf32>
    %c1_37 = arith.constant 1 : index
    %c0_38 = arith.constant 0 : index
    %c0_39 = arith.constant 0 : index
    %68 = vector.load %arg8[%c1_37, %c0_38, %c0_39] : memref<4x8x1xf32, #tpu.memory_space<vmem>>, vector<1x8x1xf32>
    %69 = vector.shape_cast %68 : vector<1x8x1xf32> to vector<8x1xf32>
    %70 = arith.mulf %64, %69 : vector<8x1xf32>
    %cst_40 = arith.constant dense<0.000000e+00> : vector<8xf32>
    %71 = vector.multi_reduction <add>, %67, %cst_40 [1] : vector<8x8xf32> to vector<8xf32>
    %72 = vector.shape_cast %71 : vector<8xf32> to vector<8x1xf32>
    %73 = arith.addf %70, %72 : vector<8x1xf32>
    %c1_41 = arith.constant 1 : index
    %c0_42 = arith.constant 0 : index
    %c0_43 = arith.constant 0 : index
    %74 = vector.load %arg8[%c1_41, %c0_42, %c0_43] : memref<4x8x1xf32, #tpu.memory_space<vmem>>, vector<1x8x1xf32>
    %75 = vector.shape_cast %74 : vector<1x8x1xf32> to vector<8x1xf32>
    %76 = vector.shape_cast %73 : vector<8x1xf32> to vector<1x8x1xf32>
    tpu.vector_store %arg8[%c1_41, %c0_42, %c0_43], %76 {strides = array<i32>} : memref<4x8x1xf32, #tpu.memory_space<vmem>>, vector<1x8x1xf32>,
    %c1_44 = arith.constant 1 : index
    %c0_45 = arith.constant 0 : index
    %c0_46 = arith.constant 0 : index
    %77 = vector.load %arg9[%c1_44, %c0_45, %c0_46] : memref<4x8x8xf32, #tpu.memory_space<vmem>>, vector<1x8x8xf32>
    %78 = vector.shape_cast %77 : vector<1x8x8xf32> to vector<8x8xf32>
    %79 = vector.broadcast %64 : vector<8x1xf32> to vector<8x8xf32>
    %80 = arith.mulf %79, %78 : vector<8x8xf32>
    %81 = arith.truncf %67 : vector<8x8xf32> to vector<8x8xbf16>
    %82 = vector.extract_strided_slice %8 {offsets = [0, 8], sizes = [8, 8], strides = [1, 1]} : vector<8x32xbf16> to vector<8x8xbf16>
    %cst_47 = arith.constant dense<0.000000e+00> : vector<8x8xf32>
    %83 = tpu.matmul %81, %82, %cst_47 {dimension_numbers = #tpu.dot_dimension_numbers<[1], [0], [0], [1], [0, 0, 1, 1], [], []>} : vector<8x8xbf16>, vector<8x8xbf16>, vector<8x8xf32> -> vector<8x8xf32>
    %84 = arith.addf %80, %83 : vector<8x8xf32>
    %c1_48 = arith.constant 1 : index
    %c0_49 = arith.constant 0 : index
    %c0_50 = arith.constant 0 : index
    %85 = vector.load %arg9[%c1_48, %c0_49, %c0_50] : memref<4x8x8xf32, #tpu.memory_space<vmem>>, vector<1x8x8xf32>
    %86 = vector.shape_cast %85 : vector<1x8x8xf32> to vector<8x8xf32>
    %87 = vector.shape_cast %84 : vector<8x8xf32> to vector<1x8x8xf32>
    tpu.vector_store %arg9[%c1_48, %c0_49, %c0_50], %87 {strides = array<i32>} : memref<4x8x8xf32, #tpu.memory_space<vmem>>, vector<1x8x8xf32>,
    %c1_51 = arith.constant 1 : index
    %c0_52 = arith.constant 0 : index
    %c0_53 = arith.constant 0 : index
    %88 = vector.load %arg7[%c1_51, %c0_52, %c0_53] : memref<4x8x1xf32, #tpu.memory_space<vmem>>, vector<1x8x1xf32>
    %89 = vector.shape_cast %88 : vector<1x8x1xf32> to vector<8x1xf32>
    %90 = vector.shape_cast %62 : vector<8x1xf32> to vector<1x8x1xf32>
    tpu.vector_store %arg7[%c1_51, %c0_52, %c0_53], %90 {strides = array<i32>} : memref<4x8x1xf32, #tpu.memory_space<vmem>>, vector<1x8x1xf32>,
    %91 = vector.extract_strided_slice %4 {offsets = [0, 16], sizes = [8, 8], strides = [1, 1]} : vector<8x32xbf16> to vector<8x8xbf16>
    %92 = vector.extract_strided_slice %6 {offsets = [0, 16], sizes = [8, 8], strides = [1, 1]} : vector<8x32xbf16> to vector<8x8xbf16>
    %cst_54 = arith.constant dense<0.000000e+00> : vector<8x8xf32>
    %93 = tpu.matmul %91, %92, %cst_54 {dimension_numbers = #tpu.dot_dimension_numbers<[1], [1], [0], [0], [0, 0, 1, 0], [], []>} : vector<8x8xbf16>, vector<8x8xbf16>, vector<8x8xf32> -> vector<8x8xf32>
    %cst_55 = arith.constant -1.000000e+30 : f32
    %94 = vector.broadcast %cst_55 : f32 to vector<8x8xf32>
    %95 = arith.select %14, %93, %94 : vector<8x8xi1>, vector<8x8xf32>
    %c2 = arith.constant 2 : index
    %c0_56 = arith.constant 0 : index
    %c0_57 = arith.constant 0 : index
    %96 = vector.load %arg7[%c2, %c0_56, %c0_57] : memref<4x8x1xf32, #tpu.memory_space<vmem>>, vector<1x8x1xf32>
    %97 = vector.shape_cast %96 : vector<1x8x1xf32> to vector<8x1xf32>
    %cst_58 = arith.constant dense<0xFF800000> : vector<8xf32>
    %98 = vector.multi_reduction <maximumf>, %95, %cst_58 [1] : vector<8x8xf32> to vector<8xf32>
    %99 = vector.shape_cast %98 : vector<8xf32> to vector<8x1xf32>
    %100 = arith.maximumf %97, %99 : vector<8x1xf32>
    %101 = arith.subf %97, %100 : vector<8x1xf32>
    %102 = math.exp %101 : vector<8x1xf32>
    %103 = vector.broadcast %100 : vector<8x1xf32> to vector<8x8xf32>
    %104 = arith.subf %95, %103 : vector<8x8xf32>
    %105 = math.exp %104 : vector<8x8xf32>
    %c2_59 = arith.constant 2 : index
    %c0_60 = arith.constant 0 : index
    %c0_61 = arith.constant 0 : index
    %106 = vector.load %arg8[%c2_59, %c0_60, %c0_61] : memref<4x8x1xf32, #tpu.memory_space<vmem>>, vector<1x8x1xf32>
    %107 = vector.shape_cast %106 : vector<1x8x1xf32> to vector<8x1xf32>
    %108 = arith.mulf %102, %107 : vector<8x1xf32>
    %cst_62 = arith.constant dense<0.000000e+00> : vector<8xf32>
    %109 = vector.multi_reduction <add>, %105, %cst_62 [1] : vector<8x8xf32> to vector<8xf32>
    %110 = vector.shape_cast %109 : vector<8xf32> to vector<8x1xf32>
    %111 = arith.addf %108, %110 : vector<8x1xf32>
    %c2_63 = arith.constant 2 : index
    %c0_64 = arith.constant 0 : index
    %c0_65 = arith.constant 0 : index
    %112 = vector.load %arg8[%c2_63, %c0_64, %c0_65] : memref<4x8x1xf32, #tpu.memory_space<vmem>>, vector<1x8x1xf32>
    %113 = vector.shape_cast %112 : vector<1x8x1xf32> to vector<8x1xf32>
    %114 = vector.shape_cast %111 : vector<8x1xf32> to vector<1x8x1xf32>
    tpu.vector_store %arg8[%c2_63, %c0_64, %c0_65], %114 {strides = array<i32>} : memref<4x8x1xf32, #tpu.memory_space<vmem>>, vector<1x8x1xf32>,
    %c2_66 = arith.constant 2 : index
    %c0_67 = arith.constant 0 : index
    %c0_68 = arith.constant 0 : index
    %115 = vector.load %arg9[%c2_66, %c0_67, %c0_68] : memref<4x8x8xf32, #tpu.memory_space<vmem>>, vector<1x8x8xf32>
    %116 = vector.shape_cast %115 : vector<1x8x8xf32> to vector<8x8xf32>
    %117 = vector.broadcast %102 : vector<8x1xf32> to vector<8x8xf32>
    %118 = arith.mulf %117, %116 : vector<8x8xf32>
    %119 = arith.truncf %105 : vector<8x8xf32> to vector<8x8xbf16>
    %120 = vector.extract_strided_slice %8 {offsets = [0, 16], sizes = [8, 8], strides = [1, 1]} : vector<8x32xbf16> to vector<8x8xbf16>
    %cst_69 = arith.constant dense<0.000000e+00> : vector<8x8xf32>
    %121 = tpu.matmul %119, %120, %cst_69 {dimension_numbers = #tpu.dot_dimension_numbers<[1], [0], [0], [1], [0, 0, 1, 1], [], []>} : vector<8x8xbf16>, vector<8x8xbf16>, vector<8x8xf32> -> vector<8x8xf32>
    %122 = arith.addf %118, %121 : vector<8x8xf32>
    %c2_70 = arith.constant 2 : index
    %c0_71 = arith.constant 0 : index
    %c0_72 = arith.constant 0 : index
    %123 = vector.load %arg9[%c2_70, %c0_71, %c0_72] : memref<4x8x8xf32, #tpu.memory_space<vmem>>, vector<1x8x8xf32>
    %124 = vector.shape_cast %123 : vector<1x8x8xf32> to vector<8x8xf32>
    %125 = vector.shape_cast %122 : vector<8x8xf32> to vector<1x8x8xf32>
    tpu.vector_store %arg9[%c2_70, %c0_71, %c0_72], %125 {strides = array<i32>} : memref<4x8x8xf32, #tpu.memory_space<vmem>>, vector<1x8x8xf32>,
    %c2_73 = arith.constant 2 : index
    %c0_74 = arith.constant 0 : index
    %c0_75 = arith.constant 0 : index
    %126 = vector.load %arg7[%c2_73, %c0_74, %c0_75] : memref<4x8x1xf32, #tpu.memory_space<vmem>>, vector<1x8x1xf32>
    %127 = vector.shape_cast %126 : vector<1x8x1xf32> to vector<8x1xf32>
    %128 = vector.shape_cast %100 : vector<8x1xf32> to vector<1x8x1xf32>
    tpu.vector_store %arg7[%c2_73, %c0_74, %c0_75], %128 {strides = array<i32>} : memref<4x8x1xf32, #tpu.memory_space<vmem>>, vector<1x8x1xf32>,
    %129 = vector.extract_strided_slice %4 {offsets = [0, 24], sizes = [8, 8], strides = [1, 1]} : vector<8x32xbf16> to vector<8x8xbf16>
    %130 = vector.extract_strided_slice %6 {offsets = [0, 24], sizes = [8, 8], strides = [1, 1]} : vector<8x32xbf16> to vector<8x8xbf16>
    %cst_76 = arith.constant dense<0.000000e+00> : vector<8x8xf32>
    %131 = tpu.matmul %129, %130, %cst_76 {dimension_numbers = #tpu.dot_dimension_numbers<[1], [1], [0], [0], [0, 0, 1, 0], [], []>} : vector<8x8xbf16>, vector<8x8xbf16>, vector<8x8xf32> -> vector<8x8xf32>
    %cst_77 = arith.constant -1.000000e+30 : f32
    %132 = vector.broadcast %cst_77 : f32 to vector<8x8xf32>
    %133 = arith.select %14, %131, %132 : vector<8x8xi1>, vector<8x8xf32>
    %c3 = arith.constant 3 : index
    %c0_78 = arith.constant 0 : index
    %c0_79 = arith.constant 0 : index
    %134 = vector.load %arg7[%c3, %c0_78, %c0_79] : memref<4x8x1xf32, #tpu.memory_space<vmem>>, vector<1x8x1xf32>
    %135 = vector.shape_cast %134 : vector<1x8x1xf32> to vector<8x1xf32>
    %cst_80 = arith.constant dense<0xFF800000> : vector<8xf32>
    %136 = vector.multi_reduction <maximumf>, %133, %cst_80 [1] : vector<8x8xf32> to vector<8xf32>
    %137 = vector.shape_cast %136 : vector<8xf32> to vector<8x1xf32>
    %138 = arith.maximumf %135, %137 : vector<8x1xf32>
    %139 = arith.subf %135, %138 : vector<8x1xf32>
    %140 = math.exp %139 : vector<8x1xf32>
    %141 = vector.broadcast %138 : vector<8x1xf32> to vector<8x8xf32>
    %142 = arith.subf %133, %141 : vector<8x8xf32>
    %143 = math.exp %142 : vector<8x8xf32>
    %c3_81 = arith.constant 3 : index
    %c0_82 = arith.constant 0 : index
    %c0_83 = arith.constant 0 : index
    %144 = vector.load %arg8[%c3_81, %c0_82, %c0_83] : memref<4x8x1xf32, #tpu.memory_space<vmem>>, vector<1x8x1xf32>
    %145 = vector.shape_cast %144 : vector<1x8x1xf32> to vector<8x1xf32>
    %146 = arith.mulf %140, %145 : vector<8x1xf32>
    %cst_84 = arith.constant dense<0.000000e+00> : vector<8xf32>
    %147 = vector.multi_reduction <add>, %143, %cst_84 [1] : vector<8x8xf32> to vector<8xf32>
    %148 = vector.shape_cast %147 : vector<8xf32> to vector<8x1xf32>
    %149 = arith.addf %146, %148 : vector<8x1xf32>
    %c3_85 = arith.constant 3 : index
    %c0_86 = arith.constant 0 : index
    %c0_87 = arith.constant 0 : index
    %150 = vector.load %arg8[%c3_85, %c0_86, %c0_87] : memref<4x8x1xf32, #tpu.memory_space<vmem>>, vector<1x8x1xf32>
    %151 = vector.shape_cast %150 : vector<1x8x1xf32> to vector<8x1xf32>
    %152 = vector.shape_cast %149 : vector<8x1xf32> to vector<1x8x1xf32>
    tpu.vector_store %arg8[%c3_85, %c0_86, %c0_87], %152 {strides = array<i32>} : memref<4x8x1xf32, #tpu.memory_space<vmem>>, vector<1x8x1xf32>,
    %c3_88 = arith.constant 3 : index
    %c0_89 = arith.constant 0 : index
    %c0_90 = arith.constant 0 : index
    %153 = vector.load %arg9[%c3_88, %c0_89, %c0_90] : memref<4x8x8xf32, #tpu.memory_space<vmem>>, vector<1x8x8xf32>
    %154 = vector.shape_cast %153 : vector<1x8x8xf32> to vector<8x8xf32>
    %155 = vector.broadcast %140 : vector<8x1xf32> to vector<8x8xf32>
    %156 = arith.mulf %155, %154 : vector<8x8xf32>
    %157 = arith.truncf %143 : vector<8x8xf32> to vector<8x8xbf16>
    %158 = vector.extract_strided_slice %8 {offsets = [0, 24], sizes = [8, 8], strides = [1, 1]} : vector<8x32xbf16> to vector<8x8xbf16>
    %cst_91 = arith.constant dense<0.000000e+00> : vector<8x8xf32>
    %159 = tpu.matmul %157, %158, %cst_91 {dimension_numbers = #tpu.dot_dimension_numbers<[1], [0], [0], [1], [0, 0, 1, 1], [], []>} : vector<8x8xbf16>, vector<8x8xbf16>, vector<8x8xf32> -> vector<8x8xf32>
    %160 = arith.addf %156, %159 : vector<8x8xf32>
    %c3_92 = arith.constant 3 : index
    %c0_93 = arith.constant 0 : index
    %c0_94 = arith.constant 0 : index
    %161 = vector.load %arg9[%c3_92, %c0_93, %c0_94] : memref<4x8x8xf32, #tpu.memory_space<vmem>>, vector<1x8x8xf32>
    %162 = vector.shape_cast %161 : vector<1x8x8xf32> to vector<8x8xf32>
    %163 = vector.shape_cast %160 : vector<8x8xf32> to vector<1x8x8xf32>
    tpu.vector_store %arg9[%c3_92, %c0_93, %c0_94], %163 {strides = array<i32>} : memref<4x8x8xf32, #tpu.memory_space<vmem>>, vector<1x8x8xf32>,
    %c3_95 = arith.constant 3 : index
    %c0_96 = arith.constant 0 : index
    %c0_97 = arith.constant 0 : index
    %164 = vector.load %arg7[%c3_95, %c0_96, %c0_97] : memref<4x8x1xf32, #tpu.memory_space<vmem>>, vector<1x8x1xf32>
    %165 = vector.shape_cast %164 : vector<1x8x1xf32> to vector<8x1xf32>
    %166 = vector.shape_cast %138 : vector<8x1xf32> to vector<1x8x1xf32>
    tpu.vector_store %arg7[%c3_95, %c0_96, %c0_97], %166 {strides = array<i32>} : memref<4x8x1xf32, #tpu.memory_space<vmem>>, vector<1x8x1xf32>,
    %c0_i32_98 = arith.constant 0 : i32
    %167 = arith.cmpi eq, %arg2, %c0_i32_98 : i32
    %168 = arith.extui %167 : i1 to i32
    %c0_i32_99 = arith.constant 0 : i32
    %169 = arith.cmpi ne, %168, %c0_i32_99 : i32
    scf.if %169 {
      %c0_100 = arith.constant 0 : index
      %c0_101 = arith.constant 0 : index
      %c0_102 = arith.constant 0 : index
      %170 = vector.load %arg9[%c0_100, %c0_101, %c0_102] : memref<4x8x8xf32, #tpu.memory_space<vmem>>, vector<1x8x8xf32>
      %171 = vector.shape_cast %170 : vector<1x8x8xf32> to vector<8x8xf32>
      %c0_103 = arith.constant 0 : index
      %c0_104 = arith.constant 0 : index
      %c0_105 = arith.constant 0 : index
      %172 = vector.load %arg8[%c0_103, %c0_104, %c0_105] : memref<4x8x1xf32, #tpu.memory_space<vmem>>, vector<1x8x1xf32>
      %173 = vector.shape_cast %172 : vector<1x8x1xf32> to vector<8x1xf32>
      %174 = tpu.reciprocal %173 {approx = true} : vector<8x1xf32> -> vector<8x1xf32>
      %175 = vector.broadcast %174 : vector<8x1xf32> to vector<8x8xf32>
      %176 = arith.mulf %171, %175 : vector<8x8xf32>
      %c1_106 = arith.constant 1 : index
      %c0_107 = arith.constant 0 : index
      %c0_108 = arith.constant 0 : index
      %177 = vector.load %arg9[%c1_106, %c0_107, %c0_108] : memref<4x8x8xf32, #tpu.memory_space<vmem>>, vector<1x8x8xf32>
      %178 = vector.shape_cast %177 : vector<1x8x8xf32> to vector<8x8xf32>
      %c1_109 = arith.constant 1 : index
      %c0_110 = arith.constant 0 : index
      %c0_111 = arith.constant 0 : index
      %179 = vector.load %arg8[%c1_109, %c0_110, %c0_111] : memref<4x8x1xf32, #tpu.memory_space<vmem>>, vector<1x8x1xf32>
      %180 = vector.shape_cast %179 : vector<1x8x1xf32> to vector<8x1xf32>
      %181 = tpu.reciprocal %180 {approx = true} : vector<8x1xf32> -> vector<8x1xf32>
      %182 = vector.broadcast %181 : vector<8x1xf32> to vector<8x8xf32>
      %183 = arith.mulf %178, %182 : vector<8x8xf32>
      %c2_112 = arith.constant 2 : index
      %c0_113 = arith.constant 0 : index
      %c0_114 = arith.constant 0 : index
      %184 = vector.load %arg9[%c2_112, %c0_113, %c0_114] : memref<4x8x8xf32, #tpu.memory_space<vmem>>, vector<1x8x8xf32>
      %185 = vector.shape_cast %184 : vector<1x8x8xf32> to vector<8x8xf32>
      %c2_115 = arith.constant 2 : index
      %c0_116 = arith.constant 0 : index
      %c0_117 = arith.constant 0 : index
      %186 = vector.load %arg8[%c2_115, %c0_116, %c0_117] : memref<4x8x1xf32, #tpu.memory_space<vmem>>, vector<1x8x1xf32>
      %187 = vector.shape_cast %186 : vector<1x8x1xf32> to vector<8x1xf32>
      %188 = tpu.reciprocal %187 {approx = true} : vector<8x1xf32> -> vector<8x1xf32>
      %189 = vector.broadcast %188 : vector<8x1xf32> to vector<8x8xf32>
      %190 = arith.mulf %185, %189 : vector<8x8xf32>
      %c3_118 = arith.constant 3 : index
      %c0_119 = arith.constant 0 : index
      %c0_120 = arith.constant 0 : index
      %191 = vector.load %arg9[%c3_118, %c0_119, %c0_120] : memref<4x8x8xf32, #tpu.memory_space<vmem>>, vector<1x8x8xf32>
      %192 = vector.shape_cast %191 : vector<1x8x8xf32> to vector<8x8xf32>
      %c3_121 = arith.constant 3 : index
      %c0_122 = arith.constant 0 : index
      %c0_123 = arith.constant 0 : index
      %193 = vector.load %arg8[%c3_121, %c0_122, %c0_123] : memref<4x8x1xf32, #tpu.memory_space<vmem>>, vector<1x8x1xf32>
      %194 = vector.shape_cast %193 : vector<1x8x1xf32> to vector<8x1xf32>
      %195 = tpu.reciprocal %194 {approx = true} : vector<8x1xf32> -> vector<8x1xf32>
      %196 = vector.broadcast %195 : vector<8x1xf32> to vector<8x8xf32>
      %197 = arith.mulf %192, %196 : vector<8x8xf32>
      %198 = tpu.concatenate %176, %183, %190, %197 in 1 : vector<8x8xf32>, vector<8x8xf32>, vector<8x8xf32>, vector<8x8xf32> -> vector<8x32xf32>
      %199 = arith.truncf %198 : vector<8x32xf32> to vector<8x32xbf16>
      %c0_124 = arith.constant 0 : index
      %c0_125 = arith.constant 0 : index
      %c0_126 = arith.constant 0 : index
      %200 = vector.load %arg6[%c0_124, %c0_125, %c0_126] : memref<1x8x32xbf16, #tpu.memory_space<vmem>>, vector<1x8x32xbf16>
      %201 = vector.shape_cast %200 : vector<1x8x32xbf16> to vector<8x32xbf16>
      %202 = vector.shape_cast %199 : vector<8x32xbf16> to vector<1x8x32xbf16>
      tpu.vector_store %arg6[%c0_124, %c0_125, %c0_126], %202 {strides = array<i32>} : memref<1x8x32xbf16, #tpu.memory_space<vmem>>, vector<1x8x32xbf16>,
    } else {
    }
    return
  }
  func.func @transform_0(%arg0: i32, %arg1: i32, %arg2: i32) -> (i32, i32, i32) {
    %c0_i32 = arith.constant 0 : i32
    %c0_i32_0 = arith.constant 0 : i32
    return %arg0, %arg1, %c0_i32 : i32, i32, i32
  }
  func.func @transform_1(%arg0: i32, %arg1: i32, %arg2: i32) -> (i32, i32, i32) {
    %c0_i32 = arith.constant 0 : i32
    %c0_i32_0 = arith.constant 0 : i32
    return %arg0, %arg2, %c0_i32 : i32, i32, i32
  }
  func.func @transform_2(%arg0: i32, %arg1: i32, %arg2: i32) -> (i32, i32, i32) {
    %c0_i32 = arith.constant 0 : i32
    %c0_i32_0 = arith.constant 0 : i32
    return %arg0, %arg2, %c0_i32 : i32, i32, i32
  }
  func.func @transform_3(%arg0: i32, %arg1: i32, %arg2: i32) -> (i32, i32, i32) {
    %c0_i32 = arith.constant 0 : i32
    %c0_i32_0 = arith.constant 0 : i32
    return %arg0, %arg1, %c0_i32 : i32, i32, i32
  }
}

module attributes {stable_mosaic.version = 11 : i64} {
  func.func @_linear_kernel(%arg0: i32, %arg1: i32, %arg2: i32, %arg3: memref<16x32xbf16, #tpu.memory_space<vmem>>, %arg4: memref<32x32xbf16, #tpu.memory_space<vmem>>, %arg5: memref<1x32xbf16, #tpu.memory_space<vmem>>, %arg6: memref<16x32xbf16, #tpu.memory_space<vmem>>, %arg7: memref<16x32xf32, #tpu.memory_space<vmem>>) attributes {dimension_semantics = [#tpu.dimension_semantics<parallel>, #tpu.dimension_semantics<parallel>, #tpu.dimension_semantics<arbitrary>], iteration_bounds = array<i64: 1, 1, 1>, scalar_prefetch = 0 : i64, scratch_operands = 1 : i64, tpu.core_type = #tpu.core_type<tc>, window_params = [{transform_indices = @transform_0, window_bounds = array<i64: 16, 32>}, {transform_indices = @transform_1, window_bounds = array<i64: 32, 32>}, {transform_indices = @transform_2, window_bounds = array<i64: 1, 32>}, {transform_indices = @transform_3, window_bounds = array<i64: 16, 32>}]} {
    %c0_i32 = arith.constant 0 : i32
    %0 = arith.cmpi eq, %arg2, %c0_i32 : i32
    %1 = arith.extui %0 : i1 to i32
    %c0_i32_0 = arith.constant 0 : i32
    %2 = arith.cmpi ne, %1, %c0_i32_0 : i32
    scf.if %2 {
      %cst_10 = arith.constant 0.000000e+00 : f32
      %12 = vector.broadcast %cst_10 : f32 to vector<16x32xf32>
      %c0_11 = arith.constant 0 : index
      %c0_12 = arith.constant 0 : index
      %13 = vector.load %arg7[%c0_11, %c0_12] : memref<16x32xf32, #tpu.memory_space<vmem>>, vector<16x32xf32>
      tpu.vector_store %arg7[%c0_11, %c0_12], %12 {strides = array<i32>} : memref<16x32xf32, #tpu.memory_space<vmem>>, vector<16x32xf32>,
    } else {
    }
    %c0 = arith.constant 0 : index
    %c0_1 = arith.constant 0 : index
    %3 = vector.load %arg3[%c0, %c0_1] : memref<16x32xbf16, #tpu.memory_space<vmem>>, vector<16x32xbf16>
    %c0_2 = arith.constant 0 : index
    %c0_3 = arith.constant 0 : index
    %4 = vector.load %arg7[%c0_2, %c0_3] : memref<16x32xf32, #tpu.memory_space<vmem>>, vector<16x32xf32>
    %c0_4 = arith.constant 0 : index
    %c0_5 = arith.constant 0 : index
    %5 = vector.load %arg4[%c0_4, %c0_5] : memref<32x32xbf16, #tpu.memory_space<vmem>>, vector<32x32xbf16>
    %cst = arith.constant dense<0.000000e+00> : vector<16x32xf32>
    %6 = tpu.matmul %3, %5, %cst {dimension_numbers = #tpu.dot_dimension_numbers<[1], [0], [0], [1], [0, 0, 1, 1], [], []>} : vector<16x32xbf16>, vector<32x32xbf16>, vector<16x32xf32> -> vector<16x32xf32>
    %7 = arith.addf %4, %6 : vector<16x32xf32>
    %c0_6 = arith.constant 0 : index
    %c0_7 = arith.constant 0 : index
    %8 = vector.load %arg7[%c0_6, %c0_7] : memref<16x32xf32, #tpu.memory_space<vmem>>, vector<16x32xf32>
    tpu.vector_store %arg7[%c0_6, %c0_7], %7 {strides = array<i32>} : memref<16x32xf32, #tpu.memory_space<vmem>>, vector<16x32xf32>,
    %c0_i32_8 = arith.constant 0 : i32
    %9 = arith.cmpi eq, %arg2, %c0_i32_8 : i32
    %10 = arith.extui %9 : i1 to i32
    %c0_i32_9 = arith.constant 0 : i32
    %11 = arith.cmpi ne, %10, %c0_i32_9 : i32
    scf.if %11 {
      %c0_10 = arith.constant 0 : index
      %c0_11 = arith.constant 0 : index
      %12 = vector.load %arg7[%c0_10, %c0_11] : memref<16x32xf32, #tpu.memory_space<vmem>>, vector<16x32xf32>
      %c0_12 = arith.constant 0 : index
      %c0_13 = arith.constant 0 : index
      %13 = vector.load %arg5[%c0_12, %c0_13] : memref<1x32xbf16, #tpu.memory_space<vmem>>, vector<1x32xbf16>
      %14 = arith.extf %13 : vector<1x32xbf16> to vector<1x32xf32>
      %15 = vector.broadcast %14 : vector<1x32xf32> to vector<16x32xf32>
      %16 = arith.addf %12, %15 : vector<16x32xf32>
      %17 = arith.truncf %16 : vector<16x32xf32> to vector<16x32xbf16>
      %c0_14 = arith.constant 0 : index
      %c0_15 = arith.constant 0 : index
      %18 = vector.load %arg6[%c0_14, %c0_15] : memref<16x32xbf16, #tpu.memory_space<vmem>>, vector<16x32xbf16>
      tpu.vector_store %arg6[%c0_14, %c0_15], %17 {strides = array<i32>} : memref<16x32xbf16, #tpu.memory_space<vmem>>, vector<16x32xbf16>,
    } else {
    }
    return
  }
  func.func @transform_0(%arg0: i32, %arg1: i32, %arg2: i32) -> (i32, i32) {
    %c0_i32 = arith.constant 0 : i32
    return %arg0, %arg2 : i32, i32
  }
  func.func @transform_1(%arg0: i32, %arg1: i32, %arg2: i32) -> (i32, i32) {
    %c0_i32 = arith.constant 0 : i32
    return %arg2, %arg1 : i32, i32
  }
  func.func @transform_2(%arg0: i32, %arg1: i32, %arg2: i32) -> (i32, i32) {
    %c0_i32 = arith.constant 0 : i32
    %c0_i32_0 = arith.constant 0 : i32
    return %c0_i32, %arg1 : i32, i32
  }
  func.func @transform_3(%arg0: i32, %arg1: i32, %arg2: i32) -> (i32, i32) {
    %c0_i32 = arith.constant 0 : i32
    return %arg0, %arg1 : i32, i32
  }
}

module attributes {stable_mosaic.version = 11 : i64} {
  func.func @_linear_kernel(%arg0: i32, %arg1: i32, %arg2: i32, %arg3: memref<16x32xbf16, #tpu.memory_space<vmem>>, %arg4: memref<32x512xbf16, #tpu.memory_space<vmem>>, %arg5: memref<1x512xbf16, #tpu.memory_space<vmem>>, %arg6: memref<16x512xbf16, #tpu.memory_space<vmem>>, %arg7: memref<16x512xf32, #tpu.memory_space<vmem>>) attributes {dimension_semantics = [#tpu.dimension_semantics<parallel>, #tpu.dimension_semantics<parallel>, #tpu.dimension_semantics<arbitrary>], iteration_bounds = array<i64: 1, 4, 1>, scalar_prefetch = 0 : i64, scratch_operands = 1 : i64, tpu.core_type = #tpu.core_type<tc>, window_params = [{transform_indices = @transform_0, window_bounds = array<i64: 16, 32>}, {transform_indices = @transform_1, window_bounds = array<i64: 32, 512>}, {transform_indices = @transform_2, window_bounds = array<i64: 1, 512>}, {transform_indices = @transform_3, window_bounds = array<i64: 16, 512>}]} {
    %c0_i32 = arith.constant 0 : i32
    %0 = arith.cmpi eq, %arg2, %c0_i32 : i32
    %1 = arith.extui %0 : i1 to i32
    %c0_i32_0 = arith.constant 0 : i32
    %2 = arith.cmpi ne, %1, %c0_i32_0 : i32
    scf.if %2 {
      %cst_10 = arith.constant 0.000000e+00 : f32
      %12 = vector.broadcast %cst_10 : f32 to vector<16x512xf32>
      %c0_11 = arith.constant 0 : index
      %c0_12 = arith.constant 0 : index
      %13 = vector.load %arg7[%c0_11, %c0_12] : memref<16x512xf32, #tpu.memory_space<vmem>>, vector<16x512xf32>
      tpu.vector_store %arg7[%c0_11, %c0_12], %12 {strides = array<i32>} : memref<16x512xf32, #tpu.memory_space<vmem>>, vector<16x512xf32>,
    } else {
    }
    %c0 = arith.constant 0 : index
    %c0_1 = arith.constant 0 : index
    %3 = vector.load %arg3[%c0, %c0_1] : memref<16x32xbf16, #tpu.memory_space<vmem>>, vector<16x32xbf16>
    %c0_2 = arith.constant 0 : index
    %c0_3 = arith.constant 0 : index
    %4 = vector.load %arg7[%c0_2, %c0_3] : memref<16x512xf32, #tpu.memory_space<vmem>>, vector<16x512xf32>
    %c0_4 = arith.constant 0 : index
    %c0_5 = arith.constant 0 : index
    %5 = vector.load %arg4[%c0_4, %c0_5] : memref<32x512xbf16, #tpu.memory_space<vmem>>, vector<32x512xbf16>
    %cst = arith.constant dense<0.000000e+00> : vector<16x512xf32>
    %6 = tpu.matmul %3, %5, %cst {dimension_numbers = #tpu.dot_dimension_numbers<[1], [0], [0], [1], [0, 0, 1, 1], [], []>} : vector<16x32xbf16>, vector<32x512xbf16>, vector<16x512xf32> -> vector<16x512xf32>
    %7 = arith.addf %4, %6 : vector<16x512xf32>
    %c0_6 = arith.constant 0 : index
    %c0_7 = arith.constant 0 : index
    %8 = vector.load %arg7[%c0_6, %c0_7] : memref<16x512xf32, #tpu.memory_space<vmem>>, vector<16x512xf32>
    tpu.vector_store %arg7[%c0_6, %c0_7], %7 {strides = array<i32>} : memref<16x512xf32, #tpu.memory_space<vmem>>, vector<16x512xf32>,
    %c0_i32_8 = arith.constant 0 : i32
    %9 = arith.cmpi eq, %arg2, %c0_i32_8 : i32
    %10 = arith.extui %9 : i1 to i32
    %c0_i32_9 = arith.constant 0 : i32
    %11 = arith.cmpi ne, %10, %c0_i32_9 : i32
    scf.if %11 {
      %c0_10 = arith.constant 0 : index
      %c0_11 = arith.constant 0 : index
      %12 = vector.load %arg7[%c0_10, %c0_11] : memref<16x512xf32, #tpu.memory_space<vmem>>, vector<16x512xf32>
      %c0_12 = arith.constant 0 : index
      %c0_13 = arith.constant 0 : index
      %13 = vector.load %arg5[%c0_12, %c0_13] : memref<1x512xbf16, #tpu.memory_space<vmem>>, vector<1x512xbf16>
      %14 = arith.extf %13 : vector<1x512xbf16> to vector<1x512xf32>
      %15 = vector.broadcast %14 : vector<1x512xf32> to vector<16x512xf32>
      %16 = arith.addf %12, %15 : vector<16x512xf32>
      %cst_14 = arith.constant 0.000000e+00 : f32
      %17 = vector.broadcast %cst_14 : f32 to vector<16x512xf32>
      %18 = arith.maximumf %16, %17 : vector<16x512xf32>
      %19 = arith.truncf %18 : vector<16x512xf32> to vector<16x512xbf16>
      %c0_15 = arith.constant 0 : index
      %c0_16 = arith.constant 0 : index
      %20 = vector.load %arg6[%c0_15, %c0_16] : memref<16x512xbf16, #tpu.memory_space<vmem>>, vector<16x512xbf16>
      tpu.vector_store %arg6[%c0_15, %c0_16], %19 {strides = array<i32>} : memref<16x512xbf16, #tpu.memory_space<vmem>>, vector<16x512xbf16>,
    } else {
    }
    return
  }
  func.func @transform_0(%arg0: i32, %arg1: i32, %arg2: i32) -> (i32, i32) {
    %c0_i32 = arith.constant 0 : i32
    return %arg0, %arg2 : i32, i32
  }
  func.func @transform_1(%arg0: i32, %arg1: i32, %arg2: i32) -> (i32, i32) {
    %c0_i32 = arith.constant 0 : i32
    return %arg2, %arg1 : i32, i32
  }
  func.func @transform_2(%arg0: i32, %arg1: i32, %arg2: i32) -> (i32, i32) {
    %c0_i32 = arith.constant 0 : i32
    %c0_i32_0 = arith.constant 0 : i32
    return %c0_i32, %arg1 : i32, i32
  }
  func.func @transform_3(%arg0: i32, %arg1: i32, %arg2: i32) -> (i32, i32) {
    %c0_i32 = arith.constant 0 : i32
    return %arg0, %arg1 : i32, i32
  }
}

module attributes {stable_mosaic.version = 11 : i64} {
  func.func @_flash_kernel(%arg0: i32, %arg1: i32, %arg2: i32, %arg3: memref<1x8x32xbf16, #tpu.memory_space<vmem>>, %arg4: memref<1x4x32xbf16, #tpu.memory_space<vmem>>, %arg5: memref<1x4x32xbf16, #tpu.memory_space<vmem>>, %arg6: memref<1x8x32xbf16, #tpu.memory_space<vmem>>, %arg7: memref<4x8x1xf32, #tpu.memory_space<vmem>>, %arg8: memref<4x8x1xf32, #tpu.memory_space<vmem>>, %arg9: memref<4x8x8xf32, #tpu.memory_space<vmem>>) attributes {dimension_semantics = [#tpu.dimension_semantics<parallel>, #tpu.dimension_semantics<parallel>, #tpu.dimension_semantics<arbitrary>], iteration_bounds = array<i64: 2, 1, 1>, scalar_prefetch = 0 : i64, scratch_operands = 3 : i64, tpu.core_type = #tpu.core_type<tc>, window_params = [{transform_indices = @transform_0, window_bounds = array<i64: 1, 8, 32>}, {transform_indices = @transform_1, window_bounds = array<i64: 1, 4, 32>}, {transform_indices = @transform_2, window_bounds = array<i64: 1, 4, 32>}, {transform_indices = @transform_3, window_bounds = array<i64: 1, 8, 32>}]} {
    %c0_i32 = arith.constant 0 : i32
    %0 = arith.cmpi eq, %arg2, %c0_i32 : i32
    %1 = arith.extui %0 : i1 to i32
    %c0_i32_0 = arith.constant 0 : i32
    %2 = arith.cmpi ne, %1, %c0_i32_0 : i32
    scf.if %2 {
      %cst_100 = arith.constant -1.000000e+30 : f32
      %170 = vector.broadcast %cst_100 : f32 to vector<4x8x1xf32>
      %c0_101 = arith.constant 0 : index
      %c0_102 = arith.constant 0 : index
      %c0_103 = arith.constant 0 : index
      %171 = vector.load %arg7[%c0_101, %c0_102, %c0_103] : memref<4x8x1xf32, #tpu.memory_space<vmem>>, vector<4x8x1xf32>
      tpu.vector_store %arg7[%c0_101, %c0_102, %c0_103], %170 {strides = array<i32>} : memref<4x8x1xf32, #tpu.memory_space<vmem>>, vector<4x8x1xf32>,
      %cst_104 = arith.constant 0.000000e+00 : f32
      %172 = vector.broadcast %cst_104 : f32 to vector<4x8x1xf32>
      %c0_105 = arith.constant 0 : index
      %c0_106 = arith.constant 0 : index
      %c0_107 = arith.constant 0 : index
      %173 = vector.load %arg8[%c0_105, %c0_106, %c0_107] : memref<4x8x1xf32, #tpu.memory_space<vmem>>, vector<4x8x1xf32>
      tpu.vector_store %arg8[%c0_105, %c0_106, %c0_107], %172 {strides = array<i32>} : memref<4x8x1xf32, #tpu.memory_space<vmem>>, vector<4x8x1xf32>,
      %cst_108 = arith.constant 0.000000e+00 : f32
      %174 = vector.broadcast %cst_108 : f32 to vector<4x8x8xf32>
      %c0_109 = arith.constant 0 : index
      %c0_110 = arith.constant 0 : index
      %c0_111 = arith.constant 0 : index
      %175 = vector.load %arg9[%c0_109, %c0_110, %c0_111] : memref<4x8x8xf32, #tpu.memory_space<vmem>>, vector<4x8x8xf32>
      tpu.vector_store %arg9[%c0_109, %c0_110, %c0_111], %174 {strides = array<i32>} : memref<4x8x8xf32, #tpu.memory_space<vmem>>, vector<4x8x8xf32>,
    } else {
    }
    %c0 = arith.constant 0 : index
    %c0_1 = arith.constant 0 : index
    %c0_2 = arith.constant 0 : index
    %3 = vector.load %arg3[%c0, %c0_1, %c0_2] : memref<1x8x32xbf16, #tpu.memory_space<vmem>>, vector<1x8x32xbf16>
    %4 = vector.shape_cast %3 : vector<1x8x32xbf16> to vector<8x32xbf16>
    %c0_3 = arith.constant 0 : index
    %c0_4 = arith.constant 0 : index
    %c0_5 = arith.constant 0 : index
    %5 = vector.load %arg4[%c0_3, %c0_4, %c0_5] : memref<1x4x32xbf16, #tpu.memory_space<vmem>>, vector<1x4x32xbf16>
    %6 = vector.shape_cast %5 : vector<1x4x32xbf16> to vector<4x32xbf16>
    %c0_6 = arith.constant 0 : index
    %c0_7 = arith.constant 0 : index
    %c0_8 = arith.constant 0 : index
    %7 = vector.load %arg5[%c0_6, %c0_7, %c0_8] : memref<1x4x32xbf16, #tpu.memory_space<vmem>>, vector<1x4x32xbf16>
    %8 = vector.shape_cast %7 : vector<1x4x32xbf16> to vector<4x32xbf16>
    %c4_i32 = arith.constant 4 : i32
    %9 = arith.muli %arg2, %c4_i32 : i32
    %10 = tpu.iota {dimensions = array<i32: 1>} : vector<8x4xi32>
    %11 = vector.broadcast %9 : i32 to vector<8x4xi32>
    %12 = arith.addi %11, %10 : vector<8x4xi32>
    %c4_i32_9 = arith.constant 4 : i32
    %13 = vector.broadcast %c4_i32_9 : i32 to vector<8x4xi32>
    %14 = arith.cmpi slt, %12, %13 : vector<8x4xi32>
    %15 = vector.extract_strided_slice %4 {offsets = [0, 0], sizes = [8, 8], strides = [1, 1]} : vector<8x32xbf16> to vector<8x8xbf16>
    %16 = vector.extract_strided_slice %6 {offsets = [0, 0], sizes = [4, 8], strides = [1, 1]} : vector<4x32xbf16> to vector<4x8xbf16>
    %cst = arith.constant dense<0.000000e+00> : vector<8x4xf32>
    %17 = tpu.matmul %15, %16, %cst {dimension_numbers = #tpu.dot_dimension_numbers<[1], [1], [0], [0], [0, 0, 1, 0], [], []>} : vector<8x8xbf16>, vector<4x8xbf16>, vector<8x4xf32> -> vector<8x4xf32>
    %cst_10 = arith.constant -1.000000e+30 : f32
    %18 = vector.broadcast %cst_10 : f32 to vector<8x4xf32>
    %19 = arith.select %14, %17, %18 : vector<8x4xi1>, vector<8x4xf32>
    %c0_11 = arith.constant 0 : index
    %c0_12 = arith.constant 0 : index
    %c0_13 = arith.constant 0 : index
    %20 = vector.load %arg7[%c0_11, %c0_12, %c0_13] : memref<4x8x1xf32, #tpu.memory_space<vmem>>, vector<1x8x1xf32>
    %21 = vector.shape_cast %20 : vector<1x8x1xf32> to vector<8x1xf32>
    %cst_14 = arith.constant dense<0xFF800000> : vector<8xf32>
    %22 = vector.multi_reduction <maximumf>, %19, %cst_14 [1] : vector<8x4xf32> to vector<8xf32>
    %23 = vector.shape_cast %22 : vector<8xf32> to vector<8x1xf32>
    %24 = arith.maximumf %21, %23 : vector<8x1xf32>
    %25 = arith.subf %21, %24 : vector<8x1xf32>
    %26 = math.exp %25 : vector<8x1xf32>
    %27 = vector.broadcast %24 : vector<8x1xf32> to vector<8x4xf32>
    %28 = arith.subf %19, %27 : vector<8x4xf32>
    %29 = math.exp %28 : vector<8x4xf32>
    %c0_15 = arith.constant 0 : index
    %c0_16 = arith.constant 0 : index
    %c0_17 = arith.constant 0 : index
    %30 = vector.load %arg8[%c0_15, %c0_16, %c0_17] : memref<4x8x1xf32, #tpu.memory_space<vmem>>, vector<1x8x1xf32>
    %31 = vector.shape_cast %30 : vector<1x8x1xf32> to vector<8x1xf32>
    %32 = arith.mulf %26, %31 : vector<8x1xf32>
    %cst_18 = arith.constant dense<0.000000e+00> : vector<8xf32>
    %33 = vector.multi_reduction <add>, %29, %cst_18 [1] : vector<8x4xf32> to vector<8xf32>
    %34 = vector.shape_cast %33 : vector<8xf32> to vector<8x1xf32>
    %35 = arith.addf %32, %34 : vector<8x1xf32>
    %c0_19 = arith.constant 0 : index
    %c0_20 = arith.constant 0 : index
    %c0_21 = arith.constant 0 : index
    %36 = vector.load %arg8[%c0_19, %c0_20, %c0_21] : memref<4x8x1xf32, #tpu.memory_space<vmem>>, vector<1x8x1xf32>
    %37 = vector.shape_cast %36 : vector<1x8x1xf32> to vector<8x1xf32>
    %38 = vector.shape_cast %35 : vector<8x1xf32> to vector<1x8x1xf32>
    tpu.vector_store %arg8[%c0_19, %c0_20, %c0_21], %38 {strides = array<i32>} : memref<4x8x1xf32, #tpu.memory_space<vmem>>, vector<1x8x1xf32>,
    %c0_22 = arith.constant 0 : index
    %c0_23 = arith.constant 0 : index
    %c0_24 = arith.constant 0 : index
    %39 = vector.load %arg9[%c0_22, %c0_23, %c0_24] : memref<4x8x8xf32, #tpu.memory_space<vmem>>, vector<1x8x8xf32>
    %40 = vector.shape_cast %39 : vector<1x8x8xf32> to vector<8x8xf32>
    %41 = vector.broadcast %26 : vector<8x1xf32> to vector<8x8xf32>
    %42 = arith.mulf %41, %40 : vector<8x8xf32>
    %43 = arith.truncf %29 : vector<8x4xf32> to vector<8x4xbf16>
    %44 = vector.extract_strided_slice %8 {offsets = [0, 0], sizes = [4, 8], strides = [1, 1]} : vector<4x32xbf16> to vector<4x8xbf16>
    %cst_25 = arith.constant dense<0.000000e+00> : vector<8x8xf32>
    %45 = tpu.matmul %43, %44, %cst_25 {dimension_numbers = #tpu.dot_dimension_numbers<[1], [0], [0], [1], [0, 0, 1, 1], [], []>} : vector<8x4xbf16>, vector<4x8xbf16>, vector<8x8xf32> -> vector<8x8xf32>
    %46 = arith.addf %42, %45 : vector<8x8xf32>
    %c0_26 = arith.constant 0 : index
    %c0_27 = arith.constant 0 : index
    %c0_28 = arith.constant 0 : index
    %47 = vector.load %arg9[%c0_26, %c0_27, %c0_28] : memref<4x8x8xf32, #tpu.memory_space<vmem>>, vector<1x8x8xf32>
    %48 = vector.shape_cast %47 : vector<1x8x8xf32> to vector<8x8xf32>
    %49 = vector.shape_cast %46 : vector<8x8xf32> to vector<1x8x8xf32>
    tpu.vector_store %arg9[%c0_26, %c0_27, %c0_28], %49 {strides = array<i32>} : memref<4x8x8xf32, #tpu.memory_space<vmem>>, vector<1x8x8xf32>,
    %c0_29 = arith.constant 0 : index
    %c0_30 = arith.constant 0 : index
    %c0_31 = arith.constant 0 : index
    %50 = vector.load %arg7[%c0_29, %c0_30, %c0_31] : memref<4x8x1xf32, #tpu.memory_space<vmem>>, vector<1x8x1xf32>
    %51 = vector.shape_cast %50 : vector<1x8x1xf32> to vector<8x1xf32>
    %52 = vector.shape_cast %24 : vector<8x1xf32> to vector<1x8x1xf32>
    tpu.vector_store %arg7[%c0_29, %c0_30, %c0_31], %52 {strides = array<i32>} : memref<4x8x1xf32, #tpu.memory_space<vmem>>, vector<1x8x1xf32>,
    %53 = vector.extract_strided_slice %4 {offsets = [0, 8], sizes = [8, 8], strides = [1, 1]} : vector<8x32xbf16> to vector<8x8xbf16>
    %54 = vector.extract_strided_slice %6 {offsets = [0, 8], sizes = [4, 8], strides = [1, 1]} : vector<4x32xbf16> to vector<4x8xbf16>
    %cst_32 = arith.constant dense<0.000000e+00> : vector<8x4xf32>
    %55 = tpu.matmul %53, %54, %cst_32 {dimension_numbers = #tpu.dot_dimension_numbers<[1], [1], [0], [0], [0, 0, 1, 0], [], []>} : vector<8x8xbf16>, vector<4x8xbf16>, vector<8x4xf32> -> vector<8x4xf32>
    %cst_33 = arith.constant -1.000000e+30 : f32
    %56 = vector.broadcast %cst_33 : f32 to vector<8x4xf32>
    %57 = arith.select %14, %55, %56 : vector<8x4xi1>, vector<8x4xf32>
    %c1 = arith.constant 1 : index
    %c0_34 = arith.constant 0 : index
    %c0_35 = arith.constant 0 : index
    %58 = vector.load %arg7[%c1, %c0_34, %c0_35] : memref<4x8x1xf32, #tpu.memory_space<vmem>>, vector<1x8x1xf32>
    %59 = vector.shape_cast %58 : vector<1x8x1xf32> to vector<8x1xf32>
    %cst_36 = arith.constant dense<0xFF800000> : vector<8xf32>
    %60 = vector.multi_reduction <maximumf>, %57, %cst_36 [1] : vector<8x4xf32> to vector<8xf32>
    %61 = vector.shape_cast %60 : vector<8xf32> to vector<8x1xf32>
    %62 = arith.maximumf %59, %61 : vector<8x1xf32>
    %63 = arith.subf %59, %62 : vector<8x1xf32>
    %64 = math.exp %63 : vector<8x1xf32>
    %65 = vector.broadcast %62 : vector<8x1xf32> to vector<8x4xf32>
    %66 = arith.subf %57, %65 : vector<8x4xf32>
    %67 = math.exp %66 : vector<8x4xf32>
    %c1_37 = arith.constant 1 : index
    %c0_38 = arith.constant 0 : index
    %c0_39 = arith.constant 0 : index
    %68 = vector.load %arg8[%c1_37, %c0_38, %c0_39] : memref<4x8x1xf32, #tpu.memory_space<vmem>>, vector<1x8x1xf32>
    %69 = vector.shape_cast %68 : vector<1x8x1xf32> to vector<8x1xf32>
    %70 = arith.mulf %64, %69 : vector<8x1xf32>
    %cst_40 = arith.constant dense<0.000000e+00> : vector<8xf32>
    %71 = vector.multi_reduction <add>, %67, %cst_40 [1] : vector<8x4xf32> to vector<8xf32>
    %72 = vector.shape_cast %71 : vector<8xf32> to vector<8x1xf32>
    %73 = arith.addf %70, %72 : vector<8x1xf32>
    %c1_41 = arith.constant 1 : index
    %c0_42 = arith.constant 0 : index
    %c0_43 = arith.constant 0 : index
    %74 = vector.load %arg8[%c1_41, %c0_42, %c0_43] : memref<4x8x1xf32, #tpu.memory_space<vmem>>, vector<1x8x1xf32>
    %75 = vector.shape_cast %74 : vector<1x8x1xf32> to vector<8x1xf32>
    %76 = vector.shape_cast %73 : vector<8x1xf32> to vector<1x8x1xf32>
    tpu.vector_store %arg8[%c1_41, %c0_42, %c0_43], %76 {strides = array<i32>} : memref<4x8x1xf32, #tpu.memory_space<vmem>>, vector<1x8x1xf32>,
    %c1_44 = arith.constant 1 : index
    %c0_45 = arith.constant 0 : index
    %c0_46 = arith.constant 0 : index
    %77 = vector.load %arg9[%c1_44, %c0_45, %c0_46] : memref<4x8x8xf32, #tpu.memory_space<vmem>>, vector<1x8x8xf32>
    %78 = vector.shape_cast %77 : vector<1x8x8xf32> to vector<8x8xf32>
    %79 = vector.broadcast %64 : vector<8x1xf32> to vector<8x8xf32>
    %80 = arith.mulf %79, %78 : vector<8x8xf32>
    %81 = arith.truncf %67 : vector<8x4xf32> to vector<8x4xbf16>
    %82 = vector.extract_strided_slice %8 {offsets = [0, 8], sizes = [4, 8], strides = [1, 1]} : vector<4x32xbf16> to vector<4x8xbf16>
    %cst_47 = arith.constant dense<0.000000e+00> : vector<8x8xf32>
    %83 = tpu.matmul %81, %82, %cst_47 {dimension_numbers = #tpu.dot_dimension_numbers<[1], [0], [0], [1], [0, 0, 1, 1], [], []>} : vector<8x4xbf16>, vector<4x8xbf16>, vector<8x8xf32> -> vector<8x8xf32>
    %84 = arith.addf %80, %83 : vector<8x8xf32>
    %c1_48 = arith.constant 1 : index
    %c0_49 = arith.constant 0 : index
    %c0_50 = arith.constant 0 : index
    %85 = vector.load %arg9[%c1_48, %c0_49, %c0_50] : memref<4x8x8xf32, #tpu.memory_space<vmem>>, vector<1x8x8xf32>
    %86 = vector.shape_cast %85 : vector<1x8x8xf32> to vector<8x8xf32>
    %87 = vector.shape_cast %84 : vector<8x8xf32> to vector<1x8x8xf32>
    tpu.vector_store %arg9[%c1_48, %c0_49, %c0_50], %87 {strides = array<i32>} : memref<4x8x8xf32, #tpu.memory_space<vmem>>, vector<1x8x8xf32>,
    %c1_51 = arith.constant 1 : index
    %c0_52 = arith.constant 0 : index
    %c0_53 = arith.constant 0 : index
    %88 = vector.load %arg7[%c1_51, %c0_52, %c0_53] : memref<4x8x1xf32, #tpu.memory_space<vmem>>, vector<1x8x1xf32>
    %89 = vector.shape_cast %88 : vector<1x8x1xf32> to vector<8x1xf32>
    %90 = vector.shape_cast %62 : vector<8x1xf32> to vector<1x8x1xf32>
    tpu.vector_store %arg7[%c1_51, %c0_52, %c0_53], %90 {strides = array<i32>} : memref<4x8x1xf32, #tpu.memory_space<vmem>>, vector<1x8x1xf32>,
    %91 = vector.extract_strided_slice %4 {offsets = [0, 16], sizes = [8, 8], strides = [1, 1]} : vector<8x32xbf16> to vector<8x8xbf16>
    %92 = vector.extract_strided_slice %6 {offsets = [0, 16], sizes = [4, 8], strides = [1, 1]} : vector<4x32xbf16> to vector<4x8xbf16>
    %cst_54 = arith.constant dense<0.000000e+00> : vector<8x4xf32>
    %93 = tpu.matmul %91, %92, %cst_54 {dimension_numbers = #tpu.dot_dimension_numbers<[1], [1], [0], [0], [0, 0, 1, 0], [], []>} : vector<8x8xbf16>, vector<4x8xbf16>, vector<8x4xf32> -> vector<8x4xf32>
    %cst_55 = arith.constant -1.000000e+30 : f32
    %94 = vector.broadcast %cst_55 : f32 to vector<8x4xf32>
    %95 = arith.select %14, %93, %94 : vector<8x4xi1>, vector<8x4xf32>
    %c2 = arith.constant 2 : index
    %c0_56 = arith.constant 0 : index
    %c0_57 = arith.constant 0 : index
    %96 = vector.load %arg7[%c2, %c0_56, %c0_57] : memref<4x8x1xf32, #tpu.memory_space<vmem>>, vector<1x8x1xf32>
    %97 = vector.shape_cast %96 : vector<1x8x1xf32> to vector<8x1xf32>
    %cst_58 = arith.constant dense<0xFF800000> : vector<8xf32>
    %98 = vector.multi_reduction <maximumf>, %95, %cst_58 [1] : vector<8x4xf32> to vector<8xf32>
    %99 = vector.shape_cast %98 : vector<8xf32> to vector<8x1xf32>
    %100 = arith.maximumf %97, %99 : vector<8x1xf32>
    %101 = arith.subf %97, %100 : vector<8x1xf32>
    %102 = math.exp %101 : vector<8x1xf32>
    %103 = vector.broadcast %100 : vector<8x1xf32> to vector<8x4xf32>
    %104 = arith.subf %95, %103 : vector<8x4xf32>
    %105 = math.exp %104 : vector<8x4xf32>
    %c2_59 = arith.constant 2 : index
    %c0_60 = arith.constant 0 : index
    %c0_61 = arith.constant 0 : index
    %106 = vector.load %arg8[%c2_59, %c0_60, %c0_61] : memref<4x8x1xf32, #tpu.memory_space<vmem>>, vector<1x8x1xf32>
    %107 = vector.shape_cast %106 : vector<1x8x1xf32> to vector<8x1xf32>
    %108 = arith.mulf %102, %107 : vector<8x1xf32>
    %cst_62 = arith.constant dense<0.000000e+00> : vector<8xf32>
    %109 = vector.multi_reduction <add>, %105, %cst_62 [1] : vector<8x4xf32> to vector<8xf32>
    %110 = vector.shape_cast %109 : vector<8xf32> to vector<8x1xf32>
    %111 = arith.addf %108, %110 : vector<8x1xf32>
    %c2_63 = arith.constant 2 : index
    %c0_64 = arith.constant 0 : index
    %c0_65 = arith.constant 0 : index
    %112 = vector.load %arg8[%c2_63, %c0_64, %c0_65] : memref<4x8x1xf32, #tpu.memory_space<vmem>>, vector<1x8x1xf32>
    %113 = vector.shape_cast %112 : vector<1x8x1xf32> to vector<8x1xf32>
    %114 = vector.shape_cast %111 : vector<8x1xf32> to vector<1x8x1xf32>
    tpu.vector_store %arg8[%c2_63, %c0_64, %c0_65], %114 {strides = array<i32>} : memref<4x8x1xf32, #tpu.memory_space<vmem>>, vector<1x8x1xf32>,
    %c2_66 = arith.constant 2 : index
    %c0_67 = arith.constant 0 : index
    %c0_68 = arith.constant 0 : index
    %115 = vector.load %arg9[%c2_66, %c0_67, %c0_68] : memref<4x8x8xf32, #tpu.memory_space<vmem>>, vector<1x8x8xf32>
    %116 = vector.shape_cast %115 : vector<1x8x8xf32> to vector<8x8xf32>
    %117 = vector.broadcast %102 : vector<8x1xf32> to vector<8x8xf32>
    %118 = arith.mulf %117, %116 : vector<8x8xf32>
    %119 = arith.truncf %105 : vector<8x4xf32> to vector<8x4xbf16>
    %120 = vector.extract_strided_slice %8 {offsets = [0, 16], sizes = [4, 8], strides = [1, 1]} : vector<4x32xbf16> to vector<4x8xbf16>
    %cst_69 = arith.constant dense<0.000000e+00> : vector<8x8xf32>
    %121 = tpu.matmul %119, %120, %cst_69 {dimension_numbers = #tpu.dot_dimension_numbers<[1], [0], [0], [1], [0, 0, 1, 1], [], []>} : vector<8x4xbf16>, vector<4x8xbf16>, vector<8x8xf32> -> vector<8x8xf32>
    %122 = arith.addf %118, %121 : vector<8x8xf32>
    %c2_70 = arith.constant 2 : index
    %c0_71 = arith.constant 0 : index
    %c0_72 = arith.constant 0 : index
    %123 = vector.load %arg9[%c2_70, %c0_71, %c0_72] : memref<4x8x8xf32, #tpu.memory_space<vmem>>, vector<1x8x8xf32>
    %124 = vector.shape_cast %123 : vector<1x8x8xf32> to vector<8x8xf32>
    %125 = vector.shape_cast %122 : vector<8x8xf32> to vector<1x8x8xf32>
    tpu.vector_store %arg9[%c2_70, %c0_71, %c0_72], %125 {strides = array<i32>} : memref<4x8x8xf32, #tpu.memory_space<vmem>>, vector<1x8x8xf32>,
    %c2_73 = arith.constant 2 : index
    %c0_74 = arith.constant 0 : index
    %c0_75 = arith.constant 0 : index
    %126 = vector.load %arg7[%c2_73, %c0_74, %c0_75] : memref<4x8x1xf32, #tpu.memory_space<vmem>>, vector<1x8x1xf32>
    %127 = vector.shape_cast %126 : vector<1x8x1xf32> to vector<8x1xf32>
    %128 = vector.shape_cast %100 : vector<8x1xf32> to vector<1x8x1xf32>
    tpu.vector_store %arg7[%c2_73, %c0_74, %c0_75], %128 {strides = array<i32>} : memref<4x8x1xf32, #tpu.memory_space<vmem>>, vector<1x8x1xf32>,
    %129 = vector.extract_strided_slice %4 {offsets = [0, 24], sizes = [8, 8], strides = [1, 1]} : vector<8x32xbf16> to vector<8x8xbf16>
    %130 = vector.extract_strided_slice %6 {offsets = [0, 24], sizes = [4, 8], strides = [1, 1]} : vector<4x32xbf16> to vector<4x8xbf16>
    %cst_76 = arith.constant dense<0.000000e+00> : vector<8x4xf32>
    %131 = tpu.matmul %129, %130, %cst_76 {dimension_numbers = #tpu.dot_dimension_numbers<[1], [1], [0], [0], [0, 0, 1, 0], [], []>} : vector<8x8xbf16>, vector<4x8xbf16>, vector<8x4xf32> -> vector<8x4xf32>
    %cst_77 = arith.constant -1.000000e+30 : f32
    %132 = vector.broadcast %cst_77 : f32 to vector<8x4xf32>
    %133 = arith.select %14, %131, %132 : vector<8x4xi1>, vector<8x4xf32>
    %c3 = arith.constant 3 : index
    %c0_78 = arith.constant 0 : index
    %c0_79 = arith.constant 0 : index
    %134 = vector.load %arg7[%c3, %c0_78, %c0_79] : memref<4x8x1xf32, #tpu.memory_space<vmem>>, vector<1x8x1xf32>
    %135 = vector.shape_cast %134 : vector<1x8x1xf32> to vector<8x1xf32>
    %cst_80 = arith.constant dense<0xFF800000> : vector<8xf32>
    %136 = vector.multi_reduction <maximumf>, %133, %cst_80 [1] : vector<8x4xf32> to vector<8xf32>
    %137 = vector.shape_cast %136 : vector<8xf32> to vector<8x1xf32>
    %138 = arith.maximumf %135, %137 : vector<8x1xf32>
    %139 = arith.subf %135, %138 : vector<8x1xf32>
    %140 = math.exp %139 : vector<8x1xf32>
    %141 = vector.broadcast %138 : vector<8x1xf32> to vector<8x4xf32>
    %142 = arith.subf %133, %141 : vector<8x4xf32>
    %143 = math.exp %142 : vector<8x4xf32>
    %c3_81 = arith.constant 3 : index
    %c0_82 = arith.constant 0 : index
    %c0_83 = arith.constant 0 : index
    %144 = vector.load %arg8[%c3_81, %c0_82, %c0_83] : memref<4x8x1xf32, #tpu.memory_space<vmem>>, vector<1x8x1xf32>
    %145 = vector.shape_cast %144 : vector<1x8x1xf32> to vector<8x1xf32>
    %146 = arith.mulf %140, %145 : vector<8x1xf32>
    %cst_84 = arith.constant dense<0.000000e+00> : vector<8xf32>
    %147 = vector.multi_reduction <add>, %143, %cst_84 [1] : vector<8x4xf32> to vector<8xf32>
    %148 = vector.shape_cast %147 : vector<8xf32> to vector<8x1xf32>
    %149 = arith.addf %146, %148 : vector<8x1xf32>
    %c3_85 = arith.constant 3 : index
    %c0_86 = arith.constant 0 : index
    %c0_87 = arith.constant 0 : index
    %150 = vector.load %arg8[%c3_85, %c0_86, %c0_87] : memref<4x8x1xf32, #tpu.memory_space<vmem>>, vector<1x8x1xf32>
    %151 = vector.shape_cast %150 : vector<1x8x1xf32> to vector<8x1xf32>
    %152 = vector.shape_cast %149 : vector<8x1xf32> to vector<1x8x1xf32>
    tpu.vector_store %arg8[%c3_85, %c0_86, %c0_87], %152 {strides = array<i32>} : memref<4x8x1xf32, #tpu.memory_space<vmem>>, vector<1x8x1xf32>,
    %c3_88 = arith.constant 3 : index
    %c0_89 = arith.constant 0 : index
    %c0_90 = arith.constant 0 : index
    %153 = vector.load %arg9[%c3_88, %c0_89, %c0_90] : memref<4x8x8xf32, #tpu.memory_space<vmem>>, vector<1x8x8xf32>
    %154 = vector.shape_cast %153 : vector<1x8x8xf32> to vector<8x8xf32>
    %155 = vector.broadcast %140 : vector<8x1xf32> to vector<8x8xf32>
    %156 = arith.mulf %155, %154 : vector<8x8xf32>
    %157 = arith.truncf %143 : vector<8x4xf32> to vector<8x4xbf16>
    %158 = vector.extract_strided_slice %8 {offsets = [0, 24], sizes = [4, 8], strides = [1, 1]} : vector<4x32xbf16> to vector<4x8xbf16>
    %cst_91 = arith.constant dense<0.000000e+00> : vector<8x8xf32>
    %159 = tpu.matmul %157, %158, %cst_91 {dimension_numbers = #tpu.dot_dimension_numbers<[1], [0], [0], [1], [0, 0, 1, 1], [], []>} : vector<8x4xbf16>, vector<4x8xbf16>, vector<8x8xf32> -> vector<8x8xf32>
    %160 = arith.addf %156, %159 : vector<8x8xf32>
    %c3_92 = arith.constant 3 : index
    %c0_93 = arith.constant 0 : index
    %c0_94 = arith.constant 0 : index
    %161 = vector.load %arg9[%c3_92, %c0_93, %c0_94] : memref<4x8x8xf32, #tpu.memory_space<vmem>>, vector<1x8x8xf32>
    %162 = vector.shape_cast %161 : vector<1x8x8xf32> to vector<8x8xf32>
    %163 = vector.shape_cast %160 : vector<8x8xf32> to vector<1x8x8xf32>
    tpu.vector_store %arg9[%c3_92, %c0_93, %c0_94], %163 {strides = array<i32>} : memref<4x8x8xf32, #tpu.memory_space<vmem>>, vector<1x8x8xf32>,
    %c3_95 = arith.constant 3 : index
    %c0_96 = arith.constant 0 : index
    %c0_97 = arith.constant 0 : index
    %164 = vector.load %arg7[%c3_95, %c0_96, %c0_97] : memref<4x8x1xf32, #tpu.memory_space<vmem>>, vector<1x8x1xf32>
    %165 = vector.shape_cast %164 : vector<1x8x1xf32> to vector<8x1xf32>
    %166 = vector.shape_cast %138 : vector<8x1xf32> to vector<1x8x1xf32>
    tpu.vector_store %arg7[%c3_95, %c0_96, %c0_97], %166 {strides = array<i32>} : memref<4x8x1xf32, #tpu.memory_space<vmem>>, vector<1x8x1xf32>,
    %c0_i32_98 = arith.constant 0 : i32
    %167 = arith.cmpi eq, %arg2, %c0_i32_98 : i32
    %168 = arith.extui %167 : i1 to i32
    %c0_i32_99 = arith.constant 0 : i32
    %169 = arith.cmpi ne, %168, %c0_i32_99 : i32
    scf.if %169 {
      %c0_100 = arith.constant 0 : index
      %c0_101 = arith.constant 0 : index
      %c0_102 = arith.constant 0 : index
      %170 = vector.load %arg9[%c0_100, %c0_101, %c0_102] : memref<4x8x8xf32, #tpu.memory_space<vmem>>, vector<1x8x8xf32>
      %171 = vector.shape_cast %170 : vector<1x8x8xf32> to vector<8x8xf32>
      %c0_103 = arith.constant 0 : index
      %c0_104 = arith.constant 0 : index
      %c0_105 = arith.constant 0 : index
      %172 = vector.load %arg8[%c0_103, %c0_104, %c0_105] : memref<4x8x1xf32, #tpu.memory_space<vmem>>, vector<1x8x1xf32>
      %173 = vector.shape_cast %172 : vector<1x8x1xf32> to vector<8x1xf32>
      %174 = tpu.reciprocal %173 {approx = true} : vector<8x1xf32> -> vector<8x1xf32>
      %175 = vector.broadcast %174 : vector<8x1xf32> to vector<8x8xf32>
      %176 = arith.mulf %171, %175 : vector<8x8xf32>
      %c1_106 = arith.constant 1 : index
      %c0_107 = arith.constant 0 : index
      %c0_108 = arith.constant 0 : index
      %177 = vector.load %arg9[%c1_106, %c0_107, %c0_108] : memref<4x8x8xf32, #tpu.memory_space<vmem>>, vector<1x8x8xf32>
      %178 = vector.shape_cast %177 : vector<1x8x8xf32> to vector<8x8xf32>
      %c1_109 = arith.constant 1 : index
      %c0_110 = arith.constant 0 : index
      %c0_111 = arith.constant 0 : index
      %179 = vector.load %arg8[%c1_109, %c0_110, %c0_111] : memref<4x8x1xf32, #tpu.memory_space<vmem>>, vector<1x8x1xf32>
      %180 = vector.shape_cast %179 : vector<1x8x1xf32> to vector<8x1xf32>
      %181 = tpu.reciprocal %180 {approx = true} : vector<8x1xf32> -> vector<8x1xf32>
      %182 = vector.broadcast %181 : vector<8x1xf32> to vector<8x8xf32>
      %183 = arith.mulf %178, %182 : vector<8x8xf32>
      %c2_112 = arith.constant 2 : index
      %c0_113 = arith.constant 0 : index
      %c0_114 = arith.constant 0 : index
      %184 = vector.load %arg9[%c2_112, %c0_113, %c0_114] : memref<4x8x8xf32, #tpu.memory_space<vmem>>, vector<1x8x8xf32>
      %185 = vector.shape_cast %184 : vector<1x8x8xf32> to vector<8x8xf32>
      %c2_115 = arith.constant 2 : index
      %c0_116 = arith.constant 0 : index
      %c0_117 = arith.constant 0 : index
      %186 = vector.load %arg8[%c2_115, %c0_116, %c0_117] : memref<4x8x1xf32, #tpu.memory_space<vmem>>, vector<1x8x1xf32>
      %187 = vector.shape_cast %186 : vector<1x8x1xf32> to vector<8x1xf32>
      %188 = tpu.reciprocal %187 {approx = true} : vector<8x1xf32> -> vector<8x1xf32>
      %189 = vector.broadcast %188 : vector<8x1xf32> to vector<8x8xf32>
      %190 = arith.mulf %185, %189 : vector<8x8xf32>
      %c3_118 = arith.constant 3 : index
      %c0_119 = arith.constant 0 : index
      %c0_120 = arith.constant 0 : index
      %191 = vector.load %arg9[%c3_118, %c0_119, %c0_120] : memref<4x8x8xf32, #tpu.memory_space<vmem>>, vector<1x8x8xf32>
      %192 = vector.shape_cast %191 : vector<1x8x8xf32> to vector<8x8xf32>
      %c3_121 = arith.constant 3 : index
      %c0_122 = arith.constant 0 : index
      %c0_123 = arith.constant 0 : index
      %193 = vector.load %arg8[%c3_121, %c0_122, %c0_123] : memref<4x8x1xf32, #tpu.memory_space<vmem>>, vector<1x8x1xf32>
      %194 = vector.shape_cast %193 : vector<1x8x1xf32> to vector<8x1xf32>
      %195 = tpu.reciprocal %194 {approx = true} : vector<8x1xf32> -> vector<8x1xf32>
      %196 = vector.broadcast %195 : vector<8x1xf32> to vector<8x8xf32>
      %197 = arith.mulf %192, %196 : vector<8x8xf32>
      %198 = tpu.concatenate %176, %183, %190, %197 in 1 : vector<8x8xf32>, vector<8x8xf32>, vector<8x8xf32>, vector<8x8xf32> -> vector<8x32xf32>
      %199 = arith.truncf %198 : vector<8x32xf32> to vector<8x32xbf16>
      %c0_124 = arith.constant 0 : index
      %c0_125 = arith.constant 0 : index
      %c0_126 = arith.constant 0 : index
      %200 = vector.load %arg6[%c0_124, %c0_125, %c0_126] : memref<1x8x32xbf16, #tpu.memory_space<vmem>>, vector<1x8x32xbf16>
      %201 = vector.shape_cast %200 : vector<1x8x32xbf16> to vector<8x32xbf16>
      %202 = vector.shape_cast %199 : vector<8x32xbf16> to vector<1x8x32xbf16>
      tpu.vector_store %arg6[%c0_124, %c0_125, %c0_126], %202 {strides = array<i32>} : memref<1x8x32xbf16, #tpu.memory_space<vmem>>, vector<1x8x32xbf16>,
    } else {
    }
    return
  }
  func.func @transform_0(%arg0: i32, %arg1: i32, %arg2: i32) -> (i32, i32, i32) {
    %c0_i32 = arith.constant 0 : i32
    %c0_i32_0 = arith.constant 0 : i32
    return %arg0, %arg1, %c0_i32 : i32, i32, i32
  }
  func.func @transform_1(%arg0: i32, %arg1: i32, %arg2: i32) -> (i32, i32, i32) {
    %c0_i32 = arith.constant 0 : i32
    %c0_i32_0 = arith.constant 0 : i32
    return %arg0, %arg2, %c0_i32 : i32, i32, i32
  }
  func.func @transform_2(%arg0: i32, %arg1: i32, %arg2: i32) -> (i32, i32, i32) {
    %c0_i32 = arith.constant 0 : i32
    %c0_i32_0 = arith.constant 0 : i32
    return %arg0, %arg2, %c0_i32 : i32, i32, i32
  }
  func.func @transform_3(%arg0: i32, %arg1: i32, %arg2: i32) -> (i32, i32, i32) {
    %c0_i32 = arith.constant 0 : i32
    %c0_i32_0 = arith.constant 0 : i32
    return %arg0, %arg1, %c0_i32 : i32, i32, i32
  }
}

module attributes {stable_mosaic.version = 11 : i64} {
  func.func @_linear_kernel(%arg0: i32, %arg1: i32, %arg2: i32, %arg3: memref<16x1024xbf16, #tpu.memory_space<vmem>>, %arg4: memref<1024x32xbf16, #tpu.memory_space<vmem>>, %arg5: memref<1x32xbf16, #tpu.memory_space<vmem>>, %arg6: memref<16x32xbf16, #tpu.memory_space<vmem>>, %arg7: memref<16x32xbf16, #tpu.memory_space<vmem>>, %arg8: memref<16x32xf32, #tpu.memory_space<vmem>>) attributes {dimension_semantics = [#tpu.dimension_semantics<parallel>, #tpu.dimension_semantics<parallel>, #tpu.dimension_semantics<arbitrary>], iteration_bounds = array<i64: 1, 1, 2>, scalar_prefetch = 0 : i64, scratch_operands = 1 : i64, tpu.core_type = #tpu.core_type<tc>, window_params = [{transform_indices = @transform_0, window_bounds = array<i64: 16, 1024>}, {transform_indices = @transform_1, window_bounds = array<i64: 1024, 32>}, {transform_indices = @transform_2, window_bounds = array<i64: 1, 32>}, {transform_indices = @transform_3, window_bounds = array<i64: 16, 32>}, {transform_indices = @transform_4, window_bounds = array<i64: 16, 32>}]} {
    %c0_i32 = arith.constant 0 : i32
    %0 = arith.cmpi eq, %arg2, %c0_i32 : i32
    %1 = arith.extui %0 : i1 to i32
    %c0_i32_0 = arith.constant 0 : i32
    %2 = arith.cmpi ne, %1, %c0_i32_0 : i32
    scf.if %2 {
      %cst_9 = arith.constant 0.000000e+00 : f32
      %12 = vector.broadcast %cst_9 : f32 to vector<16x32xf32>
      %c0_10 = arith.constant 0 : index
      %c0_11 = arith.constant 0 : index
      %13 = vector.load %arg8[%c0_10, %c0_11] : memref<16x32xf32, #tpu.memory_space<vmem>>, vector<16x32xf32>
      tpu.vector_store %arg8[%c0_10, %c0_11], %12 {strides = array<i32>} : memref<16x32xf32, #tpu.memory_space<vmem>>, vector<16x32xf32>,
    } else {
    }
    %c0 = arith.constant 0 : index
    %c0_1 = arith.constant 0 : index
    %3 = vector.load %arg3[%c0, %c0_1] : memref<16x1024xbf16, #tpu.memory_space<vmem>>, vector<16x1024xbf16>
    %c0_2 = arith.constant 0 : index
    %c0_3 = arith.constant 0 : index
    %4 = vector.load %arg8[%c0_2, %c0_3] : memref<16x32xf32, #tpu.memory_space<vmem>>, vector<16x32xf32>
    %c0_4 = arith.constant 0 : index
    %c0_5 = arith.constant 0 : index
    %5 = vector.load %arg4[%c0_4, %c0_5] : memref<1024x32xbf16, #tpu.memory_space<vmem>>, vector<1024x32xbf16>
    %cst = arith.constant dense<0.000000e+00> : vector<16x32xf32>
    %6 = tpu.matmul %3, %5, %cst {dimension_numbers = #tpu.dot_dimension_numbers<[1], [0], [0], [1], [0, 0, 1, 1], [], []>} : vector<16x1024xbf16>, vector<1024x32xbf16>, vector<16x32xf32> -> vector<16x32xf32>
    %7 = arith.addf %4, %6 : vector<16x32xf32>
    %c0_6 = arith.constant 0 : index
    %c0_7 = arith.constant 0 : index
    %8 = vector.load %arg8[%c0_6, %c0_7] : memref<16x32xf32, #tpu.memory_space<vmem>>, vector<16x32xf32>
    tpu.vector_store %arg8[%c0_6, %c0_7], %7 {strides = array<i32>} : memref<16x32xf32, #tpu.memory_space<vmem>>, vector<16x32xf32>,
    %c1_i32 = arith.constant 1 : i32
    %9 = arith.cmpi eq, %arg2, %c1_i32 : i32
    %10 = arith.extui %9 : i1 to i32
    %c0_i32_8 = arith.constant 0 : i32
    %11 = arith.cmpi ne, %10, %c0_i32_8 : i32
    scf.if %11 {
      %c0_9 = arith.constant 0 : index
      %c0_10 = arith.constant 0 : index
      %12 = vector.load %arg8[%c0_9, %c0_10] : memref<16x32xf32, #tpu.memory_space<vmem>>, vector<16x32xf32>
      %c0_11 = arith.constant 0 : index
      %c0_12 = arith.constant 0 : index
      %13 = vector.load %arg5[%c0_11, %c0_12] : memref<1x32xbf16, #tpu.memory_space<vmem>>, vector<1x32xbf16>
      %14 = arith.extf %13 : vector<1x32xbf16> to vector<1x32xf32>
      %15 = vector.broadcast %14 : vector<1x32xf32> to vector<16x32xf32>
      %16 = arith.addf %12, %15 : vector<16x32xf32>
      %c0_13 = arith.constant 0 : index
      %c0_14 = arith.constant 0 : index
      %17 = vector.load %arg6[%c0_13, %c0_14] : memref<16x32xbf16, #tpu.memory_space<vmem>>, vector<16x32xbf16>
      %18 = arith.extf %17 : vector<16x32xbf16> to vector<16x32xf32>
      %19 = arith.addf %16, %18 : vector<16x32xf32>
      %20 = arith.truncf %19 : vector<16x32xf32> to vector<16x32xbf16>
      %c0_15 = arith.constant 0 : index
      %c0_16 = arith.constant 0 : index
      %21 = vector.load %arg7[%c0_15, %c0_16] : memref<16x32xbf16, #tpu.memory_space<vmem>>, vector<16x32xbf16>
      tpu.vector_store %arg7[%c0_15, %c0_16], %20 {strides = array<i32>} : memref<16x32xbf16, #tpu.memory_space<vmem>>, vector<16x32xbf16>,
    } else {
    }
    return
  }
  func.func @transform_0(%arg0: i32, %arg1: i32, %arg2: i32) -> (i32, i32) {
    %c0_i32 = arith.constant 0 : i32
    return %arg0, %arg2 : i32, i32
  }
  func.func @transform_1(%arg0: i32, %arg1: i32, %arg2: i32) -> (i32, i32) {
    %c0_i32 = arith.constant 0 : i32
    return %arg2, %arg1 : i32, i32
  }
  func.func @transform_2(%arg0: i32, %arg1: i32, %arg2: i32) -> (i32, i32) {
    %c0_i32 = arith.constant 0 : i32
    %c0_i32_0 = arith.constant 0 : i32
    return %c0_i32, %arg1 : i32, i32
  }
  func.func @transform_3(%arg0: i32, %arg1: i32, %arg2: i32) -> (i32, i32) {
    %c0_i32 = arith.constant 0 : i32
    return %arg0, %arg1 : i32, i32
  }
  func.func @transform_4(%arg0: i32, %arg1: i32, %arg2: i32) -> (i32, i32) {
    %c0_i32 = arith.constant 0 : i32
    return %arg0, %arg1 : i32, i32
  }
}

module attributes {stable_mosaic.version = 11 : i64} {
  func.func @_linear_kernel(%arg0: i32, %arg1: i32, %arg2: i32, %arg3: memref<16x32xbf16, #tpu.memory_space<vmem>>, %arg4: memref<32x128xbf16, #tpu.memory_space<vmem>>, %arg5: memref<1x128xbf16, #tpu.memory_space<vmem>>, %arg6: memref<16x128xf32, #tpu.memory_space<vmem>>, %arg7: memref<16x128xf32, #tpu.memory_space<vmem>>) attributes {dimension_semantics = [#tpu.dimension_semantics<parallel>, #tpu.dimension_semantics<parallel>, #tpu.dimension_semantics<arbitrary>], iteration_bounds = array<i64: 1, 1, 1>, scalar_prefetch = 0 : i64, scratch_operands = 1 : i64, tpu.core_type = #tpu.core_type<tc>, window_params = [{transform_indices = @transform_0, window_bounds = array<i64: 16, 32>}, {transform_indices = @transform_1, window_bounds = array<i64: 32, 128>}, {transform_indices = @transform_2, window_bounds = array<i64: 1, 128>}, {transform_indices = @transform_3, window_bounds = array<i64: 16, 128>}]} {
    %c0_i32 = arith.constant 0 : i32
    %0 = arith.cmpi eq, %arg2, %c0_i32 : i32
    %1 = arith.extui %0 : i1 to i32
    %c0_i32_0 = arith.constant 0 : i32
    %2 = arith.cmpi ne, %1, %c0_i32_0 : i32
    scf.if %2 {
      %cst_10 = arith.constant 0.000000e+00 : f32
      %12 = vector.broadcast %cst_10 : f32 to vector<16x128xf32>
      %c0_11 = arith.constant 0 : index
      %c0_12 = arith.constant 0 : index
      %13 = vector.load %arg7[%c0_11, %c0_12] : memref<16x128xf32, #tpu.memory_space<vmem>>, vector<16x128xf32>
      tpu.vector_store %arg7[%c0_11, %c0_12], %12 {strides = array<i32>} : memref<16x128xf32, #tpu.memory_space<vmem>>, vector<16x128xf32>,
    } else {
    }
    %c0 = arith.constant 0 : index
    %c0_1 = arith.constant 0 : index
    %3 = vector.load %arg3[%c0, %c0_1] : memref<16x32xbf16, #tpu.memory_space<vmem>>, vector<16x32xbf16>
    %c0_2 = arith.constant 0 : index
    %c0_3 = arith.constant 0 : index
    %4 = vector.load %arg7[%c0_2, %c0_3] : memref<16x128xf32, #tpu.memory_space<vmem>>, vector<16x128xf32>
    %c0_4 = arith.constant 0 : index
    %c0_5 = arith.constant 0 : index
    %5 = vector.load %arg4[%c0_4, %c0_5] : memref<32x128xbf16, #tpu.memory_space<vmem>>, vector<32x128xbf16>
    %cst = arith.constant dense<0.000000e+00> : vector<16x128xf32>
    %6 = tpu.matmul %3, %5, %cst {dimension_numbers = #tpu.dot_dimension_numbers<[1], [0], [0], [1], [0, 0, 1, 1], [], []>} : vector<16x32xbf16>, vector<32x128xbf16>, vector<16x128xf32> -> vector<16x128xf32>
    %7 = arith.addf %4, %6 : vector<16x128xf32>
    %c0_6 = arith.constant 0 : index
    %c0_7 = arith.constant 0 : index
    %8 = vector.load %arg7[%c0_6, %c0_7] : memref<16x128xf32, #tpu.memory_space<vmem>>, vector<16x128xf32>
    tpu.vector_store %arg7[%c0_6, %c0_7], %7 {strides = array<i32>} : memref<16x128xf32, #tpu.memory_space<vmem>>, vector<16x128xf32>,
    %c0_i32_8 = arith.constant 0 : i32
    %9 = arith.cmpi eq, %arg2, %c0_i32_8 : i32
    %10 = arith.extui %9 : i1 to i32
    %c0_i32_9 = arith.constant 0 : i32
    %11 = arith.cmpi ne, %10, %c0_i32_9 : i32
    scf.if %11 {
      %c0_10 = arith.constant 0 : index
      %c0_11 = arith.constant 0 : index
      %12 = vector.load %arg7[%c0_10, %c0_11] : memref<16x128xf32, #tpu.memory_space<vmem>>, vector<16x128xf32>
      %c0_12 = arith.constant 0 : index
      %c0_13 = arith.constant 0 : index
      %13 = vector.load %arg5[%c0_12, %c0_13] : memref<1x128xbf16, #tpu.memory_space<vmem>>, vector<1x128xbf16>
      %14 = arith.extf %13 : vector<1x128xbf16> to vector<1x128xf32>
      %15 = vector.broadcast %14 : vector<1x128xf32> to vector<16x128xf32>
      %16 = arith.addf %12, %15 : vector<16x128xf32>
      %c0_14 = arith.constant 0 : index
      %c0_15 = arith.constant 0 : index
      %17 = vector.load %arg6[%c0_14, %c0_15] : memref<16x128xf32, #tpu.memory_space<vmem>>, vector<16x128xf32>
      tpu.vector_store %arg6[%c0_14, %c0_15], %16 {strides = array<i32>} : memref<16x128xf32, #tpu.memory_space<vmem>>, vector<16x128xf32>,
    } else {
    }
    return
  }
  func.func @transform_0(%arg0: i32, %arg1: i32, %arg2: i32) -> (i32, i32) {
    %c0_i32 = arith.constant 0 : i32
    return %arg0, %arg2 : i32, i32
  }
  func.func @transform_1(%arg0: i32, %arg1: i32, %arg2: i32) -> (i32, i32) {
    %c0_i32 = arith.constant 0 : i32
    return %arg2, %arg1 : i32, i32
  }
  func.func @transform_2(%arg0: i32, %arg1: i32, %arg2: i32) -> (i32, i32) {
    %c0_i32 = arith.constant 0 : i32
    %c0_i32_0 = arith.constant 0 : i32
    return %c0_i32, %arg1 : i32, i32
  }
  func.func @transform_3(%arg0: i32, %arg1: i32, %arg2: i32) -> (i32, i32) {
    %c0_i32 = arith.constant 0 : i32
    return %arg0, %arg1 : i32, i32
  }
}

</mosaic_0001>

<bundles_post_ra>
// kernel: vlm_forward.37
= control target key start
LH: loop header
LB: loop body
LE: loop exit
PB: predicated region body
PF: predicated region fallthrough
CT: control target
= control target key end

     0   :  { %vm22_vm0 = vcmask 261120   ;;  %v227_v0 = vmov 0   ;;  %v228_v2 = vmov 0.0   ;;  %vm128_vm1 = vcmask 523264   ;;  %s304_s1 = inlined_call_operand.vmem [shape: bf16[192,32], index: 1, kind: input, shape index: {}]   ;;  %s305_s0 = inlined_call_operand.vmem [shape: bf16[8,192], index: 0, kind: input, shape index: {}]   ;;  %s306_s2 = inlined_call_operand.vmem [shape: bf16[1,32], index: 2, kind: input, shape index: {}]   ;;  %s307_s3 = inlined_call_operand.vmem [shape: bf16[8,32], index: 3, kind: input, shape index: {}]   ;;  %s308_s4 = inlined_call_operand.vmem [shape: bf16[8,32], index: 4, kind: output, shape index: {}]  }
   0x1   :  { %132 = vmatprep.subr.bf16.mxu0 %v227_v0  ;;  %v213_v1 = vld [vmem:[%s304_s1 + $0x38] sm:$0xff]   ;;  %23 = vst.msk [vmem:[#allocation2] sm:$0xff] %vm22_vm0, %v228_v2  ;;  %v214_v3 = vld [vmem:[%s304_s1 + $0x30] sm:$0xff]   ;;  %v215_v4 = vld [vmem:[%s304_s1 + $0x28] sm:$0xff]   ;;  %v181_v17 = vlaneseq  ;;  %vm190_vm2 = vcmask 257024  }
   0x2   :  { %133 = vmatpush1.bf16.msra.mxu0 %v213_v1  ;;  %v216_v5 = vld [vmem:[%s304_s1 + $0x20] sm:$0xff]   ;;  %v217_v8 = vld [vmem:[%s304_s1 + $0x18] sm:$0xff]   ;;  %v218_v9 = vld [vmem:[%s304_s1 + $0x10] sm:$0xff]  }
   0x3   :  { %134 = vmatprep.subr.bf16.mxu0 %v227_v0  ;;  %v24_v6 = vld [vmem:[%s305_s0] sm:$0xff]  ;;  %v219_v10 = vld [vmem:[%s304_s1 + $0x8] sm:$0xff]   ;;  %v221_v12 = vld [vmem:[%s304_s1 + $0x58] sm:$0xff]   ;;  %v182_v19 = vshrl.u32 %v181_v17, 7 }
   0x4   :  { %v197_v7 = vcombine.high %v24_v6, %v24_v6  ;;  %v220_v11 = vld [vmem:[%s304_s1] sm:$0xff]   ;;  %v222_v13 = vld [vmem:[%s304_s1 + $0x50] sm:$0xff]   ;;  %v223_v14 = vld [vmem:[%s304_s1 + $0x48] sm:$0xff]   ;;  %v196_v16 = vcombine.low %v24_v6, %v24_v6 }
   0x5   :  { %v224_v15 = vld [vmem:[%s304_s1 + $0x40] sm:$0xff]   ;;  %v183_v25 = vsub.s32 0, %v182_v19 }
   0x6   :  { %135 = vmatpush1.bf16.msra.mxu0 %v214_v3  ;;  %210 = vmatprep.mubr.msk.bf16.mxu0 %vm128_vm1, %v197_v7  ;;  %v179_v21 = vld [vmem:[%s306_s2] sm:$0x1] }
   0x7   :  { %136 = vmatprep.subr.bf16.mxu0 %v227_v0  ;;  %v180_v24 = vunpack.c.l.bf16 %v179_v21  ;;  %v186_v27 = vld [vmem:[%s307_s3] sm:$0xf] }
   0x8   :  { %v25_v18 = vld [vmem:[#allocation2] sm:$0xff]  ;;  %v187_v30 = vunpack.c.l.bf16 %v186_v27 }
   0x9   :  { %v184_v29 = vrot.slane %v180_v24, %v183_v25 }
   0xa   :  { %137 = vmatpush1.bf16.msra.mxu0 %v215_v4 }
   0xb   :  { %138 = vmatprep.subr.bf16.mxu0 %v227_v0 }
   0xe   :  { %139 = vmatpush1.bf16.msra.mxu0 %v216_v5 }
   0xf   :  { %140 = vmatprep.subr.bf16.mxu0 %v227_v0 }
  0x12   :  { %141 = vmatpush1.bf16.msra.mxu0 %v217_v8 }
  0x13   :  { %142 = vmatprep.subr.bf16.mxu0 %v227_v0 }
  0x16   :  { %143 = vmatpush1.bf16.msra.mxu0 %v218_v9 }
  0x17   :  { %144 = vmatprep.subr.bf16.mxu0 %v227_v0 }
  0x1a   :  { %145 = vmatpush1.bf16.msra.mxu0 %v219_v10 }
  0x1b   :  { %146 = vmatprep.subr.bf16.mxu0 %v227_v0 }
  0x1e   :  { %147 = vmatpush1.bf16.msra.mxu0 %v220_v11 }
  0x1f   :  { %156 = vmatprep.subr.bf16.mxu0 %v227_v0 }
  0x22   :  { %157 = vmatpush2.bf16.msra.mxu0 %v221_v12 }
  0x23   :  { %158 = vmatprep.subr.bf16.mxu0 %v227_v0 }
  0x26   :  { %159 = vmatpush2.bf16.msra.mxu0 %v222_v13 }
  0x27   :  { %160 = vmatprep.subr.bf16.mxu0 %v227_v0 }
  0x2a   :  { %161 = vmatpush2.bf16.msra.mxu0 %v223_v14 }
  0x2b   :  { %162 = vmatprep.subr.bf16.mxu0 %v227_v0 }
  0x2e   :  { %163 = vmatpush2.bf16.msra.mxu0 %v224_v15 }
  0x31   :  { %165 = vmatmul.mubr.bf16.vlgmr.msra.gmra.mxu0 %v196_v16 }
  0xf1   :  { %v166_v20 = vpop.f32.mrf.mxu0 }
  0xf2   :  { %v172_v22 = vadd.f32 %v166_v20, %v25_v18 }
  0xf3   :  { %v168_v23 = vpop.f32.mrf.mxu0 }
  0xf4   :  { %174 = vst.msk [vmem:[#allocation2] sm:$0xff] %vm22_vm0, %v172_v22 }
  0xf5   :  { %v169_v26 = vpop.f32.mrf.mxu0 }
  0xf7   :  { %v170_v28 = vpop.f32.mrf.mxu0 }
  0xfb   :  { %v178_v31 = vld [vmem:[#allocation2] sm:$0xff] }
  0xfc   :  { %v185_v32 = vadd.f32 %v184_v29, %v178_v31 }
  0xfe   :  { %v188_v33 = vadd.f32 %v187_v30, %v185_v32 }
 0x100   :  { %v189_v34 = vpack.c.bf16 %v188_v33, %v188_v33 }
 0x102   :  { %191 = vst.msk [vmem:[%s308_s4] sm:$0xf] %vm190_vm2, %v189_v34 }

// kernel: vlm_forward.40
= control target key start
LH: loop header
LB: loop body
LE: loop exit
PB: predicated region body
PF: predicated region fallthrough
CT: control target
= control target key end

     0   :  { %vm22_vm0 = vcmask 261120   ;;  %v127_v0 = vmov 0.0   ;;  %vm128_vm1 = vmmov 0   ;;  %v94_v4 = vlaneseq  ;;  %s175_s1 = inlined_call_operand.vmem [shape: bf16[32,32], index: 1, kind: input, shape index: {}]   ;;  %s176_s0 = inlined_call_operand.vmem [shape: bf16[8,32], index: 0, kind: input, shape index: {}]   ;;  %s177_s2 = inlined_call_operand.vmem [shape: bf16[1,32], index: 2, kind: input, shape index: {}]   ;;  %s178_s3 = inlined_call_operand.vmem [shape: bf16[8,32], index: 3, kind: input, shape index: {}]   ;;  %s179_s4 = inlined_call_operand.vmem [shape: bf16[8,32], index: 4, kind: output, shape index: {}]  }
   0x1   :  { %115 = vmatprep.subr.bf16.mxu0 %v127_v0  ;;  %v125_v1 = vld [vmem:[%s175_s1 + $0x8] sm:$0xff]   ;;  %119 = vmatprep.mubr.msk.bf16.mxu0 %vm128_vm1, %v127_v0  ;;  %23 = vst.msk [vmem:[#allocation2] sm:$0xff] %vm22_vm0, %v127_v0  ;;  %v126_v2 = vld [vmem:[%s175_s1] sm:$0xff]   ;;  %vm103_vm2 = vcmask 257024  }
   0x2   :  { %116 = vmatpush3.bf16.msra.mxu0 %v125_v1  ;;  %v24_v3 = vld [vmem:[%s176_s0] sm:$0xf]  ;;  %v95_v6 = vshrl.u32 %v94_v4, 7 }
   0x3   :  { %117 = vmatprep.subr.bf16.mxu0 %v127_v0  ;;  %v92_v8 = vld [vmem:[%s177_s2] sm:$0x1] }
   0x4   :  { %v93_v11 = vunpack.c.l.bf16 %v92_v8  ;;  %v96_v12 = vsub.s32 0, %v95_v6  ;;  %v99_v14 = vld [vmem:[%s178_s3] sm:$0xf] }
   0x5   :  { %v100_v17 = vunpack.c.l.bf16 %v99_v14 }
   0x6   :  { %118 = vmatpush3.bf16.msra.mxu0 %v126_v2  ;;  %v97_v16 = vrot.slane %v93_v11, %v96_v12 }
   0x8   :  { %v25_v5 = vld [vmem:[#allocation2] sm:$0xff] }
   0x9   :  { %120 = vmatmul.mubr.msk.bf16.vlgmr.msra.gmra.mxu0 %vm22_vm0, %v24_v3 }
  0xc9   :  { %v80_v7 = vpop.f32.mrf.mxu0 }
  0xca   :  { %v86_v9 = vadd.f32 %v80_v7, %v25_v5 }
  0xcb   :  { %v121_v10 = vpop.f32.mrf.mxu0 }
  0xcc   :  { %87 = vst.msk [vmem:[#allocation2] sm:$0xff] %vm22_vm0, %v86_v9 }
  0xcd   :  { %v83_v13 = vpop.f32.mrf.mxu0 }
  0xcf   :  { %v122_v15 = vpop.f32.mrf.mxu0 }
  0xd3   :  { %v91_v18 = vld [vmem:[#allocation2] sm:$0xff] }
  0xd4   :  { %v98_v19 = vadd.f32 %v97_v16, %v91_v18 }
  0xd6   :  { %v101_v20 = vadd.f32 %v100_v17, %v98_v19 }
  0xd8   :  { %v102_v21 = vpack.c.bf16 %v101_v20, %v101_v20 }
  0xda   :  { %104 = vst.msk [vmem:[%s179_s4] sm:$0xf] %vm103_vm2, %v102_v21 }

// kernel: vlm_forward.38
= control target key start
LH: loop header
LB: loop body
LE: loop exit
PB: predicated region body
PF: predicated region fallthrough
CT: control target
= control target key end

     0   :  { %vm29_vm0 = vcmask 261120   ;;  %vm25_vm1 = vcmask 785408   ;;  %v164_v8 = vmov 0.0   ;;  %vm165_vm2 = vmmov 0   ;;  %s222_s0 = inlined_call_operand.vmem [shape: bf16[8,32], index: 0, kind: input, shape index: {}]   ;;  %s223_s1 = inlined_call_operand.vmem [shape: bf16[32,96], index: 1, kind: input, shape index: {}]   ;;  %s224_s3 = inlined_call_operand.vmem [shape: f32[1,32], index: 3, kind: input, shape index: {}]   ;;  %s225_s4 = inlined_call_operand.vmem [shape: f32[1,32], index: 4, kind: input, shape index: {}]   ;;  %s226_s2 = inlined_call_operand.vmem [shape: bf16[1,96], index: 2, kind: input, shape index: {}]   ;;  %s227_s5 = inlined_call_operand.vmem [shape: bf16[8,96], index: 5, kind: output, shape index: {}]  }
   0x1   :  { %v27_v0 = vld [vmem:[%s222_s0] sm:$0xf]  ;;  %26 = vst.msk [vmem:[#allocation2] sm:$0xff] %vm25_vm1, %v164_v8  ;;  %150 = vmatprep.subr.bf16.mxu0 %v164_v8  ;;  %v160_v9 = vld [vmem:[%s223_s1 + $0x8] sm:$0xff]   ;;  %154 = vmatprep.mubr.msk.bf16.mxu0 %vm165_vm2, %v164_v8  ;;  %v130_v21 = vlaneseq  ;;  %vm136_vm3 = vcmask 781312  }
   0x2   :  { %v28_v1 = vunpack.c.l.bf16 %v27_v0  ;;  %151 = vmatpush3.bf16.msra.mxu0 %v160_v9  ;;  %v161_v10 = vld [vmem:[%s223_s1] sm:$0xff]  }
   0x3   :  { %152 = vmatprep.subr.bf16.mxu0 %v164_v8  ;;  %v142_v15 = vld [vmem:[%s224_s3] ss:$0 sm:$0xff]  ;;  %v131_v23 = vshrl.u32 %v130_v21, 7 }
   0x4   :  { %v30_v2 = vsel %vm29_vm0, %v28_v1, 0.0  ;;  %v143_v17 = vld [vmem:[%s225_s4] ss:$0 sm:$0xff] }
   0x5   :  { %31 = vadd.xlane.f32.xlu0 %v30_v2  ;;  %v128_v25 = vld [vmem:[%s226_s2] sm:$0x1]  ;;  %v132_v29 = vsub.s32 0, %v131_v23 }
   0x6   :  { %153 = vmatpush3.bf16.msra.mxu0 %v161_v10  ;;  %v129_v28 = vunpack.c.l.bf16 %v128_v25 }
   0x8   :  { %v61_v22 = vld [vmem:[#allocation2] sm:$0xff]  ;;  %v133_v32 = vrot.slane %v129_v28, %v132_v29 }
  0x8e   :  { %v32_v3 = vpop.xlane.xlu0 %31 }
  0x8f   :  { %v34_v4 = vmul.f32 0.03125, %v32_v3 }
  0x91   :  { %v35_v5 = vsub.f32 %v28_v1, %v34_v4 }
  0x93   :  { %v36_v6 = vmul.f32 %v35_v5, %v35_v5 }
  0x95   :  { %v37_v7 = vsel %vm29_vm0, %v36_v6, 0.0 }
  0x96   :  { %38 = vadd.xlane.f32.xlu0 %v37_v7 }
 0x11f   :  { %v39_v11 = vpop.xlane.xlu0 %38 }
 0x120   :  { %v40_v12 = vmul.f32 0.03125, %v39_v11 }
 0x122   :  { %v41_v13 = vadd.f32 1e-06, %v40_v12 }
 0x124   :  { %162 = vrsqrt.f32 %v41_v13 }
 0x131   :  { %v163_v14 = vpop.eup %162 }
 0x132   :  { %v43_v16 = vmul.f32 %v163_v14, %v35_v5 }
 0x134   :  { %v51_v18 = vmul.f32 %v142_v15, %v43_v16 }
 0x136   :  { %v59_v19 = vadd.f32 %v143_v17, %v51_v18 }
 0x138   :  { %v60_v20 = vpack.c.bf16 %v59_v19, %v59_v19 }
 0x13a   :  { %155 = vmatmul.mubr.msk.bf16.vlgmr.msra.gmra.mxu0 %vm29_vm0, %v60_v20 }
 0x1fa   :  { %v115_v24 = vpop.f32.mrf.mxu0 }
 0x1fb   :  { %v121_v26 = vadd.f32 %v115_v24, %v61_v22 }
 0x1fc   :  { %v156_v27 = vpop.f32.mrf.mxu0 }
 0x1fd   :  { %123 = vst.msk [vmem:[#allocation2] sm:$0xff] %vm25_vm1, %v121_v26 }
 0x1fe   :  { %v118_v30 = vpop.f32.mrf.mxu0 }
 0x200   :  { %v157_v31 = vpop.f32.mrf.mxu0 }
 0x204   :  { %v127_v33 = vld [vmem:[#allocation2] sm:$0xff] }
 0x205   :  { %v134_v34 = vadd.f32 %v133_v32, %v127_v33 }
 0x207   :  { %v135_v35 = vpack.c.bf16 %v134_v34, %v134_v34 }
 0x209   :  { %137 = vst.msk [vmem:[%s227_s5] sm:$0xf] %vm136_vm3, %v135_v35 }

// kernel: vlm_forward.39
= control target key start
LH: loop header
LB: loop body
LE: loop exit
PB: predicated region body
PF: predicated region fallthrough
CT: control target
= control target key end

     0   :  { %s1218_s12 = smov 0   ;;  %s1220_s13 = smov 0   ;;  %s1402_s0 = inlined_call_operand.vmem [shape: bf16[2,4,32], index: 0, kind: input, shape index: {}]   ;;  %s1403_s1 = inlined_call_operand.vmem [shape: bf16[2,4,32], index: 1, kind: input, shape index: {}]   ;;  %s1404_s2 = inlined_call_operand.vmem [shape: bf16[2,4,32], index: 2, kind: input, shape index: {}]   ;;  %s1405_s3 = inlined_call_operand.vmem [shape: bf16[2,4,32], index: 3, kind: output, shape index: {}]  }
   0x1   :  { %s1222_s14 = smov 0  }
   0x2 LB: > { %s32_s15 = sadd.s32 1, %s1181_s13  ;;  %p1023_p0 = scmp.ge.s32.totalorder %s1185_s14, 1  ;;  %s1185_s14 = sphi %s1222_s14, %s13_s14   ;;  %s1181_s13 = sphi %s1220_s13, %s1407_s13   ;;  %s1177_s12 = sphi %s1218_s12, %s1406_s12  }
   0x3   : > { %p34_p1 = scmp.ge.s32.totalorder %s32_s15, 2  ;;  %p190_p2 = scmp.lt.s32.totalorder %s1185_s14, 3 }
   0x5   : > { %s1409_s15 = smov (%p34_p1, %s32_s15), 0  ;;  %p191_p3 = pnand %p1023_p0, %p190_p2 }
   0x6   : > { %p232_p4 = scmp.lt.s32.totalorder (!%p191_p3), %s1177_s12, 1  ;;  %s1192_s23 = smov (!%p191_p3), 120  }
   0x7   : > { %194 = sbr.rel (%p191_p3) target bundleno = 1412 (0x584), region = 32  ;;  %s1193_s24 = smov (!%p191_p3), 112  }
   0x8   : > { %s1194_s25 = smov (!%p191_p3), 104   ;;  %s1195_s29 = smov (!%p191_p3), 8  }
   0x9   : > { %s1196_s30 = smov (!%p191_p3), 16   ;;  %s1197_s4 = smov (!%p191_p3), 24  }
   0xc   : > { %v1187_v0 = vmov 0.0   ;;  %s1411_s12 = smov (!%p232_p4, %s1177_s12), 1  ;;  %vm1188_vm0 = vmmov 0   ;;  %vm288_vm1 = vcmask 64512   ;;  %vm265_vm2 = vcmask 3072  }
   0xd   : > { %1054 = vmatprep.subr.bf16.mxu0 %v1187_v0  ;;  %1060 = vmatprep.subr.bf16.mxu1 %v1187_v0  ;;  %s1242_s16 = sshll.u32 %s1411_s12, 1  ;;  %v1189_v4 = vmov -1e+30   ;;  %270 = vst.msk [vmem:[#allocation3] sm:$0xf] %vm265_vm2, %v1187_v0  ;;  %v283_v5 = vlaneseq  ;;  %vm337_vm4 = vcmask 27648  }
   0xe   : > { %1056 = vmatprep.mubr.msk.bf16.mxu0 %vm1188_vm0, %v1187_v0  ;;  %1062 = vmatprep.mubr.msk.bf16.mxu1 %vm1188_vm0, %v1187_v0  ;;  %s245_s19 = scalar_lea.vmem %s1403_s1, %s1242_s16  ;;  %s238_s22 = scalar_lea.vmem %s1402_s0, %s1242_s16  ;;  %266 = vst.msk [vmem:[#allocation2] sm:$0xf] %vm265_vm2, %v1189_v4  ;;  %267 = vst.msk [vmem:[#allocation2 + $0x4] sm:$0xf] %vm265_vm2, %v1189_v4  ;;  %v1190_v11 = vmov 1983009808  }
   0xf   : > { %v280_v1 = vld [vmem:[%s245_s19] sm:$0x3]  ;;  %268 = vst.msk [vmem:[#allocation2 + $0x8] sm:$0xf] %vm265_vm2, %v1189_v4  ;;  %269 = vst.msk [vmem:[#allocation2 + $0xc] sm:$0xf] %vm265_vm2, %v1189_v4  ;;  %v423_v12 = vunpack.c.l.s4 %v1190_v11  ;;  %s252_s28 = scalar_lea.vmem %s1404_s2, %s1242_s16  ;;  %s259_s7 = scalar_lea.vmem %s1405_s3, %s1242_s16 }
  0x10   : > { %v293_v2 = vsel %vm288_vm1, %v280_v1, 0  ;;  %v279_v3 = vld [vmem:[%s238_s22] sm:$0x3]  ;;  %271 = vst.msk [vmem:[#allocation3 + $0x4] sm:$0xf] %vm265_vm2, %v1187_v0  ;;  %v1269_v6 = vand.u32 127, %v283_v5 }
  0x11   : > { %1055 = vmatpush3.bf16.xpose.msra.mxu0 %v293_v2  ;;  %272 = vst.msk [vmem:[#allocation3 + $0x8] sm:$0xf] %vm265_vm2, %v1187_v0  ;;  %273 = vst.msk [vmem:[#allocation3 + $0xc] sm:$0xf] %vm265_vm2, %v1187_v0  ;;  %v424_v15 = vunpack.c.0.s8 %v423_v12  ;;  %v426_v16 = vshrl.u32 %v283_v5, 7  ;;  %v1191_v18 = vmov 0  }
  0x12   : > { %1072 = vmatprep.subr.bf16.mxu0 %v1187_v0  ;;  %vm287_vm3 = vcmp.lt.s32.totalorder %v1269_v6, 4  ;;  %1137 = vset.pattern.permute.xlu0 %v1191_v18  ;;  %vm373_vm5 = vcmask 1041408   ;;  %v1299_v25 = vld [vmem:[%s252_s28] sm:$0x3]  ;;  %vm369_vm6 = vcmask 31744   ;;  %vm274_vm7 = vcmask 60416  }
  0x13   : > { %v1275_v17 = vsub.s32 %v424_v15, %v426_v16  ;;  %1138 = vset.pattern.permute.xlu1 %v1191_v18  ;;  %v375_v26 = vsel %vm373_vm5, %v1299_v25, 0  ;;  %275 = vst.msk [vmem:[#allocation4] sm:$0xf] %vm274_vm7, %v1187_v0  ;;  %276 = vst.msk [vmem:[#allocation4 + $0x4] sm:$0xf] %vm274_vm7, %v1187_v0  ;;  %vm905_vm8 = vcmask 130048  }
  0x14   : > { %1061 = vmatpush3.bf16.msra.mxu1 %v375_v26  ;;  %277 = vst.msk [vmem:[#allocation4 + $0x8] sm:$0xf] %vm274_vm7, %v1187_v0  ;;  %278 = vst.msk [vmem:[#allocation4 + $0xc] sm:$0xf] %vm274_vm7, %v1187_v0  ;;  %vm907_vm9 = vcmask 195584   ;;  %vm910_vm10 = vcmask 254976  }
  0x15   : > { %v438_v19 = vrot.slane %v280_v1, %v1275_v17  ;;  %v428_v20 = vrot.slane %v279_v3, %v1275_v17  ;;  %v1285_v21 = vld [vmem:[#allocation2] sm:$0xf]  ;;  %1066 = vmatprep.subr.bf16.mxu1 %v1187_v0  ;;  %v489_v63 = vld [vmem:[#allocation2 + $0x4] sm:$0xf]  ;;  %v529_v11 = vrot.slane %v1299_v25, %v1275_v17 }
  0x16   : > { %v1335_v4 = vld [vmem:[#allocation2 + $0x8] sm:$0xf] }
  0x17   : > { %439 = vrot.lane.b32.xlu1 %v438_v19, %s1192_s23 }
  0x18   : > { %1057 = vmatmul.mubr.msk.bf16.vlgmr.msra.gmra.mxu0 %vm288_vm1, %v279_v3 }
  0x19   : > { %1074 = vmatprep.mubr.msk.bf16.mxu0 %vm1188_vm0, %v1187_v0 }
  0x1b   : > { %429 = vrot.lane.b32.xlu1 %v428_v20, %s1192_s23 }
  0x1f   : > { %583 = vrot.lane.b32.xlu1 %v438_v19, %s1193_s24 }
  0x23   : > { %581 = vrot.lane.b32.xlu1 %v428_v20, %s1193_s24 }
  0x27   : > { %719 = vrot.lane.b32.xlu1 %v438_v19, %s1194_s25 }
  0x2b   : > { %717 = vrot.lane.b32.xlu1 %v428_v20, %s1194_s25 }
  0x89   : > { %v440_v30 = vpop.permute.xlu1 %439 }
  0x8a   : > { %v445_v33 = vsel %vm288_vm1, %v440_v30, 0 }
  0x8d   : > { %v430_v31 = vpop.permute.xlu1 %429 }
  0x91   : > { %v584_v35 = vpop.permute.xlu1 %583 }
  0x92   : > { %v589_v37 = vsel %vm288_vm1, %v584_v35, 0 }
  0x95   : > { %v582_v36 = vpop.permute.xlu1 %581 }
  0x99   : > { %v720_v38 = vpop.permute.xlu1 %719 }
  0x9a   : > { %v725_v39 = vsel %vm288_vm1, %v720_v38, 0 }
  0x9d   : > { %v718_v40 = vpop.permute.xlu1 %717 }
  0xd8   : > { %v329_v7 = vpop.f32.mrf.mxu0 }
  0xd9   : > { %v335_v8 = vsel %vm287_vm3, %v329_v7, -1e+30 }
  0xda   : > { %v1058_v9 = vpop.f32.mrf.mxu0  ;;  %v338_v10 = vsel %vm337_vm4, %v335_v8, -inf }
  0xdb   : > { %339 = vmax.xlane.f32.xlu0 %v338_v10 }
  0xdc   : > { %v332_v13 = vpop.f32.mrf.mxu0 }
  0xde   : > { %v1059_v14 = vpop.f32.mrf.mxu0 }
 0x164   : > { %v340_v22 = vpop.xlane.xlu0 %339 }
 0x165   : > { %v1288_v23 = vmax.f32 %v1285_v21, %v340_v22 }
 0x167   : > { %v342_v24 = vsub.f32 %v1285_v21, %v1288_v23  ;;  %420 = vst.msk [vmem:[#allocation2] sm:$0xf] %vm265_vm2, %v1288_v23  ;;  %347 = vperm.xlu0 %1137, %v1288_v23  }
 0x169   : > { %v343_v38 = vmul.f32 1.442695, %v342_v24 }
 0x1e2   : > { %v348_v27 = vpop.permute.xlu0 %347 }
 0x1e3   : > { %v350_v28 = vsub.f32 %v335_v8, %v348_v27  ;;  %v769_v8 = vld [vmem:[#allocation2 + $0xc] sm:$0xf] }
 0x1e5   : > { %v351_v29 = vmul.f32 1.442695, %v350_v28 }
 0x1e7   : > { %1139 = vpow2.f32 %v351_v29 }
 0x1f4   : > { %v1304_v32 = vpop.eup %1139 }
 0x1f5   : > { %v368_v34 = vpack.c.bf16 %v1304_v32, %v1304_v32  ;;  %v355_v13 = vsel %vm337_vm4, %v1304_v32, 0.0 }
 0x1f7   : > { %1063 = vmatmul.mubr.msk.bf16.vlgmr.msra.gmra.mxu1 %vm369_vm6, %v368_v34 }
 0x1f8   : > { %1067 = vmatpush3.bf16.xpose.msra.mxu1 %v445_v33  ;;  %1068 = vmatprep.mubr.msk.bf16.mxu1 %vm1188_vm0, %v1187_v0 }
 0x1f9   : > { %1078 = vmatprep.subr.bf16.mxu1 %v1187_v0 }
 0x1ff   : > { %1069 = vmatmul.mubr.msk.bf16.vlgmr.msra.gmra.mxu1 %vm288_vm1, %v430_v31 }
 0x200   : > { %1079 = vmatpush3.bf16.xpose.msra.mxu1 %v589_v37  ;;  %1080 = vmatprep.mubr.msk.bf16.mxu1 %vm1188_vm0, %v1187_v0 }
 0x201   : > { %1090 = vmatprep.subr.bf16.mxu1 %v1187_v0 }
 0x207   : > { %1081 = vmatmul.mubr.msk.bf16.vlgmr.msra.gmra.mxu1 %vm288_vm1, %v582_v36 }
 0x208   : > { %1091 = vmatpush3.bf16.xpose.msra.mxu1 %v725_v39  ;;  %1092 = vmatprep.mubr.msk.bf16.mxu1 %vm1188_vm0, %v1187_v0 }
 0x20f   : > { %1093 = vmatmul.mubr.msk.bf16.vlgmr.msra.gmra.mxu1 %vm288_vm1, %v718_v40 }
 0x2b7   : > { %v1323_v41 = vpop.f32.mrf.mxu1 }
 0x2b9   : > { %v1064_v42 = vpop.f32.mrf.mxu1 }
 0x2bb   : > { %v414_v43 = vpop.f32.mrf.mxu1 }
 0x2bd   : > { %v1065_v44 = vpop.f32.mrf.mxu1 }
 0x2bf   : > { %v481_v45 = vpop.f32.mrf.mxu1 }
 0x2c0   : > { %v487_v46 = vsel %vm287_vm3, %v481_v45, -1e+30 }
 0x2c1   : > { %v1070_v47 = vpop.f32.mrf.mxu1  ;;  %v490_v48 = vsel %vm337_vm4, %v487_v46, -inf }
 0x2c2   : > { %491 = vmax.xlane.f32.xlu1 %v490_v48  ;;  %v353_v47 = vld [vmem:[#allocation3] sm:$0xf] }
 0x2c3   : > { %v484_v49 = vpop.f32.mrf.mxu1 }
 0x2c5   : > { %v1071_v50 = vpop.f32.mrf.mxu1 }
 0x2c7   : > { %v625_v51 = vpop.f32.mrf.mxu1 }
 0x2c8   : > { %v631_v52 = vsel %vm287_vm3, %v625_v51, -1e+30 }
 0x2c9   : > { %v1082_v53 = vpop.f32.mrf.mxu1  ;;  %v634_v54 = vsel %vm337_vm4, %v631_v52, -inf }
 0x2ca   : > { %635 = vmax.xlane.f32.xlu0 %v634_v54 }
 0x2cb   : > { %v628_v55 = vpop.f32.mrf.mxu1 }
 0x2cd   : > { %v1083_v56 = vpop.f32.mrf.mxu1 }
 0x2ce   : > { %v650_v56 = vld [vmem:[#allocation3 + $0x8] sm:$0xf] }
 0x2cf   : > { %v761_v57 = vpop.f32.mrf.mxu1 }
 0x2d0   : > { %v767_v58 = vsel %vm287_vm3, %v761_v57, -1e+30 }
 0x2d1   : > { %v1094_v59 = vpop.f32.mrf.mxu1  ;;  %v770_v60 = vsel %vm337_vm4, %v767_v58, -inf }
 0x2d2   : > { %771 = vmax.xlane.f32.xlu1 %v770_v60 }
 0x2d3   : > { %v764_v61 = vpop.f32.mrf.mxu1 }
 0x2d4   : > { %v786_v61 = vld [vmem:[#allocation3 + $0xc] sm:$0xf] }
 0x2d5   : > { %v1095_v62 = vpop.f32.mrf.mxu1 }
 0x2d6   : > { %v361_v62 = vld [vmem:[#allocation4] sm:$0xf] }
 0x34b   : > { %v492_v1 = vpop.xlane.xlu1 %491 }
 0x34c   : > { %v493_v2 = vmax.f32 %v489_v63, %v492_v1 }
 0x34e   : > { %v494_v3 = vsub.f32 %v489_v63, %v493_v2  ;;  %580 = vst.msk [vmem:[#allocation2 + $0x4] sm:$0xf] %vm265_vm2, %v493_v2  ;;  %499 = vperm.xlu1 %1138, %v493_v2  }
 0x350   : > { %v495_v40 = vmul.f32 1.442695, %v494_v3 }
 0x353   : > { %v636_v5 = vpop.xlane.xlu0 %635 }
 0x354   : > { %v1338_v7 = vmax.f32 %v1335_v4, %v636_v5 }
 0x356   : > { %v638_v6 = vsub.f32 %v1335_v4, %v1338_v7  ;;  %716 = vst.msk [vmem:[#allocation2 + $0x8] sm:$0xf] %vm265_vm2, %v1338_v7  ;;  %643 = vperm.xlu0 %1137, %v1338_v7  }
 0x358   : > { %v639_v21 = vmul.f32 1.442695, %v638_v6 }
 0x35b   : > { %v772_v9 = vpop.xlane.xlu1 %771 }
 0x35c   : > { %v773_v10 = vmax.f32 %v769_v8, %v772_v9 }
 0x35e   : > { %v774_v12 = vsub.f32 %v769_v8, %v773_v10  ;;  %852 = vst.msk [vmem:[#allocation2 + $0xc] sm:$0xf] %vm265_vm2, %v773_v10  ;;  %779 = vperm.xlu1 %1138, %v773_v10  }
 0x360   : > { %v775_v43 = vmul.f32 1.442695, %v774_v12 }
 0x362   : > { %530 = vrot.lane.b32.xlu1 %v529_v11, %s1192_s23 }
 0x366   : > { %666 = vrot.lane.b32.xlu1 %v529_v11, %s1193_s24 }
 0x36a   : > { %802 = vrot.lane.b32.xlu1 %v529_v11, %s1194_s25  ;;  %v514_v11 = vld [vmem:[#allocation4 + $0x4] sm:$0xf] }
 0x38e   : > { %356 = vadd.xlane.f32.xlu1 %v355_v13 }
 0x3c9   : > { %v500_v14 = vpop.permute.xlu1 %499 }
 0x3ca   : > { %v502_v15 = vsub.f32 %v487_v46, %v500_v14 }
 0x3cc   : > { %v503_v16 = vmul.f32 1.442695, %v502_v15 }
 0x3ce   : > { %1141 = vpow2.f32 %v503_v16 }
 0x3d1   : > { %v644_v18 = vpop.permute.xlu0 %643 }
 0x3d2   : > { %v646_v17 = vsub.f32 %v631_v52, %v644_v18  ;;  %v506_v52 = vld [vmem:[#allocation3 + $0x4] sm:$0xf] }
 0x3d4   : > { %v647_v19 = vmul.f32 1.442695, %v646_v17 }
 0x3d6   : > { %1143 = vpow2.f32 %v647_v19 }
 0x3d9   : > { %v780_v20 = vpop.permute.xlu1 %779 }
 0x3da   : > { %v782_v22 = vsub.f32 %v767_v58, %v780_v20 }
 0x3db   : > { %v1142_v25 = vpop.eup %1141 }
 0x3dc   : > { %v783_v26 = vmul.f32 1.442695, %v782_v22  ;;  %v508_v27 = vsel %vm337_vm4, %v1142_v25, 0.0  ;;  %v521_v30 = vpack.c.bf16 %v1142_v25, %v1142_v25 }
 0x3dd   : > { %509 = vadd.xlane.f32.xlu0 %v508_v27  ;;  %v531_v28 = vpop.permute.xlu1 %530  ;;  %v794_v27 = vld [vmem:[#allocation4 + $0xc] sm:$0xf] }
 0x3de   : > { %1145 = vpow2.f32 %v783_v26  ;;  %v536_v29 = vsel %vm373_vm5, %v531_v28, 0 }
 0x3df   : > { %1073 = vmatpush3.bf16.msra.mxu0 %v536_v29  ;;  %1147 = vpow2.f32 %v343_v38 }
 0x3e0   : > { %1084 = vmatprep.subr.bf16.mxu0 %v1187_v0  ;;  %1149 = vpow2.f32 %v495_v40 }
 0x3e1   : > { %v667_v31 = vpop.permute.xlu1 %666  ;;  %1151 = vpow2.f32 %v775_v43 }
 0x3e2   : > { %1075 = vmatmul.mubr.msk.bf16.vlgmr.msra.gmra.mxu0 %vm369_vm6, %v521_v30  ;;  %v672_v32 = vsel %vm373_vm5, %v667_v31, 0  ;;  %1153 = vpow2.f32 %v639_v21 }
 0x3e3   : > { %v1144_v33 = vpop.eup %1143  ;;  %1085 = vmatpush3.bf16.msra.mxu0 %v672_v32  ;;  %1086 = vmatprep.mubr.msk.bf16.mxu0 %vm1188_vm0, %v1187_v0 }
 0x3e4   : > { %v652_v34 = vsel %vm337_vm4, %v1144_v33, 0.0  ;;  %1096 = vmatprep.subr.bf16.mxu0 %v1187_v0  ;;  %v665_v36 = vpack.c.bf16 %v1144_v33, %v1144_v33 }
 0x3e5   : > { %653 = vadd.xlane.f32.xlu0 %v652_v34  ;;  %v803_v35 = vpop.permute.xlu1 %802 }
 0x3e6   : > { %v808_v37 = vsel %vm373_vm5, %v803_v35, 0 }
 0x3ea   : > { %1087 = vmatmul.mubr.msk.bf16.vlgmr.msra.gmra.mxu0 %vm369_vm6, %v665_v36 }
 0x3eb   : > { %v1146_v39 = vpop.eup %1145  ;;  %1097 = vmatpush3.bf16.msra.mxu0 %v808_v37  ;;  %1098 = vmatprep.mubr.msk.bf16.mxu0 %vm1188_vm0, %v1187_v0 }
 0x3ec   : > { %v788_v42 = vsel %vm337_vm4, %v1146_v39, 0.0  ;;  %v801_v23 = vpack.c.bf16 %v1146_v39, %v1146_v39  ;;  %v1148_v24 = vpop.eup %1147 }
 0x3ed   : > { %789 = vadd.xlane.f32.xlu1 %v788_v42  ;;  %v1150_v44 = vpop.eup %1149  ;;  %v354_v48 = vmul.f32 %v1148_v24, %v353_v47 }
 0x3ee   : > { %v1152_v45 = vpop.eup %1151  ;;  %v507_v53 = vmul.f32 %v1150_v44, %v506_v52 }
 0x3ef   : > { %v1154_v46 = vpop.eup %1153  ;;  %v787_v63 = vmul.f32 %v1152_v45, %v786_v61 }
 0x3f0   : > { %v651_v57 = vmul.f32 %v1154_v46, %v650_v56 }
 0x3f2   : > { %1099 = vmatmul.mubr.msk.bf16.vlgmr.msra.gmra.mxu0 %vm369_vm6, %v801_v23 }
 0x3fb   : > { %364 = vperm.xlu0 %1137, %v1148_v24  }
 0x3fe   : > { %517 = vperm.xlu1 %1138, %v1150_v44  }
 0x3ff   : > { %797 = vperm.xlu0 %1137, %v1152_v45  }
 0x402   : > { %661 = vperm.xlu1 %1138, %v1154_v46  }
 0x417   : > { %v357_v49 = vpop.xlane.xlu1 %356 }
 0x418   : > { %v358_v50 = vadd.f32 %v357_v49, %v354_v48 }
 0x41a   : > { %360 = vst.msk [vmem:[#allocation3] sm:$0xf] %vm265_vm2, %v358_v50 }
 0x421   : > { %v857_v0 = vld [vmem:[#allocation3] sm:$0xf] }
 0x422   : > { %1155 = vrcp.f32 %v857_v0 }
 0x42f   : > { %v1156_v51 = vpop.eup %1155 }
 0x430   : > { %861 = vperm.xlu1 %1138, %v1156_v51  }
 0x466   : > { %v510_v54 = vpop.xlane.xlu0 %509 }
 0x467   : > { %v511_v55 = vadd.f32 %v510_v54, %v507_v53 }
 0x469   : > { %512 = vst.msk [vmem:[#allocation3 + $0x4] sm:$0xf] %vm265_vm2, %v511_v55 }
 0x46e   : > { %v654_v58 = vpop.xlane.xlu0 %653 }
 0x46f   : > { %v655_v59 = vadd.f32 %v654_v58, %v651_v57 }
 0x470   : > { %v866_v60 = vld [vmem:[#allocation3 + $0x4] sm:$0xf] }
 0x471   : > { %656 = vst.msk [vmem:[#allocation3 + $0x8] sm:$0xf] %vm265_vm2, %v655_v59  ;;  %1157 = vrcp.f32 %v866_v60 }
 0x476   : > { %v790_v1 = vpop.xlane.xlu1 %789  ;;  %v365_v2 = vpop.permute.xlu0 %364 }
 0x477   : > { %v791_v3 = vadd.f32 %v790_v1, %v787_v63  ;;  %v367_v4 = vmul.f32 %v365_v2, %v361_v62 }
 0x478   : > { %v875_v5 = vld [vmem:[#allocation3 + $0x8] sm:$0xf] }
 0x479   : > { %792 = vst.msk [vmem:[#allocation3 + $0xc] sm:$0xf] %vm265_vm2, %v791_v3  ;;  %v417_v7 = vadd.f32 %v1323_v41, %v367_v4  ;;  %1159 = vrcp.f32 %v875_v5  ;;  %v658_v41 = vld [vmem:[#allocation4 + $0x8] sm:$0xf] }
 0x47a   : > { %v518_v12 = vpop.permute.xlu1 %517  ;;  %v798_v28 = vpop.permute.xlu0 %797 }
 0x47b   : > { %419 = vst.msk [vmem:[#allocation4] sm:$0xf] %vm274_vm7, %v417_v7  ;;  %v520_v13 = vmul.f32 %v518_v12, %v514_v11  ;;  %v800_v31 = vmul.f32 %v798_v28, %v794_v27 }
 0x47e   : > { %v1158_v6 = vpop.eup %1157  ;;  %v662_v18 = vpop.permute.xlu1 %661 }
 0x47f   : > { %870 = vperm.xlu0 %1137, %v1158_v6   ;;  %v664_v20 = vmul.f32 %v662_v18, %v658_v41 }
 0x480   : > { %v884_v8 = vld [vmem:[#allocation3 + $0xc] sm:$0xf] }
 0x481   : > { %1161 = vrcp.f32 %v884_v8 }
 0x482   : > { %v856_v45 = vld [vmem:[#allocation4] sm:$0xf] }
 0x486   : > { %v1160_v9 = vpop.eup %1159 }
 0x487   : > { %879 = vperm.xlu1 %1138, %v1160_v9  }
 0x48e   : > { %v1162_v10 = vpop.eup %1161 }
 0x48f   : > { %888 = vperm.xlu0 %1137, %v1162_v10  }
 0x4a2   : > { %v572_v14 = vpop.f32.mrf.mxu0 }
 0x4a3   : > { %v578_v15 = vadd.f32 %v572_v14, %v520_v13 }
 0x4a4   : > { %v1076_v16 = vpop.f32.mrf.mxu0 }
 0x4a5   : > { %579 = vst.msk [vmem:[#allocation4 + $0x4] sm:$0xf] %vm274_vm7, %v578_v15 }
 0x4a6   : > { %v575_v17 = vpop.f32.mrf.mxu0 }
 0x4a8   : > { %v1077_v19 = vpop.f32.mrf.mxu0 }
 0x4aa   : > { %v708_v22 = vpop.f32.mrf.mxu0 }
 0x4ab   : > { %v714_v25 = vadd.f32 %v708_v22, %v664_v20  ;;  %v862_v40 = vpop.permute.xlu1 %861 }
 0x4ac   : > { %v1088_v26 = vpop.f32.mrf.mxu0  ;;  %v865_v38 = vld [vmem:[#allocation4 + $0x4] sm:$0xf]  ;;  %v864_v47 = vmul.f32 %v862_v40, %v856_v45 }
 0x4ad   : > { %715 = vst.msk [vmem:[#allocation4 + $0x8] sm:$0xf] %vm274_vm7, %v714_v25 }
 0x4ae   : > { %v711_v29 = vpop.f32.mrf.mxu0 }
 0x4b0   : > { %v1089_v30 = vpop.f32.mrf.mxu0 }
 0x4b2   : > { %v844_v32 = vpop.f32.mrf.mxu0 }
 0x4b3   : > { %v850_v33 = vadd.f32 %v844_v32, %v800_v31 }
 0x4b4   : > { %v1100_v34 = vpop.f32.mrf.mxu0  ;;  %v874_v43 = vld [vmem:[#allocation4 + $0x8] sm:$0xf] }
 0x4b5   : > { %851 = vst.msk [vmem:[#allocation4 + $0xc] sm:$0xf] %vm274_vm7, %v850_v33 }
 0x4b6   : > { %v847_v35 = vpop.f32.mrf.mxu0 }
 0x4b8   : > { %v1101_v36 = vpop.f32.mrf.mxu0 }
 0x4bc   : > { %v883_v24 = vld [vmem:[#allocation4 + $0xc] sm:$0xf] }
 0x4fa   : > { %v871_v37 = vpop.permute.xlu0 %870 }
 0x4fb   : > { %v873_v39 = vmul.f32 %v871_v37, %v865_v38 }
 0x4fd   : > { %893 = vrot.lane.b32.xlu1 %v873_v39, %s1195_s29 }
 0x502   : > { %v880_v42 = vpop.permute.xlu1 %879 }
 0x503   : > { %v882_v21 = vmul.f32 %v880_v42, %v874_v43 }
 0x505   : > { %897 = vrot.lane.b32.xlu0 %v882_v21, %s1196_s30 }
 0x50a   : > { %v889_v23 = vpop.permute.xlu0 %888 }
 0x50b   : > { %v891_v44 = vmul.f32 %v889_v23, %v883_v24 }
 0x50d   : > { %901 = vrot.lane.b32.xlu1 %v891_v44, %s1197_s4 }
 0x56f   : > { %v894_v46 = vpop.permute.xlu1 %893 }
 0x570   : > { %v904_v49 = vsel %vm288_vm1, %v864_v47, %v894_v46 }
 0x577   : > { %v898_v48 = vpop.permute.xlu0 %897 }
 0x578   : > { %v906_v50 = vsel %vm905_vm8, %v904_v49, %v898_v48 }
 0x57f   : > { %v902_v0 = vpop.permute.xlu1 %901 }
 0x580   : > { %v908_v51 = vsel %vm907_vm9, %v906_v50, %v902_v0 }
 0x581   : > { %v909_v52 = vpack.c.bf16 %v908_v51, %v908_v51 }
 0x583   : > { %911 = vst.msk [vmem:[%s259_s7] sm:$0x3] %vm910_vm10, %v909_v52 }
 0x584 PF: > { %s13_s14 = sadd.s32 1, %s1185_s14   ;;  %s1406_s12 = smov %s1181_s13 }
 0x585   : > { %p10_p5 = scmp.ge.s32.totalorder %s13_s14, 4   ;;  %s1407_s13 = smov %s1409_s15 }
 0x587   :  { %12 = sbr.rel (!%p10_p5) target bundleno = 2 (0x2), region = 85 }

// kernel: vlm_forward.42
= control target key start
LH: loop header
LB: loop body
LE: loop exit
PB: predicated region body
PF: predicated region fallthrough
CT: control target
= control target key end

     0   :  { %vm22_vm0 = vcmask 261120   ;;  %v154_v0 = vmov 0.0   ;;  %vm155_vm1 = vmmov 0   ;;  %vm58_vm2 = vcmask 523264   ;;  %s207_s1 = inlined_call_operand.vmem [shape: bf16[64,32], index: 1, kind: input, shape index: {}]   ;;  %s208_s0 = inlined_call_operand.vmem [shape: bf16[8,64], index: 0, kind: input, shape index: {}]   ;;  %s209_s2 = inlined_call_operand.vmem [shape: bf16[1,32], index: 2, kind: input, shape index: {}]   ;;  %s210_s3 = inlined_call_operand.vmem [shape: bf16[8,32], index: 3, kind: input, shape index: {}]   ;;  %s211_s4 = inlined_call_operand.vmem [shape: bf16[8,32], index: 4, kind: output, shape index: {}]  }
   0x1   :  { %136 = vmatprep.subr.bf16.mxu0 %v154_v0  ;;  %v150_v1 = vld [vmem:[%s207_s1 + $0x18] sm:$0xff]   ;;  %144 = vmatprep.mubr.msk.bf16.mxu0 %vm155_vm1, %v154_v0  ;;  %23 = vst.msk [vmem:[#allocation2] sm:$0xff] %vm22_vm0, %v154_v0  ;;  %v151_v2 = vld [vmem:[%s207_s1 + $0x10] sm:$0xff]   ;;  %v152_v3 = vld [vmem:[%s207_s1 + $0x8] sm:$0xff]   ;;  %v111_v6 = vlaneseq  ;;  %vm120_vm3 = vcmask 257024  }
   0x2   :  { %137 = vmatpush3.bf16.msra.mxu0 %v150_v1  ;;  %v153_v4 = vld [vmem:[%s207_s1] sm:$0xff]  }
   0x3   :  { %138 = vmatprep.subr.bf16.mxu0 %v154_v0  ;;  %v24_v5 = vld [vmem:[%s208_s0] sm:$0xf]  ;;  %v112_v8 = vshrl.u32 %v111_v6, 7 }
   0x4   :  { %v109_v10 = vld [vmem:[%s209_s2] sm:$0x1] }
   0x5   :  { %v110_v13 = vunpack.c.l.bf16 %v109_v10  ;;  %v113_v14 = vsub.s32 0, %v112_v8  ;;  %v116_v16 = vld [vmem:[%s210_s3] sm:$0xf] }
   0x6   :  { %139 = vmatpush3.bf16.msra.mxu0 %v151_v2  ;;  %v117_v19 = vunpack.c.l.bf16 %v116_v16 }
   0x7   :  { %140 = vmatprep.subr.bf16.mxu0 %v154_v0  ;;  %v114_v18 = vrot.slane %v110_v13, %v113_v14 }
   0x8   :  { %v25_v7 = vld [vmem:[#allocation2] sm:$0xff] }
   0xa   :  { %141 = vmatpush3.bf16.msra.mxu0 %v152_v3 }
   0xb   :  { %142 = vmatprep.subr.bf16.mxu0 %v154_v0 }
   0xe   :  { %143 = vmatpush3.bf16.msra.mxu0 %v153_v4 }
  0x11   :  { %145 = vmatmul.mubr.msk.bf16.vlgmr.msra.gmra.mxu0 %vm58_vm2, %v24_v5 }
  0xd1   :  { %v96_v9 = vpop.f32.mrf.mxu0 }
  0xd2   :  { %v102_v11 = vadd.f32 %v96_v9, %v25_v7 }
  0xd3   :  { %v146_v12 = vpop.f32.mrf.mxu0 }
  0xd4   :  { %104 = vst.msk [vmem:[#allocation2] sm:$0xff] %vm22_vm0, %v102_v11 }
  0xd5   :  { %v99_v15 = vpop.f32.mrf.mxu0 }
  0xd7   :  { %v147_v17 = vpop.f32.mrf.mxu0 }
  0xdb   :  { %v108_v20 = vld [vmem:[#allocation2] sm:$0xff] }
  0xdc   :  { %v115_v21 = vadd.f32 %v114_v18, %v108_v20 }
  0xde   :  { %v118_v22 = vadd.f32 %v117_v19, %v115_v21 }
  0xe0   :  { %v119_v23 = vpack.c.bf16 %v118_v22, %v118_v22 }
  0xe2   :  { %121 = vst.msk [vmem:[%s211_s4] sm:$0xf] %vm120_vm3, %v119_v23 }

// kernel: vlm_forward.48
= control target key start
LH: loop header
LB: loop body
LE: loop exit
PB: predicated region body
PF: predicated region fallthrough
CT: control target
= control target key end

     0   :  { %vm16_vm0 = vcmask 261120   ;;  %vm48_vm1 = vcmask 257024   ;;  %s90_s0 = inlined_call_operand.vmem [shape: bf16[8,32], index: 0, kind: input, shape index: {}]   ;;  %s91_s1 = inlined_call_operand.vmem [shape: f32[1,32], index: 1, kind: input, shape index: {}]   ;;  %s92_s2 = inlined_call_operand.vmem [shape: f32[1,32], index: 2, kind: input, shape index: {}]   ;;  %s93_s3 = inlined_call_operand.vmem [shape: bf16[8,32], index: 3, kind: output, shape index: {}]  }
   0x1   :  { %v14_v0 = vld [vmem:[%s90_s0] sm:$0xf] }
   0x2   :  { %v15_v1 = vunpack.c.l.bf16 %v14_v0  ;;  %v54_v12 = vld [vmem:[%s91_s1] ss:$0 sm:$0xff] }
   0x3   :  { %v55_v14 = vld [vmem:[%s92_s2] ss:$0 sm:$0xff] }
   0x4   :  { %v17_v2 = vsel %vm16_vm0, %v15_v1, 0.0 }
   0x5   :  { %18 = vadd.xlane.f32.xlu0 %v17_v2 }
  0x8e   :  { %v19_v3 = vpop.xlane.xlu0 %18 }
  0x8f   :  { %v21_v4 = vmul.f32 0.03125, %v19_v3 }
  0x91   :  { %v22_v5 = vsub.f32 %v15_v1, %v21_v4 }
  0x93   :  { %v23_v6 = vmul.f32 %v22_v5, %v22_v5 }
  0x95   :  { %v24_v7 = vsel %vm16_vm0, %v23_v6, 0.0 }
  0x96   :  { %25 = vadd.xlane.f32.xlu0 %v24_v7 }
 0x11f   :  { %v26_v8 = vpop.xlane.xlu0 %25 }
 0x120   :  { %v27_v9 = vmul.f32 0.03125, %v26_v8 }
 0x122   :  { %v28_v10 = vadd.f32 1e-06, %v27_v9 }
 0x124   :  { %56 = vrsqrt.f32 %v28_v10 }
 0x131   :  { %v57_v11 = vpop.eup %56 }
 0x132   :  { %v30_v13 = vmul.f32 %v57_v11, %v22_v5 }
 0x134   :  { %v38_v15 = vmul.f32 %v54_v12, %v30_v13 }
 0x136   :  { %v46_v16 = vadd.f32 %v55_v14, %v38_v15 }
 0x138   :  { %v47_v17 = vpack.c.bf16 %v46_v16, %v46_v16 }
 0x13a   :  { %49 = vst.msk [vmem:[%s93_s3] sm:$0xf] %vm48_vm1, %v47_v17 }

// kernel: vlm_forward.41
= control target key start
LH: loop header
LB: loop body
LE: loop exit
PB: predicated region body
PF: predicated region fallthrough
CT: control target
= control target key end

     0   :  { %vm29_vm0 = vcmask 261120   ;;  %vm25_vm1 = vcmask 523264   ;;  %v175_v8 = vmov 0.0   ;;  %vm176_vm2 = vmmov 0   ;;  %s233_s0 = inlined_call_operand.vmem [shape: bf16[8,32], index: 0, kind: input, shape index: {}]   ;;  %s234_s1 = inlined_call_operand.vmem [shape: bf16[32,64], index: 1, kind: input, shape index: {}]   ;;  %s235_s3 = inlined_call_operand.vmem [shape: f32[1,32], index: 3, kind: input, shape index: {}]   ;;  %s236_s4 = inlined_call_operand.vmem [shape: f32[1,32], index: 4, kind: input, shape index: {}]   ;;  %s237_s2 = inlined_call_operand.vmem [shape: bf16[1,64], index: 2, kind: input, shape index: {}]   ;;  %s238_s5 = inlined_call_operand.vmem [shape: bf16[8,64], index: 5, kind: output, shape index: {}]  }
   0x1   :  { %v27_v0 = vld [vmem:[%s233_s0] sm:$0xf]  ;;  %26 = vst.msk [vmem:[#allocation2] sm:$0xff] %vm25_vm1, %v175_v8  ;;  %159 = vmatprep.subr.bf16.mxu0 %v175_v8  ;;  %v169_v9 = vld [vmem:[%s234_s1 + $0x8] sm:$0xff]   ;;  %163 = vmatprep.mubr.msk.bf16.mxu0 %vm176_vm2, %v175_v8  ;;  %v130_v21 = vlaneseq  ;;  %vm145_vm3 = vcmask 519168  }
   0x2   :  { %v28_v1 = vunpack.c.l.bf16 %v27_v0  ;;  %160 = vmatpush3.bf16.msra.mxu0 %v169_v9  ;;  %v170_v10 = vld [vmem:[%s234_s1] sm:$0xff]  }
   0x3   :  { %161 = vmatprep.subr.bf16.mxu0 %v175_v8  ;;  %v151_v15 = vld [vmem:[%s235_s3] ss:$0 sm:$0xff]  ;;  %v131_v23 = vshrl.u32 %v130_v21, 7 }
   0x4   :  { %v30_v2 = vsel %vm29_vm0, %v28_v1, 0.0  ;;  %v152_v17 = vld [vmem:[%s236_s4] ss:$0 sm:$0xff] }
   0x5   :  { %31 = vadd.xlane.f32.xlu0 %v30_v2  ;;  %v128_v25 = vld [vmem:[%s237_s2] sm:$0x1]  ;;  %v132_v29 = vsub.s32 0, %v131_v23 }
   0x6   :  { %162 = vmatpush3.bf16.msra.mxu0 %v170_v10  ;;  %v129_v28 = vunpack.c.l.bf16 %v128_v25 }
   0x8   :  { %v61_v22 = vld [vmem:[#allocation2] sm:$0xff]  ;;  %v133_v32 = vrot.slane %v129_v28, %v132_v29 }
  0x8e   :  { %v32_v3 = vpop.xlane.xlu0 %31 }
  0x8f   :  { %v34_v4 = vmul.f32 0.03125, %v32_v3 }
  0x91   :  { %v35_v5 = vsub.f32 %v28_v1, %v34_v4 }
  0x93   :  { %v36_v6 = vmul.f32 %v35_v5, %v35_v5 }
  0x95   :  { %v37_v7 = vsel %vm29_vm0, %v36_v6, 0.0 }
  0x96   :  { %38 = vadd.xlane.f32.xlu0 %v37_v7 }
 0x11f   :  { %v39_v11 = vpop.xlane.xlu0 %38 }
 0x120   :  { %v40_v12 = vmul.f32 0.03125, %v39_v11 }
 0x122   :  { %v41_v13 = vadd.f32 1e-06, %v40_v12 }
 0x124   :  { %171 = vrsqrt.f32 %v41_v13 }
 0x131   :  { %v172_v14 = vpop.eup %171 }
 0x132   :  { %v43_v16 = vmul.f32 %v172_v14, %v35_v5 }
 0x134   :  { %v51_v18 = vmul.f32 %v151_v15, %v43_v16 }
 0x136   :  { %v59_v19 = vadd.f32 %v152_v17, %v51_v18 }
 0x138   :  { %v60_v20 = vpack.c.bf16 %v59_v19, %v59_v19 }
 0x13a   :  { %164 = vmatmul.mubr.msk.bf16.vlgmr.msra.gmra.mxu0 %vm29_vm0, %v60_v20 }
 0x1fa   :  { %v115_v24 = vpop.f32.mrf.mxu0 }
 0x1fb   :  { %v121_v26 = vadd.f32 %v115_v24, %v61_v22 }
 0x1fc   :  { %v165_v27 = vpop.f32.mrf.mxu0 }
 0x1fd   :  { %123 = vst.msk [vmem:[#allocation2] sm:$0xff] %vm25_vm1, %v121_v26 }
 0x1fe   :  { %v118_v30 = vpop.f32.mrf.mxu0 }
 0x200   :  { %v166_v31 = vpop.f32.mrf.mxu0 }
 0x204   :  { %v127_v33 = vld [vmem:[#allocation2] sm:$0xff] }
 0x205   :  { %v134_v34 = vadd.f32 %v133_v32, %v127_v33 }
 0x207   :  { %v136_v35 = vmul.f32 0.044715, %v134_v34  ;;  %v135_v41 = vmul.f32 0.5, %v134_v34 }
 0x209   :  { %v137_v36 = vmul.f32 %v136_v35, %v134_v34 }
 0x20b   :  { %v138_v37 = vmul.f32 %v137_v36, %v134_v34 }
 0x20d   :  { %v139_v38 = vadd.f32 %v138_v37, %v134_v34 }
 0x20f   :  { %v140_v39 = vmul.f32 0.7978846, %v139_v38 }
 0x211   :  { %173 = vtanh.f32 %v140_v39 }
 0x21e   :  { %v174_v40 = vpop.eup %173 }
 0x21f   :  { %v142_v42 = vadd.f32 1.0, %v174_v40 }
 0x221   :  { %v143_v43 = vmul.f32 %v142_v42, %v135_v41 }
 0x223   :  { %v144_v44 = vpack.c.bf16 %v143_v43, %v143_v43 }
 0x225   :  { %146 = vst.msk [vmem:[%s238_s5] sm:$0xf] %vm145_vm3, %v144_v44 }

// kernel: vlm_forward.54
= control target key start
LH: loop header
LB: loop body
LE: loop exit
PB: predicated region body
PF: predicated region fallthrough
CT: control target
= control target key end

     0   :  { %vm19_vm0 = vcmask 523264   ;;  %v122_v0 = vmov 0.0   ;;  %vm123_vm1 = vmmov 0   ;;  %vm39_vm2 = vcmask 261120   ;;  %s161_s1 = inlined_call_operand.vmem [shape: bf16[32,64], index: 1, kind: input, shape index: {}]   ;;  %s162_s0 = inlined_call_operand.vmem [shape: bf16[8,32], index: 0, kind: input, shape index: {}]   ;;  %s163_s2 = inlined_call_operand.vmem [shape: bf16[1,64], index: 2, kind: input, shape index: {}]   ;;  %s164_s3 = inlined_call_operand.vmem [shape: bf16[8,64], index: 3, kind: output, shape index: {}]  }
   0x1   :  { %20 = vst.msk [vmem:[#allocation2] sm:$0xff] %vm19_vm0, %v122_v0  ;;  %110 = vmatprep.subr.bf16.mxu0 %v122_v0  ;;  %v120_v1 = vld [vmem:[%s161_s1 + $0x8] sm:$0xff]   ;;  %114 = vmatprep.mubr.msk.bf16.mxu0 %vm123_vm1, %v122_v0  ;;  %v121_v2 = vld [vmem:[%s161_s1] sm:$0xff]   ;;  %v92_v4 = vlaneseq  ;;  %vm98_vm3 = vcmask 519168  }
   0x2   :  { %111 = vmatpush3.bf16.msra.mxu0 %v120_v1  ;;  %v21_v3 = vld [vmem:[%s162_s0] sm:$0xf] }
   0x3   :  { %112 = vmatprep.subr.bf16.mxu0 %v122_v0  ;;  %v93_v6 = vshrl.u32 %v92_v4, 7  ;;  %v90_v8 = vld [vmem:[%s163_s2] sm:$0x1] }
   0x4   :  { %v91_v11 = vunpack.c.l.bf16 %v90_v8 }
   0x5   :  { %v94_v12 = vsub.s32 0, %v93_v6 }
   0x6   :  { %113 = vmatpush3.bf16.msra.mxu0 %v121_v2 }
   0x7   :  { %v95_v15 = vrot.slane %v91_v11, %v94_v12 }
   0x8   :  { %v22_v5 = vld [vmem:[#allocation2] sm:$0xff] }
   0x9   :  { %115 = vmatmul.mubr.msk.bf16.vlgmr.msra.gmra.mxu0 %vm39_vm2, %v21_v3 }
  0xc9   :  { %v77_v7 = vpop.f32.mrf.mxu0 }
  0xca   :  { %v83_v9 = vadd.f32 %v77_v7, %v22_v5 }
  0xcb   :  { %v116_v10 = vpop.f32.mrf.mxu0 }
  0xcc   :  { %85 = vst.msk [vmem:[#allocation2] sm:$0xff] %vm19_vm0, %v83_v9 }
  0xcd   :  { %v80_v13 = vpop.f32.mrf.mxu0 }
  0xcf   :  { %v117_v14 = vpop.f32.mrf.mxu0 }
  0xd3   :  { %v89_v16 = vld [vmem:[#allocation2] sm:$0xff] }
  0xd4   :  { %v96_v17 = vadd.f32 %v95_v15, %v89_v16 }
  0xd6   :  { %v97_v18 = vpack.c.bf16 %v96_v17, %v96_v17 }
  0xd8   :  { %99 = vst.msk [vmem:[%s164_s3] sm:$0xf] %vm98_vm3, %v97_v18 }

// kernel: vlm_forward.49
= control target key start
LH: loop header
LB: loop body
LE: loop exit
PB: predicated region body
PF: predicated region fallthrough
CT: control target
= control target key end

     0   :  { %vm19_vm0 = vcmask 785408   ;;  %v149_v0 = vmov 0.0   ;;  %vm150_vm1 = vmmov 0   ;;  %vm47_vm2 = vcmask 261120   ;;  %s193_s1 = inlined_call_operand.vmem [shape: bf16[32,96], index: 1, kind: input, shape index: {}]   ;;  %s194_s0 = inlined_call_operand.vmem [shape: bf16[16,32], index: 0, kind: input, shape index: {}]   ;;  %s195_s2 = inlined_call_operand.vmem [shape: bf16[1,96], index: 2, kind: input, shape index: {}]   ;;  %s196_s3 = inlined_call_operand.vmem [shape: bf16[16,96], index: 3, kind: output, shape index: {}]  }
   0x1   :  { %136 = vmatprep.subr.bf16.mxu0 %v149_v0  ;;  %v146_v1 = vld [vmem:[%s193_s1 + $0x8] sm:$0xff]   ;;  %140 = vmatprep.mubr.msk.bf16.mxu0 %vm150_vm1, %v149_v0  ;;  %20 = vst.msk [vmem:[#allocation2] sm:$0xff] %vm19_vm0, %v149_v0  ;;  %21 = vst.msk [vmem:[#allocation2 + $0x8] sm:$0xff] %vm19_vm0, %v149_v0  ;;  %v147_v2 = vld [vmem:[%s193_s1] sm:$0xff]   ;;  %v104_v4 = vlaneseq  ;;  %vm118_vm3 = vcmask 781312  }
   0x2   :  { %137 = vmatpush3.bf16.msra.mxu0 %v146_v1  ;;  %v148_v3 = vld [vmem:[%s194_s0] sm:$0xff]  }
   0x3   :  { %138 = vmatprep.subr.bf16.mxu0 %v149_v0  ;;  %v105_v6 = vshrl.u32 %v104_v4, 7  ;;  %v102_v8 = vld [vmem:[%s195_s2] sm:$0x1] }
   0x4   :  { %v103_v12 = vunpack.c.l.bf16 %v102_v8 }
   0x5   :  { %v106_v13 = vsub.s32 0, %v105_v6 }
   0x6   :  { %139 = vmatpush3.bf16.msra.mxu0 %v147_v2 }
   0x7   :  { %v107_v17 = vrot.slane %v103_v12, %v106_v13 }
   0x8   :  { %v24_v5 = vld [vmem:[#allocation2] sm:$0xff]  ;;  %v25_v11 = vld [vmem:[#allocation2 + $0x8] sm:$0xff] }
   0x9   :  { %141 = vmatmul.mubr.msk.bf16.vlgmr.msra.gmra.mxu0 %vm47_vm2, %v148_v3 }
  0xc9   :  { %v85_v7 = vpop.f32.mrf.mxu0 }
  0xca   :  { %v92_v9 = vadd.f32 %v85_v7, %v24_v5 }
  0xcb   :  { %v142_v10 = vpop.f32.mrf.mxu0 }
  0xcc   :  { %95 = vst.msk [vmem:[#allocation2] sm:$0xff] %vm19_vm0, %v92_v9 }
  0xcd   :  { %v88_v14 = vpop.f32.mrf.mxu0 }
  0xce   :  { %v93_v15 = vadd.f32 %v88_v14, %v25_v11 }
  0xcf   :  { %v143_v16 = vpop.f32.mrf.mxu0 }
  0xd0   :  { %96 = vst.msk [vmem:[#allocation2 + $0x8] sm:$0xff] %vm19_vm0, %v93_v15 }
  0xd3   :  { %v100_v18 = vld [vmem:[#allocation2] sm:$0xff] }
  0xd4   :  { %v108_v19 = vadd.f32 %v107_v17, %v100_v18 }
  0xd6   :  { %v131_v20 = vpack.c.bf16 %v108_v19, %v108_v19 }
  0xd7   :  { %v101_v21 = vld [vmem:[#allocation2 + $0x8] sm:$0xff] }
  0xd8   :  { %119 = vst.msk [vmem:[%s196_s3] sm:$0xf] %vm118_vm3, %v131_v20  ;;  %v109_v22 = vadd.f32 %v107_v17, %v101_v21 }
  0xda   :  { %v132_v23 = vpack.c.bf16 %v109_v22, %v109_v22 }
  0xdc   :  { %120 = vst.msk [vmem:[%s196_s3 + $0x4] sm:$0xf] %vm118_vm3, %v132_v23 }

// kernel: vlm_forward.52
= control target key start
LH: loop header
LB: loop body
LE: loop exit
PB: predicated region body
PF: predicated region fallthrough
CT: control target
= control target key end

     0   :  { %vm18_vm0 = vcmask 261120   ;;  %vm72_vm1 = vcmask 257024   ;;  %s132_s0 = inlined_call_operand.vmem [shape: bf16[16,32], index: 0, kind: input, shape index: {}]   ;;  %s133_s1 = inlined_call_operand.vmem [shape: f32[1,32], index: 1, kind: input, shape index: {}]   ;;  %s134_s2 = inlined_call_operand.vmem [shape: f32[1,32], index: 2, kind: input, shape index: {}]   ;;  %s135_s3 = inlined_call_operand.vmem [shape: bf16[16,32], index: 3, kind: output, shape index: {}]  }
   0x1   :  { %v86_v0 = vld [vmem:[%s132_s0] sm:$0xff]  }
   0x2   :  { %v87_v1 = vunpack.c.l.bf16 %v86_v0  ;;  %v88_v2 = vunpack.c.h.bf16 %v86_v0  ;;  %v79_v22 = vld [vmem:[%s133_s1] ss:$0 sm:$0xff] }
   0x3   :  { %v80_v24 = vld [vmem:[%s134_s2] ss:$0 sm:$0xff] }
   0x4   :  { %v19_v3 = vsel %vm18_vm0, %v87_v1, 0.0  ;;  %v22_v4 = vsel %vm18_vm0, %v88_v2, 0.0 }
   0x5   :  { %20 = vadd.xlane.f32.xlu0 %v19_v3 }
   0x9   :  { %23 = vadd.xlane.f32.xlu0 %v22_v4 }
  0x8e   :  { %v21_v5 = vpop.xlane.xlu0 %20 }
  0x8f   :  { %v26_v6 = vmul.f32 0.03125, %v21_v5 }
  0x91   :  { %v28_v7 = vsub.f32 %v87_v1, %v26_v6 }
  0x92   :  { %v24_v8 = vpop.xlane.xlu0 %23 }
  0x93   :  { %v27_v9 = vmul.f32 0.03125, %v24_v8  ;;  %v30_v10 = vmul.f32 %v28_v7, %v28_v7 }
  0x95   :  { %v29_v11 = vsub.f32 %v88_v2, %v27_v9  ;;  %v32_v12 = vsel %vm18_vm0, %v30_v10, 0.0 }
  0x96   :  { %33 = vadd.xlane.f32.xlu1 %v32_v12 }
  0x97   :  { %v31_v13 = vmul.f32 %v29_v11, %v29_v11 }
  0x99   :  { %v35_v14 = vsel %vm18_vm0, %v31_v13, 0.0 }
  0x9a   :  { %36 = vadd.xlane.f32.xlu1 %v35_v14 }
 0x11f   :  { %v34_v15 = vpop.xlane.xlu1 %33 }
 0x120   :  { %v38_v16 = vmul.f32 0.03125, %v34_v15 }
 0x122   :  { %v40_v17 = vadd.f32 1e-05, %v38_v16 }
 0x123   :  { %v37_v18 = vpop.xlane.xlu1 %36 }
 0x124   :  { %89 = vrsqrt.f32 %v40_v17  ;;  %v39_v19 = vmul.f32 0.03125, %v37_v18 }
 0x126   :  { %v41_v20 = vadd.f32 1e-05, %v39_v19 }
 0x128   :  { %91 = vrsqrt.f32 %v41_v20 }
 0x131   :  { %v90_v21 = vpop.eup %89 }
 0x132   :  { %v44_v23 = vmul.f32 %v90_v21, %v28_v7 }
 0x134   :  { %v53_v25 = vmul.f32 %v79_v22, %v44_v23 }
 0x135   :  { %v92_v26 = vpop.eup %91 }
 0x136   :  { %v62_v27 = vadd.f32 %v80_v24, %v53_v25  ;;  %v45_v28 = vmul.f32 %v92_v26, %v29_v11 }
 0x138   :  { %v83_v29 = vpack.c.bf16 %v62_v27, %v62_v27  ;;  %v54_v30 = vmul.f32 %v79_v22, %v45_v28 }
 0x13a   :  { %73 = vst.msk [vmem:[%s135_s3] sm:$0xf] %vm72_vm1, %v83_v29  ;;  %v63_v31 = vadd.f32 %v80_v24, %v54_v30 }
 0x13c   :  { %v84_v32 = vpack.c.bf16 %v63_v31, %v63_v31 }
 0x13e   :  { %74 = vst.msk [vmem:[%s135_s3 + $0x4] sm:$0xf] %vm72_vm1, %v84_v32 }

// kernel: vlm_forward.51
= control target key start
LH: loop header
LB: loop body
LE: loop exit
PB: predicated region body
PF: predicated region fallthrough
CT: control target
= control target key end

     0   :  { %vm22_vm0 = vcmask 261120   ;;  %v161_v0 = vmov 0.0   ;;  %vm162_vm1 = vmmov 0   ;;  %v106_v4 = vlaneseq  ;;  %s214_s1 = inlined_call_operand.vmem [shape: bf16[32,32], index: 1, kind: input, shape index: {}]   ;;  %s215_s0 = inlined_call_operand.vmem [shape: bf16[16,32], index: 0, kind: input, shape index: {}]   ;;  %s216_s2 = inlined_call_operand.vmem [shape: bf16[1,32], index: 2, kind: input, shape index: {}]   ;;  %s217_s3 = inlined_call_operand.vmem [shape: bf16[16,32], index: 3, kind: input, shape index: {}]   ;;  %s218_s4 = inlined_call_operand.vmem [shape: bf16[16,32], index: 4, kind: output, shape index: {}]  }
   0x1   :  { %148 = vmatprep.subr.bf16.mxu0 %v161_v0  ;;  %v158_v1 = vld [vmem:[%s214_s1 + $0x8] sm:$0xff]   ;;  %152 = vmatprep.mubr.msk.bf16.mxu0 %vm162_vm1, %v161_v0  ;;  %23 = vst.msk [vmem:[#allocation2] sm:$0xff] %vm22_vm0, %v161_v0  ;;  %24 = vst.msk [vmem:[#allocation2 + $0x8] sm:$0xff] %vm22_vm0, %v161_v0  ;;  %v159_v2 = vld [vmem:[%s214_s1] sm:$0xff]   ;;  %vm126_vm2 = vcmask 257024  }
   0x2   :  { %149 = vmatpush3.bf16.msra.mxu0 %v158_v1  ;;  %v160_v3 = vld [vmem:[%s215_s0] sm:$0xff]   ;;  %v107_v6 = vshrl.u32 %v106_v4, 7 }
   0x3   :  { %150 = vmatprep.subr.bf16.mxu0 %v161_v0  ;;  %v104_v8 = vld [vmem:[%s216_s2] sm:$0x1] }
   0x4   :  { %v105_v12 = vunpack.c.l.bf16 %v104_v8  ;;  %v108_v13 = vsub.s32 0, %v107_v6  ;;  %v142_v16 = vld [vmem:[%s217_s3] sm:$0xff]  }
   0x5   :  { %v143_v19 = vunpack.c.l.bf16 %v142_v16  ;;  %v144_v23 = vunpack.c.h.bf16 %v142_v16 }
   0x6   :  { %151 = vmatpush3.bf16.msra.mxu0 %v159_v2  ;;  %v109_v18 = vrot.slane %v105_v12, %v108_v13 }
   0x8   :  { %v27_v5 = vld [vmem:[#allocation2] sm:$0xff]  ;;  %v28_v11 = vld [vmem:[#allocation2 + $0x8] sm:$0xff] }
   0x9   :  { %153 = vmatmul.mubr.msk.bf16.vlgmr.msra.gmra.mxu0 %vm22_vm0, %v160_v3 }
  0xc9   :  { %v88_v7 = vpop.f32.mrf.mxu0 }
  0xca   :  { %v95_v9 = vadd.f32 %v88_v7, %v27_v5 }
  0xcb   :  { %v154_v10 = vpop.f32.mrf.mxu0 }
  0xcc   :  { %97 = vst.msk [vmem:[#allocation2] sm:$0xff] %vm22_vm0, %v95_v9 }
  0xcd   :  { %v91_v14 = vpop.f32.mrf.mxu0 }
  0xce   :  { %v96_v15 = vadd.f32 %v91_v14, %v28_v11 }
  0xcf   :  { %v155_v17 = vpop.f32.mrf.mxu0 }
  0xd0   :  { %98 = vst.msk [vmem:[#allocation2 + $0x8] sm:$0xff] %vm22_vm0, %v96_v15 }
  0xd3   :  { %v102_v20 = vld [vmem:[#allocation2] sm:$0xff] }
  0xd4   :  { %v110_v21 = vadd.f32 %v109_v18, %v102_v20 }
  0xd6   :  { %v116_v22 = vadd.f32 %v143_v19, %v110_v21 }
  0xd7   :  { %v103_v24 = vld [vmem:[#allocation2 + $0x8] sm:$0xff] }
  0xd8   :  { %v139_v25 = vpack.c.bf16 %v116_v22, %v116_v22  ;;  %v111_v26 = vadd.f32 %v109_v18, %v103_v24 }
  0xda   :  { %127 = vst.msk [vmem:[%s218_s4] sm:$0xf] %vm126_vm2, %v139_v25  ;;  %v117_v27 = vadd.f32 %v144_v23, %v111_v26 }
  0xdc   :  { %v140_v28 = vpack.c.bf16 %v117_v27, %v117_v27 }
  0xde   :  { %128 = vst.msk [vmem:[%s218_s4 + $0x4] sm:$0xf] %vm126_vm2, %v140_v28 }

// kernel: vlm_forward.50
= control target key start
LH: loop header
LB: loop body
LE: loop exit
PB: predicated region body
PF: predicated region fallthrough
CT: control target
= control target key end

     0   :  { %s1203_s12 = smov 0   ;;  %s1205_s13 = smov 0   ;;  %s1374_s0 = inlined_call_operand.vmem [shape: bf16[2,8,32], index: 0, kind: input, shape index: {}]   ;;  %s1375_s1 = inlined_call_operand.vmem [shape: bf16[2,8,32], index: 1, kind: input, shape index: {}]   ;;  %s1376_s2 = inlined_call_operand.vmem [shape: bf16[2,8,32], index: 2, kind: input, shape index: {}]   ;;  %s1377_s3 = inlined_call_operand.vmem [shape: bf16[2,8,32], index: 3, kind: output, shape index: {}]  }
   0x1   :  { %s1207_s14 = smov 0  }
   0x2 LB: > { %s32_s15 = sadd.s32 1, %s1167_s13  ;;  %p1005_p0 = scmp.ge.s32.totalorder %s1171_s14, 1  ;;  %s1171_s14 = sphi %s1207_s14, %s13_s14   ;;  %s1167_s13 = sphi %s1205_s13, %s1379_s13   ;;  %s1163_s12 = sphi %s1203_s12, %s1378_s12  }
   0x3   : > { %p34_p1 = scmp.ge.s32.totalorder %s32_s15, 2  ;;  %p190_p2 = scmp.lt.s32.totalorder %s1171_s14, 3 }
   0x5   : > { %s1381_s15 = smov (%p34_p1, %s32_s15), 0  ;;  %p191_p3 = pnand %p1005_p0, %p190_p2 }
   0x6   : > { %p232_p4 = scmp.lt.s32.totalorder (!%p191_p3), %s1163_s12, 1  ;;  %s1177_s23 = smov (!%p191_p3), 120  }
   0x7   : > { %194 = sbr.rel (%p191_p3) target bundleno = 1412 (0x584), region = 32  ;;  %s1178_s24 = smov (!%p191_p3), 112  }
   0x8   : > { %s1179_s25 = smov (!%p191_p3), 104   ;;  %s1180_s29 = smov (!%p191_p3), 8  }
   0x9   : > { %s1181_s30 = smov (!%p191_p3), 16   ;;  %s1182_s4 = smov (!%p191_p3), 24  }
   0xc   : > { %vm274_vm0 = vcmask 64512   ;;  %v1173_v0 = vmov 0.0   ;;  %vm1174_vm1 = vmmov 0   ;;  %s1383_s12 = smov (!%p232_p4, %s1163_s12), 1  ;;  %vm265_vm2 = vcmask 7168  }
   0xd   : > { %1039 = vmatprep.subr.bf16.mxu0 %v1173_v0  ;;  %275 = vst.msk [vmem:[#allocation4] sm:$0xff] %vm274_vm0, %v1173_v0  ;;  %276 = vst.msk [vmem:[#allocation4 + $0x8] sm:$0xff] %vm274_vm0, %v1173_v0  ;;  %1041 = vmatprep.mubr.msk.bf16.mxu0 %vm1174_vm1, %v1173_v0  ;;  %s1235_s16 = sshll.u32 %s1383_s12, 2  ;;  %v1175_v4 = vmov -1e+30   ;;  %v283_v5 = vlaneseq  ;;  %v1176_v13 = vmov 0  }
   0xe   : > { %277 = vst.msk [vmem:[#allocation4 + $0x10] sm:$0xff] %vm274_vm0, %v1173_v0  ;;  %278 = vst.msk [vmem:[#allocation4 + $0x18] sm:$0xff] %vm274_vm0, %v1173_v0  ;;  %1045 = vmatprep.subr.bf16.mxu1 %v1173_v0  ;;  %1047 = vmatprep.mubr.msk.bf16.mxu1 %vm1174_vm1, %v1173_v0  ;;  %s245_s19 = scalar_lea.vmem %s1375_s1, %s1235_s16  ;;  %s238_s22 = scalar_lea.vmem %s1374_s0, %s1235_s16  ;;  %vm371_vm4 = vcmask 1043456   ;;  %vm887_vm5 = vcmask 130048   ;;  %vm889_vm6 = vcmask 195584   ;;  %vm892_vm7 = vcmask 257024  }
   0xf   : > { %v280_v1 = vld [vmem:[%s245_s19] sm:$0xf]  ;;  %266 = vst.msk [vmem:[#allocation2] sm:$0xff] %vm265_vm2, %v1175_v4  ;;  %267 = vst.msk [vmem:[#allocation2 + $0x8] sm:$0xff] %vm265_vm2, %v1175_v4  ;;  %v1262_v6 = vand.u32 127, %v283_v5  ;;  %1121 = vset.pattern.permute.xlu0 %v1176_v13  ;;  %1122 = vset.pattern.permute.xlu1 %v1176_v13  ;;  %s252_s28 = scalar_lea.vmem %s1376_s2, %s1235_s16  ;;  %s259_s7 = scalar_lea.vmem %s1377_s3, %s1235_s16 }
  0x10   : > { %v293_v2 = vsel %vm274_vm0, %v280_v1, 0  ;;  %v279_v3 = vld [vmem:[%s238_s22] sm:$0xf]  ;;  %268 = vst.msk [vmem:[#allocation2 + $0x10] sm:$0xff] %vm265_vm2, %v1175_v4  ;;  %269 = vst.msk [vmem:[#allocation2 + $0x18] sm:$0xff] %vm265_vm2, %v1175_v4  ;;  %v1013_v14 = vcombine.low %v280_v1, %v280_v1 }
  0x11   : > { %1040 = vmatpush3.bf16.xpose.msra.mxu0 %v293_v2  ;;  %270 = vst.msk [vmem:[#allocation3] sm:$0xff] %vm265_vm2, %v1173_v0  ;;  %271 = vst.msk [vmem:[#allocation3 + $0x8] sm:$0xff] %vm265_vm2, %v1173_v0  ;;  %vm287_vm3 = vcmp.lt.s32.totalorder %v1262_v6, 8  ;;  %v1012_v15 = vcombine.low %v279_v3, %v279_v3  ;;  %v1288_v20 = vld [vmem:[%s252_s28] sm:$0xf] }
  0x12   : > { %1057 = vmatprep.subr.bf16.mxu0 %v1173_v0  ;;  %272 = vst.msk [vmem:[#allocation3 + $0x10] sm:$0xff] %vm265_vm2, %v1173_v0  ;;  %273 = vst.msk [vmem:[#allocation3 + $0x18] sm:$0xff] %vm265_vm2, %v1173_v0  ;;  %426 = vrot.lane.b32.xlu1 %v1013_v14, %s1177_s23  ;;  %v373_v21 = vsel %vm371_vm4, %v1288_v20, 0  ;;  %v1015_v6 = vcombine.low %v1288_v20, %v1288_v20 }
  0x13   : > { %1046 = vmatpush3.bf16.msra.mxu1 %v373_v21 }
  0x14   : > { %1051 = vmatprep.subr.bf16.mxu1 %v1173_v0 }
  0x16   : > { %421 = vrot.lane.b32.xlu1 %v1012_v15, %s1177_s23  ;;  %v1274_v16 = vld [vmem:[#allocation2] sm:$0xff]  ;;  %v476_v58 = vld [vmem:[#allocation2 + $0x8] sm:$0xff] }
  0x17   : > { %v615_v62 = vld [vmem:[#allocation2 + $0x10] sm:$0xff] }
  0x18   : > { %1042 = vmatmul.mubr.msk.bf16.vlgmr.msra.gmra.mxu0 %vm274_vm0, %v279_v3  ;;  %v751_v3 = vld [vmem:[#allocation2 + $0x18] sm:$0xff] }
  0x19   : > { %1059 = vmatprep.mubr.msk.bf16.mxu0 %vm1174_vm1, %v1173_v0 }
  0x1a   : > { %565 = vrot.lane.b32.xlu1 %v1013_v14, %s1178_s24 }
  0x1e   : > { %563 = vrot.lane.b32.xlu1 %v1012_v15, %s1178_s24 }
  0x22   : > { %701 = vrot.lane.b32.xlu1 %v1013_v14, %s1179_s25 }
  0x26   : > { %699 = vrot.lane.b32.xlu1 %v1012_v15, %s1179_s25 }
  0x84   : > { %v427_v25 = vpop.permute.xlu1 %426 }
  0x85   : > { %v432_v28 = vsel %vm274_vm0, %v427_v25, 0 }
  0x88   : > { %v422_v26 = vpop.permute.xlu1 %421 }
  0x8c   : > { %v566_v30 = vpop.permute.xlu1 %565 }
  0x8d   : > { %v571_v32 = vsel %vm274_vm0, %v566_v30, 0 }
  0x90   : > { %v564_v31 = vpop.permute.xlu1 %563 }
  0x94   : > { %v702_v33 = vpop.permute.xlu1 %701 }
  0x95   : > { %v707_v34 = vsel %vm274_vm0, %v702_v33, 0 }
  0x98   : > { %v700_v35 = vpop.permute.xlu1 %699 }
  0xd8   : > { %v329_v7 = vpop.f32.mrf.mxu0 }
  0xd9   : > { %v335_v8 = vsel %vm287_vm3, %v329_v7, -1e+30 }
  0xda   : > { %v1043_v9 = vpop.f32.mrf.mxu0  ;;  %v337_v10 = vsel %vm274_vm0, %v335_v8, -inf }
  0xdb   : > { %338 = vmax.xlane.f32.xlu0 %v337_v10 }
  0xdc   : > { %v332_v11 = vpop.f32.mrf.mxu0 }
  0xde   : > { %v1044_v12 = vpop.f32.mrf.mxu0 }
 0x164   : > { %v339_v17 = vpop.xlane.xlu0 %338 }
 0x165   : > { %v1277_v18 = vmax.f32 %v1274_v16, %v339_v17 }
 0x167   : > { %v341_v19 = vsub.f32 %v1274_v16, %v1277_v18  ;;  %417 = vst.msk [vmem:[#allocation2] sm:$0xff] %vm265_vm2, %v1277_v18  ;;  %346 = vperm.xlu0 %1121, %v1277_v18  }
 0x169   : > { %v342_v33 = vmul.f32 1.442695, %v341_v19 }
 0x1e2   : > { %v347_v22 = vpop.permute.xlu0 %346 }
 0x1e3   : > { %v349_v23 = vsub.f32 %v335_v8, %v347_v22 }
 0x1e5   : > { %v350_v24 = vmul.f32 1.442695, %v349_v23 }
 0x1e7   : > { %1125 = vpow2.f32 %v350_v24 }
 0x1f4   : > { %v1293_v27 = vpop.eup %1125 }
 0x1f5   : > { %v367_v29 = vpack.c.bf16 %v1293_v27, %v1293_v27  ;;  %v354_v8 = vsel %vm274_vm0, %v1293_v27, 0.0 }
 0x1f7   : > { %1048 = vmatmul.mubr.msk.bf16.vlgmr.msra.gmra.mxu1 %vm274_vm0, %v367_v29 }
 0x1f8   : > { %1052 = vmatpush3.bf16.xpose.msra.mxu1 %v432_v28  ;;  %1053 = vmatprep.mubr.msk.bf16.mxu1 %vm1174_vm1, %v1173_v0 }
 0x1f9   : > { %1063 = vmatprep.subr.bf16.mxu1 %v1173_v0 }
 0x1ff   : > { %1054 = vmatmul.mubr.msk.bf16.vlgmr.msra.gmra.mxu1 %vm274_vm0, %v422_v26 }
 0x200   : > { %1064 = vmatpush3.bf16.xpose.msra.mxu1 %v571_v32  ;;  %1065 = vmatprep.mubr.msk.bf16.mxu1 %vm1174_vm1, %v1173_v0 }
 0x201   : > { %1075 = vmatprep.subr.bf16.mxu1 %v1173_v0 }
 0x207   : > { %1066 = vmatmul.mubr.msk.bf16.vlgmr.msra.gmra.mxu1 %vm274_vm0, %v564_v31 }
 0x208   : > { %1076 = vmatpush3.bf16.xpose.msra.mxu1 %v707_v34  ;;  %1077 = vmatprep.mubr.msk.bf16.mxu1 %vm1174_vm1, %v1173_v0 }
 0x20f   : > { %1078 = vmatmul.mubr.msk.bf16.vlgmr.msra.gmra.mxu1 %vm274_vm0, %v700_v35 }
 0x2b7   : > { %v1312_v36 = vpop.f32.mrf.mxu1 }
 0x2b9   : > { %v1049_v37 = vpop.f32.mrf.mxu1 }
 0x2bb   : > { %v412_v38 = vpop.f32.mrf.mxu1 }
 0x2bd   : > { %v1050_v39 = vpop.f32.mrf.mxu1 }
 0x2bf   : > { %v468_v40 = vpop.f32.mrf.mxu1 }
 0x2c0   : > { %v474_v41 = vsel %vm287_vm3, %v468_v40, -1e+30 }
 0x2c1   : > { %v1055_v42 = vpop.f32.mrf.mxu1  ;;  %v477_v43 = vsel %vm274_vm0, %v474_v41, -inf }
 0x2c2   : > { %478 = vmax.xlane.f32.xlu1 %v477_v43 }
 0x2c3   : > { %v471_v44 = vpop.f32.mrf.mxu1 }
 0x2c5   : > { %v1056_v45 = vpop.f32.mrf.mxu1 }
 0x2c7   : > { %v607_v46 = vpop.f32.mrf.mxu1 }
 0x2c8   : > { %v613_v47 = vsel %vm287_vm3, %v607_v46, -1e+30 }
 0x2c9   : > { %v1067_v48 = vpop.f32.mrf.mxu1  ;;  %v616_v49 = vsel %vm274_vm0, %v613_v47, -inf }
 0x2ca   : > { %617 = vmax.xlane.f32.xlu0 %v616_v49 }
 0x2cb   : > { %v610_v50 = vpop.f32.mrf.mxu1 }
 0x2cd   : > { %v1068_v51 = vpop.f32.mrf.mxu1 }
 0x2ce   : > { %v632_v51 = vld [vmem:[#allocation3 + $0x10] sm:$0xff] }
 0x2cf   : > { %v743_v52 = vpop.f32.mrf.mxu1 }
 0x2d0   : > { %v749_v53 = vsel %vm287_vm3, %v743_v52, -1e+30 }
 0x2d1   : > { %v1079_v54 = vpop.f32.mrf.mxu1  ;;  %v752_v55 = vsel %vm274_vm0, %v749_v53, -inf }
 0x2d2   : > { %753 = vmax.xlane.f32.xlu1 %v752_v55 }
 0x2d3   : > { %v746_v56 = vpop.f32.mrf.mxu1 }
 0x2d4   : > { %v768_v56 = vld [vmem:[#allocation3 + $0x18] sm:$0xff] }
 0x2d5   : > { %v1080_v57 = vpop.f32.mrf.mxu1 }
 0x2d6   : > { %v360_v57 = vld [vmem:[#allocation4] sm:$0xff] }
 0x34b   : > { %v479_v59 = vpop.xlane.xlu1 %478 }
 0x34c   : > { %v480_v60 = vmax.f32 %v476_v58, %v479_v59 }
 0x34e   : > { %v481_v61 = vsub.f32 %v476_v58, %v480_v60  ;;  %562 = vst.msk [vmem:[#allocation2 + $0x8] sm:$0xff] %vm265_vm2, %v480_v60  ;;  %486 = vperm.xlu1 %1122, %v480_v60  }
 0x350   : > { %v482_v35 = vmul.f32 1.442695, %v481_v61 }
 0x353   : > { %v618_v63 = vpop.xlane.xlu0 %617 }
 0x354   : > { %v619_v1 = vmax.f32 %v615_v62, %v618_v63 }
 0x356   : > { %v620_v2 = vsub.f32 %v615_v62, %v619_v1  ;;  %698 = vst.msk [vmem:[#allocation2 + $0x10] sm:$0xff] %vm265_vm2, %v619_v1  ;;  %625 = vperm.xlu0 %1121, %v619_v1  }
 0x358   : > { %v621_v39 = vmul.f32 1.442695, %v620_v2 }
 0x35b   : > { %v754_v4 = vpop.xlane.xlu1 %753 }
 0x35c   : > { %v755_v5 = vmax.f32 %v751_v3, %v754_v4 }
 0x35e   : > { %v756_v7 = vsub.f32 %v751_v3, %v755_v5  ;;  %834 = vst.msk [vmem:[#allocation2 + $0x18] sm:$0xff] %vm265_vm2, %v755_v5  ;;  %761 = vperm.xlu1 %1122, %v755_v5  }
 0x360   : > { %v757_v38 = vmul.f32 1.442695, %v756_v7 }
 0x362   : > { %512 = vrot.lane.b32.xlu1 %v1015_v6, %s1177_s23 }
 0x366   : > { %648 = vrot.lane.b32.xlu1 %v1015_v6, %s1178_s24 }
 0x36a   : > { %784 = vrot.lane.b32.xlu1 %v1015_v6, %s1179_s25  ;;  %v501_v6 = vld [vmem:[#allocation4 + $0x8] sm:$0xff] }
 0x38e   : > { %355 = vadd.xlane.f32.xlu1 %v354_v8 }
 0x3c9   : > { %v487_v9 = vpop.permute.xlu1 %486 }
 0x3ca   : > { %v489_v10 = vsub.f32 %v474_v41, %v487_v9  ;;  %v352_v41 = vld [vmem:[#allocation3] sm:$0xff] }
 0x3cc   : > { %v490_v11 = vmul.f32 1.442695, %v489_v10 }
 0x3ce   : > { %1127 = vpow2.f32 %v490_v11 }
 0x3d1   : > { %v626_v12 = vpop.permute.xlu0 %625 }
 0x3d2   : > { %v628_v13 = vsub.f32 %v613_v47, %v626_v12  ;;  %v493_v47 = vld [vmem:[#allocation3 + $0x8] sm:$0xff] }
 0x3d4   : > { %v629_v14 = vmul.f32 1.442695, %v628_v13 }
 0x3d6   : > { %1129 = vpow2.f32 %v629_v14 }
 0x3d9   : > { %v762_v15 = vpop.permute.xlu1 %761 }
 0x3da   : > { %v764_v17 = vsub.f32 %v749_v53, %v762_v15 }
 0x3db   : > { %v1128_v20 = vpop.eup %1127 }
 0x3dc   : > { %v765_v21 = vmul.f32 1.442695, %v764_v17  ;;  %v495_v22 = vsel %vm274_vm0, %v1128_v20, 0.0  ;;  %v508_v25 = vpack.c.bf16 %v1128_v20, %v1128_v20 }
 0x3dd   : > { %496 = vadd.xlane.f32.xlu0 %v495_v22  ;;  %v513_v23 = vpop.permute.xlu1 %512  ;;  %v776_v22 = vld [vmem:[#allocation4 + $0x18] sm:$0xff] }
 0x3de   : > { %1131 = vpow2.f32 %v765_v21  ;;  %v518_v24 = vsel %vm371_vm4, %v513_v23, 0 }
 0x3df   : > { %1058 = vmatpush3.bf16.msra.mxu0 %v518_v24  ;;  %1133 = vpow2.f32 %v342_v33 }
 0x3e0   : > { %1069 = vmatprep.subr.bf16.mxu0 %v1173_v0  ;;  %1135 = vpow2.f32 %v482_v35 }
 0x3e1   : > { %v649_v26 = vpop.permute.xlu1 %648  ;;  %1137 = vpow2.f32 %v757_v38 }
 0x3e2   : > { %1060 = vmatmul.mubr.msk.bf16.vlgmr.msra.gmra.mxu0 %vm274_vm0, %v508_v25  ;;  %v654_v27 = vsel %vm371_vm4, %v649_v26, 0  ;;  %1139 = vpow2.f32 %v621_v39 }
 0x3e3   : > { %v1130_v28 = vpop.eup %1129  ;;  %1070 = vmatpush3.bf16.msra.mxu0 %v654_v27  ;;  %1071 = vmatprep.mubr.msk.bf16.mxu0 %vm1174_vm1, %v1173_v0 }
 0x3e4   : > { %v634_v29 = vsel %vm274_vm0, %v1130_v28, 0.0  ;;  %1081 = vmatprep.subr.bf16.mxu0 %v1173_v0  ;;  %v647_v31 = vpack.c.bf16 %v1130_v28, %v1130_v28 }
 0x3e5   : > { %635 = vadd.xlane.f32.xlu0 %v634_v29  ;;  %v785_v30 = vpop.permute.xlu1 %784 }
 0x3e6   : > { %v790_v32 = vsel %vm371_vm4, %v785_v30, 0 }
 0x3ea   : > { %1072 = vmatmul.mubr.msk.bf16.vlgmr.msra.gmra.mxu0 %vm274_vm0, %v647_v31 }
 0x3eb   : > { %v1132_v34 = vpop.eup %1131  ;;  %1082 = vmatpush3.bf16.msra.mxu0 %v790_v32  ;;  %1083 = vmatprep.mubr.msk.bf16.mxu0 %vm1174_vm1, %v1173_v0 }
 0x3ec   : > { %v770_v37 = vsel %vm274_vm0, %v1132_v34, 0.0  ;;  %v783_v40 = vpack.c.bf16 %v1132_v34, %v1132_v34  ;;  %v1134_v16 = vpop.eup %1133 }
 0x3ed   : > { %771 = vadd.xlane.f32.xlu1 %v770_v37  ;;  %v1136_v18 = vpop.eup %1135  ;;  %v353_v42 = vmul.f32 %v1134_v16, %v352_v41 }
 0x3ee   : > { %v1138_v19 = vpop.eup %1137  ;;  %v494_v48 = vmul.f32 %v1136_v18, %v493_v47 }
 0x3ef   : > { %v1140_v0 = vpop.eup %1139  ;;  %v769_v58 = vmul.f32 %v1138_v19, %v768_v56 }
 0x3f0   : > { %v633_v52 = vmul.f32 %v1140_v0, %v632_v51 }
 0x3f2   : > { %1084 = vmatmul.mubr.msk.bf16.vlgmr.msra.gmra.mxu0 %vm274_vm0, %v783_v40 }
 0x3fb   : > { %363 = vperm.xlu0 %1121, %v1134_v16  }
 0x3fe   : > { %504 = vperm.xlu1 %1122, %v1136_v18  }
 0x3ff   : > { %779 = vperm.xlu0 %1121, %v1138_v19  }
 0x402   : > { %643 = vperm.xlu1 %1122, %v1140_v0  }
 0x417   : > { %v356_v43 = vpop.xlane.xlu1 %355 }
 0x418   : > { %v357_v44 = vadd.f32 %v356_v43, %v353_v42 }
 0x41a   : > { %359 = vst.msk [vmem:[#allocation3] sm:$0xff] %vm265_vm2, %v357_v44 }
 0x421   : > { %v839_v45 = vld [vmem:[#allocation3] sm:$0xff] }
 0x422   : > { %1141 = vrcp.f32 %v839_v45 }
 0x42f   : > { %v1142_v46 = vpop.eup %1141 }
 0x430   : > { %843 = vperm.xlu1 %1122, %v1142_v46  }
 0x466   : > { %v497_v49 = vpop.xlane.xlu0 %496 }
 0x467   : > { %v498_v50 = vadd.f32 %v497_v49, %v494_v48 }
 0x469   : > { %499 = vst.msk [vmem:[#allocation3 + $0x8] sm:$0xff] %vm265_vm2, %v498_v50 }
 0x46e   : > { %v636_v53 = vpop.xlane.xlu0 %635 }
 0x46f   : > { %v637_v54 = vadd.f32 %v636_v53, %v633_v52 }
 0x470   : > { %v848_v55 = vld [vmem:[#allocation3 + $0x8] sm:$0xff] }
 0x471   : > { %638 = vst.msk [vmem:[#allocation3 + $0x10] sm:$0xff] %vm265_vm2, %v637_v54  ;;  %1143 = vrcp.f32 %v848_v55 }
 0x476   : > { %v772_v59 = vpop.xlane.xlu1 %771  ;;  %v364_v60 = vpop.permute.xlu0 %363 }
 0x477   : > { %v773_v61 = vadd.f32 %v772_v59, %v769_v58  ;;  %v366_v62 = vmul.f32 %v364_v60, %v360_v57 }
 0x478   : > { %v857_v63 = vld [vmem:[#allocation3 + $0x10] sm:$0xff] }
 0x479   : > { %774 = vst.msk [vmem:[#allocation3 + $0x18] sm:$0xff] %vm265_vm2, %v773_v61  ;;  %v415_v1 = vadd.f32 %v1312_v36, %v366_v62  ;;  %1145 = vrcp.f32 %v857_v63  ;;  %v640_v36 = vld [vmem:[#allocation4 + $0x10] sm:$0xff] }
 0x47a   : > { %v505_v7 = vpop.permute.xlu1 %504  ;;  %v780_v23 = vpop.permute.xlu0 %779 }
 0x47b   : > { %416 = vst.msk [vmem:[#allocation4] sm:$0xff] %vm274_vm0, %v415_v1  ;;  %v507_v8 = vmul.f32 %v505_v7, %v501_v6  ;;  %v782_v26 = vmul.f32 %v780_v23, %v776_v22 }
 0x47e   : > { %v1144_v2 = vpop.eup %1143  ;;  %v644_v12 = vpop.permute.xlu1 %643 }
 0x47f   : > { %852 = vperm.xlu0 %1121, %v1144_v2   ;;  %v646_v15 = vmul.f32 %v644_v12, %v640_v36 }
 0x480   : > { %v866_v3 = vld [vmem:[#allocation3 + $0x18] sm:$0xff] }
 0x481   : > { %1147 = vrcp.f32 %v866_v3 }
 0x482   : > { %v838_v19 = vld [vmem:[#allocation4] sm:$0xff] }
 0x486   : > { %v1146_v4 = vpop.eup %1145 }
 0x487   : > { %861 = vperm.xlu1 %1122, %v1146_v4  }
 0x48e   : > { %v1148_v5 = vpop.eup %1147 }
 0x48f   : > { %870 = vperm.xlu0 %1121, %v1148_v5  }
 0x4a2   : > { %v554_v9 = vpop.f32.mrf.mxu0 }
 0x4a3   : > { %v560_v10 = vadd.f32 %v554_v9, %v507_v8 }
 0x4a4   : > { %v1061_v11 = vpop.f32.mrf.mxu0 }
 0x4a5   : > { %561 = vst.msk [vmem:[#allocation4 + $0x8] sm:$0xff] %vm274_vm0, %v560_v10 }
 0x4a6   : > { %v557_v13 = vpop.f32.mrf.mxu0 }
 0x4a8   : > { %v1062_v14 = vpop.f32.mrf.mxu0 }
 0x4aa   : > { %v690_v17 = vpop.f32.mrf.mxu0 }
 0x4ab   : > { %v696_v20 = vadd.f32 %v690_v17, %v646_v15  ;;  %v844_v35 = vpop.permute.xlu1 %843 }
 0x4ac   : > { %v1073_v21 = vpop.f32.mrf.mxu0  ;;  %v847_v33 = vld [vmem:[#allocation4 + $0x8] sm:$0xff]  ;;  %v846_v41 = vmul.f32 %v844_v35, %v838_v19 }
 0x4ad   : > { %697 = vst.msk [vmem:[#allocation4 + $0x10] sm:$0xff] %vm274_vm0, %v696_v20 }
 0x4ae   : > { %v693_v24 = vpop.f32.mrf.mxu0 }
 0x4b0   : > { %v1074_v25 = vpop.f32.mrf.mxu0 }
 0x4b2   : > { %v826_v27 = vpop.f32.mrf.mxu0 }
 0x4b3   : > { %v832_v28 = vadd.f32 %v826_v27, %v782_v26 }
 0x4b4   : > { %v1085_v29 = vpop.f32.mrf.mxu0  ;;  %v856_v38 = vld [vmem:[#allocation4 + $0x10] sm:$0xff] }
 0x4b5   : > { %833 = vst.msk [vmem:[#allocation4 + $0x18] sm:$0xff] %vm274_vm0, %v832_v28 }
 0x4b6   : > { %v829_v30 = vpop.f32.mrf.mxu0 }
 0x4b8   : > { %v1086_v31 = vpop.f32.mrf.mxu0 }
 0x4bc   : > { %v865_v16 = vld [vmem:[#allocation4 + $0x18] sm:$0xff] }
 0x4fa   : > { %v853_v32 = vpop.permute.xlu0 %852 }
 0x4fb   : > { %v855_v34 = vmul.f32 %v853_v32, %v847_v33 }
 0x4fd   : > { %875 = vrot.lane.b32.xlu1 %v855_v34, %s1180_s29 }
 0x502   : > { %v862_v37 = vpop.permute.xlu1 %861 }
 0x503   : > { %v864_v39 = vmul.f32 %v862_v37, %v856_v38 }
 0x505   : > { %879 = vrot.lane.b32.xlu0 %v864_v39, %s1181_s30 }
 0x50a   : > { %v871_v40 = vpop.permute.xlu0 %870 }
 0x50b   : > { %v873_v18 = vmul.f32 %v871_v40, %v865_v16 }
 0x50d   : > { %883 = vrot.lane.b32.xlu1 %v873_v18, %s1182_s4 }
 0x56f   : > { %v876_v0 = vpop.permute.xlu1 %875 }
 0x570   : > { %v886_v43 = vsel %vm274_vm0, %v846_v41, %v876_v0 }
 0x577   : > { %v880_v42 = vpop.permute.xlu0 %879 }
 0x578   : > { %v888_v44 = vsel %vm887_vm5, %v886_v43, %v880_v42 }
 0x57f   : > { %v884_v45 = vpop.permute.xlu1 %883 }
 0x580   : > { %v890_v46 = vsel %vm889_vm6, %v888_v44, %v884_v45 }
 0x581   : > { %v891_v47 = vpack.c.bf16 %v890_v46, %v890_v46 }
 0x583   : > { %893 = vst.msk [vmem:[%s259_s7] sm:$0xf] %vm892_vm7, %v891_v47 }
 0x584 PF: > { %s13_s14 = sadd.s32 1, %s1171_s14   ;;  %s1378_s12 = smov %s1167_s13 }
 0x585   : > { %p10_p5 = scmp.ge.s32.totalorder %s13_s14, 4   ;;  %s1379_s13 = smov %s1381_s15 }
 0x587   :  { %12 = sbr.rel (!%p10_p5) target bundleno = 2 (0x2), region = 85 }

// kernel: vlm_forward.53
= control target key start
LH: loop header
LB: loop body
LE: loop exit
PB: predicated region body
PF: predicated region fallthrough
CT: control target
= control target key end

     0   :  { %vm19_vm0 = vcmask 261120   ;;  %v148_v0 = vmov 0.0   ;;  %vm149_vm1 = vmmov 0   ;;  %v103_v4 = vlaneseq  ;;  %s193_s1 = inlined_call_operand.vmem [shape: bf16[32,32], index: 1, kind: input, shape index: {}]   ;;  %s194_s0 = inlined_call_operand.vmem [shape: bf16[16,32], index: 0, kind: input, shape index: {}]   ;;  %s195_s2 = inlined_call_operand.vmem [shape: bf16[1,32], index: 2, kind: input, shape index: {}]   ;;  %s196_s3 = inlined_call_operand.vmem [shape: bf16[16,32], index: 3, kind: output, shape index: {}]  }
   0x1   :  { %135 = vmatprep.subr.bf16.mxu0 %v148_v0  ;;  %v145_v1 = vld [vmem:[%s193_s1 + $0x8] sm:$0xff]   ;;  %139 = vmatprep.mubr.msk.bf16.mxu0 %vm149_vm1, %v148_v0  ;;  %20 = vst.msk [vmem:[#allocation2] sm:$0xff] %vm19_vm0, %v148_v0  ;;  %21 = vst.msk [vmem:[#allocation2 + $0x8] sm:$0xff] %vm19_vm0, %v148_v0  ;;  %v146_v2 = vld [vmem:[%s193_s1] sm:$0xff]   ;;  %vm117_vm2 = vcmask 257024  }
   0x2   :  { %136 = vmatpush3.bf16.msra.mxu0 %v145_v1  ;;  %v147_v3 = vld [vmem:[%s194_s0] sm:$0xff]   ;;  %v104_v6 = vshrl.u32 %v103_v4, 7 }
   0x3   :  { %137 = vmatprep.subr.bf16.mxu0 %v148_v0  ;;  %v101_v8 = vld [vmem:[%s195_s2] sm:$0x1] }
   0x4   :  { %v102_v12 = vunpack.c.l.bf16 %v101_v8  ;;  %v105_v13 = vsub.s32 0, %v104_v6 }
   0x6   :  { %138 = vmatpush3.bf16.msra.mxu0 %v146_v2  ;;  %v106_v17 = vrot.slane %v102_v12, %v105_v13 }
   0x8   :  { %v24_v5 = vld [vmem:[#allocation2] sm:$0xff]  ;;  %v25_v11 = vld [vmem:[#allocation2 + $0x8] sm:$0xff] }
   0x9   :  { %140 = vmatmul.mubr.msk.bf16.vlgmr.msra.gmra.mxu0 %vm19_vm0, %v147_v3 }
  0xc9   :  { %v85_v7 = vpop.f32.mrf.mxu0 }
  0xca   :  { %v92_v9 = vadd.f32 %v85_v7, %v24_v5 }
  0xcb   :  { %v141_v10 = vpop.f32.mrf.mxu0 }
  0xcc   :  { %94 = vst.msk [vmem:[#allocation2] sm:$0xff] %vm19_vm0, %v92_v9 }
  0xcd   :  { %v88_v14 = vpop.f32.mrf.mxu0 }
  0xce   :  { %v93_v15 = vadd.f32 %v88_v14, %v25_v11 }
  0xcf   :  { %v142_v16 = vpop.f32.mrf.mxu0 }
  0xd0   :  { %95 = vst.msk [vmem:[#allocation2 + $0x8] sm:$0xff] %vm19_vm0, %v93_v15 }
  0xd3   :  { %v99_v18 = vld [vmem:[#allocation2] sm:$0xff] }
  0xd4   :  { %v107_v19 = vadd.f32 %v106_v17, %v99_v18 }
  0xd6   :  { %v130_v20 = vpack.c.bf16 %v107_v19, %v107_v19 }
  0xd7   :  { %v100_v21 = vld [vmem:[#allocation2 + $0x8] sm:$0xff] }
  0xd8   :  { %118 = vst.msk [vmem:[%s196_s3] sm:$0xf] %vm117_vm2, %v130_v20  ;;  %v108_v22 = vadd.f32 %v106_v17, %v100_v21 }
  0xda   :  { %v131_v23 = vpack.c.bf16 %v108_v22, %v108_v22 }
  0xdc   :  { %119 = vst.msk [vmem:[%s196_s3 + $0x4] sm:$0xf] %vm117_vm2, %v131_v23 }

// kernel: vlm_forward.58
= control target key start
LH: loop header
LB: loop body
LE: loop exit
PB: predicated region body
PF: predicated region fallthrough
CT: control target
= control target key end

     0   :  { %s847_s12 = smov 0   ;;  %s849_s13 = smov 0   ;;  %s930_s0 = inlined_call_operand.vmem [shape: bf16[16,32], index: 0, kind: input, shape index: {}]   ;;  %s931_s1 = inlined_call_operand.vmem [shape: bf16[32,2048], index: 1, kind: input, shape index: {}]   ;;  %s932_s2 = inlined_call_operand.vmem [shape: bf16[1,2048], index: 2, kind: input, shape index: {}]   ;;  %s933_s3 = inlined_call_operand.vmem [shape: bf16[16,2048], index: 3, kind: output, shape index: {}]  }
   0x1   :  { %s851_s14 = smov 0   ;;  %s853_s15 = smov 0  }
   0x2   :  { %s855_s16 = smov 0  }
   0x3 LB: > { %s28_s17 = sadd.s32 1, %s820_s15  ;;  %s694_s18 = sadd.s32 4294967295, %s824_s16   ;;  %s824_s16 = sphi %s855_s16, %s13_s16   ;;  %s820_s15 = sphi %s853_s15, %s938_s15   ;;  %s816_s14 = sphi %s851_s14, %s937_s14   ;;  %s812_s13 = sphi %s849_s13, %s936_s13   ;;  %s808_s12 = sphi %s847_s12, %s935_s12  }
   0x4   : > { %p30_p0 = scmp.ge.s32.totalorder %s28_s17, 4  ;;  %p76_p1 = scmp.ne.s32.totalorder %s812_s13, %s808_s12 }
   0x5   : > { %p77_p2 = scmp.eq.s32.totalorder %s824_s16, 0  ;;  %p134_p4 = scmp.eq.s32.totalorder %s694_s18, 3 }
   0x6   : > { %s940_s17 = smov (%p30_p0, %s28_s17), 0  ;;  %s69_s20 = sadd.s32 1, %s812_s13 }
   0x7   : > { %p78_p3 = por %p77_p2, %p76_p1  ;;  %s65_s19 = ssub.s32 %s820_s15, %s940_s17 }
   0x8   : > { %p67_p5 = scmp.eq.s32.totalorder %s65_s19, 0  ;;  %p882_p6 = por %p134_p4, %p76_p1 }
   0x9   : > { %p698_p7 = scmp.ge.s32.totalorder %s824_s16, 4 }
   0xa   : > { %s887_s22 = scalar_select %p67_p5, %s812_s13, %s69_s20  }
   0xb   : > { %168 = sbr.rel (%p698_p7) target bundleno = 24 (0x18), region = 20 }
  0x10   : > { %171 = sbr.rel (!%p78_p3) target bundleno = 24 (0x18), region = 24  ;;  %s173_s23 = sand.u32 (%p78_p3), 1, %s812_s13  }
  0x11   : > { %s726_s24 = sshll.u32 (%p78_p3), %s820_s15, 4  ;;  %s699_s25 = sshll.u32 (%p78_p3), %s173_s23, 6 }
  0x12   : > { %s181_s28 = scalar_lea.vmem (%p78_p3), %s931_s1, %s726_s24  ;;  %s175_s29 = scalar_lea.vmem (%p78_p3), [#allocation3], %s699_s25 }
  0x13   : > { %v194_v0 = vld [vmem:[%s181_s28] sm:$0xff] (%p78_p3)  ;;  %v196_v1 = vld [vmem:[%s181_s28 + $0x8] sm:$0xff] (%p78_p3) }
  0x14   : > { %v198_v2 = vld [vmem:[%s181_s28 + $0x40] sm:$0xff] (%p78_p3)  ;;  %195 = vst [vmem:[%s175_s29] sm:$0xff] (%p78_p3), %v194_v0  ;;  %197 = vst [vmem:[%s175_s29 + $0x8] sm:$0xff] (%p78_p3), %v196_v1  ;;  %v200_v3 = vld [vmem:[%s181_s28 + $0x48] sm:$0xff] (%p78_p3) }
  0x15   : > { %199 = vst [vmem:[%s175_s29 + $0x10] sm:$0xff] %v198_v2  ;;  %v202_v4 = vld [vmem:[%s181_s28 + $0x80] sm:$0xff]  ;;  %v204_v5 = vld [vmem:[%s181_s28 + $0x88] sm:$0xff]  ;;  %201 = vst [vmem:[%s175_s29 + $0x18] sm:$0xff] %v200_v3 }
  0x16   : > { %203 = vst [vmem:[%s175_s29 + $0x20] sm:$0xff] %v202_v4  ;;  %205 = vst [vmem:[%s175_s29 + $0x28] sm:$0xff] %v204_v5  ;;  %v206_v6 = vld [vmem:[%s181_s28 + $0xc0] sm:$0xff]  ;;  %v208_v7 = vld [vmem:[%s181_s28 + $0xc8] sm:$0xff] }
  0x17   : > { %207 = vst [vmem:[%s175_s29 + $0x30] sm:$0xff] %v206_v6  ;;  %209 = vst [vmem:[%s175_s29 + $0x38] sm:$0xff] %v208_v7 }
  0x18 PF: > { %p702_p8 = scmp.ge.s32.totalorder %s824_s16, 1  ;;  %p222_p9 = scmp.lt.s32.totalorder %s824_s16, 5 }
  0x1a   : > { %p223_p10 = pnand %p702_p8, %p222_p9 }
  0x1b   : > { %s229_s30 = sand.u32 (!%p223_p10), 1, %s808_s12   ;;  %s705_s8 = sshll.u32 (!%p223_p10), %s816_s14, 2 }
  0x1c   : > { %226 = sbr.rel (%p223_p10) target bundleno = 257 (0x101), region = 51  ;;  %s703_s4 = sshll.u32 (!%p223_p10), %s229_s30, 6 }
  0x1d   : > { %s231_s5 = scalar_lea.vmem (!%p223_p10), [#allocation3], %s703_s4  ;;  %p275_p11 = scmp.lt.s32.totalorder (!%p223_p10), %s705_s8, 15 }
  0x1e   : > { %s704_s18 = sshll.u32 (!%p223_p10), %s229_s30, 5 }
  0x1f   : > { %s262_s19 = scalar_lea.vmem (!%p223_p10), [#allocation4], %s704_s18 }
  0x21   : > { %v826_v8 = vmov 0   ;;  %v773_v9 = vld [vmem:[%s231_s5 + $0x24] ss:$16 sps:$4 sm:$0xff]   ;;  %v775_v10 = vld [vmem:[%s231_s5 + $0x2c] ss:$16 sps:$4 sm:$0xff]   ;;  %vm357_vm0 = vcmask 261120   ;;  %v477_v18 = vlaneseq }
  0x22   : > { %393 = vmatprep.mubr.bf16.mxu0 %v826_v8  ;;  %436 = vmatprep.mubr.bf16.mxu1 %v826_v8  ;;  %v777_v11 = vld [vmem:[%s231_s5 + $0x20] ss:$16 sps:$4 sm:$0xff]   ;;  %v778_v12 = vld [vmem:[%s231_s5 + $0x28] ss:$16 sps:$4 sm:$0xff]   ;;  %v779_v13 = vld [vmem:[%s231_s5 + $0x4] ss:$16 sps:$4 sm:$0xff]  }
  0x23   : > { %373 = vmatprep.subr.bf16.mxu0 %v773_v9  ;;  %416 = vmatprep.subr.bf16.mxu1 %v775_v10  ;;  %v781_v14 = vld [vmem:[%s231_s5 + $0xc] ss:$16 sps:$4 sm:$0xff]   ;;  %v783_v15 = vld [vmem:[%s231_s5] ss:$16 sps:$4 sm:$0xff]   ;;  %v784_v16 = vld [vmem:[%s231_s5 + $0x8] ss:$16 sps:$4 sm:$0xff]  }
  0x24   : > { %374 = vmatpush1.bf16.msra.mxu0 %v777_v11  ;;  %417 = vmatpush1.bf16.msra.mxu1 %v778_v12  ;;  %v785_v17 = vld [vmem:[%s930_s0] sm:$0xff]   ;;  %s942_s8 = smov (!%p275_p11, %s705_s8), 15  ;;  %v478_v19 = vshrl.u32 %v477_v18, 7  ;;  %s731_s12 = sshll.u32 (%p882_p6), %s816_s14, 4 }
  0x25   : > { %375 = vmatprep.subr.bf16.mxu0 %v779_v13  ;;  %418 = vmatprep.subr.bf16.mxu1 %v781_v14  ;;  %s277_s11 = scalar_lea.vmem %s932_s2, %s942_s8  ;;  %s569_s24 = scalar_lea.vmem (%p882_p6), %s933_s3, %s731_s12 }
  0x26   : > { %v474_v20 = vld [vmem:[%s277_s11] sm:$0xf]  ;;  %v479_v22 = vsub.s32 0, %v478_v19  ;;  %v487_v23 = vsub.s32 4, %v478_v19  ;;  %v483_v24 = vsub.s32 2, %v478_v19  ;;  %v491_v25 = vsub.s32 6, %v478_v19 }
  0x27   : > { %v475_v21 = vunpack.c.l.bf16 %v474_v20 }
  0x28   : > { %376 = vmatpush1.bf16.msra.mxu0 %v783_v15  ;;  %419 = vmatpush1.bf16.msra.mxu1 %v784_v16 }
  0x29   : > { %v480_v26 = vrot.slane %v475_v21, %v479_v22  ;;  %v488_v27 = vrot.slane %v475_v21, %v487_v23  ;;  %v484_v28 = vrot.slane %v475_v21, %v483_v24  ;;  %v492_v29 = vrot.slane %v475_v21, %v491_v25 }
  0x2b   : > { %715 = vmatmul.mubr.msk.bf16.vlgmr.msra.gmra.mxu0 %vm357_vm0, %v785_v17  ;;  %716 = vmatmul.mubr.msk.bf16.vlgmr.msra.gmra.mxu1 %vm357_vm0, %v785_v17  ;;  %v500_v30 = vrot.slane %v480_v26, %v479_v22  ;;  %v508_v31 = vrot.slane %v488_v27, %v479_v22  ;;  %v504_v32 = vrot.slane %v484_v28, %v479_v22 }
  0x2c   : > { %v512_v33 = vrot.slane %v492_v29, %v479_v22 }
  0xeb   : > { %v395_v34 = vpop.f32.mrf.mxu0  ;;  %v438_v35 = vpop.f32.mrf.mxu1 }
  0xec   : > { %v513_v36 = vadd.f32 %v500_v30, %v395_v34  ;;  %v515_v37 = vadd.f32 %v508_v31, %v438_v35 }
  0xed   : > { %v397_v38 = vpop.f32.mrf.mxu0  ;;  %v440_v39 = vpop.f32.mrf.mxu1 }
  0xee   : > { %v514_v40 = vadd.f32 %v504_v32, %v397_v38  ;;  %v516_v41 = vadd.f32 %v512_v33, %v440_v39  ;;  %v521_v44 = vmax.f32 %v513_v36, 0.0  ;;  %v523_v45 = vmax.f32 %v515_v37, 0.0 }
  0xef   : > { %v399_v42 = vpop.f32.mrf.mxu0  ;;  %v442_v43 = vpop.f32.mrf.mxu1 }
  0xf0   : > { %v522_v46 = vmax.f32 %v514_v40, 0.0  ;;  %v524_v47 = vmax.f32 %v516_v41, 0.0  ;;  %v517_v48 = vadd.f32 %v500_v30, %v399_v42  ;;  %v519_v49 = vadd.f32 %v508_v31, %v442_v43 }
  0xf1   : > { %v401_v50 = vpop.f32.mrf.mxu0  ;;  %v444_v51 = vpop.f32.mrf.mxu1 }
  0xf2   : > { %v727_v52 = vpack.c.bf16 %v522_v46, %v521_v44  ;;  %v728_v53 = vpack.c.bf16 %v524_v47, %v523_v45  ;;  %v518_v54 = vadd.f32 %v504_v32, %v401_v50  ;;  %v520_v55 = vadd.f32 %v512_v33, %v444_v51 }
  0xf3   : > { %v525_v56 = vmax.f32 %v517_v48, 0.0  ;;  %v527_v57 = vmax.f32 %v519_v49, 0.0 }
  0xf4   : > { %553 = vst [vmem:[%s262_s19] sm:$0xff] %v727_v52  ;;  %554 = vst [vmem:[%s262_s19 + $0x8] sm:$0xff] %v728_v53  ;;  %v526_v58 = vmax.f32 %v518_v54, 0.0  ;;  %v528_v59 = vmax.f32 %v520_v55, 0.0  ;;  %563 = sbr.rel (!%p882_p6) target bundleno = 257 (0x101), region = 67 }
  0xf6   : > { %v729_v60 = vpack.c.bf16 %v526_v58, %v525_v56  ;;  %v730_v61 = vpack.c.bf16 %v528_v59, %v527_v57 }
  0xf8   : > { %555 = vst [vmem:[%s262_s19 + $0x10] sm:$0xff] %v729_v60  ;;  %556 = vst [vmem:[%s262_s19 + $0x18] sm:$0xff] %v730_v61 }
  0xfb   : > { %v582_v62 = vld [vmem:[%s262_s19] sm:$0xff]  ;;  %v584_v63 = vld [vmem:[%s262_s19 + $0x8] sm:$0xff] }
  0xfc   : > { %583 = vst [vmem:[%s569_s24] sm:$0xff] %v582_v62  ;;  %585 = vst [vmem:[%s569_s24 + $0x8] sm:$0xff] %v584_v63 }
  0xff   : > { %v586_v0 = vld [vmem:[%s262_s19 + $0x10] sm:$0xff]  ;;  %v588_v1 = vld [vmem:[%s262_s19 + $0x18] sm:$0xff] }
 0x100   : > { %587 = vst [vmem:[%s569_s24 + $0x40] sm:$0xff] %v586_v0  ;;  %589 = vst [vmem:[%s569_s24 + $0x48] sm:$0xff] %v588_v1 }
 0x101 PF: > { %s13_s16 = sadd.s32 1, %s824_s16   ;;  %s935_s12 = smov %s812_s13 }
 0x102   : > { %p10_p12 = scmp.ge.s32.totalorder %s13_s16, 6   ;;  %s936_s13 = smov %s887_s22 }
 0x103   : > { %s937_s14 = smov %s820_s15  ;;  %s938_s15 = smov %s940_s17 }
 0x104   :  { %12 = sbr.rel (!%p10_p12) target bundleno = 3 (0x3), region = 127 }

// kernel: vlm_forward.55
= control target key start
LH: loop header
LB: loop body
LE: loop exit
PB: predicated region body
PF: predicated region fallthrough
CT: control target
= control target key end

     0   :  { %s1212_s12 = smov 0   ;;  %s1214_s13 = smov 0   ;;  %s1392_s0 = inlined_call_operand.vmem [shape: bf16[2,8,32], index: 0, kind: input, shape index: {}]   ;;  %s1393_s1 = inlined_call_operand.vmem [shape: bf16[2,4,32], index: 1, kind: input, shape index: {}]   ;;  %s1394_s2 = inlined_call_operand.vmem [shape: bf16[2,4,32], index: 2, kind: input, shape index: {}]   ;;  %s1395_s3 = inlined_call_operand.vmem [shape: bf16[2,8,32], index: 3, kind: output, shape index: {}]  }
   0x1   :  { %s1216_s14 = smov 0  }
   0x2 LB: > { %s32_s15 = sadd.s32 1, %s1175_s13  ;;  %p1016_p0 = scmp.ge.s32.totalorder %s1179_s14, 1  ;;  %s1179_s14 = sphi %s1216_s14, %s13_s14   ;;  %s1175_s13 = sphi %s1214_s13, %s1397_s13   ;;  %s1171_s12 = sphi %s1212_s12, %s1396_s12  }
   0x3   : > { %p34_p1 = scmp.ge.s32.totalorder %s32_s15, 2  ;;  %p190_p2 = scmp.lt.s32.totalorder %s1179_s14, 3 }
   0x5   : > { %s1399_s15 = smov (%p34_p1, %s32_s15), 0  ;;  %p191_p3 = pnand %p1016_p0, %p190_p2 }
   0x6   : > { %p232_p4 = scmp.lt.s32.totalorder (!%p191_p3), %s1171_s12, 1  ;;  %s1186_s24 = smov (!%p191_p3), 120  }
   0x7   : > { %194 = sbr.rel (%p191_p3) target bundleno = 1412 (0x584), region = 32  ;;  %s1187_s25 = smov (!%p191_p3), 112  }
   0x8   : > { %s1188_s26 = smov (!%p191_p3), 104   ;;  %s1189_s30 = smov (!%p191_p3), 8  }
   0x9   : > { %s1190_s4 = smov (!%p191_p3), 16   ;;  %s1191_s5 = smov (!%p191_p3), 24  }
   0xc   : > { %vm274_vm0 = vcmask 64512   ;;  %v1181_v0 = vmov 0.0   ;;  %s1401_s12 = smov (!%p232_p4, %s1171_s12), 1  ;;  %vm1182_vm1 = vmmov 0   ;;  %vm265_vm2 = vcmask 7168  }
   0xd   : > { %1048 = vmatprep.subr.bf16.mxu0 %v1181_v0  ;;  %275 = vst.msk [vmem:[#allocation4] sm:$0xff] %vm274_vm0, %v1181_v0  ;;  %276 = vst.msk [vmem:[#allocation4 + $0x8] sm:$0xff] %vm274_vm0, %v1181_v0  ;;  %1054 = vmatprep.subr.bf16.mxu1 %v1181_v0  ;;  %s1018_s16 = sshll.u32 %s1401_s12, 1  ;;  %s1017_s20 = sshll.u32 %s1401_s12, 2  ;;  %v1183_v4 = vmov -1e+30   ;;  %v283_v5 = vlaneseq }
   0xe   : > { %277 = vst.msk [vmem:[#allocation4 + $0x10] sm:$0xff] %vm274_vm0, %v1181_v0  ;;  %278 = vst.msk [vmem:[#allocation4 + $0x18] sm:$0xff] %vm274_vm0, %v1181_v0  ;;  %1050 = vmatprep.mubr.msk.bf16.mxu0 %vm1182_vm1, %v1181_v0  ;;  %1056 = vmatprep.mubr.msk.bf16.mxu1 %vm1182_vm1, %v1181_v0  ;;  %s245_s19 = scalar_lea.vmem %s1393_s1, %s1018_s16  ;;  %s238_s23 = scalar_lea.vmem %s1392_s0, %s1017_s20  ;;  %vm337_vm4 = vcmask 31744   ;;  %v1184_v11 = vmov 1983009808   ;;  %v1185_v18 = vmov 0  }
   0xf   : > { %v280_v1 = vld [vmem:[%s245_s19] sm:$0x3]  ;;  %266 = vst.msk [vmem:[#allocation2] sm:$0xff] %vm265_vm2, %v1183_v4  ;;  %267 = vst.msk [vmem:[#allocation2 + $0x8] sm:$0xff] %vm265_vm2, %v1183_v4  ;;  %v1275_v6 = vand.u32 127, %v283_v5  ;;  %v426_v12 = vunpack.c.l.s4 %v1184_v11  ;;  %v429_v16 = vshrl.u32 %v283_v5, 7  ;;  %1131 = vset.pattern.permute.xlu0 %v1185_v18  ;;  %1132 = vset.pattern.permute.xlu1 %v1185_v18  ;;  %s252_s29 = scalar_lea.vmem %s1394_s2, %s1018_s16  ;;  %s259_s8 = scalar_lea.vmem %s1395_s3, %s1017_s20 }
  0x10   : > { %v293_v2 = vsel %vm274_vm0, %v280_v1, 0  ;;  %v279_v3 = vld [vmem:[%s238_s23] sm:$0xf]  ;;  %268 = vst.msk [vmem:[#allocation2 + $0x10] sm:$0xff] %vm265_vm2, %v1183_v4  ;;  %269 = vst.msk [vmem:[#allocation2 + $0x18] sm:$0xff] %vm265_vm2, %v1183_v4  ;;  %vm372_vm5 = vcmask 1041408  }
  0x11   : > { %1049 = vmatpush3.bf16.xpose.msra.mxu0 %v293_v2  ;;  %270 = vst.msk [vmem:[#allocation3] sm:$0xff] %vm265_vm2, %v1181_v0  ;;  %271 = vst.msk [vmem:[#allocation3 + $0x8] sm:$0xff] %vm265_vm2, %v1181_v0  ;;  %vm287_vm3 = vcmp.lt.s32.totalorder %v1275_v6, 4  ;;  %v427_v15 = vunpack.c.0.s8 %v426_v12  ;;  %v1023_v20 = vcombine.low %v279_v3, %v279_v3  ;;  %v1305_v25 = vld [vmem:[%s252_s29] sm:$0x3]  ;;  %vm898_vm6 = vcmask 130048  }
  0x12   : > { %1066 = vmatprep.subr.bf16.mxu0 %v1181_v0  ;;  %272 = vst.msk [vmem:[#allocation3 + $0x10] sm:$0xff] %vm265_vm2, %v1181_v0  ;;  %273 = vst.msk [vmem:[#allocation3 + $0x18] sm:$0xff] %vm265_vm2, %v1181_v0  ;;  %v374_v26 = vsel %vm372_vm5, %v1305_v25, 0  ;;  %vm900_vm7 = vcmask 195584   ;;  %vm903_vm8 = vcmask 257024  }
  0x13   : > { %v1281_v17 = vsub.s32 %v427_v15, %v429_v16  ;;  %1055 = vmatpush3.bf16.msra.mxu1 %v374_v26 }
  0x14   : > { %1060 = vmatprep.subr.bf16.mxu1 %v1181_v0 }
  0x15   : > { %v431_v19 = vrot.slane %v280_v1, %v1281_v17  ;;  %v522_v11 = vrot.slane %v1305_v25, %v1281_v17 }
  0x16   : > { %v1290_v21 = vld [vmem:[#allocation2] sm:$0xff]  ;;  %v482_v63 = vld [vmem:[#allocation2 + $0x8] sm:$0xff] }
  0x17   : > { %432 = vrot.lane.b32.xlu1 %v431_v19, %s1186_s24  ;;  %v626_v4 = vld [vmem:[#allocation2 + $0x10] sm:$0xff]  ;;  %v762_v6 = vld [vmem:[#allocation2 + $0x18] sm:$0xff] }
  0x18   : > { %1051 = vmatmul.mubr.msk.bf16.vlgmr.msra.gmra.mxu0 %vm274_vm0, %v279_v3 }
  0x19   : > { %1068 = vmatprep.mubr.msk.bf16.mxu0 %vm1182_vm1, %v1181_v0 }
  0x1b   : > { %422 = vrot.lane.b32.xlu1 %v1023_v20, %s1186_s24 }
  0x1f   : > { %576 = vrot.lane.b32.xlu1 %v431_v19, %s1187_s25 }
  0x23   : > { %574 = vrot.lane.b32.xlu1 %v1023_v20, %s1187_s25 }
  0x27   : > { %712 = vrot.lane.b32.xlu1 %v431_v19, %s1188_s26 }
  0x2b   : > { %710 = vrot.lane.b32.xlu1 %v1023_v20, %s1188_s26 }
  0x89   : > { %v433_v30 = vpop.permute.xlu1 %432 }
  0x8a   : > { %v438_v33 = vsel %vm274_vm0, %v433_v30, 0 }
  0x8d   : > { %v423_v31 = vpop.permute.xlu1 %422 }
  0x91   : > { %v577_v35 = vpop.permute.xlu1 %576 }
  0x92   : > { %v582_v37 = vsel %vm274_vm0, %v577_v35, 0 }
  0x95   : > { %v575_v36 = vpop.permute.xlu1 %574 }
  0x99   : > { %v713_v38 = vpop.permute.xlu1 %712 }
  0x9a   : > { %v718_v39 = vsel %vm274_vm0, %v713_v38, 0 }
  0x9d   : > { %v711_v40 = vpop.permute.xlu1 %710 }
  0xd8   : > { %v329_v7 = vpop.f32.mrf.mxu0 }
  0xd9   : > { %v335_v8 = vsel %vm287_vm3, %v329_v7, -1e+30 }
  0xda   : > { %v1052_v9 = vpop.f32.mrf.mxu0  ;;  %v338_v10 = vsel %vm337_vm4, %v335_v8, -inf }
  0xdb   : > { %339 = vmax.xlane.f32.xlu0 %v338_v10 }
  0xdc   : > { %v332_v13 = vpop.f32.mrf.mxu0 }
  0xde   : > { %v1053_v14 = vpop.f32.mrf.mxu0 }
 0x164   : > { %v340_v22 = vpop.xlane.xlu0 %339 }
 0x165   : > { %v1293_v23 = vmax.f32 %v1290_v21, %v340_v22 }
 0x167   : > { %v342_v24 = vsub.f32 %v1290_v21, %v1293_v23  ;;  %418 = vst.msk [vmem:[#allocation2] sm:$0xff] %vm265_vm2, %v1293_v23  ;;  %347 = vperm.xlu0 %1131, %v1293_v23  }
 0x169   : > { %v343_v38 = vmul.f32 1.442695, %v342_v24 }
 0x1e2   : > { %v348_v27 = vpop.permute.xlu0 %347 }
 0x1e3   : > { %v350_v28 = vsub.f32 %v335_v8, %v348_v27 }
 0x1e5   : > { %v351_v29 = vmul.f32 1.442695, %v350_v28 }
 0x1e7   : > { %1133 = vpow2.f32 %v351_v29 }
 0x1f4   : > { %v1310_v32 = vpop.eup %1133 }
 0x1f5   : > { %v368_v34 = vpack.c.bf16 %v1310_v32, %v1310_v32  ;;  %v355_v13 = vsel %vm337_vm4, %v1310_v32, 0.0 }
 0x1f7   : > { %1057 = vmatmul.mubr.msk.bf16.vlgmr.msra.gmra.mxu1 %vm337_vm4, %v368_v34 }
 0x1f8   : > { %1061 = vmatpush3.bf16.xpose.msra.mxu1 %v438_v33  ;;  %1062 = vmatprep.mubr.msk.bf16.mxu1 %vm1182_vm1, %v1181_v0 }
 0x1f9   : > { %1072 = vmatprep.subr.bf16.mxu1 %v1181_v0 }
 0x1ff   : > { %1063 = vmatmul.mubr.msk.bf16.vlgmr.msra.gmra.mxu1 %vm274_vm0, %v423_v31 }
 0x200   : > { %1073 = vmatpush3.bf16.xpose.msra.mxu1 %v582_v37  ;;  %1074 = vmatprep.mubr.msk.bf16.mxu1 %vm1182_vm1, %v1181_v0 }
 0x201   : > { %1084 = vmatprep.subr.bf16.mxu1 %v1181_v0 }
 0x207   : > { %1075 = vmatmul.mubr.msk.bf16.vlgmr.msra.gmra.mxu1 %vm274_vm0, %v575_v36 }
 0x208   : > { %1085 = vmatpush3.bf16.xpose.msra.mxu1 %v718_v39  ;;  %1086 = vmatprep.mubr.msk.bf16.mxu1 %vm1182_vm1, %v1181_v0 }
 0x20f   : > { %1087 = vmatmul.mubr.msk.bf16.vlgmr.msra.gmra.mxu1 %vm274_vm0, %v711_v40 }
 0x2b7   : > { %v1329_v41 = vpop.f32.mrf.mxu1 }
 0x2b9   : > { %v1058_v42 = vpop.f32.mrf.mxu1 }
 0x2bb   : > { %v413_v43 = vpop.f32.mrf.mxu1 }
 0x2bd   : > { %v1059_v44 = vpop.f32.mrf.mxu1 }
 0x2bf   : > { %v474_v45 = vpop.f32.mrf.mxu1 }
 0x2c0   : > { %v480_v46 = vsel %vm287_vm3, %v474_v45, -1e+30 }
 0x2c1   : > { %v1064_v47 = vpop.f32.mrf.mxu1  ;;  %v483_v48 = vsel %vm337_vm4, %v480_v46, -inf }
 0x2c2   : > { %484 = vmax.xlane.f32.xlu1 %v483_v48 }
 0x2c3   : > { %v477_v49 = vpop.f32.mrf.mxu1 }
 0x2c5   : > { %v1065_v50 = vpop.f32.mrf.mxu1 }
 0x2c7   : > { %v618_v51 = vpop.f32.mrf.mxu1 }
 0x2c8   : > { %v624_v52 = vsel %vm287_vm3, %v618_v51, -1e+30 }
 0x2c9   : > { %v1076_v53 = vpop.f32.mrf.mxu1  ;;  %v627_v54 = vsel %vm337_vm4, %v624_v52, -inf }
 0x2ca   : > { %628 = vmax.xlane.f32.xlu0 %v627_v54 }
 0x2cb   : > { %v621_v55 = vpop.f32.mrf.mxu1 }
 0x2cd   : > { %v1077_v56 = vpop.f32.mrf.mxu1 }
 0x2ce   : > { %v643_v56 = vld [vmem:[#allocation3 + $0x10] sm:$0xff] }
 0x2cf   : > { %v754_v57 = vpop.f32.mrf.mxu1 }
 0x2d0   : > { %v760_v58 = vsel %vm287_vm3, %v754_v57, -1e+30 }
 0x2d1   : > { %v1088_v59 = vpop.f32.mrf.mxu1  ;;  %v763_v60 = vsel %vm337_vm4, %v760_v58, -inf }
 0x2d2   : > { %764 = vmax.xlane.f32.xlu1 %v763_v60 }
 0x2d3   : > { %v757_v61 = vpop.f32.mrf.mxu1 }
 0x2d4   : > { %v779_v61 = vld [vmem:[#allocation3 + $0x18] sm:$0xff] }
 0x2d5   : > { %v1089_v62 = vpop.f32.mrf.mxu1 }
 0x2d6   : > { %v361_v62 = vld [vmem:[#allocation4] sm:$0xff] }
 0x34b   : > { %v485_v1 = vpop.xlane.xlu1 %484 }
 0x34c   : > { %v486_v2 = vmax.f32 %v482_v63, %v485_v1 }
 0x34e   : > { %v487_v3 = vsub.f32 %v482_v63, %v486_v2  ;;  %573 = vst.msk [vmem:[#allocation2 + $0x8] sm:$0xff] %vm265_vm2, %v486_v2  ;;  %492 = vperm.xlu1 %1132, %v486_v2  }
 0x350   : > { %v488_v40 = vmul.f32 1.442695, %v487_v3 }
 0x353   : > { %v629_v5 = vpop.xlane.xlu0 %628 }
 0x354   : > { %v630_v7 = vmax.f32 %v626_v4, %v629_v5 }
 0x356   : > { %v631_v8 = vsub.f32 %v626_v4, %v630_v7  ;;  %709 = vst.msk [vmem:[#allocation2 + $0x10] sm:$0xff] %vm265_vm2, %v630_v7  ;;  %636 = vperm.xlu0 %1131, %v630_v7  }
 0x358   : > { %v632_v44 = vmul.f32 1.442695, %v631_v8 }
 0x35b   : > { %v765_v9 = vpop.xlane.xlu1 %764 }
 0x35c   : > { %v766_v10 = vmax.f32 %v762_v6, %v765_v9 }
 0x35e   : > { %v767_v12 = vsub.f32 %v762_v6, %v766_v10  ;;  %845 = vst.msk [vmem:[#allocation2 + $0x18] sm:$0xff] %vm265_vm2, %v766_v10  ;;  %772 = vperm.xlu1 %1132, %v766_v10  }
 0x360   : > { %v768_v43 = vmul.f32 1.442695, %v767_v12 }
 0x362   : > { %523 = vrot.lane.b32.xlu1 %v522_v11, %s1186_s24 }
 0x366   : > { %659 = vrot.lane.b32.xlu1 %v522_v11, %s1187_s25 }
 0x36a   : > { %795 = vrot.lane.b32.xlu1 %v522_v11, %s1188_s26  ;;  %v507_v11 = vld [vmem:[#allocation4 + $0x8] sm:$0xff] }
 0x38e   : > { %356 = vadd.xlane.f32.xlu1 %v355_v13 }
 0x3c9   : > { %v493_v14 = vpop.permute.xlu1 %492 }
 0x3ca   : > { %v495_v15 = vsub.f32 %v480_v46, %v493_v14  ;;  %v353_v46 = vld [vmem:[#allocation3] sm:$0xff] }
 0x3cc   : > { %v496_v16 = vmul.f32 1.442695, %v495_v15 }
 0x3ce   : > { %1135 = vpow2.f32 %v496_v16 }
 0x3d1   : > { %v637_v18 = vpop.permute.xlu0 %636 }
 0x3d2   : > { %v639_v17 = vsub.f32 %v624_v52, %v637_v18  ;;  %v499_v52 = vld [vmem:[#allocation3 + $0x8] sm:$0xff] }
 0x3d4   : > { %v640_v19 = vmul.f32 1.442695, %v639_v17 }
 0x3d6   : > { %1137 = vpow2.f32 %v640_v19 }
 0x3d9   : > { %v773_v20 = vpop.permute.xlu1 %772 }
 0x3da   : > { %v775_v22 = vsub.f32 %v760_v58, %v773_v20 }
 0x3db   : > { %v1136_v25 = vpop.eup %1135 }
 0x3dc   : > { %v776_v26 = vmul.f32 1.442695, %v775_v22  ;;  %v501_v27 = vsel %vm337_vm4, %v1136_v25, 0.0  ;;  %v514_v30 = vpack.c.bf16 %v1136_v25, %v1136_v25 }
 0x3dd   : > { %502 = vadd.xlane.f32.xlu0 %v501_v27  ;;  %v524_v28 = vpop.permute.xlu1 %523  ;;  %v787_v27 = vld [vmem:[#allocation4 + $0x18] sm:$0xff] }
 0x3de   : > { %1139 = vpow2.f32 %v776_v26  ;;  %v529_v29 = vsel %vm372_vm5, %v524_v28, 0 }
 0x3df   : > { %1067 = vmatpush3.bf16.msra.mxu0 %v529_v29  ;;  %1141 = vpow2.f32 %v343_v38 }
 0x3e0   : > { %1078 = vmatprep.subr.bf16.mxu0 %v1181_v0  ;;  %1143 = vpow2.f32 %v488_v40 }
 0x3e1   : > { %v660_v31 = vpop.permute.xlu1 %659  ;;  %1145 = vpow2.f32 %v768_v43 }
 0x3e2   : > { %1069 = vmatmul.mubr.msk.bf16.vlgmr.msra.gmra.mxu0 %vm337_vm4, %v514_v30  ;;  %v665_v32 = vsel %vm372_vm5, %v660_v31, 0  ;;  %1147 = vpow2.f32 %v632_v44 }
 0x3e3   : > { %v1138_v33 = vpop.eup %1137  ;;  %1079 = vmatpush3.bf16.msra.mxu0 %v665_v32  ;;  %1080 = vmatprep.mubr.msk.bf16.mxu0 %vm1182_vm1, %v1181_v0 }
 0x3e4   : > { %v645_v34 = vsel %vm337_vm4, %v1138_v33, 0.0  ;;  %1090 = vmatprep.subr.bf16.mxu0 %v1181_v0  ;;  %v658_v36 = vpack.c.bf16 %v1138_v33, %v1138_v33 }
 0x3e5   : > { %646 = vadd.xlane.f32.xlu0 %v645_v34  ;;  %v796_v35 = vpop.permute.xlu1 %795 }
 0x3e6   : > { %v801_v37 = vsel %vm372_vm5, %v796_v35, 0 }
 0x3ea   : > { %1081 = vmatmul.mubr.msk.bf16.vlgmr.msra.gmra.mxu0 %vm337_vm4, %v658_v36 }
 0x3eb   : > { %v1140_v39 = vpop.eup %1139  ;;  %1091 = vmatpush3.bf16.msra.mxu0 %v801_v37  ;;  %1092 = vmatprep.mubr.msk.bf16.mxu0 %vm1182_vm1, %v1181_v0 }
 0x3ec   : > { %v781_v42 = vsel %vm337_vm4, %v1140_v39, 0.0  ;;  %v794_v45 = vpack.c.bf16 %v1140_v39, %v1140_v39  ;;  %v1142_v21 = vpop.eup %1141 }
 0x3ed   : > { %782 = vadd.xlane.f32.xlu1 %v781_v42  ;;  %v1144_v23 = vpop.eup %1143  ;;  %v354_v47 = vmul.f32 %v1142_v21, %v353_v46 }
 0x3ee   : > { %v1146_v24 = vpop.eup %1145  ;;  %v500_v53 = vmul.f32 %v1144_v23, %v499_v52 }
 0x3ef   : > { %v1148_v0 = vpop.eup %1147  ;;  %v780_v63 = vmul.f32 %v1146_v24, %v779_v61 }
 0x3f0   : > { %v644_v57 = vmul.f32 %v1148_v0, %v643_v56 }
 0x3f2   : > { %1093 = vmatmul.mubr.msk.bf16.vlgmr.msra.gmra.mxu0 %vm337_vm4, %v794_v45 }
 0x3fb   : > { %364 = vperm.xlu0 %1131, %v1142_v21  }
 0x3fe   : > { %510 = vperm.xlu1 %1132, %v1144_v23  }
 0x3ff   : > { %790 = vperm.xlu0 %1131, %v1146_v24  }
 0x402   : > { %654 = vperm.xlu1 %1132, %v1148_v0  }
 0x417   : > { %v357_v48 = vpop.xlane.xlu1 %356 }
 0x418   : > { %v358_v49 = vadd.f32 %v357_v48, %v354_v47 }
 0x41a   : > { %360 = vst.msk [vmem:[#allocation3] sm:$0xff] %vm265_vm2, %v358_v49 }
 0x421   : > { %v850_v50 = vld [vmem:[#allocation3] sm:$0xff] }
 0x422   : > { %1149 = vrcp.f32 %v850_v50 }
 0x42f   : > { %v1150_v51 = vpop.eup %1149 }
 0x430   : > { %854 = vperm.xlu1 %1132, %v1150_v51  }
 0x466   : > { %v503_v54 = vpop.xlane.xlu0 %502 }
 0x467   : > { %v504_v55 = vadd.f32 %v503_v54, %v500_v53 }
 0x469   : > { %505 = vst.msk [vmem:[#allocation3 + $0x8] sm:$0xff] %vm265_vm2, %v504_v55 }
 0x46e   : > { %v647_v58 = vpop.xlane.xlu0 %646 }
 0x46f   : > { %v648_v59 = vadd.f32 %v647_v58, %v644_v57 }
 0x470   : > { %v859_v60 = vld [vmem:[#allocation3 + $0x8] sm:$0xff] }
 0x471   : > { %649 = vst.msk [vmem:[#allocation3 + $0x10] sm:$0xff] %vm265_vm2, %v648_v59  ;;  %1151 = vrcp.f32 %v859_v60 }
 0x476   : > { %v783_v1 = vpop.xlane.xlu1 %782  ;;  %v365_v2 = vpop.permute.xlu0 %364 }
 0x477   : > { %v784_v3 = vadd.f32 %v783_v1, %v780_v63  ;;  %v367_v4 = vmul.f32 %v365_v2, %v361_v62 }
 0x478   : > { %v868_v5 = vld [vmem:[#allocation3 + $0x10] sm:$0xff] }
 0x479   : > { %785 = vst.msk [vmem:[#allocation3 + $0x18] sm:$0xff] %vm265_vm2, %v784_v3  ;;  %v416_v7 = vadd.f32 %v1329_v41, %v367_v4  ;;  %1153 = vrcp.f32 %v868_v5  ;;  %v651_v41 = vld [vmem:[#allocation4 + $0x10] sm:$0xff] }
 0x47a   : > { %v511_v12 = vpop.permute.xlu1 %510  ;;  %v791_v28 = vpop.permute.xlu0 %790 }
 0x47b   : > { %417 = vst.msk [vmem:[#allocation4] sm:$0xff] %vm274_vm0, %v416_v7  ;;  %v513_v13 = vmul.f32 %v511_v12, %v507_v11  ;;  %v793_v31 = vmul.f32 %v791_v28, %v787_v27 }
 0x47e   : > { %v1152_v8 = vpop.eup %1151  ;;  %v655_v18 = vpop.permute.xlu1 %654 }
 0x47f   : > { %863 = vperm.xlu0 %1131, %v1152_v8   ;;  %v657_v20 = vmul.f32 %v655_v18, %v651_v41 }
 0x480   : > { %v877_v6 = vld [vmem:[#allocation3 + $0x18] sm:$0xff] }
 0x481   : > { %1155 = vrcp.f32 %v877_v6 }
 0x482   : > { %v849_v24 = vld [vmem:[#allocation4] sm:$0xff] }
 0x486   : > { %v1154_v9 = vpop.eup %1153 }
 0x487   : > { %872 = vperm.xlu1 %1132, %v1154_v9  }
 0x48e   : > { %v1156_v10 = vpop.eup %1155 }
 0x48f   : > { %881 = vperm.xlu0 %1131, %v1156_v10  }
 0x4a2   : > { %v565_v14 = vpop.f32.mrf.mxu0 }
 0x4a3   : > { %v571_v15 = vadd.f32 %v565_v14, %v513_v13 }
 0x4a4   : > { %v1070_v16 = vpop.f32.mrf.mxu0 }
 0x4a5   : > { %572 = vst.msk [vmem:[#allocation4 + $0x8] sm:$0xff] %vm274_vm0, %v571_v15 }
 0x4a6   : > { %v568_v17 = vpop.f32.mrf.mxu0 }
 0x4a8   : > { %v1071_v19 = vpop.f32.mrf.mxu0 }
 0x4aa   : > { %v701_v22 = vpop.f32.mrf.mxu0 }
 0x4ab   : > { %v707_v25 = vadd.f32 %v701_v22, %v657_v20  ;;  %v855_v40 = vpop.permute.xlu1 %854 }
 0x4ac   : > { %v1082_v26 = vpop.f32.mrf.mxu0  ;;  %v858_v38 = vld [vmem:[#allocation4 + $0x8] sm:$0xff]  ;;  %v857_v46 = vmul.f32 %v855_v40, %v849_v24 }
 0x4ad   : > { %708 = vst.msk [vmem:[#allocation4 + $0x10] sm:$0xff] %vm274_vm0, %v707_v25 }
 0x4ae   : > { %v704_v29 = vpop.f32.mrf.mxu0 }
 0x4b0   : > { %v1083_v30 = vpop.f32.mrf.mxu0 }
 0x4b2   : > { %v837_v32 = vpop.f32.mrf.mxu0 }
 0x4b3   : > { %v843_v33 = vadd.f32 %v837_v32, %v793_v31 }
 0x4b4   : > { %v1094_v34 = vpop.f32.mrf.mxu0  ;;  %v867_v43 = vld [vmem:[#allocation4 + $0x10] sm:$0xff] }
 0x4b5   : > { %844 = vst.msk [vmem:[#allocation4 + $0x18] sm:$0xff] %vm274_vm0, %v843_v33 }
 0x4b6   : > { %v840_v35 = vpop.f32.mrf.mxu0 }
 0x4b8   : > { %v1095_v36 = vpop.f32.mrf.mxu0 }
 0x4bc   : > { %v876_v21 = vld [vmem:[#allocation4 + $0x18] sm:$0xff] }
 0x4fa   : > { %v864_v37 = vpop.permute.xlu0 %863 }
 0x4fb   : > { %v866_v39 = vmul.f32 %v864_v37, %v858_v38 }
 0x4fd   : > { %886 = vrot.lane.b32.xlu1 %v866_v39, %s1189_s30 }
 0x502   : > { %v873_v42 = vpop.permute.xlu1 %872 }
 0x503   : > { %v875_v44 = vmul.f32 %v873_v42, %v867_v43 }
 0x505   : > { %890 = vrot.lane.b32.xlu0 %v875_v44, %s1190_s4 }
 0x50a   : > { %v882_v45 = vpop.permute.xlu0 %881 }
 0x50b   : > { %v884_v23 = vmul.f32 %v882_v45, %v876_v21 }
 0x50d   : > { %894 = vrot.lane.b32.xlu1 %v884_v23, %s1191_s5 }
 0x56f   : > { %v887_v0 = vpop.permute.xlu1 %886 }
 0x570   : > { %v897_v48 = vsel %vm274_vm0, %v857_v46, %v887_v0 }
 0x577   : > { %v891_v47 = vpop.permute.xlu0 %890 }
 0x578   : > { %v899_v49 = vsel %vm898_vm6, %v897_v48, %v891_v47 }
 0x57f   : > { %v895_v50 = vpop.permute.xlu1 %894 }
 0x580   : > { %v901_v51 = vsel %vm900_vm7, %v899_v49, %v895_v50 }
 0x581   : > { %v902_v52 = vpack.c.bf16 %v901_v51, %v901_v51 }
 0x583   : > { %904 = vst.msk [vmem:[%s259_s8] sm:$0xf] %vm903_vm8, %v902_v52 }
 0x584 PF: > { %s13_s14 = sadd.s32 1, %s1179_s14   ;;  %s1396_s12 = smov %s1175_s13 }
 0x585   : > { %p10_p5 = scmp.ge.s32.totalorder %s13_s14, 4   ;;  %s1397_s13 = smov %s1399_s15 }
 0x587   :  { %12 = sbr.rel (!%p10_p5) target bundleno = 2 (0x2), region = 85 }

// kernel: vlm_forward.73
= control target key start
LH: loop header
LB: loop body
LE: loop exit
PB: predicated region body
PF: predicated region fallthrough
CT: control target
= control target key end

     0   :  { %v172_v1 = vmov 0.0   ;;  %vm173_vm0 = vmmov 0   ;;  %s212_s0 = inlined_call_operand.vmem [shape: bf16[16,32], index: 0, kind: input, shape index: {}]   ;;  %s213_s1 = inlined_call_operand.vmem [shape: bf16[32,128], index: 1, kind: input, shape index: {}]   ;;  %s214_s2 = inlined_call_operand.vmem [shape: bf16[1,128], index: 2, kind: input, shape index: {}]   ;;  %s215_s3 = inlined_call_operand.hbm [shape: f32[16,128], index: 3, kind: output, shape index: {}]  }
   0x1   :  { %v147_v0 = vld [vmem:[%s213_s1 + $0x8] sm:$0xff]   ;;  %134 = vmatprep.subr.bf16.mxu0 %v172_v1  ;;  %v148_v2 = vld [vmem:[%s213_s1] sm:$0xff]   ;;  %138 = vmatprep.mubr.msk.bf16.mxu0 %vm173_vm0, %v172_v1 }
   0x2   :  { %135 = vmatpush3.bf16.msra.mxu0 %v147_v0 }
   0x3   :  { %136 = vmatprep.subr.bf16.mxu0 %v172_v1 }
   0x4   :  { %8 = vsyncpa [#allocation4], 0  ;;  %v149_v3 = vld [vmem:[%s212_s0] sm:$0xff]   ;;  %vm47_vm1 = vcmask 261120   ;;  %v103_v4 = vlaneseq  ;;  %s174_s1 = smov [#allocation3]  }
   0x5   :  { %v101_v6 = vld [vmem:[%s214_s2] sm:$0x1]  ;;  %s116_s20 = sshll.u32 %s174_s1, 4  ;;  %s117_s20 = int_to_ptr.vmem [resolvable:$true] %s116_s20 }
   0x6   :  { %137 = vmatpush3.bf16.msra.mxu0 %v148_v2  ;;  %v104_v5 = vshrl.u32 %v103_v4, 7  ;;  %v102_v7 = vunpack.c.l.bf16 %v101_v6  ;;  %s150_s0 = scalar_lea.vmem %s117_s20, 256  ;;  %p155_p1 = scmp.lt.s32.totalorder %s117_s20, %s117_s20 }
   0x7   :  { %p151_p0 = scmp.ne.s32.totalorder %s117_s20, %s150_s0  ;;  %p156_p2 = scmp.lt.s32.totalorder %s150_s0, %s150_s0 }
   0x8   :  { %v105_v8 = vsub.s32 0, %v104_v5 }
   0x9   :  { %139 = vmatmul.mubr.msk.bf16.vlgmr.msra.gmra.mxu0 %vm47_vm1, %v149_v3  ;;  %p157_p3 = por %p156_p2, %p155_p1 }
   0xa   :  { %v106_v9 = vrot.slane %v102_v7, %v105_v8 }
   0xb   :  { %p158_p4 = pnand %p157_p3, %p151_p0 }
  0xc9   :  { %v85_v10 = vpop.f32.mrf.mxu0 }
  0xca   :  { %v107_v11 = vadd.f32 %v106_v9, %v85_v10 }
  0xcb   :  { %v140_v12 = vpop.f32.mrf.mxu0 }
  0xcc   :  { %109 = vst [vmem:[#allocation3] sm:$0xff] %v107_v11 }
  0xcd   :  { %v88_v13 = vpop.f32.mrf.mxu0 }
  0xce   :  { %v108_v14 = vadd.f32 %v106_v9, %v88_v13 }
  0xcf   :  { %v141_v15 = vpop.f32.mrf.mxu0 }
  0xd0   :  { %110 = vst [vmem:[#allocation3 + $0x8] sm:$0xff] %v108_v14 }
  0xd1   :  { %161 = shalt.err (!%p158_p4)
}
  0xd2   :  { %s175_s2 = smov 128   ;;  %s176_s21 = smov 8  }
  0xd3   :  { %122 = dma.vmem_to_hbm [thread:$0]  %s117_s20, 256, %s215_s3, [#allocation4], %s175_s2, %s175_s2, %s176_s21  }
  0xd4   :  { %170 = dma.done.wait [#allocation4], 256  }
  0xd5   :  { %171 = vsyncadd [#allocation4], 4294967040 }
  0xd6   :  { %126 = vsyncpa [#allocation4], 1 }

// kernel: vlm_forward.59
= control target key start
LH: loop header
LB: loop body
LE: loop exit
PB: predicated region body
PF: predicated region fallthrough
CT: control target
= control target key end

     0   :  { %s1604_s15 = smov 0   ;;  %s1606_s16 = smov 0   ;;  %s1759_s0 = inlined_call_operand.vmem [shape: bf16[16,2048], index: 0, kind: input, shape index: {}]   ;;  %s1760_s1 = inlined_call_operand.vmem [shape: bf16[2048,32], index: 1, kind: input, shape index: {}]   ;;  %s1761_s2 = inlined_call_operand.vmem [shape: bf16[1,32], index: 2, kind: input, shape index: {}]   ;;  %s1762_s3 = inlined_call_operand.vmem [shape: bf16[16,32], index: 3, kind: input, shape index: {}]   ;;  %s1763_s4 = inlined_call_operand.vmem [shape: bf16[16,32], index: 4, kind: output, shape index: {}]  }
   0x1   :  { %s1608_s17 = smov 0   ;;  %s1610_s18 = smov 0  }
   0x2   :  { %s1612_s19 = smov 0  }
   0x3 LB: > { %s26_s20 = sadd.s32 1, %s1572_s18  ;;  %p49_p1 = scmp.ne.s32.totalorder %s1564_s16, %s1560_s15  ;;  %s1576_s19 = sphi %s1612_s19, %s14_s19   ;;  %s1572_s18 = sphi %s1610_s18, %s1767_s18   ;;  %s1568_s17 = sphi %s1608_s17, %s1766_s17   ;;  %s1564_s16 = sphi %s1606_s16, %s1765_s16   ;;  %s1560_s15 = sphi %s1604_s15, %s1764_s15  }
   0x4   : > { %p27_p0 = scmp.ge.s32.totalorder %s26_s20, 2  ;;  %p50_p2 = scmp.eq.s32.totalorder %s1576_s19, 0 }
   0x5   : > { %s42_s22 = sadd.s32 1, %s1564_s16  ;;  %p1250_p5 = scmp.ge.s32.totalorder %s1576_s19, 2 }
   0x6   : > { %s1769_s20 = smov (%p27_p0, %s26_s20), 0  ;;  %p51_p3 = por %p50_p2, %p49_p1 }
   0x7   : > { %s38_s21 = ssub.s32 %s1572_s18, %s1769_s20  ;;  %203 = sbr.rel (%p1250_p5) target bundleno = 20 (0x14), region = 24 }
   0x8   : > { %p40_p4 = scmp.eq.s32.totalorder %s38_s21, 0 }
   0xa   : > { %s1639_s23 = scalar_select %p40_p4, %s1564_s16, %s42_s22  }
   0xc   : > { %206 = sbr.rel (!%p51_p3) target bundleno = 20 (0x14), region = 28  ;;  %s208_s24 = sand.u32 (%p51_p3), 1, %s1564_s16  }
   0xd   : > { %s1338_s25 = sshll.u32 (%p51_p3), %s1572_s18, 5  ;;  %s1251_s26 = sshll.u32 (%p51_p3), %s208_s24, 6 }
   0xe   : > { %s216_s29 = scalar_lea.vmem (%p51_p3), %s1759_s0, %s1338_s25  ;;  %s210_s30 = scalar_lea.vmem (%p51_p3), [#allocation3], %s1251_s26 }
   0xf   : > { %v229_v0 = vld [vmem:[%s216_s29] sm:$0xff] (%p51_p3)  ;;  %v231_v1 = vld [vmem:[%s216_s29 + $0x8] sm:$0xff] (%p51_p3)  ;;  %v233_v2 = vld [vmem:[%s216_s29 + $0x10] sm:$0xff] (%p51_p3) }
  0x10   : > { %230 = vst [vmem:[%s210_s30] sm:$0xff] (%p51_p3), %v229_v0  ;;  %232 = vst [vmem:[%s210_s30 + $0x8] sm:$0xff] (%p51_p3), %v231_v1  ;;  %v235_v3 = vld [vmem:[%s216_s29 + $0x18] sm:$0xff] (%p51_p3)  ;;  %v237_v4 = vld [vmem:[%s216_s29 + $0x40] sm:$0xff] (%p51_p3) }
  0x11   : > { %234 = vst [vmem:[%s210_s30 + $0x10] sm:$0xff] %v233_v2  ;;  %v239_v5 = vld [vmem:[%s216_s29 + $0x48] sm:$0xff]  ;;  %236 = vst [vmem:[%s210_s30 + $0x18] sm:$0xff] %v235_v3  ;;  %v241_v6 = vld [vmem:[%s216_s29 + $0x50] sm:$0xff] }
  0x12   : > { %238 = vst [vmem:[%s210_s30 + $0x20] sm:$0xff] %v237_v4  ;;  %240 = vst [vmem:[%s210_s30 + $0x28] sm:$0xff] %v239_v5  ;;  %v243_v7 = vld [vmem:[%s216_s29 + $0x58] sm:$0xff] }
  0x13   : > { %242 = vst [vmem:[%s210_s30 + $0x30] sm:$0xff] %v241_v6  ;;  %244 = vst [vmem:[%s210_s30 + $0x38] sm:$0xff] %v243_v7 }
  0x14 PF: > { %p1254_p6 = scmp.ge.s32.totalorder %s1576_s19, 1  ;;  %p261_p7 = scmp.lt.s32.totalorder %s1576_s19, 3 }
  0x16   : > { %p262_p8 = pnand %p1254_p6, %p261_p7 }
  0x17   : > { %s268_s5 = sand.u32 (!%p262_p8), 1, %s1560_s15   ;;  %s1256_s6 = sshll.u32 (!%p262_p8), %s1568_s17, 7 }
  0x18   : > { %265 = sbr.rel (%p262_p8) target bundleno = 325 (0x145), region = 55  ;;  %s1255_s7 = sshll.u32 (!%p262_p8), %s268_s5, 6 }
  0x19   : > { %p318_p9 = scmp.lt.s32.totalorder (!%p262_p8), %s1256_s6, 255  ;;  %s1656_s12 = scalar_lea.vmem (!%p262_p8), [#allocation3], %s1255_s7 }
  0x1a   : > { %p1258_p10 = scmp.ne.s32.totalorder (!%p262_p8), %s1568_s17, 0 }
  0x1d   : > { %s1771_s6 = smov (!%p318_p9, %s1256_s6), 255  ;;  %351 = sbr.rel (%p1258_p10) target bundleno = 36 (0x24), region = 63 }
  0x1e   : > { %s1257_s8 = sshll.u32 %s1771_s6, 2 }
  0x1f   : > { %s1654_s11 = scalar_lea.vmem %s1760_s1, %s1257_s8 }
  0x22   : > { %vm352_vm0 = vcmask 261120   ;;  %v1578_v8 = vmov 0.0  }
  0x23   : > { %353 = vst.msk [vmem:[#allocation2] sm:$0xff] %vm352_vm0, %v1578_v8  ;;  %354 = vst.msk [vmem:[#allocation2 + $0x8] sm:$0xff] %vm352_vm0, %v1578_v8 }
  0x24 PF: > { %v1474_v9 = vld [vmem:[%s1654_s11 + $0x78] sm:$0xff]   ;;  %v1478_v13 = vld [vmem:[%s1654_s11 + $0x70] sm:$0xff]   ;;  %v1482_v17 = vld [vmem:[%s1654_s11 + $0x68] sm:$0xff]   ;;  %vm1083_vm1 = vcmask 261120   ;;  %p1331_p11 = scmp.ne.s32.totalorder %s1568_s17, 1 }
  0x25   : > { %v1475_v10 = vld [vmem:[%s1654_s11 + $0xf8] sm:$0xff]   ;;  %1345 = vmatprep.subr.bf16.mxu0 %v1474_v9  ;;  %v1479_v14 = vld [vmem:[%s1654_s11 + $0xf0] sm:$0xff]   ;;  %v1483_v18 = vld [vmem:[%s1654_s11 + $0xe8] sm:$0xff]  }
  0x26   : > { %v1476_v11 = vld [vmem:[%s1654_s11 + $0x38] sm:$0xff]   ;;  %1367 = vmatprep.subr.bf16.mxu1 %v1475_v10  ;;  %v1480_v15 = vld [vmem:[%s1654_s11 + $0x30] sm:$0xff]   ;;  %v1484_v19 = vld [vmem:[%s1654_s11 + $0x28] sm:$0xff]  }
  0x27   : > { %v1477_v12 = vld [vmem:[%s1654_s11 + $0xb8] sm:$0xff]   ;;  %1346 = vmatpush3.bf16.msra.mxu0 %v1476_v11  ;;  %v1481_v16 = vld [vmem:[%s1654_s11 + $0xb0] sm:$0xff]   ;;  %v1485_v20 = vld [vmem:[%s1654_s11 + $0xa8] sm:$0xff]  }
  0x28   : > { %1368 = vmatpush3.bf16.msra.mxu1 %v1477_v12  ;;  %1347 = vmatprep.subr.bf16.mxu0 %v1478_v13  ;;  %v1486_v21 = vld [vmem:[%s1654_s11 + $0x60] sm:$0xff]   ;;  %v1490_v25 = vld [vmem:[%s1654_s11 + $0x58] sm:$0xff]   ;;  %v1494_v29 = vld [vmem:[%s1654_s11 + $0x50] sm:$0xff]  }
  0x29   : > { %1369 = vmatprep.subr.bf16.mxu1 %v1479_v14  ;;  %v1487_v22 = vld [vmem:[%s1654_s11 + $0xe0] sm:$0xff]   ;;  %v1491_v26 = vld [vmem:[%s1654_s11 + $0xd8] sm:$0xff]   ;;  %v1495_v30 = vld [vmem:[%s1654_s11 + $0xd0] sm:$0xff]  }
  0x2a   : > { %v1488_v23 = vld [vmem:[%s1654_s11 + $0x20] sm:$0xff]   ;;  %v1492_v27 = vld [vmem:[%s1654_s11 + $0x18] sm:$0xff]   ;;  %v1496_v31 = vld [vmem:[%s1654_s11 + $0x10] sm:$0xff]  }
  0x2b   : > { %1348 = vmatpush3.bf16.msra.mxu0 %v1480_v15  ;;  %v1489_v24 = vld [vmem:[%s1654_s11 + $0xa0] sm:$0xff]   ;;  %v1493_v28 = vld [vmem:[%s1654_s11 + $0x98] sm:$0xff]   ;;  %v1497_v32 = vld [vmem:[%s1654_s11 + $0x90] sm:$0xff]  }
  0x2c   : > { %1370 = vmatpush3.bf16.msra.mxu1 %v1481_v16  ;;  %1349 = vmatprep.subr.bf16.mxu0 %v1482_v17  ;;  %v1498_v33 = vld [vmem:[%s1654_s11 + $0x48] sm:$0xff]   ;;  %v1502_v37 = vld [vmem:[%s1654_s11 + $0x40] sm:$0xff]   ;;  %v355_v41 = vld [vmem:[%s1656_s12] sm:$0xff] }
  0x2d   : > { %1371 = vmatprep.subr.bf16.mxu1 %v1483_v18  ;;  %v1499_v34 = vld [vmem:[%s1654_s11 + $0xc8] sm:$0xff]   ;;  %v1503_v38 = vld [vmem:[%s1654_s11 + $0xc0] sm:$0xff]   ;;  %v359_v42 = vld [vmem:[%s1656_s12 + $0x20] sm:$0xff] }
  0x2e   : > { %v1500_v35 = vld [vmem:[%s1654_s11 + $0x8] sm:$0xff]   ;;  %v1504_v39 = vld [vmem:[%s1654_s11] sm:$0xff]   ;;  %v356_v43 = vld [vmem:[%s1656_s12 + $0x8] sm:$0xff]  ;;  %v1259_v44 = vcombine.low %v355_v41, %v359_v42  ;;  %v1260_v45 = vcombine.high %v355_v41, %v359_v42 }
  0x2f   : > { %1350 = vmatpush3.bf16.msra.mxu0 %v1484_v19  ;;  %v1501_v36 = vld [vmem:[%s1654_s11 + $0x88] sm:$0xff]   ;;  %v1505_v40 = vld [vmem:[%s1654_s11 + $0x80] sm:$0xff]   ;;  %v360_v46 = vld [vmem:[%s1656_s12 + $0x28] sm:$0xff] }
  0x30   : > { %1372 = vmatpush3.bf16.msra.mxu1 %v1485_v20  ;;  %1351 = vmatprep.subr.bf16.mxu0 %v1486_v21  ;;  %v1261_v47 = vcombine.low %v356_v43, %v360_v46  ;;  %v1262_v48 = vcombine.high %v356_v43, %v360_v46  ;;  %v1506_v49 = vld [vmem:[%s1654_s11 + $0x178] sm:$0xff]   ;;  %v1510_v53 = vld [vmem:[%s1654_s11 + $0x170] sm:$0xff]   ;;  %v1514_v57 = vld [vmem:[%s1654_s11 + $0x168] sm:$0xff]  }
  0x31   : > { %1373 = vmatprep.subr.bf16.mxu1 %v1487_v22  ;;  %949 = vmatprep.mubr.bf16.mxu0 %v1260_v45  ;;  %v1507_v50 = vld [vmem:[%s1654_s11 + $0x1f8] sm:$0xff]   ;;  %v1511_v54 = vld [vmem:[%s1654_s11 + $0x1f0] sm:$0xff]   ;;  %v1515_v58 = vld [vmem:[%s1654_s11 + $0x1e8] sm:$0xff]  }
  0x32   : > { %990 = vmatprep.mubr.bf16.mxu1 %v1262_v48  ;;  %v1508_v51 = vld [vmem:[%s1654_s11 + $0x138] sm:$0xff]   ;;  %v1512_v55 = vld [vmem:[%s1654_s11 + $0x130] sm:$0xff]   ;;  %v1516_v59 = vld [vmem:[%s1654_s11 + $0x128] sm:$0xff]  }
  0x33   : > { %1352 = vmatpush3.bf16.msra.mxu0 %v1488_v23  ;;  %v1509_v52 = vld [vmem:[%s1654_s11 + $0x1b8] sm:$0xff]   ;;  %v1513_v56 = vld [vmem:[%s1654_s11 + $0x1b0] sm:$0xff]   ;;  %v1517_v60 = vld [vmem:[%s1654_s11 + $0x1a8] sm:$0xff]  }
  0x34   : > { %1374 = vmatpush3.bf16.msra.mxu1 %v1489_v24  ;;  %1353 = vmatprep.subr.bf16.mxu0 %v1490_v25  ;;  %v1518_v61 = vld [vmem:[%s1654_s11 + $0x160] sm:$0xff]   ;;  %v1522_v1 = vld [vmem:[%s1654_s11 + $0x158] sm:$0xff]   ;;  %v1526_v5 = vld [vmem:[%s1654_s11 + $0x150] sm:$0xff]  }
  0x35   : > { %1375 = vmatprep.subr.bf16.mxu1 %v1491_v26  ;;  %v1519_v62 = vld [vmem:[%s1654_s11 + $0x1e0] sm:$0xff]   ;;  %v1523_v2 = vld [vmem:[%s1654_s11 + $0x1d8] sm:$0xff]   ;;  %v1527_v6 = vld [vmem:[%s1654_s11 + $0x1d0] sm:$0xff]  }
  0x36   : > { %v1520_v63 = vld [vmem:[%s1654_s11 + $0x120] sm:$0xff]   ;;  %v1524_v3 = vld [vmem:[%s1654_s11 + $0x118] sm:$0xff]   ;;  %v1528_v7 = vld [vmem:[%s1654_s11 + $0x110] sm:$0xff]  }
  0x37   : > { %1354 = vmatpush3.bf16.msra.mxu0 %v1492_v27  ;;  %v1521_v0 = vld [vmem:[%s1654_s11 + $0x1a0] sm:$0xff]   ;;  %v1525_v4 = vld [vmem:[%s1654_s11 + $0x198] sm:$0xff]   ;;  %v1529_v8 = vld [vmem:[%s1654_s11 + $0x190] sm:$0xff]  }
  0x38   : > { %1376 = vmatpush3.bf16.msra.mxu1 %v1493_v28  ;;  %1355 = vmatprep.subr.bf16.mxu0 %v1494_v29  ;;  %v1530_v9 = vld [vmem:[%s1654_s11 + $0x148] sm:$0xff]   ;;  %v1534_v13 = vld [vmem:[%s1654_s11 + $0x140] sm:$0xff]  }
  0x39   : > { %1377 = vmatprep.subr.bf16.mxu1 %v1495_v30  ;;  %v1531_v10 = vld [vmem:[%s1654_s11 + $0x1c8] sm:$0xff]   ;;  %v1535_v14 = vld [vmem:[%s1654_s11 + $0x1c0] sm:$0xff]  }
  0x3a   : > { %v1532_v11 = vld [vmem:[%s1654_s11 + $0x108] sm:$0xff]   ;;  %v1536_v15 = vld [vmem:[%s1654_s11 + $0x100] sm:$0xff]  }
  0x3b   : > { %1356 = vmatpush3.bf16.msra.mxu0 %v1496_v31  ;;  %v1533_v12 = vld [vmem:[%s1654_s11 + $0x188] sm:$0xff]   ;;  %v1537_v16 = vld [vmem:[%s1654_s11 + $0x180] sm:$0xff]  }
  0x3c   : > { %1378 = vmatpush3.bf16.msra.mxu1 %v1497_v32  ;;  %1357 = vmatprep.subr.bf16.mxu0 %v1498_v33  ;;  %v357_v17 = vld [vmem:[%s1656_s12 + $0x10] sm:$0xff]  ;;  %v358_v21 = vld [vmem:[%s1656_s12 + $0x18] sm:$0xff] }
  0x3d   : > { %1379 = vmatprep.subr.bf16.mxu1 %v1499_v34  ;;  %v361_v18 = vld [vmem:[%s1656_s12 + $0x30] sm:$0xff]  ;;  %v362_v22 = vld [vmem:[%s1656_s12 + $0x38] sm:$0xff] }
  0x3e   : > { %v1263_v19 = vcombine.low %v357_v17, %v361_v18  ;;  %v1264_v20 = vcombine.high %v357_v17, %v361_v18  ;;  %v1265_v23 = vcombine.low %v358_v21, %v362_v22  ;;  %v1266_v24 = vcombine.high %v358_v21, %v362_v22 }
  0x3f   : > { %1358 = vmatpush3.bf16.msra.mxu0 %v1500_v35 }
  0x40   : > { %1380 = vmatpush3.bf16.msra.mxu1 %v1501_v36  ;;  %1359 = vmatprep.subr.bf16.mxu0 %v1502_v37 }
  0x41   : > { %1381 = vmatprep.subr.bf16.mxu1 %v1503_v38 }
  0x43   : > { %1360 = vmatpush3.bf16.msra.mxu0 %v1504_v39 }
  0x44   : > { %1382 = vmatpush3.bf16.msra.mxu1 %v1505_v40  ;;  %1389 = vmatprep.subr.bf16.mxu0 %v1506_v49 }
  0x45   : > { %1411 = vmatprep.subr.bf16.mxu1 %v1507_v50 }
  0x46   : > { %950 = vmatmul.mubr.bf16.vlgmr.msra.gmra.mxu0 %v1259_v44 }
  0x47   : > { %991 = vmatmul.mubr.bf16.vlgmr.msra.gmra.mxu1 %v1261_v47  ;;  %1390 = vmatpush3.bf16.msra.mxu0 %v1508_v51  ;;  %v363_v47 = vld [vmem:[#allocation2] sm:$0xff] }
  0x48   : > { %1412 = vmatpush3.bf16.msra.mxu1 %v1509_v52  ;;  %1391 = vmatprep.subr.bf16.mxu0 %v1510_v53 }
  0x49   : > { %1413 = vmatprep.subr.bf16.mxu1 %v1511_v54  ;;  %1031 = vmatprep.mubr.bf16.mxu0 %v1264_v20 }
  0x4a   : > { %1072 = vmatprep.mubr.bf16.mxu1 %v1266_v24 }
  0x4b   : > { %1392 = vmatpush3.bf16.msra.mxu0 %v1512_v55 }
  0x4c   : > { %1414 = vmatpush3.bf16.msra.mxu1 %v1513_v56  ;;  %1393 = vmatprep.subr.bf16.mxu0 %v1514_v57  ;;  %v364_v56 = vld [vmem:[#allocation2 + $0x8] sm:$0xff] }
  0x4d   : > { %1415 = vmatprep.subr.bf16.mxu1 %v1515_v58 }
  0x4f   : > { %1394 = vmatpush3.bf16.msra.mxu0 %v1516_v59 }
  0x50   : > { %1416 = vmatpush3.bf16.msra.mxu1 %v1517_v60  ;;  %1395 = vmatprep.subr.bf16.mxu0 %v1518_v61 }
  0x51   : > { %1417 = vmatprep.subr.bf16.mxu1 %v1519_v62 }
  0x53   : > { %1396 = vmatpush3.bf16.msra.mxu0 %v1520_v63 }
  0x54   : > { %1418 = vmatpush3.bf16.msra.mxu1 %v1521_v0  ;;  %1397 = vmatprep.subr.bf16.mxu0 %v1522_v1 }
  0x55   : > { %1419 = vmatprep.subr.bf16.mxu1 %v1523_v2 }
  0x57   : > { %1398 = vmatpush3.bf16.msra.mxu0 %v1524_v3 }
  0x58   : > { %1420 = vmatpush3.bf16.msra.mxu1 %v1525_v4  ;;  %1399 = vmatprep.subr.bf16.mxu0 %v1526_v5 }
  0x59   : > { %1421 = vmatprep.subr.bf16.mxu1 %v1527_v6 }
  0x5b   : > { %1400 = vmatpush3.bf16.msra.mxu0 %v1528_v7 }
  0x5c   : > { %1422 = vmatpush3.bf16.msra.mxu1 %v1529_v8  ;;  %1401 = vmatprep.subr.bf16.mxu0 %v1530_v9 }
  0x5d   : > { %1423 = vmatprep.subr.bf16.mxu1 %v1531_v10 }
  0x5f   : > { %1402 = vmatpush3.bf16.msra.mxu0 %v1532_v11 }
  0x60   : > { %1424 = vmatpush3.bf16.msra.mxu1 %v1533_v12  ;;  %1403 = vmatprep.subr.bf16.mxu0 %v1534_v13 }
  0x61   : > { %1425 = vmatprep.subr.bf16.mxu1 %v1535_v14 }
  0x63   : > { %1404 = vmatpush3.bf16.msra.mxu0 %v1536_v15 }
  0x64   : > { %1426 = vmatpush3.bf16.msra.mxu1 %v1537_v16 }
  0x66   : > { %1032 = vmatmul.mubr.bf16.vlgmr.msra.gmra.mxu0 %v1263_v19 }
  0x67   : > { %1073 = vmatmul.mubr.bf16.vlgmr.msra.gmra.mxu1 %v1265_v23 }
 0x106   : > { %v1361_v25 = vpop.f32.mrf.mxu0 }
 0x107   : > { %v1383_v26 = vpop.f32.mrf.mxu1 }
 0x108   : > { %v1362_v27 = vpop.f32.mrf.mxu0 }
 0x109   : > { %v1384_v28 = vpop.f32.mrf.mxu1  ;;  %v1363_v32 = vadd.f32 %v1362_v27, %v1361_v25 }
 0x10a   : > { %v1364_v29 = vpop.f32.mrf.mxu0  ;;  %v1385_v33 = vadd.f32 %v1384_v28, %v1383_v26 }
 0x10b   : > { %v1386_v30 = vpop.f32.mrf.mxu1 }
 0x10c   : > { %v1365_v31 = vpop.f32.mrf.mxu0  ;;  %v993_v38 = vadd.f32 %v1385_v33, %v1363_v32 }
 0x10d   : > { %v1387_v34 = vpop.f32.mrf.mxu1  ;;  %v1366_v39 = vadd.f32 %v1365_v31, %v1364_v29 }
 0x10e   : > { %v1388_v40 = vadd.f32 %v1387_v34, %v1386_v30 }
 0x110   : > { %v996_v49 = vadd.f32 %v1388_v40, %v1366_v39 }
 0x126   : > { %v1405_v35 = vpop.f32.mrf.mxu0 }
 0x127   : > { %v1427_v36 = vpop.f32.mrf.mxu1 }
 0x128   : > { %v1406_v37 = vpop.f32.mrf.mxu0 }
 0x129   : > { %v1407_v41 = vadd.f32 %v1406_v37, %v1405_v35  ;;  %v1428_v42 = vpop.f32.mrf.mxu1 }
 0x12a   : > { %v1408_v43 = vpop.f32.mrf.mxu0  ;;  %v1429_v45 = vadd.f32 %v1428_v42, %v1427_v36 }
 0x12b   : > { %v1034_v44 = vadd.f32 %v1407_v41, %v993_v38  ;;  %v1430_v46 = vpop.f32.mrf.mxu1 }
 0x12c   : > { %v1409_v48 = vpop.f32.mrf.mxu0 }
 0x12d   : > { %v1075_v50 = vadd.f32 %v1429_v45, %v1034_v44  ;;  %v1410_v51 = vadd.f32 %v1409_v48, %v1408_v43  ;;  %v1431_v52 = vpop.f32.mrf.mxu1 }
 0x12e   : > { %v1432_v55 = vadd.f32 %v1431_v52, %v1430_v46 }
 0x12f   : > { %v1081_v53 = vadd.f32 %v1075_v50, %v363_v47  ;;  %v1037_v54 = vadd.f32 %v1410_v51, %v996_v49 }
 0x131   : > { %1084 = vst.msk [vmem:[#allocation2] sm:$0xff] %vm1083_vm1, %v1081_v53  ;;  %v1078_v57 = vadd.f32 %v1432_v55, %v1037_v54  ;;  %1089 = sbr.rel (%p1331_p11) target bundleno = 325 (0x145), region = 67 }
 0x133   : > { %v1082_v58 = vadd.f32 %v1078_v57, %v364_v56 }
 0x135   : > { %1085 = vst.msk [vmem:[#allocation2 + $0x8] sm:$0xff] %vm1083_vm1, %v1082_v58 }
 0x136   : > { %v1092_v59 = vld [vmem:[%s1761_s2] sm:$0x1]  ;;  %v1094_v60 = vlaneseq  ;;  %vm1114_vm2 = vcmask 257024  }
 0x137   : > { %v1093_v61 = vunpack.c.l.bf16 %v1092_v59  ;;  %v1342_v63 = vld [vmem:[%s1762_s3] sm:$0xff]  }
 0x138   : > { %v1095_v62 = vshrl.u32 %v1094_v60, 7  ;;  %v1090_v1 = vld [vmem:[#allocation2] sm:$0xff]  ;;  %v1343_v4 = vunpack.c.l.bf16 %v1342_v63  ;;  %v1344_v5 = vunpack.c.h.bf16 %v1342_v63 }
 0x13a   : > { %v1096_v0 = vsub.s32 0, %v1095_v62 }
 0x13c   : > { %v1091_v2 = vld [vmem:[#allocation2 + $0x8] sm:$0xff]  ;;  %v1097_v3 = vrot.slane %v1093_v61, %v1096_v0 }
 0x13e   : > { %v1098_v6 = vadd.f32 %v1097_v3, %v1090_v1  ;;  %v1099_v7 = vadd.f32 %v1097_v3, %v1091_v2 }
 0x140   : > { %v1104_v8 = vadd.f32 %v1343_v4, %v1098_v6  ;;  %v1105_v9 = vadd.f32 %v1344_v5, %v1099_v7 }
 0x142   : > { %v1339_v10 = vpack.c.bf16 %v1104_v8, %v1104_v8  ;;  %v1340_v11 = vpack.c.bf16 %v1105_v9, %v1105_v9 }
 0x144   : > { %1115 = vst.msk [vmem:[%s1763_s4] sm:$0xf] %vm1114_vm2, %v1339_v10  ;;  %1116 = vst.msk [vmem:[%s1763_s4 + $0x4] sm:$0xf] %vm1114_vm2, %v1340_v11 }
 0x145 PF: > { %s14_s19 = sadd.s32 1, %s1576_s19   ;;  %s1764_s15 = smov %s1564_s16 }
 0x146   : > { %p11_p12 = scmp.ge.s32.totalorder %s14_s19, 4   ;;  %s1765_s16 = smov %s1639_s23 }
 0x147   : > { %s1766_s17 = smov %s1572_s18  ;;  %s1767_s18 = smov %s1769_s20 }
 0x148   :  { %13 = sbr.rel (!%p11_p12) target bundleno = 3 (0x3), region = 111 }

</bundles_post_ra>
